<compile_context>
chip_gen: v7x
topology: tpu7x:2x2x1
jax: 0.10.0
libtpu: 0.0.40
codegen_flags: <defaults>
</compile_context>

<pallas_src>
import jax
import jax.numpy as jnp
from jax import lax
from jax.experimental import pallas as pl
from jax.experimental.pallas import tpu as pltpu

# ---------------- config (small, TPU-friendly BERT) ----------------
B = 2          # batch ("number of texts")
S = 128        # padded sequence length (mirrors max_length=128)
H = 128        # hidden size
NH = 4         # attention heads
HD = H // NH   # head dim
F = 512        # FFN intermediate size (4*H, BERT convention)
V = 64         # vocab size (synthetic)
P = 128        # max position embeddings
L = 2          # number of encoder layers
LN_EPS = 1e-12
MASK_NEG = -1e9

# row indices of the packed per-layer vector array (L, 9, H)
_BQ, _BK, _BV, _BO, _G1, _B1, _BF, _G2, _B2 = range(9)


# ---------------- in-kernel helpers ----------------
def _layernorm(x, g, b):
    mu = jnp.mean(x, axis=-1, keepdims=True)
    var = jnp.mean((x - mu) ** 2, axis=-1, keepdims=True)
    return (x - mu) * lax.rsqrt(var + LN_EPS) * g + b


def _gelu(x):
    # TODO(synk): erf-GELU (HF BERT) approximated by tanh-GELU (EUP-friendly).
    return jax.nn.gelu(x, approximate=True)


# ---------------- fused Pallas kernel: one sequence per grid step ----------------
def bert_seq_kernel(ids_ref, wemb_ref, pos_type_ref, emb_ln_ref, kbias_ref,
                    wqkv_ref, wo_ref, wi_ref, wf_ref, vecs_ref, bi_ref,
                    out_ref):
    f32, bf16 = jnp.float32, jnp.bfloat16

    # ---- embeddings: one-hot gather on the MXU + pos/type add + LayerNorm ----
    ids = ids_ref[0]                                               # (S, 1) int32
    iota_v = lax.broadcasted_iota(jnp.int32, (S, V), 1)
    one_hot = (ids == iota_v).astype(bf16)                         # (S, V)
    emb = jnp.dot(one_hot, wemb_ref[...], preferred_element_type=f32)  # (S, H)
    emb = emb + pos_type_ref[...]
    emb_ln = emb_ln_ref[...]                                       # (2, H) f32
    x = _layernorm(emb, emb_ln[0:1, :], emb_ln[1:2, :])            # (S, H) f32

    kbias = kbias_ref[0]                                           # (1, S) f32

    for l in range(L):                  # static unroll; weights resident in VMEM
        wqkv = wqkv_ref[l]              # (H, 3H) bf16 (Q third pre-scaled)
        wo = wo_ref[l]                  # (H, H)  bf16
        wi = wi_ref[l]                  # (H, F)  bf16
        wf = wf_ref[l]                  # (F, H)  bf16
        vecs = vecs_ref[l]              # (9, H)  f32  packed biases / LN params
        bi = bi_ref[l]                  # (1, F)  f32

        # ---- fused QKV projection (1/sqrt(HD) folded into Q weight) ----
        xb = x.astype(bf16)
        qkv = jnp.dot(xb, wqkv, preferred_element_type=f32)        # (S, 3H) f32
        q = (qkv[:, 0 * H:1 * H] + vecs[_BQ:_BQ + 1, :]).astype(bf16)
        k = (qkv[:, 1 * H:2 * H] + vecs[_BK:_BK + 1, :]).astype(bf16)
        v = (qkv[:, 2 * H:3 * H] + vecs[_BV:_BV + 1, :]).astype(bf16)

        # ---- multi-head self-attention; per-head output accumulated via Wo ----
        attn_acc = jnp.zeros((S, H), f32)
        for h in range(NH):             # static unroll over heads
            c0 = h * HD
            qh = q[:, c0:c0 + HD]                                  # (S, HD)
            kh = k[:, c0:c0 + HD]
            vh = v[:, c0:c0 + HD]
            s = lax.dot_general(qh, kh, (((1,), (1,)), ((), ())),
                                preferred_element_type=f32)        # (S, S)
            s = s + kbias                                          # mask padded keys
            s = s - jnp.max(s, axis=-1, keepdims=True)
            p = jnp.exp(s)
            p = p * pl.reciprocal(jnp.sum(p, axis=-1, keepdims=True), approx=True)
            ctx_h = jnp.dot(p.astype(bf16), vh,
                            preferred_element_type=f32)            # (S, HD)
            attn_acc = attn_acc + jnp.dot(ctx_h.astype(bf16), wo[c0:c0 + HD, :],
                                          preferred_element_type=f32)  # (S, H)
        attn = attn_acc + vecs[_BO:_BO + 1, :]
        h1 = _layernorm(x + attn, vecs[_G1:_G1 + 1, :], vecs[_B1:_B1 + 1, :])

        # ---- feed-forward ----
        ff = _gelu(jnp.dot(h1.astype(bf16), wi, preferred_element_type=f32) + bi)
        ff = jnp.dot(ff.astype(bf16), wf, preferred_element_type=f32) \
            + vecs[_BF:_BF + 1, :]
        x = _layernorm(h1 + ff, vecs[_G2:_G2 + 1, :], vecs[_B2:_B2 + 1, :])

    # ---- emit the [CLS] row for this sequence, lane-dense (1, H) ----
    out_ref[0] = x[0:1, :]


# ---------------- params ----------------
def init_params(key):
    """Deterministic synthetic BERT-style init; matmul weights stored in bf16.

    The 1/sqrt(HD) attention scale is folded into the Q third of wqkv (and would
    also be folded into the Q bias for a non-zero real checkpoint).
    """
    def nrm(k, shape, dtype=jnp.bfloat16):
        return (0.02 * jax.random.normal(k, shape)).astype(dtype)

    ks = iter(jax.random.split(key, 3 + 4 * L))
    scale = 1.0 / (HD ** 0.5)

    word_emb = nrm(next(ks), (V, H))                               # bf16
    pos_emb = nrm(next(ks), (P, H), jnp.float32)
    type_emb = nrm(next(ks), (2, H), jnp.float32)

    wqkv = []
    for _ in range(L):
        w = 0.02 * jax.random.normal(next(ks), (H, 3 * H))
        w = w.at[:, :H].multiply(scale)        # fold score scale into Q weight
        wqkv.append(w.astype(jnp.bfloat16))

    vecs = jnp.zeros((L, 9, H), jnp.float32)
    vecs = vecs.at[:, _G1, :].set(1.0).at[:, _G2, :].set(1.0)      # LN gains = 1

    return {
        "word_emb": word_emb,
        "pos_emb": pos_emb,
        "type_emb": type_emb,
        "emb_ln": jnp.concatenate(
            [jnp.ones((1, H), jnp.float32), jnp.zeros((1, H), jnp.float32)], axis=0),
        "wqkv": jnp.stack(wqkv),                                            # (L,H,3H)
        "wo": jnp.stack([nrm(next(ks), (H, H)) for _ in range(L)]),         # (L,H,H)
        "wi": jnp.stack([nrm(next(ks), (H, F)) for _ in range(L)]),         # (L,H,F)
        "wf": jnp.stack([nrm(next(ks), (F, H)) for _ in range(L)]),         # (L,F,H)
        "vecs": vecs,                                                       # (L,9,H)
        "bi": jnp.zeros((L, 1, F), jnp.float32),                            # (L,1,F)
    }


# ---------------- wrapper ----------------
@jax.jit
def bert_text_encoder(input_ids, attention_mask, params):
    """Equivalent of BertTextEncoder.forward on pre-tokenized inputs.

    input_ids      : (B, S) int32
    attention_mask : (B, S) int32 (1 = real token, 0 = padding)
    returns        : (B, H) float32 == last_hidden_state[:, 0, :]
    """
    ids_3d = input_ids.reshape(B, S, 1).astype(jnp.int32)

    # position + token-type(=0) embeddings shared by every sequence.
    pos_type = (params["pos_emb"][:S] + params["type_emb"][0:1]).astype(jnp.float32)

    # additive key mask per sequence: 0 = valid key, -1e9 = padded key.
    key_bias = jnp.where(attention_mask > 0, 0.0, MASK_NEG) \
        .astype(jnp.float32).reshape(B, 1, S)

    const2 = lambda b: (0, 0)
    const3 = lambda b: (0, 0, 0)
    in_specs = [
        pl.BlockSpec((1, S, 1), lambda b: (b, 0, 0)),     # ids (per sequence)
        pl.BlockSpec((V, H), const2),                     # word embedding table
        pl.BlockSpec((S, H), const2),                     # pos+type embeddings
        pl.BlockSpec((2, H), const2),                     # embedding LN (gain, bias)
        pl.BlockSpec((1, 1, S), lambda b: (b, 0, 0)),     # key bias (per sequence)
        pl.BlockSpec((L, H, 3 * H), const3),              # fused QKV weights
        pl.BlockSpec((L, H, H), const3),                  # attention output weights
        pl.BlockSpec((L, H, F), const3),                  # FFN in weights
        pl.BlockSpec((L, F, H), const3),                  # FFN out weights
        pl.BlockSpec((L, 9, H), const3),                  # packed biases / LN params
        pl.BlockSpec((L, 1, F), const3),                  # FFN intermediate bias
    ]

    out = pl.pallas_call(
        bert_seq_kernel,
        out_shape=jax.ShapeDtypeStruct((B, 1, H), jnp.float32),
        grid=(B,),
        in_specs=in_specs,
        out_specs=pl.BlockSpec((1, 1, H), lambda b: (b, 0, 0)),
        compiler_params=pltpu.CompilerParams(dimension_semantics=("parallel",)),
    )(ids_3d, params["word_emb"], pos_type, params["emb_ln"], key_bias,
      params["wqkv"], params["wo"], params["wi"], params["wf"],
      params["vecs"], params["bi"])
    return out.reshape(B, H)


if __name__ == "__main__":
    key = jax.random.PRNGKey(0)
    k_param, k_ids = jax.random.split(key)

    params = init_params(k_param)

    # Synthetic "tokenized" batch: ids in [0, V); second example padded after 80 tokens.
    input_ids = jax.random.randint(k_ids, (B, S), 0, V, dtype=jnp.int32)
    lengths = jnp.array([S, 80], dtype=jnp.int32)
    attention_mask = (jnp.arange(S)[None, :] < lengths[:, None]).astype(jnp.int32)

    embeddings = bert_text_encoder(input_ids, attention_mask, params)
    embeddings = jax.block_until_ready(embeddings)

    assert embeddings.shape == (B, H) and embeddings.dtype == jnp.float32
    assert bool(jnp.all(jnp.isfinite(embeddings)))
    print("KERNEL_OK")
</pallas_src>

<mosaic_0001>
module attributes {stable_mosaic.version = 11 : i64} {
  func.func @bert_seq_kernel(%arg0: i32, %arg1: memref<1x128x1xi32, #tpu.memory_space<vmem>>, %arg2: memref<64x128xbf16, #tpu.memory_space<vmem>>, %arg3: memref<128x128xf32, #tpu.memory_space<vmem>>, %arg4: memref<2x128xf32, #tpu.memory_space<vmem>>, %arg5: memref<1x1x128xf32, #tpu.memory_space<vmem>>, %arg6: memref<2x128x384xbf16, #tpu.memory_space<vmem>>, %arg7: memref<2x128x128xbf16, #tpu.memory_space<vmem>>, %arg8: memref<2x128x512xbf16, #tpu.memory_space<vmem>>, %arg9: memref<2x512x128xbf16, #tpu.memory_space<vmem>>, %arg10: memref<2x9x128xf32, #tpu.memory_space<vmem>>, %arg11: memref<2x1x512xf32, #tpu.memory_space<vmem>>, %arg12: memref<1x1x128xf32, #tpu.memory_space<vmem>>) attributes {dimension_semantics = [#tpu.dimension_semantics<parallel>], iteration_bounds = array<i64: 2>, scalar_prefetch = 0 : i64, scratch_operands = 0 : i64, tpu.core_type = #tpu.core_type<tc>, window_params = [{transform_indices = @transform_0, window_bounds = array<i64: 1, 128, 1>}, {pipeline_mode = #tpu.pipeline_mode<synchronous>, transform_indices = @transform_1, window_bounds = array<i64: 64, 128>}, {pipeline_mode = #tpu.pipeline_mode<synchronous>, transform_indices = @transform_2, window_bounds = array<i64: 128, 128>}, {pipeline_mode = #tpu.pipeline_mode<synchronous>, transform_indices = @transform_3, window_bounds = array<i64: 2, 128>}, {transform_indices = @transform_4, window_bounds = array<i64: 1, 1, 128>}, {pipeline_mode = #tpu.pipeline_mode<synchronous>, transform_indices = @transform_5, window_bounds = array<i64: 2, 128, 384>}, {pipeline_mode = #tpu.pipeline_mode<synchronous>, transform_indices = @transform_6, window_bounds = array<i64: 2, 128, 128>}, {pipeline_mode = #tpu.pipeline_mode<synchronous>, transform_indices = @transform_7, window_bounds = array<i64: 2, 128, 512>}, {pipeline_mode = #tpu.pipeline_mode<synchronous>, transform_indices = @transform_8, window_bounds = array<i64: 2, 512, 128>}, {pipeline_mode = #tpu.pipeline_mode<synchronous>, transform_indices = @transform_9, window_bounds = array<i64: 2, 9, 128>}, {pipeline_mode = #tpu.pipeline_mode<synchronous>, transform_indices = @transform_10, window_bounds = array<i64: 2, 1, 512>}, {transform_indices = @transform_11, window_bounds = array<i64: 1, 1, 128>}]} {
    %c0 = arith.constant 0 : index
    %c0_0 = arith.constant 0 : index
    %c0_1 = arith.constant 0 : index
    %0 = vector.load %arg1[%c0, %c0_0, %c0_1] : memref<1x128x1xi32, #tpu.memory_space<vmem>>, vector<1x128x1xi32>
    %1 = vector.shape_cast %0 : vector<1x128x1xi32> to vector<128x1xi32>
    %2 = tpu.iota {dimensions = array<i32: 1>} : vector<128x64xi32>
    %3 = vector.broadcast %1 : vector<128x1xi32> to vector<128x64xi32>
    %4 = arith.cmpi eq, %3, %2 : vector<128x64xi32>
    %5 = arith.extui %4 : vector<128x64xi1> to vector<128x64xi32>
    %6 = arith.sitofp %5 : vector<128x64xi32> to vector<128x64xf32>
    %7 = arith.truncf %6 : vector<128x64xf32> to vector<128x64xbf16>
    %c0_2 = arith.constant 0 : index
    %c0_3 = arith.constant 0 : index
    %8 = vector.load %arg2[%c0_2, %c0_3] : memref<64x128xbf16, #tpu.memory_space<vmem>>, vector<64x128xbf16>
    %cst = arith.constant dense<0.000000e+00> : vector<128x128xf32>
    %9 = tpu.matmul %7, %8, %cst {dimension_numbers = #tpu.dot_dimension_numbers<[1], [0], [0], [1], [0, 0, 1, 1], [], []>} : vector<128x64xbf16>, vector<64x128xbf16>, vector<128x128xf32> -> vector<128x128xf32>
    %c0_4 = arith.constant 0 : index
    %c0_5 = arith.constant 0 : index
    %10 = vector.load %arg3[%c0_4, %c0_5] : memref<128x128xf32, #tpu.memory_space<vmem>>, vector<128x128xf32>
    %11 = arith.addf %9, %10 : vector<128x128xf32>
    %c0_6 = arith.constant 0 : index
    %c0_7 = arith.constant 0 : index
    %12 = vector.load %arg4[%c0_6, %c0_7] : memref<2x128xf32, #tpu.memory_space<vmem>>, vector<2x128xf32>
    %13 = vector.extract_strided_slice %12 {offsets = [0, 0], sizes = [1, 128], strides = [1, 1]} : vector<2x128xf32> to vector<1x128xf32>
    %14 = vector.extract_strided_slice %12 {offsets = [1, 0], sizes = [1, 128], strides = [1, 1]} : vector<2x128xf32> to vector<1x128xf32>
    %cst_8 = arith.constant dense<0.000000e+00> : vector<128xf32>
    %15 = vector.multi_reduction <add>, %11, %cst_8 [1] : vector<128x128xf32> to vector<128xf32>
    %16 = vector.shape_cast %15 : vector<128xf32> to vector<128x1xf32>
    %cst_9 = arith.constant 1.280000e+02 : f32
    %17 = vector.broadcast %cst_9 : f32 to vector<128x1xf32>
    %18 = arith.divf %16, %17 : vector<128x1xf32>
    %19 = vector.broadcast %18 : vector<128x1xf32> to vector<128x128xf32>
    %20 = arith.subf %11, %19 : vector<128x128xf32>
    %21 = arith.mulf %20, %20 : vector<128x128xf32>
    %cst_10 = arith.constant dense<0.000000e+00> : vector<128xf32>
    %22 = vector.multi_reduction <add>, %21, %cst_10 [1] : vector<128x128xf32> to vector<128xf32>
    %23 = vector.shape_cast %22 : vector<128xf32> to vector<128x1xf32>
    %cst_11 = arith.constant 1.280000e+02 : f32
    %24 = vector.broadcast %cst_11 : f32 to vector<128x1xf32>
    %25 = arith.divf %23, %24 : vector<128x1xf32>
    %26 = vector.broadcast %18 : vector<128x1xf32> to vector<128x128xf32>
    %27 = arith.subf %11, %26 : vector<128x128xf32>
    %cst_12 = arith.constant 9.99999996E-13 : f32
    %28 = vector.broadcast %cst_12 : f32 to vector<128x1xf32>
    %29 = arith.addf %25, %28 : vector<128x1xf32>
    %30 = math.rsqrt %29 : vector<128x1xf32>
    %31 = vector.broadcast %30 : vector<128x1xf32> to vector<128x128xf32>
    %32 = arith.mulf %27, %31 : vector<128x128xf32>
    %33 = vector.broadcast %13 : vector<1x128xf32> to vector<128x128xf32>
    %34 = arith.mulf %32, %33 : vector<128x128xf32>
    %35 = vector.broadcast %14 : vector<1x128xf32> to vector<128x128xf32>
    %36 = arith.addf %34, %35 : vector<128x128xf32>
    %c0_13 = arith.constant 0 : index
    %c0_14 = arith.constant 0 : index
    %c0_15 = arith.constant 0 : index
    %37 = vector.load %arg5[%c0_13, %c0_14, %c0_15] : memref<1x1x128xf32, #tpu.memory_space<vmem>>, vector<1x1x128xf32>
    %38 = vector.shape_cast %37 : vector<1x1x128xf32> to vector<1x128xf32>
    %c0_16 = arith.constant 0 : index
    %c0_17 = arith.constant 0 : index
    %c0_18 = arith.constant 0 : index
    %39 = vector.load %arg6[%c0_16, %c0_17, %c0_18] : memref<2x128x384xbf16, #tpu.memory_space<vmem>>, vector<1x128x384xbf16>
    %40 = vector.shape_cast %39 : vector<1x128x384xbf16> to vector<128x384xbf16>
    %c0_19 = arith.constant 0 : index
    %c0_20 = arith.constant 0 : index
    %c0_21 = arith.constant 0 : index
    %41 = vector.load %arg7[%c0_19, %c0_20, %c0_21] : memref<2x128x128xbf16, #tpu.memory_space<vmem>>, vector<1x128x128xbf16>
    %42 = vector.shape_cast %41 : vector<1x128x128xbf16> to vector<128x128xbf16>
    %c0_22 = arith.constant 0 : index
    %c0_23 = arith.constant 0 : index
    %c0_24 = arith.constant 0 : index
    %43 = vector.load %arg8[%c0_22, %c0_23, %c0_24] : memref<2x128x512xbf16, #tpu.memory_space<vmem>>, vector<1x128x512xbf16>
    %44 = vector.shape_cast %43 : vector<1x128x512xbf16> to vector<128x512xbf16>
    %c0_25 = arith.constant 0 : index
    %c0_26 = arith.constant 0 : index
    %c0_27 = arith.constant 0 : index
    %45 = vector.load %arg9[%c0_25, %c0_26, %c0_27] : memref<2x512x128xbf16, #tpu.memory_space<vmem>>, vector<1x512x128xbf16>
    %46 = vector.shape_cast %45 : vector<1x512x128xbf16> to vector<512x128xbf16>
    %c0_28 = arith.constant 0 : index
    %c0_29 = arith.constant 0 : index
    %c0_30 = arith.constant 0 : index
    %47 = vector.load %arg10[%c0_28, %c0_29, %c0_30] : memref<2x9x128xf32, #tpu.memory_space<vmem>>, vector<1x9x128xf32>
    %48 = vector.shape_cast %47 : vector<1x9x128xf32> to vector<9x128xf32>
    %c0_31 = arith.constant 0 : index
    %c0_32 = arith.constant 0 : index
    %c0_33 = arith.constant 0 : index
    %49 = vector.load %arg11[%c0_31, %c0_32, %c0_33] : memref<2x1x512xf32, #tpu.memory_space<vmem>>, vector<1x1x512xf32>
    %50 = vector.shape_cast %49 : vector<1x1x512xf32> to vector<1x512xf32>
    %51 = arith.truncf %36 : vector<128x128xf32> to vector<128x128xbf16>
    %cst_34 = arith.constant dense<0.000000e+00> : vector<128x384xf32>
    %52 = tpu.matmul %51, %40, %cst_34 {dimension_numbers = #tpu.dot_dimension_numbers<[1], [0], [0], [1], [0, 0, 1, 1], [], []>} : vector<128x128xbf16>, vector<128x384xbf16>, vector<128x384xf32> -> vector<128x384xf32>
    %53 = vector.extract_strided_slice %52 {offsets = [0, 0], sizes = [128, 128], strides = [1, 1]} : vector<128x384xf32> to vector<128x128xf32>
    %54 = vector.extract_strided_slice %48 {offsets = [0, 0], sizes = [1, 128], strides = [1, 1]} : vector<9x128xf32> to vector<1x128xf32>
    %55 = vector.broadcast %54 : vector<1x128xf32> to vector<128x128xf32>
    %56 = arith.addf %53, %55 : vector<128x128xf32>
    %57 = arith.truncf %56 : vector<128x128xf32> to vector<128x128xbf16>
    %58 = vector.extract_strided_slice %52 {offsets = [0, 128], sizes = [128, 128], strides = [1, 1]} : vector<128x384xf32> to vector<128x128xf32>
    %59 = vector.extract_strided_slice %48 {offsets = [1, 0], sizes = [1, 128], strides = [1, 1]} : vector<9x128xf32> to vector<1x128xf32>
    %60 = vector.broadcast %59 : vector<1x128xf32> to vector<128x128xf32>
    %61 = arith.addf %58, %60 : vector<128x128xf32>
    %62 = arith.truncf %61 : vector<128x128xf32> to vector<128x128xbf16>
    %63 = vector.extract_strided_slice %52 {offsets = [0, 256], sizes = [128, 128], strides = [1, 1]} : vector<128x384xf32> to vector<128x128xf32>
    %64 = vector.extract_strided_slice %48 {offsets = [2, 0], sizes = [1, 128], strides = [1, 1]} : vector<9x128xf32> to vector<1x128xf32>
    %65 = vector.broadcast %64 : vector<1x128xf32> to vector<128x128xf32>
    %66 = arith.addf %63, %65 : vector<128x128xf32>
    %67 = arith.truncf %66 : vector<128x128xf32> to vector<128x128xbf16>
    %cst_35 = arith.constant 0.000000e+00 : f32
    %68 = vector.broadcast %cst_35 : f32 to vector<128x128xf32>
    %69 = vector.extract_strided_slice %57 {offsets = [0, 0], sizes = [128, 32], strides = [1, 1]} : vector<128x128xbf16> to vector<128x32xbf16>
    %70 = vector.extract_strided_slice %62 {offsets = [0, 0], sizes = [128, 32], strides = [1, 1]} : vector<128x128xbf16> to vector<128x32xbf16>
    %71 = vector.extract_strided_slice %67 {offsets = [0, 0], sizes = [128, 32], strides = [1, 1]} : vector<128x128xbf16> to vector<128x32xbf16>
    %cst_36 = arith.constant dense<0.000000e+00> : vector<128x128xf32>
    %72 = tpu.matmul %69, %70, %cst_36 {dimension_numbers = #tpu.dot_dimension_numbers<[1], [1], [0], [0], [0, 0, 1, 0], [], []>} : vector<128x32xbf16>, vector<128x32xbf16>, vector<128x128xf32> -> vector<128x128xf32>
    %73 = vector.broadcast %38 : vector<1x128xf32> to vector<128x128xf32>
    %74 = arith.addf %72, %73 : vector<128x128xf32>
    %cst_37 = arith.constant dense<0xFF800000> : vector<128xf32>
    %75 = vector.multi_reduction <maximumf>, %74, %cst_37 [1] : vector<128x128xf32> to vector<128xf32>
    %76 = vector.shape_cast %75 : vector<128xf32> to vector<128x1xf32>
    %77 = vector.broadcast %76 : vector<128x1xf32> to vector<128x128xf32>
    %78 = arith.subf %74, %77 : vector<128x128xf32>
    %79 = math.exp %78 : vector<128x128xf32>
    %cst_38 = arith.constant dense<0.000000e+00> : vector<128xf32>
    %80 = vector.multi_reduction <add>, %79, %cst_38 [1] : vector<128x128xf32> to vector<128xf32>
    %81 = vector.shape_cast %80 : vector<128xf32> to vector<128x1xf32>
    %82 = tpu.reciprocal %81 {approx = true} : vector<128x1xf32> -> vector<128x1xf32>
    %83 = vector.broadcast %82 : vector<128x1xf32> to vector<128x128xf32>
    %84 = arith.mulf %79, %83 : vector<128x128xf32>
    %85 = arith.truncf %84 : vector<128x128xf32> to vector<128x128xbf16>
    %cst_39 = arith.constant dense<0.000000e+00> : vector<128x32xf32>
    %86 = tpu.matmul %85, %71, %cst_39 {dimension_numbers = #tpu.dot_dimension_numbers<[1], [0], [0], [1], [0, 0, 1, 1], [], []>} : vector<128x128xbf16>, vector<128x32xbf16>, vector<128x32xf32> -> vector<128x32xf32>
    %87 = arith.truncf %86 : vector<128x32xf32> to vector<128x32xbf16>
    %88 = vector.extract_strided_slice %42 {offsets = [0, 0], sizes = [32, 128], strides = [1, 1]} : vector<128x128xbf16> to vector<32x128xbf16>
    %cst_40 = arith.constant dense<0.000000e+00> : vector<128x128xf32>
    %89 = tpu.matmul %87, %88, %cst_40 {dimension_numbers = #tpu.dot_dimension_numbers<[1], [0], [0], [1], [0, 0, 1, 1], [], []>} : vector<128x32xbf16>, vector<32x128xbf16>, vector<128x128xf32> -> vector<128x128xf32>
    %90 = arith.addf %68, %89 : vector<128x128xf32>
    %91 = vector.extract_strided_slice %57 {offsets = [0, 32], sizes = [128, 32], strides = [1, 1]} : vector<128x128xbf16> to vector<128x32xbf16>
    %92 = vector.extract_strided_slice %62 {offsets = [0, 32], sizes = [128, 32], strides = [1, 1]} : vector<128x128xbf16> to vector<128x32xbf16>
    %93 = vector.extract_strided_slice %67 {offsets = [0, 32], sizes = [128, 32], strides = [1, 1]} : vector<128x128xbf16> to vector<128x32xbf16>
    %cst_41 = arith.constant dense<0.000000e+00> : vector<128x128xf32>
    %94 = tpu.matmul %91, %92, %cst_41 {dimension_numbers = #tpu.dot_dimension_numbers<[1], [1], [0], [0], [0, 0, 1, 0], [], []>} : vector<128x32xbf16>, vector<128x32xbf16>, vector<128x128xf32> -> vector<128x128xf32>
    %95 = vector.broadcast %38 : vector<1x128xf32> to vector<128x128xf32>
    %96 = arith.addf %94, %95 : vector<128x128xf32>
    %cst_42 = arith.constant dense<0xFF800000> : vector<128xf32>
    %97 = vector.multi_reduction <maximumf>, %96, %cst_42 [1] : vector<128x128xf32> to vector<128xf32>
    %98 = vector.shape_cast %97 : vector<128xf32> to vector<128x1xf32>
    %99 = vector.broadcast %98 : vector<128x1xf32> to vector<128x128xf32>
    %100 = arith.subf %96, %99 : vector<128x128xf32>
    %101 = math.exp %100 : vector<128x128xf32>
    %cst_43 = arith.constant dense<0.000000e+00> : vector<128xf32>
    %102 = vector.multi_reduction <add>, %101, %cst_43 [1] : vector<128x128xf32> to vector<128xf32>
    %103 = vector.shape_cast %102 : vector<128xf32> to vector<128x1xf32>
    %104 = tpu.reciprocal %103 {approx = true} : vector<128x1xf32> -> vector<128x1xf32>
    %105 = vector.broadcast %104 : vector<128x1xf32> to vector<128x128xf32>
    %106 = arith.mulf %101, %105 : vector<128x128xf32>
    %107 = arith.truncf %106 : vector<128x128xf32> to vector<128x128xbf16>
    %cst_44 = arith.constant dense<0.000000e+00> : vector<128x32xf32>
    %108 = tpu.matmul %107, %93, %cst_44 {dimension_numbers = #tpu.dot_dimension_numbers<[1], [0], [0], [1], [0, 0, 1, 1], [], []>} : vector<128x128xbf16>, vector<128x32xbf16>, vector<128x32xf32> -> vector<128x32xf32>
    %109 = arith.truncf %108 : vector<128x32xf32> to vector<128x32xbf16>
    %110 = vector.extract_strided_slice %42 {offsets = [32, 0], sizes = [32, 128], strides = [1, 1]} : vector<128x128xbf16> to vector<32x128xbf16>
    %cst_45 = arith.constant dense<0.000000e+00> : vector<128x128xf32>
    %111 = tpu.matmul %109, %110, %cst_45 {dimension_numbers = #tpu.dot_dimension_numbers<[1], [0], [0], [1], [0, 0, 1, 1], [], []>} : vector<128x32xbf16>, vector<32x128xbf16>, vector<128x128xf32> -> vector<128x128xf32>
    %112 = arith.addf %90, %111 : vector<128x128xf32>
    %113 = vector.extract_strided_slice %57 {offsets = [0, 64], sizes = [128, 32], strides = [1, 1]} : vector<128x128xbf16> to vector<128x32xbf16>
    %114 = vector.extract_strided_slice %62 {offsets = [0, 64], sizes = [128, 32], strides = [1, 1]} : vector<128x128xbf16> to vector<128x32xbf16>
    %115 = vector.extract_strided_slice %67 {offsets = [0, 64], sizes = [128, 32], strides = [1, 1]} : vector<128x128xbf16> to vector<128x32xbf16>
    %cst_46 = arith.constant dense<0.000000e+00> : vector<128x128xf32>
    %116 = tpu.matmul %113, %114, %cst_46 {dimension_numbers = #tpu.dot_dimension_numbers<[1], [1], [0], [0], [0, 0, 1, 0], [], []>} : vector<128x32xbf16>, vector<128x32xbf16>, vector<128x128xf32> -> vector<128x128xf32>
    %117 = vector.broadcast %38 : vector<1x128xf32> to vector<128x128xf32>
    %118 = arith.addf %116, %117 : vector<128x128xf32>
    %cst_47 = arith.constant dense<0xFF800000> : vector<128xf32>
    %119 = vector.multi_reduction <maximumf>, %118, %cst_47 [1] : vector<128x128xf32> to vector<128xf32>
    %120 = vector.shape_cast %119 : vector<128xf32> to vector<128x1xf32>
    %121 = vector.broadcast %120 : vector<128x1xf32> to vector<128x128xf32>
    %122 = arith.subf %118, %121 : vector<128x128xf32>
    %123 = math.exp %122 : vector<128x128xf32>
    %cst_48 = arith.constant dense<0.000000e+00> : vector<128xf32>
    %124 = vector.multi_reduction <add>, %123, %cst_48 [1] : vector<128x128xf32> to vector<128xf32>
    %125 = vector.shape_cast %124 : vector<128xf32> to vector<128x1xf32>
    %126 = tpu.reciprocal %125 {approx = true} : vector<128x1xf32> -> vector<128x1xf32>
    %127 = vector.broadcast %126 : vector<128x1xf32> to vector<128x128xf32>
    %128 = arith.mulf %123, %127 : vector<128x128xf32>
    %129 = arith.truncf %128 : vector<128x128xf32> to vector<128x128xbf16>
    %cst_49 = arith.constant dense<0.000000e+00> : vector<128x32xf32>
    %130 = tpu.matmul %129, %115, %cst_49 {dimension_numbers = #tpu.dot_dimension_numbers<[1], [0], [0], [1], [0, 0, 1, 1], [], []>} : vector<128x128xbf16>, vector<128x32xbf16>, vector<128x32xf32> -> vector<128x32xf32>
    %131 = arith.truncf %130 : vector<128x32xf32> to vector<128x32xbf16>
    %132 = vector.extract_strided_slice %42 {offsets = [64, 0], sizes = [32, 128], strides = [1, 1]} : vector<128x128xbf16> to vector<32x128xbf16>
    %cst_50 = arith.constant dense<0.000000e+00> : vector<128x128xf32>
    %133 = tpu.matmul %131, %132, %cst_50 {dimension_numbers = #tpu.dot_dimension_numbers<[1], [0], [0], [1], [0, 0, 1, 1], [], []>} : vector<128x32xbf16>, vector<32x128xbf16>, vector<128x128xf32> -> vector<128x128xf32>
    %134 = arith.addf %112, %133 : vector<128x128xf32>
    %135 = vector.extract_strided_slice %57 {offsets = [0, 96], sizes = [128, 32], strides = [1, 1]} : vector<128x128xbf16> to vector<128x32xbf16>
    %136 = vector.extract_strided_slice %62 {offsets = [0, 96], sizes = [128, 32], strides = [1, 1]} : vector<128x128xbf16> to vector<128x32xbf16>
    %137 = vector.extract_strided_slice %67 {offsets = [0, 96], sizes = [128, 32], strides = [1, 1]} : vector<128x128xbf16> to vector<128x32xbf16>
    %cst_51 = arith.constant dense<0.000000e+00> : vector<128x128xf32>
    %138 = tpu.matmul %135, %136, %cst_51 {dimension_numbers = #tpu.dot_dimension_numbers<[1], [1], [0], [0], [0, 0, 1, 0], [], []>} : vector<128x32xbf16>, vector<128x32xbf16>, vector<128x128xf32> -> vector<128x128xf32>
    %139 = vector.broadcast %38 : vector<1x128xf32> to vector<128x128xf32>
    %140 = arith.addf %138, %139 : vector<128x128xf32>
    %cst_52 = arith.constant dense<0xFF800000> : vector<128xf32>
    %141 = vector.multi_reduction <maximumf>, %140, %cst_52 [1] : vector<128x128xf32> to vector<128xf32>
    %142 = vector.shape_cast %141 : vector<128xf32> to vector<128x1xf32>
    %143 = vector.broadcast %142 : vector<128x1xf32> to vector<128x128xf32>
    %144 = arith.subf %140, %143 : vector<128x128xf32>
    %145 = math.exp %144 : vector<128x128xf32>
    %cst_53 = arith.constant dense<0.000000e+00> : vector<128xf32>
    %146 = vector.multi_reduction <add>, %145, %cst_53 [1] : vector<128x128xf32> to vector<128xf32>
    %147 = vector.shape_cast %146 : vector<128xf32> to vector<128x1xf32>
    %148 = tpu.reciprocal %147 {approx = true} : vector<128x1xf32> -> vector<128x1xf32>
    %149 = vector.broadcast %148 : vector<128x1xf32> to vector<128x128xf32>
    %150 = arith.mulf %145, %149 : vector<128x128xf32>
    %151 = arith.truncf %150 : vector<128x128xf32> to vector<128x128xbf16>
    %cst_54 = arith.constant dense<0.000000e+00> : vector<128x32xf32>
    %152 = tpu.matmul %151, %137, %cst_54 {dimension_numbers = #tpu.dot_dimension_numbers<[1], [0], [0], [1], [0, 0, 1, 1], [], []>} : vector<128x128xbf16>, vector<128x32xbf16>, vector<128x32xf32> -> vector<128x32xf32>
    %153 = arith.truncf %152 : vector<128x32xf32> to vector<128x32xbf16>
    %154 = vector.extract_strided_slice %42 {offsets = [96, 0], sizes = [32, 128], strides = [1, 1]} : vector<128x128xbf16> to vector<32x128xbf16>
    %cst_55 = arith.constant dense<0.000000e+00> : vector<128x128xf32>
    %155 = tpu.matmul %153, %154, %cst_55 {dimension_numbers = #tpu.dot_dimension_numbers<[1], [0], [0], [1], [0, 0, 1, 1], [], []>} : vector<128x32xbf16>, vector<32x128xbf16>, vector<128x128xf32> -> vector<128x128xf32>
    %156 = arith.addf %134, %155 : vector<128x128xf32>
    %157 = vector.extract_strided_slice %48 {offsets = [3, 0], sizes = [1, 128], strides = [1, 1]} : vector<9x128xf32> to vector<1x128xf32>
    %158 = vector.broadcast %157 : vector<1x128xf32> to vector<128x128xf32>
    %159 = arith.addf %156, %158 : vector<128x128xf32>
    %160 = arith.addf %36, %159 : vector<128x128xf32>
    %161 = vector.extract_strided_slice %48 {offsets = [4, 0], sizes = [1, 128], strides = [1, 1]} : vector<9x128xf32> to vector<1x128xf32>
    %162 = vector.extract_strided_slice %48 {offsets = [5, 0], sizes = [1, 128], strides = [1, 1]} : vector<9x128xf32> to vector<1x128xf32>
    %cst_56 = arith.constant dense<0.000000e+00> : vector<128xf32>
    %163 = vector.multi_reduction <add>, %160, %cst_56 [1] : vector<128x128xf32> to vector<128xf32>
    %164 = vector.shape_cast %163 : vector<128xf32> to vector<128x1xf32>
    %cst_57 = arith.constant 1.280000e+02 : f32
    %165 = vector.broadcast %cst_57 : f32 to vector<128x1xf32>
    %166 = arith.divf %164, %165 : vector<128x1xf32>
    %167 = vector.broadcast %166 : vector<128x1xf32> to vector<128x128xf32>
    %168 = arith.subf %160, %167 : vector<128x128xf32>
    %169 = arith.mulf %168, %168 : vector<128x128xf32>
    %cst_58 = arith.constant dense<0.000000e+00> : vector<128xf32>
    %170 = vector.multi_reduction <add>, %169, %cst_58 [1] : vector<128x128xf32> to vector<128xf32>
    %171 = vector.shape_cast %170 : vector<128xf32> to vector<128x1xf32>
    %cst_59 = arith.constant 1.280000e+02 : f32
    %172 = vector.broadcast %cst_59 : f32 to vector<128x1xf32>
    %173 = arith.divf %171, %172 : vector<128x1xf32>
    %174 = vector.broadcast %166 : vector<128x1xf32> to vector<128x128xf32>
    %175 = arith.subf %160, %174 : vector<128x128xf32>
    %cst_60 = arith.constant 9.99999996E-13 : f32
    %176 = vector.broadcast %cst_60 : f32 to vector<128x1xf32>
    %177 = arith.addf %173, %176 : vector<128x1xf32>
    %178 = math.rsqrt %177 : vector<128x1xf32>
    %179 = vector.broadcast %178 : vector<128x1xf32> to vector<128x128xf32>
    %180 = arith.mulf %175, %179 : vector<128x128xf32>
    %181 = vector.broadcast %161 : vector<1x128xf32> to vector<128x128xf32>
    %182 = arith.mulf %180, %181 : vector<128x128xf32>
    %183 = vector.broadcast %162 : vector<1x128xf32> to vector<128x128xf32>
    %184 = arith.addf %182, %183 : vector<128x128xf32>
    %185 = arith.truncf %184 : vector<128x128xf32> to vector<128x128xbf16>
    %cst_61 = arith.constant dense<0.000000e+00> : vector<128x512xf32>
    %186 = tpu.matmul %185, %44, %cst_61 {dimension_numbers = #tpu.dot_dimension_numbers<[1], [0], [0], [1], [0, 0, 1, 1], [], []>} : vector<128x128xbf16>, vector<128x512xbf16>, vector<128x512xf32> -> vector<128x512xf32>
    %187 = vector.broadcast %50 : vector<1x512xf32> to vector<128x512xf32>
    %188 = arith.addf %186, %187 : vector<128x512xf32>
    %189 = arith.mulf %188, %188 : vector<128x512xf32>
    %190 = arith.mulf %188, %189 : vector<128x512xf32>
    %cst_62 = arith.constant 4.471500e-02 : f32
    %191 = vector.broadcast %cst_62 : f32 to vector<128x512xf32>
    %192 = arith.mulf %191, %190 : vector<128x512xf32>
    %193 = arith.addf %188, %192 : vector<128x512xf32>
    %cst_63 = arith.constant 0.797884583 : f32
    %194 = vector.broadcast %cst_63 : f32 to vector<128x512xf32>
    %195 = arith.mulf %194, %193 : vector<128x512xf32>
    %196 = math.tanh %195 : vector<128x512xf32>
    %cst_64 = arith.constant 1.000000e+00 : f32
    %197 = vector.broadcast %cst_64 : f32 to vector<128x512xf32>
    %198 = arith.addf %197, %196 : vector<128x512xf32>
    %cst_65 = arith.constant 5.000000e-01 : f32
    %199 = vector.broadcast %cst_65 : f32 to vector<128x512xf32>
    %200 = arith.mulf %199, %198 : vector<128x512xf32>
    %201 = arith.mulf %188, %200 : vector<128x512xf32>
    %202 = arith.truncf %201 : vector<128x512xf32> to vector<128x512xbf16>
    %cst_66 = arith.constant dense<0.000000e+00> : vector<128x128xf32>
    %203 = tpu.matmul %202, %46, %cst_66 {dimension_numbers = #tpu.dot_dimension_numbers<[1], [0], [0], [1], [0, 0, 1, 1], [], []>} : vector<128x512xbf16>, vector<512x128xbf16>, vector<128x128xf32> -> vector<128x128xf32>
    %204 = vector.extract_strided_slice %48 {offsets = [6, 0], sizes = [1, 128], strides = [1, 1]} : vector<9x128xf32> to vector<1x128xf32>
    %205 = vector.broadcast %204 : vector<1x128xf32> to vector<128x128xf32>
    %206 = arith.addf %203, %205 : vector<128x128xf32>
    %207 = arith.addf %184, %206 : vector<128x128xf32>
    %208 = vector.extract_strided_slice %48 {offsets = [7, 0], sizes = [1, 128], strides = [1, 1]} : vector<9x128xf32> to vector<1x128xf32>
    %209 = vector.extract_strided_slice %48 {offsets = [8, 0], sizes = [1, 128], strides = [1, 1]} : vector<9x128xf32> to vector<1x128xf32>
    %cst_67 = arith.constant dense<0.000000e+00> : vector<128xf32>
    %210 = vector.multi_reduction <add>, %207, %cst_67 [1] : vector<128x128xf32> to vector<128xf32>
    %211 = vector.shape_cast %210 : vector<128xf32> to vector<128x1xf32>
    %cst_68 = arith.constant 1.280000e+02 : f32
    %212 = vector.broadcast %cst_68 : f32 to vector<128x1xf32>
    %213 = arith.divf %211, %212 : vector<128x1xf32>
    %214 = vector.broadcast %213 : vector<128x1xf32> to vector<128x128xf32>
    %215 = arith.subf %207, %214 : vector<128x128xf32>
    %216 = arith.mulf %215, %215 : vector<128x128xf32>
    %cst_69 = arith.constant dense<0.000000e+00> : vector<128xf32>
    %217 = vector.multi_reduction <add>, %216, %cst_69 [1] : vector<128x128xf32> to vector<128xf32>
    %218 = vector.shape_cast %217 : vector<128xf32> to vector<128x1xf32>
    %cst_70 = arith.constant 1.280000e+02 : f32
    %219 = vector.broadcast %cst_70 : f32 to vector<128x1xf32>
    %220 = arith.divf %218, %219 : vector<128x1xf32>
    %221 = vector.broadcast %213 : vector<128x1xf32> to vector<128x128xf32>
    %222 = arith.subf %207, %221 : vector<128x128xf32>
    %cst_71 = arith.constant 9.99999996E-13 : f32
    %223 = vector.broadcast %cst_71 : f32 to vector<128x1xf32>
    %224 = arith.addf %220, %223 : vector<128x1xf32>
    %225 = math.rsqrt %224 : vector<128x1xf32>
    %226 = vector.broadcast %225 : vector<128x1xf32> to vector<128x128xf32>
    %227 = arith.mulf %222, %226 : vector<128x128xf32>
    %228 = vector.broadcast %208 : vector<1x128xf32> to vector<128x128xf32>
    %229 = arith.mulf %227, %228 : vector<128x128xf32>
    %230 = vector.broadcast %209 : vector<1x128xf32> to vector<128x128xf32>
    %231 = arith.addf %229, %230 : vector<128x128xf32>
    %c1 = arith.constant 1 : index
    %c0_72 = arith.constant 0 : index
    %c0_73 = arith.constant 0 : index
    %232 = vector.load %arg6[%c1, %c0_72, %c0_73] : memref<2x128x384xbf16, #tpu.memory_space<vmem>>, vector<1x128x384xbf16>
    %233 = vector.shape_cast %232 : vector<1x128x384xbf16> to vector<128x384xbf16>
    %c1_74 = arith.constant 1 : index
    %c0_75 = arith.constant 0 : index
    %c0_76 = arith.constant 0 : index
    %234 = vector.load %arg7[%c1_74, %c0_75, %c0_76] : memref<2x128x128xbf16, #tpu.memory_space<vmem>>, vector<1x128x128xbf16>
    %235 = vector.shape_cast %234 : vector<1x128x128xbf16> to vector<128x128xbf16>
    %c1_77 = arith.constant 1 : index
    %c0_78 = arith.constant 0 : index
    %c0_79 = arith.constant 0 : index
    %236 = vector.load %arg8[%c1_77, %c0_78, %c0_79] : memref<2x128x512xbf16, #tpu.memory_space<vmem>>, vector<1x128x512xbf16>
    %237 = vector.shape_cast %236 : vector<1x128x512xbf16> to vector<128x512xbf16>
    %c1_80 = arith.constant 1 : index
    %c0_81 = arith.constant 0 : index
    %c0_82 = arith.constant 0 : index
    %238 = vector.load %arg9[%c1_80, %c0_81, %c0_82] : memref<2x512x128xbf16, #tpu.memory_space<vmem>>, vector<1x512x128xbf16>
    %239 = vector.shape_cast %238 : vector<1x512x128xbf16> to vector<512x128xbf16>
    %c1_83 = arith.constant 1 : index
    %c0_84 = arith.constant 0 : index
    %c0_85 = arith.constant 0 : index
    %240 = vector.load %arg10[%c1_83, %c0_84, %c0_85] : memref<2x9x128xf32, #tpu.memory_space<vmem>>, vector<1x9x128xf32>
    %241 = vector.shape_cast %240 : vector<1x9x128xf32> to vector<9x128xf32>
    %c1_86 = arith.constant 1 : index
    %c0_87 = arith.constant 0 : index
    %c0_88 = arith.constant 0 : index
    %242 = vector.load %arg11[%c1_86, %c0_87, %c0_88] : memref<2x1x512xf32, #tpu.memory_space<vmem>>, vector<1x1x512xf32>
    %243 = vector.shape_cast %242 : vector<1x1x512xf32> to vector<1x512xf32>
    %244 = arith.truncf %231 : vector<128x128xf32> to vector<128x128xbf16>
    %cst_89 = arith.constant dense<0.000000e+00> : vector<128x384xf32>
    %245 = tpu.matmul %244, %233, %cst_89 {dimension_numbers = #tpu.dot_dimension_numbers<[1], [0], [0], [1], [0, 0, 1, 1], [], []>} : vector<128x128xbf16>, vector<128x384xbf16>, vector<128x384xf32> -> vector<128x384xf32>
    %246 = vector.extract_strided_slice %245 {offsets = [0, 0], sizes = [128, 128], strides = [1, 1]} : vector<128x384xf32> to vector<128x128xf32>
    %247 = vector.extract_strided_slice %241 {offsets = [0, 0], sizes = [1, 128], strides = [1, 1]} : vector<9x128xf32> to vector<1x128xf32>
    %248 = vector.broadcast %247 : vector<1x128xf32> to vector<128x128xf32>
    %249 = arith.addf %246, %248 : vector<128x128xf32>
    %250 = arith.truncf %249 : vector<128x128xf32> to vector<128x128xbf16>
    %251 = vector.extract_strided_slice %245 {offsets = [0, 128], sizes = [128, 128], strides = [1, 1]} : vector<128x384xf32> to vector<128x128xf32>
    %252 = vector.extract_strided_slice %241 {offsets = [1, 0], sizes = [1, 128], strides = [1, 1]} : vector<9x128xf32> to vector<1x128xf32>
    %253 = vector.broadcast %252 : vector<1x128xf32> to vector<128x128xf32>
    %254 = arith.addf %251, %253 : vector<128x128xf32>
    %255 = arith.truncf %254 : vector<128x128xf32> to vector<128x128xbf16>
    %256 = vector.extract_strided_slice %245 {offsets = [0, 256], sizes = [128, 128], strides = [1, 1]} : vector<128x384xf32> to vector<128x128xf32>
    %257 = vector.extract_strided_slice %241 {offsets = [2, 0], sizes = [1, 128], strides = [1, 1]} : vector<9x128xf32> to vector<1x128xf32>
    %258 = vector.broadcast %257 : vector<1x128xf32> to vector<128x128xf32>
    %259 = arith.addf %256, %258 : vector<128x128xf32>
    %260 = arith.truncf %259 : vector<128x128xf32> to vector<128x128xbf16>
    %cst_90 = arith.constant 0.000000e+00 : f32
    %261 = vector.broadcast %cst_90 : f32 to vector<128x128xf32>
    %262 = vector.extract_strided_slice %250 {offsets = [0, 0], sizes = [128, 32], strides = [1, 1]} : vector<128x128xbf16> to vector<128x32xbf16>
    %263 = vector.extract_strided_slice %255 {offsets = [0, 0], sizes = [128, 32], strides = [1, 1]} : vector<128x128xbf16> to vector<128x32xbf16>
    %264 = vector.extract_strided_slice %260 {offsets = [0, 0], sizes = [128, 32], strides = [1, 1]} : vector<128x128xbf16> to vector<128x32xbf16>
    %cst_91 = arith.constant dense<0.000000e+00> : vector<128x128xf32>
    %265 = tpu.matmul %262, %263, %cst_91 {dimension_numbers = #tpu.dot_dimension_numbers<[1], [1], [0], [0], [0, 0, 1, 0], [], []>} : vector<128x32xbf16>, vector<128x32xbf16>, vector<128x128xf32> -> vector<128x128xf32>
    %266 = vector.broadcast %38 : vector<1x128xf32> to vector<128x128xf32>
    %267 = arith.addf %265, %266 : vector<128x128xf32>
    %cst_92 = arith.constant dense<0xFF800000> : vector<128xf32>
    %268 = vector.multi_reduction <maximumf>, %267, %cst_92 [1] : vector<128x128xf32> to vector<128xf32>
    %269 = vector.shape_cast %268 : vector<128xf32> to vector<128x1xf32>
    %270 = vector.broadcast %269 : vector<128x1xf32> to vector<128x128xf32>
    %271 = arith.subf %267, %270 : vector<128x128xf32>
    %272 = math.exp %271 : vector<128x128xf32>
    %cst_93 = arith.constant dense<0.000000e+00> : vector<128xf32>
    %273 = vector.multi_reduction <add>, %272, %cst_93 [1] : vector<128x128xf32> to vector<128xf32>
    %274 = vector.shape_cast %273 : vector<128xf32> to vector<128x1xf32>
    %275 = tpu.reciprocal %274 {approx = true} : vector<128x1xf32> -> vector<128x1xf32>
    %276 = vector.broadcast %275 : vector<128x1xf32> to vector<128x128xf32>
    %277 = arith.mulf %272, %276 : vector<128x128xf32>
    %278 = arith.truncf %277 : vector<128x128xf32> to vector<128x128xbf16>
    %cst_94 = arith.constant dense<0.000000e+00> : vector<128x32xf32>
    %279 = tpu.matmul %278, %264, %cst_94 {dimension_numbers = #tpu.dot_dimension_numbers<[1], [0], [0], [1], [0, 0, 1, 1], [], []>} : vector<128x128xbf16>, vector<128x32xbf16>, vector<128x32xf32> -> vector<128x32xf32>
    %280 = arith.truncf %279 : vector<128x32xf32> to vector<128x32xbf16>
    %281 = vector.extract_strided_slice %235 {offsets = [0, 0], sizes = [32, 128], strides = [1, 1]} : vector<128x128xbf16> to vector<32x128xbf16>
    %cst_95 = arith.constant dense<0.000000e+00> : vector<128x128xf32>
    %282 = tpu.matmul %280, %281, %cst_95 {dimension_numbers = #tpu.dot_dimension_numbers<[1], [0], [0], [1], [0, 0, 1, 1], [], []>} : vector<128x32xbf16>, vector<32x128xbf16>, vector<128x128xf32> -> vector<128x128xf32>
    %283 = arith.addf %261, %282 : vector<128x128xf32>
    %284 = vector.extract_strided_slice %250 {offsets = [0, 32], sizes = [128, 32], strides = [1, 1]} : vector<128x128xbf16> to vector<128x32xbf16>
    %285 = vector.extract_strided_slice %255 {offsets = [0, 32], sizes = [128, 32], strides = [1, 1]} : vector<128x128xbf16> to vector<128x32xbf16>
    %286 = vector.extract_strided_slice %260 {offsets = [0, 32], sizes = [128, 32], strides = [1, 1]} : vector<128x128xbf16> to vector<128x32xbf16>
    %cst_96 = arith.constant dense<0.000000e+00> : vector<128x128xf32>
    %287 = tpu.matmul %284, %285, %cst_96 {dimension_numbers = #tpu.dot_dimension_numbers<[1], [1], [0], [0], [0, 0, 1, 0], [], []>} : vector<128x32xbf16>, vector<128x32xbf16>, vector<128x128xf32> -> vector<128x128xf32>
    %288 = vector.broadcast %38 : vector<1x128xf32> to vector<128x128xf32>
    %289 = arith.addf %287, %288 : vector<128x128xf32>
    %cst_97 = arith.constant dense<0xFF800000> : vector<128xf32>
    %290 = vector.multi_reduction <maximumf>, %289, %cst_97 [1] : vector<128x128xf32> to vector<128xf32>
    %291 = vector.shape_cast %290 : vector<128xf32> to vector<128x1xf32>
    %292 = vector.broadcast %291 : vector<128x1xf32> to vector<128x128xf32>
    %293 = arith.subf %289, %292 : vector<128x128xf32>
    %294 = math.exp %293 : vector<128x128xf32>
    %cst_98 = arith.constant dense<0.000000e+00> : vector<128xf32>
    %295 = vector.multi_reduction <add>, %294, %cst_98 [1] : vector<128x128xf32> to vector<128xf32>
    %296 = vector.shape_cast %295 : vector<128xf32> to vector<128x1xf32>
    %297 = tpu.reciprocal %296 {approx = true} : vector<128x1xf32> -> vector<128x1xf32>
    %298 = vector.broadcast %297 : vector<128x1xf32> to vector<128x128xf32>
    %299 = arith.mulf %294, %298 : vector<128x128xf32>
    %300 = arith.truncf %299 : vector<128x128xf32> to vector<128x128xbf16>
    %cst_99 = arith.constant dense<0.000000e+00> : vector<128x32xf32>
    %301 = tpu.matmul %300, %286, %cst_99 {dimension_numbers = #tpu.dot_dimension_numbers<[1], [0], [0], [1], [0, 0, 1, 1], [], []>} : vector<128x128xbf16>, vector<128x32xbf16>, vector<128x32xf32> -> vector<128x32xf32>
    %302 = arith.truncf %301 : vector<128x32xf32> to vector<128x32xbf16>
    %303 = vector.extract_strided_slice %235 {offsets = [32, 0], sizes = [32, 128], strides = [1, 1]} : vector<128x128xbf16> to vector<32x128xbf16>
    %cst_100 = arith.constant dense<0.000000e+00> : vector<128x128xf32>
    %304 = tpu.matmul %302, %303, %cst_100 {dimension_numbers = #tpu.dot_dimension_numbers<[1], [0], [0], [1], [0, 0, 1, 1], [], []>} : vector<128x32xbf16>, vector<32x128xbf16>, vector<128x128xf32> -> vector<128x128xf32>
    %305 = arith.addf %283, %304 : vector<128x128xf32>
    %306 = vector.extract_strided_slice %250 {offsets = [0, 64], sizes = [128, 32], strides = [1, 1]} : vector<128x128xbf16> to vector<128x32xbf16>
    %307 = vector.extract_strided_slice %255 {offsets = [0, 64], sizes = [128, 32], strides = [1, 1]} : vector<128x128xbf16> to vector<128x32xbf16>
    %308 = vector.extract_strided_slice %260 {offsets = [0, 64], sizes = [128, 32], strides = [1, 1]} : vector<128x128xbf16> to vector<128x32xbf16>
    %cst_101 = arith.constant dense<0.000000e+00> : vector<128x128xf32>
    %309 = tpu.matmul %306, %307, %cst_101 {dimension_numbers = #tpu.dot_dimension_numbers<[1], [1], [0], [0], [0, 0, 1, 0], [], []>} : vector<128x32xbf16>, vector<128x32xbf16>, vector<128x128xf32> -> vector<128x128xf32>
    %310 = vector.broadcast %38 : vector<1x128xf32> to vector<128x128xf32>
    %311 = arith.addf %309, %310 : vector<128x128xf32>
    %cst_102 = arith.constant dense<0xFF800000> : vector<128xf32>
    %312 = vector.multi_reduction <maximumf>, %311, %cst_102 [1] : vector<128x128xf32> to vector<128xf32>
    %313 = vector.shape_cast %312 : vector<128xf32> to vector<128x1xf32>
    %314 = vector.broadcast %313 : vector<128x1xf32> to vector<128x128xf32>
    %315 = arith.subf %311, %314 : vector<128x128xf32>
    %316 = math.exp %315 : vector<128x128xf32>
    %cst_103 = arith.constant dense<0.000000e+00> : vector<128xf32>
    %317 = vector.multi_reduction <add>, %316, %cst_103 [1] : vector<128x128xf32> to vector<128xf32>
    %318 = vector.shape_cast %317 : vector<128xf32> to vector<128x1xf32>
    %319 = tpu.reciprocal %318 {approx = true} : vector<128x1xf32> -> vector<128x1xf32>
    %320 = vector.broadcast %319 : vector<128x1xf32> to vector<128x128xf32>
    %321 = arith.mulf %316, %320 : vector<128x128xf32>
    %322 = arith.truncf %321 : vector<128x128xf32> to vector<128x128xbf16>
    %cst_104 = arith.constant dense<0.000000e+00> : vector<128x32xf32>
    %323 = tpu.matmul %322, %308, %cst_104 {dimension_numbers = #tpu.dot_dimension_numbers<[1], [0], [0], [1], [0, 0, 1, 1], [], []>} : vector<128x128xbf16>, vector<128x32xbf16>, vector<128x32xf32> -> vector<128x32xf32>
    %324 = arith.truncf %323 : vector<128x32xf32> to vector<128x32xbf16>
    %325 = vector.extract_strided_slice %235 {offsets = [64, 0], sizes = [32, 128], strides = [1, 1]} : vector<128x128xbf16> to vector<32x128xbf16>
    %cst_105 = arith.constant dense<0.000000e+00> : vector<128x128xf32>
    %326 = tpu.matmul %324, %325, %cst_105 {dimension_numbers = #tpu.dot_dimension_numbers<[1], [0], [0], [1], [0, 0, 1, 1], [], []>} : vector<128x32xbf16>, vector<32x128xbf16>, vector<128x128xf32> -> vector<128x128xf32>
    %327 = arith.addf %305, %326 : vector<128x128xf32>
    %328 = vector.extract_strided_slice %250 {offsets = [0, 96], sizes = [128, 32], strides = [1, 1]} : vector<128x128xbf16> to vector<128x32xbf16>
    %329 = vector.extract_strided_slice %255 {offsets = [0, 96], sizes = [128, 32], strides = [1, 1]} : vector<128x128xbf16> to vector<128x32xbf16>
    %330 = vector.extract_strided_slice %260 {offsets = [0, 96], sizes = [128, 32], strides = [1, 1]} : vector<128x128xbf16> to vector<128x32xbf16>
    %cst_106 = arith.constant dense<0.000000e+00> : vector<128x128xf32>
    %331 = tpu.matmul %328, %329, %cst_106 {dimension_numbers = #tpu.dot_dimension_numbers<[1], [1], [0], [0], [0, 0, 1, 0], [], []>} : vector<128x32xbf16>, vector<128x32xbf16>, vector<128x128xf32> -> vector<128x128xf32>
    %332 = vector.broadcast %38 : vector<1x128xf32> to vector<128x128xf32>
    %333 = arith.addf %331, %332 : vector<128x128xf32>
    %cst_107 = arith.constant dense<0xFF800000> : vector<128xf32>
    %334 = vector.multi_reduction <maximumf>, %333, %cst_107 [1] : vector<128x128xf32> to vector<128xf32>
    %335 = vector.shape_cast %334 : vector<128xf32> to vector<128x1xf32>
    %336 = vector.broadcast %335 : vector<128x1xf32> to vector<128x128xf32>
    %337 = arith.subf %333, %336 : vector<128x128xf32>
    %338 = math.exp %337 : vector<128x128xf32>
    %cst_108 = arith.constant dense<0.000000e+00> : vector<128xf32>
    %339 = vector.multi_reduction <add>, %338, %cst_108 [1] : vector<128x128xf32> to vector<128xf32>
    %340 = vector.shape_cast %339 : vector<128xf32> to vector<128x1xf32>
    %341 = tpu.reciprocal %340 {approx = true} : vector<128x1xf32> -> vector<128x1xf32>
    %342 = vector.broadcast %341 : vector<128x1xf32> to vector<128x128xf32>
    %343 = arith.mulf %338, %342 : vector<128x128xf32>
    %344 = arith.truncf %343 : vector<128x128xf32> to vector<128x128xbf16>
    %cst_109 = arith.constant dense<0.000000e+00> : vector<128x32xf32>
    %345 = tpu.matmul %344, %330, %cst_109 {dimension_numbers = #tpu.dot_dimension_numbers<[1], [0], [0], [1], [0, 0, 1, 1], [], []>} : vector<128x128xbf16>, vector<128x32xbf16>, vector<128x32xf32> -> vector<128x32xf32>
    %346 = arith.truncf %345 : vector<128x32xf32> to vector<128x32xbf16>
    %347 = vector.extract_strided_slice %235 {offsets = [96, 0], sizes = [32, 128], strides = [1, 1]} : vector<128x128xbf16> to vector<32x128xbf16>
    %cst_110 = arith.constant dense<0.000000e+00> : vector<128x128xf32>
    %348 = tpu.matmul %346, %347, %cst_110 {dimension_numbers = #tpu.dot_dimension_numbers<[1], [0], [0], [1], [0, 0, 1, 1], [], []>} : vector<128x32xbf16>, vector<32x128xbf16>, vector<128x128xf32> -> vector<128x128xf32>
    %349 = arith.addf %327, %348 : vector<128x128xf32>
    %350 = vector.extract_strided_slice %241 {offsets = [3, 0], sizes = [1, 128], strides = [1, 1]} : vector<9x128xf32> to vector<1x128xf32>
    %351 = vector.broadcast %350 : vector<1x128xf32> to vector<128x128xf32>
    %352 = arith.addf %349, %351 : vector<128x128xf32>
    %353 = arith.addf %231, %352 : vector<128x128xf32>
    %354 = vector.extract_strided_slice %241 {offsets = [4, 0], sizes = [1, 128], strides = [1, 1]} : vector<9x128xf32> to vector<1x128xf32>
    %355 = vector.extract_strided_slice %241 {offsets = [5, 0], sizes = [1, 128], strides = [1, 1]} : vector<9x128xf32> to vector<1x128xf32>
    %cst_111 = arith.constant dense<0.000000e+00> : vector<128xf32>
    %356 = vector.multi_reduction <add>, %353, %cst_111 [1] : vector<128x128xf32> to vector<128xf32>
    %357 = vector.shape_cast %356 : vector<128xf32> to vector<128x1xf32>
    %cst_112 = arith.constant 1.280000e+02 : f32
    %358 = vector.broadcast %cst_112 : f32 to vector<128x1xf32>
    %359 = arith.divf %357, %358 : vector<128x1xf32>
    %360 = vector.broadcast %359 : vector<128x1xf32> to vector<128x128xf32>
    %361 = arith.subf %353, %360 : vector<128x128xf32>
    %362 = arith.mulf %361, %361 : vector<128x128xf32>
    %cst_113 = arith.constant dense<0.000000e+00> : vector<128xf32>
    %363 = vector.multi_reduction <add>, %362, %cst_113 [1] : vector<128x128xf32> to vector<128xf32>
    %364 = vector.shape_cast %363 : vector<128xf32> to vector<128x1xf32>
    %cst_114 = arith.constant 1.280000e+02 : f32
    %365 = vector.broadcast %cst_114 : f32 to vector<128x1xf32>
    %366 = arith.divf %364, %365 : vector<128x1xf32>
    %367 = vector.broadcast %359 : vector<128x1xf32> to vector<128x128xf32>
    %368 = arith.subf %353, %367 : vector<128x128xf32>
    %cst_115 = arith.constant 9.99999996E-13 : f32
    %369 = vector.broadcast %cst_115 : f32 to vector<128x1xf32>
    %370 = arith.addf %366, %369 : vector<128x1xf32>
    %371 = math.rsqrt %370 : vector<128x1xf32>
    %372 = vector.broadcast %371 : vector<128x1xf32> to vector<128x128xf32>
    %373 = arith.mulf %368, %372 : vector<128x128xf32>
    %374 = vector.broadcast %354 : vector<1x128xf32> to vector<128x128xf32>
    %375 = arith.mulf %373, %374 : vector<128x128xf32>
    %376 = vector.broadcast %355 : vector<1x128xf32> to vector<128x128xf32>
    %377 = arith.addf %375, %376 : vector<128x128xf32>
    %378 = arith.truncf %377 : vector<128x128xf32> to vector<128x128xbf16>
    %cst_116 = arith.constant dense<0.000000e+00> : vector<128x512xf32>
    %379 = tpu.matmul %378, %237, %cst_116 {dimension_numbers = #tpu.dot_dimension_numbers<[1], [0], [0], [1], [0, 0, 1, 1], [], []>} : vector<128x128xbf16>, vector<128x512xbf16>, vector<128x512xf32> -> vector<128x512xf32>
    %380 = vector.broadcast %243 : vector<1x512xf32> to vector<128x512xf32>
    %381 = arith.addf %379, %380 : vector<128x512xf32>
    %382 = arith.mulf %381, %381 : vector<128x512xf32>
    %383 = arith.mulf %381, %382 : vector<128x512xf32>
    %cst_117 = arith.constant 4.471500e-02 : f32
    %384 = vector.broadcast %cst_117 : f32 to vector<128x512xf32>
    %385 = arith.mulf %384, %383 : vector<128x512xf32>
    %386 = arith.addf %381, %385 : vector<128x512xf32>
    %cst_118 = arith.constant 0.797884583 : f32
    %387 = vector.broadcast %cst_118 : f32 to vector<128x512xf32>
    %388 = arith.mulf %387, %386 : vector<128x512xf32>
    %389 = math.tanh %388 : vector<128x512xf32>
    %cst_119 = arith.constant 1.000000e+00 : f32
    %390 = vector.broadcast %cst_119 : f32 to vector<128x512xf32>
    %391 = arith.addf %390, %389 : vector<128x512xf32>
    %cst_120 = arith.constant 5.000000e-01 : f32
    %392 = vector.broadcast %cst_120 : f32 to vector<128x512xf32>
    %393 = arith.mulf %392, %391 : vector<128x512xf32>
    %394 = arith.mulf %381, %393 : vector<128x512xf32>
    %395 = arith.truncf %394 : vector<128x512xf32> to vector<128x512xbf16>
    %cst_121 = arith.constant dense<0.000000e+00> : vector<128x128xf32>
    %396 = tpu.matmul %395, %239, %cst_121 {dimension_numbers = #tpu.dot_dimension_numbers<[1], [0], [0], [1], [0, 0, 1, 1], [], []>} : vector<128x512xbf16>, vector<512x128xbf16>, vector<128x128xf32> -> vector<128x128xf32>
    %397 = vector.extract_strided_slice %241 {offsets = [6, 0], sizes = [1, 128], strides = [1, 1]} : vector<9x128xf32> to vector<1x128xf32>
    %398 = vector.broadcast %397 : vector<1x128xf32> to vector<128x128xf32>
    %399 = arith.addf %396, %398 : vector<128x128xf32>
    %400 = arith.addf %377, %399 : vector<128x128xf32>
    %401 = vector.extract_strided_slice %241 {offsets = [7, 0], sizes = [1, 128], strides = [1, 1]} : vector<9x128xf32> to vector<1x128xf32>
    %402 = vector.extract_strided_slice %241 {offsets = [8, 0], sizes = [1, 128], strides = [1, 1]} : vector<9x128xf32> to vector<1x128xf32>
    %cst_122 = arith.constant dense<0.000000e+00> : vector<128xf32>
    %403 = vector.multi_reduction <add>, %400, %cst_122 [1] : vector<128x128xf32> to vector<128xf32>
    %404 = vector.shape_cast %403 : vector<128xf32> to vector<128x1xf32>
    %cst_123 = arith.constant 1.280000e+02 : f32
    %405 = vector.broadcast %cst_123 : f32 to vector<128x1xf32>
    %406 = arith.divf %404, %405 : vector<128x1xf32>
    %407 = vector.broadcast %406 : vector<128x1xf32> to vector<128x128xf32>
    %408 = arith.subf %400, %407 : vector<128x128xf32>
    %409 = arith.mulf %408, %408 : vector<128x128xf32>
    %cst_124 = arith.constant dense<0.000000e+00> : vector<128xf32>
    %410 = vector.multi_reduction <add>, %409, %cst_124 [1] : vector<128x128xf32> to vector<128xf32>
    %411 = vector.shape_cast %410 : vector<128xf32> to vector<128x1xf32>
    %cst_125 = arith.constant 1.280000e+02 : f32
    %412 = vector.broadcast %cst_125 : f32 to vector<128x1xf32>
    %413 = arith.divf %411, %412 : vector<128x1xf32>
    %414 = vector.broadcast %406 : vector<128x1xf32> to vector<128x128xf32>
    %415 = arith.subf %400, %414 : vector<128x128xf32>
    %cst_126 = arith.constant 9.99999996E-13 : f32
    %416 = vector.broadcast %cst_126 : f32 to vector<128x1xf32>
    %417 = arith.addf %413, %416 : vector<128x1xf32>
    %418 = math.rsqrt %417 : vector<128x1xf32>
    %419 = vector.broadcast %418 : vector<128x1xf32> to vector<128x128xf32>
    %420 = arith.mulf %415, %419 : vector<128x128xf32>
    %421 = vector.broadcast %401 : vector<1x128xf32> to vector<128x128xf32>
    %422 = arith.mulf %420, %421 : vector<128x128xf32>
    %423 = vector.broadcast %402 : vector<1x128xf32> to vector<128x128xf32>
    %424 = arith.addf %422, %423 : vector<128x128xf32>
    %425 = vector.extract_strided_slice %424 {offsets = [0, 0], sizes = [1, 128], strides = [1, 1]} : vector<128x128xf32> to vector<1x128xf32>
    %c0_127 = arith.constant 0 : index
    %c0_128 = arith.constant 0 : index
    %c0_129 = arith.constant 0 : index
    %426 = vector.load %arg12[%c0_127, %c0_128, %c0_129] : memref<1x1x128xf32, #tpu.memory_space<vmem>>, vector<1x1x128xf32>
    %427 = vector.shape_cast %426 : vector<1x1x128xf32> to vector<1x128xf32>
    %428 = vector.shape_cast %425 : vector<1x128xf32> to vector<1x1x128xf32>
    tpu.vector_store %arg12[%c0_127, %c0_128, %c0_129], %428 {strides = array<i32>} : memref<1x1x128xf32, #tpu.memory_space<vmem>>, vector<1x1x128xf32>,
    return
  }
  func.func @transform_0(%arg0: i32) -> (i32, i32, i32) {
    %c0_i32 = arith.constant 0 : i32
    %c0_i32_0 = arith.constant 0 : i32
    %c0_i32_1 = arith.constant 0 : i32
    return %arg0, %c0_i32, %c0_i32_0 : i32, i32, i32
  }
  func.func @transform_1(%arg0: i32) -> (i32, i32) {
    %c0_i32 = arith.constant 0 : i32
    %c0_i32_0 = arith.constant 0 : i32
    %c0_i32_1 = arith.constant 0 : i32
    return %c0_i32, %c0_i32_0 : i32, i32
  }
  func.func @transform_2(%arg0: i32) -> (i32, i32) {
    %c0_i32 = arith.constant 0 : i32
    %c0_i32_0 = arith.constant 0 : i32
    %c0_i32_1 = arith.constant 0 : i32
    return %c0_i32, %c0_i32_0 : i32, i32
  }
  func.func @transform_3(%arg0: i32) -> (i32, i32) {
    %c0_i32 = arith.constant 0 : i32
    %c0_i32_0 = arith.constant 0 : i32
    %c0_i32_1 = arith.constant 0 : i32
    return %c0_i32, %c0_i32_0 : i32, i32
  }
  func.func @transform_4(%arg0: i32) -> (i32, i32, i32) {
    %c0_i32 = arith.constant 0 : i32
    %c0_i32_0 = arith.constant 0 : i32
    %c0_i32_1 = arith.constant 0 : i32
    return %arg0, %c0_i32, %c0_i32_0 : i32, i32, i32
  }
  func.func @transform_5(%arg0: i32) -> (i32, i32, i32) {
    %c0_i32 = arith.constant 0 : i32
    %c0_i32_0 = arith.constant 0 : i32
    %c0_i32_1 = arith.constant 0 : i32
    %c0_i32_2 = arith.constant 0 : i32
    return %c0_i32, %c0_i32_0, %c0_i32_1 : i32, i32, i32
  }
  func.func @transform_6(%arg0: i32) -> (i32, i32, i32) {
    %c0_i32 = arith.constant 0 : i32
    %c0_i32_0 = arith.constant 0 : i32
    %c0_i32_1 = arith.constant 0 : i32
    %c0_i32_2 = arith.constant 0 : i32
    return %c0_i32, %c0_i32_0, %c0_i32_1 : i32, i32, i32
  }
  func.func @transform_7(%arg0: i32) -> (i32, i32, i32) {
    %c0_i32 = arith.constant 0 : i32
    %c0_i32_0 = arith.constant 0 : i32
    %c0_i32_1 = arith.constant 0 : i32
    %c0_i32_2 = arith.constant 0 : i32
    return %c0_i32, %c0_i32_0, %c0_i32_1 : i32, i32, i32
  }
  func.func @transform_8(%arg0: i32) -> (i32, i32, i32) {
    %c0_i32 = arith.constant 0 : i32
    %c0_i32_0 = arith.constant 0 : i32
    %c0_i32_1 = arith.constant 0 : i32
    %c0_i32_2 = arith.constant 0 : i32
    return %c0_i32, %c0_i32_0, %c0_i32_1 : i32, i32, i32
  }
  func.func @transform_9(%arg0: i32) -> (i32, i32, i32) {
    %c0_i32 = arith.constant 0 : i32
    %c0_i32_0 = arith.constant 0 : i32
    %c0_i32_1 = arith.constant 0 : i32
    %c0_i32_2 = arith.constant 0 : i32
    return %c0_i32, %c0_i32_0, %c0_i32_1 : i32, i32, i32
  }
  func.func @transform_10(%arg0: i32) -> (i32, i32, i32) {
    %c0_i32 = arith.constant 0 : i32
    %c0_i32_0 = arith.constant 0 : i32
    %c0_i32_1 = arith.constant 0 : i32
    %c0_i32_2 = arith.constant 0 : i32
    return %c0_i32, %c0_i32_0, %c0_i32_1 : i32, i32, i32
  }
  func.func @transform_11(%arg0: i32) -> (i32, i32, i32) {
    %c0_i32 = arith.constant 0 : i32
    %c0_i32_0 = arith.constant 0 : i32
    %c0_i32_1 = arith.constant 0 : i32
    return %arg0, %c0_i32, %c0_i32_0 : i32, i32, i32
  }
}

</mosaic_0001>

<bundles_post_ra>
// kernel: bert_text_encoder.1
= control target key start
LH: loop header
LB: loop body
LE: loop exit
PB: predicated region body
PF: predicated region fallthrough
CT: control target
= control target key end

     0   :  { %s19580_s0 = inlined_call_operand.vmem [shape: s32[2,128,1], index: 0, kind: input, shape index: {}]   ;;  %s19581_s1 = inlined_call_operand.vmem [shape: bf16[64,128], index: 1, kind: input, shape index: {}]   ;;  %s19582_s2 = inlined_call_operand.vmem [shape: f32[128,128], index: 2, kind: input, shape index: {}]   ;;  %s19583_s3 = inlined_call_operand.vmem [shape: f32[2,128], index: 3, kind: input, shape index: {}]   ;;  %s19584_s4 = inlined_call_operand.vmem [shape: f32[2,1,128], index: 4, kind: input, shape index: {}]   ;;  %s19585_s5 = inlined_call_operand.hbm [shape: bf16[2,128,384], index: 5, kind: input, shape index: {}]   ;;  %s19586_s6 = inlined_call_operand.hbm [shape: bf16[2,128,128], index: 6, kind: input, shape index: {}]   ;;  %s19587_s7 = inlined_call_operand.vmem [shape: bf16[2,128,512], index: 7, kind: input, shape index: {}]   ;;  %s19588_s8 = inlined_call_operand.hbm [shape: bf16[2,512,128], index: 8, kind: input, shape index: {}]   ;;  %s19589_s9 = inlined_call_operand.vmem [shape: f32[2,9,128], index: 9, kind: input, shape index: {}]   ;;  %s19590_s10 = inlined_call_operand.vmem [shape: f32[2,1,512], index: 10, kind: input, shape index: {}]   ;;  %s19591_s11 = inlined_call_operand.hbm [shape: f32[2,1,128], index: 11, kind: output, shape index: {}]  }
   0x1   :  { %19760 = sst [smem:[#allocation77_spill]] %s19586_s6 }
   0x2   :  { %16 = vsyncpa [#allocation3], 0 }
   0x3   :  { %17 = vsyncpa [#allocation6], 0 }
   0x4   :  { %18 = vsyncpa [#allocation4], 0 }
   0x5   :  { %20 = vsyncpa [#allocation4 + $0x1], 0  ;;  %s13948_s17 = smov 0   ;;  %s13950_s18 = smov 0  }
   0x6   :  { %s13952_s19 = smov 0   ;;  %s13954_s20 = smov 0  }
   0x7 LB: > { %19761 = sst [smem:[#allocation12_spill]] %s13861_s17  ;;  %s13969_s21 = sadd.s32 4294967295, %s13873_s20   ;;  %s13873_s20 = sphi %s13954_s20, %s20172_s20   ;;  %s13869_s19 = sphi %s13952_s19, %s20174_s19   ;;  %s13865_s18 = sphi %s13950_s18, %s20176_s18   ;;  %s13861_s17 = sphi %s13948_s17, %s20175_s17  }
   0x8   : > { %19762 = sst [smem:[#allocation13_spill]] %s13869_s19  ;;  %s10512_s22 = sadd.s32 4294967294, %s13873_s20  }
   0x9   : > { %19763 = sst [smem:[#allocation14_spill]] %s13873_s20  ;;  %s13973_s23 = sadd.s32 1, %s13873_s20  }
   0xa   : > { %19764 = sst [smem:[#allocation15_spill]] %s13973_s23  ;;  %s274_s24 = sadd.s32 1, %s13869_s19 }
   0xb   : > { %s271_s25 = ssub.s32 %s13873_s20, %s13973_s23  ;;  %p284_p0 = scmp.ne.s32.totalorder %s13869_s19, %s13865_s18 }
   0xc   : > { %p272_p1 = scmp.eq.s32.totalorder %s271_s25, 0  ;;  %p285_p2 = scmp.eq.s32.totalorder %s13969_s21, 1 }
   0xd   : > { %p290_p3 = scmp.ne.s32.totalorder %s13865_s18, %s13861_s17  ;;  %p291_p4 = scmp.eq.s32.totalorder %s10512_s22, 1 }
   0xe   : > { %s13984_s26 = scalar_select %p272_p1, %s13869_s19, %s274_s24  }
   0xf   : > { %p13986_p5 = por %p285_p2, %p284_p0  ;;  %p13990_p6 = por %p291_p4, %p290_p3 }
  0x10   : > { %19765 = sst [smem:[#allocation16_spill]] %s13984_s26  ;;  %p10513_p7 = scmp.ge.s32.totalorder %s13873_s20, 1 }
  0x11   : > { %s19766_s27 = scalar_select %p13986_p5, 1, 0 }
  0x12   : > { %s19767_s28 = scalar_select %p13990_p6, 1, 0 }
  0x13   : > { %p298_p8 = scmp.lt.s32.totalorder %s13873_s20, 3  ;;  %p19593_p9 = scmp.eq.s32.totalorder %s13969_s21, 0 }
  0x14   : > { %19768 = sst [smem:[#allocation17_spill]] %s19767_s28  ;;  %s13875_s30 = smov [#allocation5]  }
  0x15   : > { %p13997_p10 = pnand %p10513_p7, %p298_p8  ;;  %s332_s12 = sshll.u32 %s13875_s30, 4  ;;  %s333_s12 = int_to_ptr.vmem [resolvable:$true] %s332_s12 }
  0x16   : > { %s13876_s14 = smov [#allocation2]   ;;  %s19771_s6 = sld [smem:[#allocation77_spill]] }
  0x17   : > { %s19769_s29 = scalar_select %p13997_p10, 1, 0 }
  0x18   : > { %p12500_p11 = pneg %p13997_p10  ;;  %s319_s15 = sshll.u32 %s13876_s14, 4  ;;  %s14009_s15 = int_to_ptr.vmem [resolvable:$true] %s319_s15 }
  0x1a   : > { %p14005_p12 = pnand %p19593_p9, %p12500_p11 }
  0x1c   : > { %s13719_s24 = scalar_lea.hbm %s19771_s6, 2048  ;;  %p14019_p0 = pneg %p14005_p12 }
  0x1d   : > { %p13720_p13 = scmp.ne.s32.totalorder %s19771_s6, %s13719_s24  ;;  %p13726_p3 = scmp.lt.u32.totalorder %s13719_s24, %s19771_s6 }
  0x1f   : > { %p13722_p1 = pnand %p14019_p0, %p13720_p13 }
  0x21   : > { %p13723_p2 = pneg %p13722_p1 }
  0x23   : > { %p13728_p4 = pnand %p13726_p3, %p13723_p2 }
  0x25   : > { %13731 = shalt.err (!%p13728_p4)
}
  0x26   : > { %s13732_s16 = scalar_lea.vmem %s333_s12, 2048  ;;  %p13740_p9 = scmp.lt.s32.totalorder %s333_s12, %s333_s12 }
  0x27   : > { %p13733_p7 = scmp.ne.s32.totalorder %s333_s12, %s13732_s16  ;;  %p13741_p6 = scmp.lt.s32.totalorder %s13732_s16, %s13732_s16 }
  0x29   : > { %p13735_p8 = pnand %p13733_p7, %p14019_p0  ;;  %p13742_p5 = por %p13741_p6, %p13740_p9 }
  0x2b   : > { %p13736_p11 = pneg %p13735_p8 }
  0x2d   : > { %p13743_p10 = pnand %p13742_p5, %p13736_p11 }
  0x2f   : > { %13746 = shalt.err (!%p13743_p10)
}
  0x30   : > { %s19601_s26 = smov 64   ;;  %s19602_s22 = smov 4  }
  0x31   : > { %12506 = dma.hbm_to_vmem [thread:$0]  (!%p14005_p12), %s19771_s6, 2048, %s333_s12, [#allocation6], %s19601_s26, %s19601_s26, %s19602_s22  }
  0x32   : > { %s13747_s23 = scalar_lea.hbm %s19585_s5, 6144 }
  0x33   : > { %p13748_p5 = scmp.ne.s32.totalorder %s19585_s5, %s13747_s23  ;;  %p13754_p10 = scmp.lt.u32.totalorder %s13747_s23, %s19585_s5 }
  0x35   : > { %p13750_p6 = pnand %p13748_p5, %p14019_p0 }
  0x37   : > { %p13751_p9 = pneg %p13750_p6 }
  0x39   : > { %p13756_p13 = pnand %p13754_p10, %p13751_p9 }
  0x3b   : > { %13759 = shalt.err (!%p13756_p13)
}
  0x3c   : > { %s13760_s12 = scalar_lea.vmem %s14009_s15, 6144  ;;  %p13768_p4 = scmp.lt.s32.totalorder %s14009_s15, %s14009_s15 }
  0x3d   : > { %p13761_p1 = scmp.ne.s32.totalorder %s14009_s15, %s13760_s12  ;;  %p13769_p7 = scmp.lt.s32.totalorder %s13760_s12, %s13760_s12 }
  0x3f   : > { %p13763_p2 = pnand %p13761_p1, %p14019_p0  ;;  %p13770_p8 = por %p13769_p7, %p13768_p4 }
  0x41   : > { %p13764_p3 = pneg %p13763_p2 }
  0x43   : > { %p13771_p11 = pnand %p13770_p8, %p13764_p3 }
  0x45   : > { %13774 = shalt.err (!%p13771_p11)
}
  0x46   : > { %s13879_s28 = smov 192   ;;  %s13880_s17 = smov 12  }
  0x47   : > { %12503 = dma.hbm_to_vmem [thread:$0]  (!%p14005_p12), %s19585_s5, 6144, %s14009_s15, [#allocation3], %s13879_s28, %s13879_s28, %s13880_s17  }
  0x48   : > { %s13881_s19 = smov [#allocation7]   ;;  %s13775_s16 = scalar_lea.hbm %s19588_s8, 8192 }
  0x49   : > { %s348_s24 = sshll.u32 %s13881_s19, 4  ;;  %p13776_p5 = scmp.ne.s32.totalorder %s19588_s8, %s13775_s16  ;;  %s349_s24 = int_to_ptr.vmem [resolvable:$true] %s348_s24 }
  0x4a   : > { %p13782_p10 = scmp.lt.u32.totalorder %s13775_s16, %s19588_s8 }
  0x4b   : > { %p13778_p6 = pnand %p13776_p5, %p14019_p0 }
  0x4d   : > { %p13779_p9 = pneg %p13778_p6 }
  0x4f   : > { %p13784_p13 = pnand %p13782_p10, %p13779_p9 }
  0x51   : > { %13787 = shalt.err (!%p13784_p13)
}
  0x52   : > { %s13788_s15 = scalar_lea.vmem %s349_s24, 8192  ;;  %p13796_p4 = scmp.lt.s32.totalorder %s349_s24, %s349_s24 }
  0x53   : > { %p13789_p1 = scmp.ne.s32.totalorder %s349_s24, %s13788_s15  ;;  %p13797_p7 = scmp.lt.s32.totalorder %s13788_s15, %s13788_s15 }
  0x55   : > { %p13791_p2 = pnand %p13789_p1, %p14019_p0  ;;  %p13798_p8 = por %p13797_p7, %p13796_p4 }
  0x57   : > { %p13792_p3 = pneg %p13791_p2 }
  0x59   : > { %p13799_p11 = pnand %p13798_p8, %p13792_p3 }
  0x5b   : > { %13802 = shalt.err (!%p13799_p11)
}
  0x5c   : > { %s19773_s26 = smov 4   ;;  %s19774_s28 = smov 64  }
  0x5d   : > { %12509 = dma.hbm_to_vmem [thread:$0]  (!%p14005_p12), %s19588_s8, 8192, %s349_s24, [#allocation6], %s19774_s28, %s19774_s28, %s19773_s26  }
  0x5e   : > { %p19775_p5 = scmp.ne.s32.totalorder %s19769_s29, 0 }
  0x60   : > { %384 = sbr.rel (%p19775_p5) target bundleno = 7758 (0x1e4e), region = 64 }
  0x67   : > { %p19776_p0 = scmp.eq.s32.totalorder %s13969_s21, 0 }
  0x69   : > { %13848 = dma.done.wait (%p19776_p0), [#allocation3], 6144   ;;  %p19777_p6 = pmov %p19776_p0 }
  0x6a   : > { %p19778_p9 = pmov %p19776_p0 }
  0x6b   : > { %13850 = vsyncadd (%p19777_p6), [#allocation3], 4294961152 }
  0x6c   : > { %13852 = dma.done.wait (%p19778_p9), [#allocation6], 10240   ;;  %p19779_p10 = pmov %p19776_p0 }
  0x6d   : > { %p434_p13 = scmp.lt.s32.totalorder %s13969_s21, 1  ;;  %v19603_v0 = vmov 0   ;;  %v12567_v7 = vld [vmem:[%s19581_s1] sm:$0xff]   ;;  %v12568_v8 = vld [vmem:[%s19581_s1 + $0x8] sm:$0xff]   ;;  %v12569_v11 = vld [vmem:[%s19581_s1 + $0x10] sm:$0xff]   ;;  %v459_v21 = vlaneseq  ;;  %vm613_vm4 = vcmask 523264  }
  0x6e   : > { %13854 = vsyncadd (%p19779_p10), [#allocation6], 4294957056  ;;  %12566 = vset.pattern.permute.xlu1 %v19603_v0  ;;  %12565 = vset.pattern.permute.xlu0 %v19603_v0  ;;  %v12570_v14 = vld [vmem:[%s19581_s1 + $0x18] sm:$0xff]   ;;  %v13883_v27 = vmov 0.0   ;;  %s13886_s23 = smov 32   ;;  %s10910_s22 = sshll.u32 %s13969_s21, 4 }
  0x6f   : > { %s14096_s29 = scalar_select %p434_p13, %s13969_s21, 1  ;;  %1269 = vmatprep.mubr.bf16.mxu1 %v19603_v0  ;;  %11550 = vmatprep.subr.bf16.mxu0 %v12567_v7  ;;  %v14134_v22 = vand.u32 127, %v459_v21 }
  0x70   : > { %11551 = vmatpush3.bf16.msra.mxu0 %v12567_v7  ;;  %s19538_s25 = scalar_lea.hbm %s19591_s11, %s10910_s22  ;;  %p20167_p1 = scmp.ne.s32.totalorder %s19766_s27, 0 }
  0x71   : > { %s10913_s13 = sshll.u32 %s14096_s29, 7  ;;  %11552 = vmatprep.subr.bf16.mxu0 %v12568_v8  ;;  %s13887_s21 = smov [#allocation8]  }
  0x72   : > { %s14103_s20 = scalar_lea.vmem %s19580_s0, %s10913_s13  ;;  %s13884_s13 = smov 96  }
  0x73   : > { %v445_v1 = vld [vmem:[%s14103_s20 + $0x10] sm:$0xff]  ;;  %v443_v2 = vld [vmem:[%s14103_s20] sm:$0xff]  ;;  %v446_v3 = vld [vmem:[%s14103_s20 + $0x18] sm:$0xff]  ;;  %s13807_s12 = sshll.u32 %s13887_s21, 4  ;;  %s13808_s12 = int_to_ptr.vmem [resolvable:$false] %s13807_s12 }
  0x74   : > { %468 = vperm.xlu1 %12566, %v445_v1   ;;  %462 = vperm.xlu0 %12565, %v443_v2   ;;  %v444_v4 = vld [vmem:[%s14103_s20 + $0x8] sm:$0xff]  ;;  %v447_v6 = vld [vmem:[%s14103_s20 + $0x20] sm:$0xff]  ;;  %v450_v9 = vld [vmem:[%s14103_s20 + $0x38] sm:$0xff]  ;;  %s13809_s15 = scalar_lea.vmem %s13808_s12, 32 }
  0x75   : > { %v448_v5 = vld [vmem:[%s14103_s20 + $0x28] sm:$0xff]  ;;  %v449_v10 = vld [vmem:[%s14103_s20 + $0x30] sm:$0xff]  ;;  %v451_v13 = vld [vmem:[%s14103_s20 + $0x40] sm:$0xff]  ;;  %11553 = vmatpush3.bf16.msra.mxu0 %v12568_v8 }
  0x76   : > { %v452_v12 = vld [vmem:[%s14103_s20 + $0x48] sm:$0xff]  ;;  %11554 = vmatprep.subr.bf16.mxu0 %v12569_v11  ;;  %v454_v15 = vld [vmem:[%s14103_s20 + $0x58] sm:$0xff]  ;;  %v453_v16 = vld [vmem:[%s14103_s20 + $0x50] sm:$0xff] }
  0x77   : > { %v456_v17 = vld [vmem:[%s14103_s20 + $0x68] sm:$0xff]  ;;  %v455_v18 = vld [vmem:[%s14103_s20 + $0x60] sm:$0xff]  ;;  %v458_v19 = vld [vmem:[%s14103_s20 + $0x78] sm:$0xff] }
  0x78   : > { %471 = vperm.xlu1 %12566, %v446_v3   ;;  %465 = vperm.xlu0 %12565, %v444_v4   ;;  %v457_v20 = vld [vmem:[%s14103_s20 + $0x70] sm:$0xff]  ;;  %v573_v1 = vld [vmem:[%s19582_s2] sm:$0xff]  ;;  %v574_v4 = vld [vmem:[%s19582_s2 + $0x8] sm:$0xff]  ;;  %s14642_s20 = scalar_lea.vmem %s19584_s4, %s14096_s29  ;;  %s13885_s29 = smov 64  }
  0x79   : > { %11555 = vmatpush3.bf16.msra.mxu0 %v12569_v11  ;;  %v575_v8 = vld [vmem:[%s19582_s2 + $0x10] sm:$0xff]  ;;  %v576_v11 = vld [vmem:[%s19582_s2 + $0x18] sm:$0xff] }
  0x7a   : > { %11556 = vmatprep.subr.bf16.mxu0 %v12570_v14 }
  0x7c   : > { %477 = vperm.xlu1 %12566, %v448_v5   ;;  %474 = vperm.xlu0 %12565, %v447_v6  }
  0x7d   : > { %11557 = vmatpush3.bf16.msra.mxu0 %v12570_v14 }
  0x80   : > { %483 = vperm.xlu1 %12566, %v450_v9   ;;  %480 = vperm.xlu0 %12565, %v449_v10  }
  0x84   : > { %489 = vperm.xlu1 %12566, %v452_v12   ;;  %486 = vperm.xlu0 %12565, %v451_v13   ;;  %v577_v12 = vld [vmem:[%s19582_s2 + $0x20] sm:$0xff] }
  0x88   : > { %495 = vperm.xlu1 %12566, %v454_v15   ;;  %492 = vperm.xlu0 %12565, %v453_v16  }
  0x8c   : > { %501 = vperm.xlu1 %12566, %v456_v17   ;;  %498 = vperm.xlu0 %12565, %v455_v18  }
  0x90   : > { %507 = vperm.xlu1 %12566, %v458_v19   ;;  %504 = vperm.xlu0 %12565, %v457_v20   ;;  %v578_v19 = vld [vmem:[%s19582_s2 + $0x28] sm:$0xff]  ;;  %v579_v20 = vld [vmem:[%s19582_s2 + $0x30] sm:$0xff] }
  0xf3   : > { %v469_v23 = vpop.permute.xlu1 %468  ;;  %v463_v24 = vpop.permute.xlu0 %462 }
  0xf4   : > { %vm511_vm0 = vcmp.eq.s32.totalorder %v469_v23, %v14134_v22  ;;  %vm509_vm1 = vcmp.eq.s32.totalorder %v463_v24, %v14134_v22  ;;  %v580_v24 = vld [vmem:[%s19582_s2 + $0x38] sm:$0xff] }
  0xf5   : > { %v10526_v28 = vsel %vm511_vm0, 1.0, %v13883_v27  ;;  %v10524_v30 = vsel %vm509_vm1, 1.0, %v13883_v27  ;;  %vm1537_vm1 = vcmask 261120  }
  0xf7   : > { %v472_v25 = vpop.permute.xlu1 %471  ;;  %v466_v26 = vpop.permute.xlu0 %465 }
  0xf8   : > { %vm512_vm2 = vcmp.eq.s32.totalorder %v472_v25, %v14134_v22  ;;  %vm510_vm3 = vcmp.eq.s32.totalorder %v466_v26, %v14134_v22  ;;  %v581_v25 = vld [vmem:[%s19582_s2 + $0x40] sm:$0xff] }
  0xf9   : > { %v10527_v29 = vsel %vm512_vm2, 1.0, %v13883_v27  ;;  %v10525_v31 = vsel %vm510_vm3, 1.0, %v13883_v27 }
  0xfa   : > { %v558_v32 = vpack.c.bf16 %v10527_v29, %v10526_v28  ;;  %v557_v33 = vpack.c.bf16 %v10525_v31, %v10524_v30 }
  0xfb   : > { %v478_v34 = vpop.permute.xlu1 %477  ;;  %v475_v35 = vpop.permute.xlu0 %474 }
  0xfc   : > { %vm514_vm5 = vcmp.eq.s32.totalorder %v478_v34, %v14134_v22  ;;  %vm513_vm6 = vcmp.eq.s32.totalorder %v475_v35, %v14134_v22  ;;  %11558 = vmatprep.mubr.msk.bf16.mxu0 %vm613_vm4, %v557_v33  ;;  %v583_v33 = vld [vmem:[%s19582_s2 + $0x50] sm:$0xff] }
  0xfd   : > { %v10529_v36 = vsel %vm514_vm5, 1.0, %v13883_v27  ;;  %v10528_v37 = vsel %vm513_vm6, 1.0, %v13883_v27  ;;  %11559 = vmatmul.mubr.msk.bf16.vlgmr.msra.gmra.mrb[0].mxu0 %vm613_vm4, %v558_v32  ;;  %v582_v32 = vld [vmem:[%s19582_s2 + $0x48] sm:$0xff] }
  0xfe   : > { %v559_v38 = vpack.c.bf16 %v10529_v36, %v10528_v37  ;;  %v584_v36 = vld [vmem:[%s19582_s2 + $0x58] sm:$0xff]  ;;  %v585_v37 = vld [vmem:[%s19582_s2 + $0x60] sm:$0xff] }
  0xff   : > { %v484_v39 = vpop.permute.xlu1 %483  ;;  %v481_v40 = vpop.permute.xlu0 %480 }
 0x100   : > { %vm516_vm7 = vcmp.eq.s32.totalorder %v484_v39, %v14134_v22  ;;  %vm515_vm8 = vcmp.eq.s32.totalorder %v481_v40, %v14134_v22  ;;  %11562 = vmatprep.mubr.msk.bf16.mxu0 %vm613_vm4, %v559_v38 }
 0x101   : > { %v10531_v41 = vsel %vm516_vm7, 1.0, %v13883_v27  ;;  %v10530_v42 = vsel %vm515_vm8, 1.0, %v13883_v27 }
 0x102   : > { %v560_v43 = vpack.c.bf16 %v10531_v41, %v10530_v42 }
 0x103   : > { %v490_v44 = vpop.permute.xlu1 %489  ;;  %v487_v45 = vpop.permute.xlu0 %486 }
 0x104   : > { %vm518_vm9 = vcmp.eq.s32.totalorder %v490_v44, %v14134_v22  ;;  %vm517_vm10 = vcmp.eq.s32.totalorder %v487_v45, %v14134_v22  ;;  %v586_v44 = vld [vmem:[%s19582_s2 + $0x68] sm:$0xff]  ;;  %v587_v45 = vld [vmem:[%s19582_s2 + $0x70] sm:$0xff] }
 0x105   : > { %v10533_v46 = vsel %vm518_vm9, 1.0, %v13883_v27  ;;  %v10532_v47 = vsel %vm517_vm10, 1.0, %v13883_v27  ;;  %11563 = vmatmul.mubr.msk.bf16.gmra.mrb[4].mxu0 %vm613_vm4, %v560_v43 }
 0x106   : > { %v561_v48 = vpack.c.bf16 %v10533_v46, %v10532_v47 }
 0x107   : > { %v496_v49 = vpop.permute.xlu1 %495  ;;  %v493_v50 = vpop.permute.xlu0 %492 }
 0x108   : > { %vm520_vm11 = vcmp.eq.s32.totalorder %v496_v49, %v14134_v22  ;;  %vm519_vm12 = vcmp.eq.s32.totalorder %v493_v50, %v14134_v22  ;;  %11566 = vmatprep.mubr.msk.bf16.mxu0 %vm613_vm4, %v561_v48  ;;  %v588_v48 = vld [vmem:[%s19582_s2 + $0x78] sm:$0xff]  ;;  %v12571_v50 = vld [vmem:[#allocation2 + $0x4] ss:$12 sps:$4 sm:$0xff]  }
 0x109   : > { %v10535_v51 = vsel %vm520_vm11, 1.0, %v13883_v27  ;;  %v10534_v52 = vsel %vm519_vm12, 1.0, %v13883_v27  ;;  %1237 = vmatprep.subr.bf16.mxu1 %v12571_v50 }
 0x10a   : > { %v562_v53 = vpack.c.bf16 %v10535_v51, %v10534_v52  ;;  %v12573_v51 = vld [vmem:[#allocation2] ss:$12 sps:$4 sm:$0xff]   ;;  %v12574_v52 = vld [vmem:[#allocation2 + $0x1c] ss:$12 sps:$4 sm:$0xff]  }
 0x10b   : > { %v502_v54 = vpop.permute.xlu1 %501  ;;  %v499_v55 = vpop.permute.xlu0 %498  ;;  %1238 = vmatpush1.bf16.msra.mxu1 %v12573_v51 }
 0x10c   : > { %vm522_vm13 = vcmp.eq.s32.totalorder %v502_v54, %v14134_v22  ;;  %vm521_vm14 = vcmp.eq.s32.totalorder %v499_v55, %v14134_v22  ;;  %v12576_v54 = vld [vmem:[#allocation2 + $0x18] ss:$12 sps:$4 sm:$0xff]   ;;  %1239 = vmatprep.subr.bf16.mxu1 %v12574_v52  ;;  %v12584_v52 = vld [vmem:[#allocation2 + $0x48] ss:$12 sps:$4 sm:$0xff]  }
 0x10d   : > { %v10537_v56 = vsel %vm522_vm13, 1.0, %v13883_v27  ;;  %v10536_v57 = vsel %vm521_vm14, 1.0, %v13883_v27  ;;  %11567 = vmatmul.mubr.msk.bf16.gmra.mrb[8].mxu0 %vm613_vm4, %v562_v53  ;;  %v12577_v53 = vld [vmem:[#allocation2 + $0x8] ss:$12 sps:$4 sm:$0xff]  }
 0x10e   : > { %v563_v58 = vpack.c.bf16 %v10537_v56, %v10536_v57  ;;  %11574 = vmatprep.subr.bf16.mxu0 %v12577_v53 }
 0x10f   : > { %v508_v59 = vpop.permute.xlu1 %507  ;;  %v505_v60 = vpop.permute.xlu0 %504  ;;  %11575 = vmatpush3.bf16.msra.mxu0 %v12577_v53  ;;  %1240 = vmatpush1.bf16.msra.mxu1 %v12576_v54 }
 0x110   : > { %vm524_vm15 = vcmp.eq.s32.totalorder %v508_v59, %v14134_v22  ;;  %vm523_vm0 = vcmp.eq.s32.totalorder %v505_v60, %v14134_v22  ;;  %11570 = vmatprep.mubr.msk.bf16.mxu0 %vm613_vm4, %v563_v58 }
 0x111   : > { %v10539_v61 = vsel %vm524_vm15, 1.0, %v13883_v27  ;;  %v10538_v62 = vsel %vm523_vm0, 1.0, %v13883_v27 }
 0x112   : > { %v564_v63 = vpack.c.bf16 %v10539_v61, %v10538_v62 }
 0x115   : > { %11571 = vmatmul.mubr.msk.bf16.gmra.mrb[12].mxu0 %vm613_vm4, %v564_v63 }
 0x1d0   : > { %v11560_v2 = vpop.f32.mrb[0].mxu0 }
 0x1d1   : > { %v672_v3 = vpop.f32.mrb[1].mxu0  ;;  %v14175_v10 = vadd.f32 %v11560_v2, %v575_v8 }
 0x1d2   : > { %v11561_v5 = vpop.f32.mrb[2].mxu0  ;;  %v14166_v6 = vadd.f32 %v672_v3, %v573_v1 }
 0x1d3   : > { %v675_v7 = vpop.f32.mrb[3].mxu0  ;;  %v14184_v16 = vadd.f32 %v11561_v5, %v576_v11 }
 0x1d4   : > { %736 = vadd.xlane.f32.xlu0 %v14166_v6  ;;  %v14172_v9 = vadd.f32 %v675_v7, %v574_v4 }
 0x1d6   : > { %738 = vadd.xlane.f32.xlu1 %v14172_v9 }
 0x1d8   : > { %740 = vadd.xlane.f32.xlu0 %v14175_v10  ;;  %v11564_v13 = vpop.f32.mrb[4].mxu0 }
 0x1d9   : > { %v688_v14 = vpop.f32.mrb[5].mxu0  ;;  %v14198_v23 = vadd.f32 %v11564_v13, %v579_v20 }
 0x1da   : > { %v11565_v15 = vpop.f32.mrb[6].mxu0  ;;  %v14186_v17 = vadd.f32 %v688_v14, %v577_v12 }
 0x1db   : > { %v691_v18 = vpop.f32.mrb[7].mxu0  ;;  %v14208_v29 = vadd.f32 %v11565_v15, %v580_v24 }
 0x1dc   : > { %742 = vadd.xlane.f32.xlu0 %v14184_v16  ;;  %744 = vadd.xlane.f32.xlu1 %v14186_v17  ;;  %v14196_v22 = vadd.f32 %v691_v18, %v578_v19 }
 0x1e0   : > { %746 = vadd.xlane.f32.xlu0 %v14196_v22  ;;  %748 = vadd.xlane.f32.xlu1 %v14198_v23  ;;  %v11568_v26 = vpop.f32.mrb[8].mxu0 }
 0x1e1   : > { %v704_v27 = vpop.f32.mrb[9].mxu0  ;;  %v14222_v35 = vadd.f32 %v11568_v26, %v583_v33 }
 0x1e2   : > { %v11569_v28 = vpop.f32.mrb[10].mxu0  ;;  %v14210_v30 = vadd.f32 %v704_v27, %v581_v25 }
 0x1e3   : > { %v707_v31 = vpop.f32.mrb[11].mxu0  ;;  %v14232_v41 = vadd.f32 %v11569_v28, %v584_v36 }
 0x1e4   : > { %750 = vadd.xlane.f32.xlu0 %v14208_v29  ;;  %752 = vadd.xlane.f32.xlu1 %v14210_v30  ;;  %v14220_v34 = vadd.f32 %v707_v31, %v582_v32  ;;  %v12578_v31 = vld [vmem:[#allocation2 + $0x34] ss:$12 sps:$4 sm:$0xff]  }
 0x1e5   : > { %1241 = vmatprep.subr.bf16.mxu1 %v12578_v31 }
 0x1e8   : > { %754 = vadd.xlane.f32.xlu0 %v14220_v34  ;;  %756 = vadd.xlane.f32.xlu1 %v14222_v35  ;;  %v11572_v38 = vpop.f32.mrb[12].mxu0 }
 0x1e9   : > { %v720_v39 = vpop.f32.mrb[13].mxu0  ;;  %v14246_v47 = vadd.f32 %v11572_v38, %v587_v45  ;;  %v12580_v38 = vld [vmem:[#allocation2 + $0x30] ss:$12 sps:$4 sm:$0xff]  }
 0x1ea   : > { %v11573_v40 = vpop.f32.mrb[14].mxu0  ;;  %v14234_v42 = vadd.f32 %v720_v39, %v585_v37  ;;  %v12581_v39 = vld [vmem:[#allocation2 + $0x20] ss:$12 sps:$4 sm:$0xff]   ;;  %1242 = vmatpush1.bf16.msra.mxu1 %v12580_v38 }
 0x1eb   : > { %v723_v43 = vpop.f32.mrb[15].mxu0  ;;  %v14253_v49 = vadd.f32 %v11573_v40, %v588_v48  ;;  %11576 = vmatprep.subr.bf16.mxu0 %v12581_v39 }
 0x1ec   : > { %758 = vadd.xlane.f32.xlu0 %v14232_v41  ;;  %760 = vadd.xlane.f32.xlu1 %v14234_v42  ;;  %v14244_v46 = vadd.f32 %v723_v43, %v586_v44  ;;  %v12582_v44 = vld [vmem:[#allocation2 + $0x4c] ss:$12 sps:$4 sm:$0xff]  }
 0x1ed   : > { %11577 = vmatpush3.bf16.msra.mxu0 %v12581_v39  ;;  %1243 = vmatprep.subr.bf16.mxu1 %v12582_v44  ;;  %v735_v44 = vld [vmem:[%s19583_s3] sm:$0x3] }
 0x1ee   : > { %1244 = vmatpush1.bf16.msra.mxu1 %v12584_v52 }
 0x1f0   : > { %762 = vadd.xlane.f32.xlu0 %v14244_v46  ;;  %764 = vadd.xlane.f32.xlu1 %v14246_v47 }
 0x1f4   : > { %766 = vadd.xlane.f32.xlu0 %v14253_v49 }
 0x261   : > { %v737_v55 = vpop.xlane.xlu0 %736 }
 0x262   : > { %v769_v56 = vmul.f32 0.0078125, %v737_v55 }
 0x263   : > { %v739_v57 = vpop.xlane.xlu1 %738 }
 0x264   : > { %v770_v58 = vmul.f32 0.0078125, %v739_v57  ;;  %v14257_v59 = vsub.f32 %v14166_v6, %v769_v56 }
 0x265   : > { %v741_v60 = vpop.xlane.xlu0 %740 }
 0x266   : > { %v771_v61 = vmul.f32 0.0078125, %v741_v60  ;;  %v801_v62 = vmul.f32 %v14257_v59, %v14257_v59  ;;  %v14262_v63 = vsub.f32 %v14172_v9, %v770_v58 }
 0x268   : > { %817 = vadd.xlane.f32.xlu1 %v801_v62  ;;  %v802_v1 = vmul.f32 %v14262_v63, %v14262_v63  ;;  %v14267_v2 = vsub.f32 %v14175_v10, %v771_v61  ;;  %v12586_v61 = vld [vmem:[#allocation2 + $0x64] ss:$12 sps:$4 sm:$0xff]   ;;  %v12588_v62 = vld [vmem:[#allocation2 + $0x60] ss:$12 sps:$4 sm:$0xff]  }
 0x269   : > { %v745_v3 = vpop.xlane.xlu1 %744  ;;  %v743_v4 = vpop.xlane.xlu0 %742  ;;  %1245 = vmatprep.subr.bf16.mxu1 %v12586_v61 }
 0x26a   : > { %v773_v5 = vmul.f32 0.0078125, %v745_v3  ;;  %v772_v6 = vmul.f32 0.0078125, %v743_v4  ;;  %819 = vadd.xlane.f32.xlu0 %v802_v1  ;;  %v803_v7 = vmul.f32 %v14267_v2, %v14267_v2  ;;  %v12589_v1 = vld [vmem:[#allocation2 + $0x50] ss:$12 sps:$4 sm:$0xff]   ;;  %1246 = vmatpush1.bf16.msra.mxu1 %v12588_v62 }
 0x26c   : > { %821 = vadd.xlane.f32.xlu1 %v803_v7  ;;  %v14272_v8 = vsub.f32 %v14186_v17, %v773_v5  ;;  %v14275_v9 = vsub.f32 %v14184_v16, %v772_v6  ;;  %v12590_v7 = vld [vmem:[#allocation2 + $0x7c] ss:$12 sps:$4 sm:$0xff]  }
 0x26d   : > { %v749_v11 = vpop.xlane.xlu1 %748  ;;  %v747_v12 = vpop.xlane.xlu0 %746  ;;  %1247 = vmatprep.subr.bf16.mxu1 %v12590_v7 }
 0x26e   : > { %v775_v13 = vmul.f32 0.0078125, %v749_v11  ;;  %v774_v10 = vmul.f32 0.0078125, %v747_v12  ;;  %v805_v14 = vmul.f32 %v14272_v8, %v14272_v8  ;;  %v804_v15 = vmul.f32 %v14275_v9, %v14275_v9  ;;  %v12592_v11 = vld [vmem:[#allocation2 + $0x78] ss:$12 sps:$4 sm:$0xff]  }
 0x26f   : > { %1248 = vmatpush1.bf16.msra.mxu1 %v12592_v11 }
 0x270   : > { %825 = vadd.xlane.f32.xlu1 %v805_v14  ;;  %823 = vadd.xlane.f32.xlu0 %v804_v15  ;;  %v14282_v18 = vsub.f32 %v14198_v23, %v775_v13  ;;  %v14285_v17 = vsub.f32 %v14196_v22, %v774_v10  ;;  %v12594_v13 = vld [vmem:[#allocation2 + $0x94] ss:$12 sps:$4 sm:$0xff]   ;;  %v12596_v10 = vld [vmem:[#allocation2 + $0x90] ss:$12 sps:$4 sm:$0xff]   ;;  %v12598_v15 = vld [vmem:[#allocation2 + $0xac] ss:$12 sps:$4 sm:$0xff]  }
 0x271   : > { %v753_v16 = vpop.xlane.xlu1 %752  ;;  %v751_v19 = vpop.xlane.xlu0 %750  ;;  %1249 = vmatprep.subr.bf16.mxu1 %v12594_v13  ;;  %v12597_v14 = vld [vmem:[#allocation2 + $0x80] ss:$12 sps:$4 sm:$0xff]  }
 0x272   : > { %v777_v20 = vmul.f32 0.0078125, %v753_v16  ;;  %v776_v24 = vmul.f32 0.0078125, %v751_v19  ;;  %v807_v25 = vmul.f32 %v14282_v18, %v14282_v18  ;;  %v806_v26 = vmul.f32 %v14285_v17, %v14285_v17  ;;  %v12600_v16 = vld [vmem:[#allocation2 + $0xa8] ss:$12 sps:$4 sm:$0xff]   ;;  %v12602_v19 = vld [vmem:[#allocation2 + $0xb0] ss:$12 sps:$4 sm:$0xff]  }
 0x273   : > { %1250 = vmatpush1.bf16.msra.mxu1 %v12596_v10 }
 0x274   : > { %829 = vadd.xlane.f32.xlu1 %v807_v25  ;;  %827 = vadd.xlane.f32.xlu0 %v806_v26  ;;  %v14292_v27 = vsub.f32 %v14210_v30, %v777_v20  ;;  %v14295_v23 = vsub.f32 %v14208_v29, %v776_v24 }
 0x275   : > { %v757_v22 = vpop.xlane.xlu1 %756  ;;  %v755_v28 = vpop.xlane.xlu0 %754  ;;  %1251 = vmatprep.subr.bf16.mxu1 %v12598_v15 }
 0x276   : > { %v779_v32 = vmul.f32 0.0078125, %v757_v22  ;;  %v778_v33 = vmul.f32 0.0078125, %v755_v28  ;;  %v809_v36 = vmul.f32 %v14292_v27, %v14292_v27  ;;  %v808_v37 = vmul.f32 %v14295_v23, %v14295_v23 }
 0x277   : > { %1252 = vmatpush1.bf16.msra.mxu1 %v12600_v16 }
 0x278   : > { %833 = vadd.xlane.f32.xlu1 %v809_v36  ;;  %831 = vadd.xlane.f32.xlu0 %v808_v37  ;;  %v14302_v30 = vsub.f32 %v14222_v35, %v779_v32  ;;  %v14305_v29 = vsub.f32 %v14220_v34, %v778_v33  ;;  %v12585_v35 = vld [vmem:[#allocation2 + $0x38] ss:$12 sps:$4 sm:$0xff]   ;;  %v14337_v33 = vshrl.u32 %v459_v21, 7 }
 0x279   : > { %v761_v40 = vpop.xlane.xlu1 %760  ;;  %v759_v43 = vpop.xlane.xlu0 %758  ;;  %11578 = vmatprep.subr.bf16.mxu0 %v12585_v35 }
 0x27a   : > { %v781_v45 = vmul.f32 0.0078125, %v761_v40  ;;  %v780_v48 = vmul.f32 0.0078125, %v759_v43  ;;  %v811_v50 = vmul.f32 %v14302_v30, %v14302_v30  ;;  %v810_v51 = vmul.f32 %v14305_v29, %v14305_v29  ;;  %11579 = vmatpush3.bf16.msra.mxu0 %v12585_v35  ;;  %19780 = vst [vmem:[#allocation18_spill] sm:$0xff] %v14337_v33 }
 0x27b   : > { %11580 = vmatprep.subr.bf16.mxu0 %v12589_v1  ;;  %v14340_v43 = vsub.s32 0, %v14337_v33 }
 0x27c   : > { %837 = vadd.xlane.f32.xlu1 %v811_v50  ;;  %835 = vadd.xlane.f32.xlu0 %v810_v51  ;;  %v14312_v34 = vsub.f32 %v14234_v42, %v781_v45  ;;  %v14315_v53 = vsub.f32 %v14232_v41, %v780_v48 }
 0x27d   : > { %v765_v54 = vpop.xlane.xlu1 %764  ;;  %v763_v55 = vpop.xlane.xlu0 %762  ;;  %19781 = vst [vmem:[#allocation19_spill] sm:$0xff] %v14340_v43  ;;  %v14346_v35 = vrot.slane %v735_v44, %v14340_v43 }
 0x27e   : > { %v783_v56 = vmul.f32 0.0078125, %v765_v54  ;;  %v782_v57 = vmul.f32 0.0078125, %v763_v55  ;;  %v813_v58 = vmul.f32 %v14312_v34, %v14312_v34  ;;  %v812_v60 = vmul.f32 %v14315_v53, %v14315_v53  ;;  %11581 = vmatpush3.bf16.msra.mxu0 %v12589_v1 }
 0x27f   : > { %v14349_v54 = vsub.s32 1, %v14337_v33 }
 0x280   : > { %841 = vadd.xlane.f32.xlu1 %v813_v58  ;;  %839 = vadd.xlane.f32.xlu0 %v812_v60  ;;  %v14322_v41 = vsub.f32 %v14246_v47, %v783_v56  ;;  %v14325_v42 = vsub.f32 %v14244_v46, %v782_v57  ;;  %v12593_v47 = vld [vmem:[#allocation2 + $0x68] ss:$12 sps:$4 sm:$0xff]  }
 0x281   : > { %v767_v3 = vpop.xlane.xlu0 %766  ;;  %11582 = vmatprep.subr.bf16.mxu0 %v12593_v47  ;;  %19782 = vst [vmem:[#allocation20_spill] sm:$0xff] %v14349_v54 }
 0x282   : > { %v784_v4 = vmul.f32 0.0078125, %v767_v3  ;;  %v815_v5 = vmul.f32 %v14322_v41, %v14322_v41  ;;  %v814_v6 = vmul.f32 %v14325_v42, %v14325_v42  ;;  %11583 = vmatpush3.bf16.msra.mxu0 %v12593_v47 }
 0x283   : > { %11584 = vmatprep.subr.bf16.mxu0 %v12597_v14 }
 0x284   : > { %845 = vadd.xlane.f32.xlu1 %v815_v5  ;;  %843 = vadd.xlane.f32.xlu0 %v814_v6  ;;  %v14332_v46 = vsub.f32 %v14253_v49, %v784_v4  ;;  %v12601_v49 = vld [vmem:[#allocation2 + $0x98] ss:$12 sps:$4 sm:$0xff]   ;;  %v14355_v6 = vrot.slane %v735_v44, %v14349_v54 }
 0x286   : > { %v816_v12 = vmul.f32 %v14332_v46, %v14332_v46  ;;  %11585 = vmatpush3.bf16.msra.mxu0 %v12597_v14 }
 0x287   : > { %11586 = vmatprep.subr.bf16.mxu0 %v12601_v49 }
 0x288   : > { %847 = vadd.xlane.f32.xlu0 %v816_v12 }
 0x28a   : > { %11587 = vmatpush3.bf16.msra.mxu0 %v12601_v49 }
 0x28b   : > { %11588 = vmatprep.subr.bf16.mxu0 %v12602_v19 }
 0x28e   : > { %11589 = vmatpush3.bf16.msra.mxu0 %v12602_v19 }
 0x2f5   : > { %v818_v20 = vpop.xlane.xlu1 %817 }
 0x2f6   : > { %v849_v24 = vmul.f32 0.0078125, %v818_v20 }
 0x2f7   : > { %v820_v25 = vpop.xlane.xlu0 %819 }
 0x2f8   : > { %v865_v26 = vadd.f32 1e-12, %v849_v24  ;;  %v850_v22 = vmul.f32 0.0078125, %v820_v25 }
 0x2f9   : > { %v822_v28 = vpop.xlane.xlu1 %821 }
 0x2fa   : > { %12811 = vrsqrt.f32 %v865_v26  ;;  %v866_v31 = vadd.f32 1e-12, %v850_v22  ;;  %v851_v32 = vmul.f32 0.0078125, %v822_v28 }
 0x2fc   : > { %12813 = vrsqrt.f32 %v866_v31  ;;  %v867_v36 = vadd.f32 1e-12, %v851_v32 }
 0x2fd   : > { %v826_v37 = vpop.xlane.xlu1 %825  ;;  %v824_v38 = vpop.xlane.xlu0 %823 }
 0x2fe   : > { %12815 = vrsqrt.f32 %v867_v36  ;;  %v853_v39 = vmul.f32 0.0078125, %v826_v37  ;;  %v852_v40 = vmul.f32 0.0078125, %v824_v38 }
 0x300   : > { %v869_v45 = vadd.f32 1e-12, %v853_v39  ;;  %v868_v48 = vadd.f32 1e-12, %v852_v40 }
 0x301   : > { %v830_v50 = vpop.xlane.xlu1 %829  ;;  %v828_v51 = vpop.xlane.xlu0 %827 }
 0x302   : > { %12817 = vrsqrt.f32 %v869_v45  ;;  %v855_v21 = vmul.f32 0.0078125, %v830_v50  ;;  %v854_v52 = vmul.f32 0.0078125, %v828_v51 }
 0x303   : > { %12819 = vrsqrt.f32 %v868_v48 }
 0x304   : > { %v12812_v55 = vpop.eup %12811  ;;  %v871_v56 = vadd.f32 1e-12, %v855_v21  ;;  %v870_v57 = vadd.f32 1e-12, %v854_v52 }
 0x305   : > { %v834_v58 = vpop.xlane.xlu1 %833  ;;  %v832_v60 = vpop.xlane.xlu0 %831  ;;  %v897_v61 = vmul.f32 %v12812_v55, %v14257_v59 }
 0x306   : > { %v12814_v62 = vpop.eup %12813  ;;  %12821 = vrsqrt.f32 %v871_v56  ;;  %v857_v1 = vmul.f32 0.0078125, %v834_v58  ;;  %v856_v3 = vmul.f32 0.0078125, %v832_v60 }
 0x307   : > { %12823 = vrsqrt.f32 %v870_v57  ;;  %v898_v4 = vmul.f32 %v12814_v62, %v14262_v63  ;;  %v917_v5 = vmul.f32 %v14346_v35, %v897_v61 }
 0x308   : > { %v12816_v7 = vpop.eup %12815  ;;  %v873_v11 = vadd.f32 1e-12, %v857_v1  ;;  %v872_v47 = vadd.f32 1e-12, %v856_v3 }
 0x309   : > { %v899_v12 = vmul.f32 %v12816_v7, %v14267_v2  ;;  %v838_v13 = vpop.xlane.xlu1 %837  ;;  %v836_v10 = vpop.xlane.xlu0 %835  ;;  %v918_v59 = vmul.f32 %v14346_v35, %v898_v4  ;;  %v14360_v63 = vadd.f32 %v14355_v6, %v917_v5 }
 0x30a   : > { %12825 = vrsqrt.f32 %v873_v11  ;;  %v859_v14 = vmul.f32 0.0078125, %v838_v13  ;;  %v858_v15 = vmul.f32 0.0078125, %v836_v10 }
 0x30b   : > { %12827 = vrsqrt.f32 %v872_v47  ;;  %19783 = vst [vmem:[#allocation21_spill] sm:$0xff] %v14360_v63  ;;  %v14363_v16 = vadd.f32 %v14355_v6, %v918_v59  ;;  %v919_v2 = vmul.f32 %v14346_v35, %v899_v12 }
 0x30c   : > { %v12818_v49 = vpop.eup %12817  ;;  %v875_v19 = vadd.f32 1e-12, %v859_v14  ;;  %v874_v20 = vadd.f32 1e-12, %v858_v15 }
 0x30d   : > { %19784 = vst [vmem:[#allocation22_spill] sm:$0xff] %v14363_v16  ;;  %v12820_v24 = vpop.eup %12819  ;;  %v842_v25 = vpop.xlane.xlu1 %841  ;;  %v1101_v22 = vpack.c.bf16 %v14363_v16, %v14360_v63  ;;  %v901_v36 = vmul.f32 %v12818_v49, %v14272_v8 }
 0x30e   : > { %v840_v26 = vpop.xlane.xlu0 %839  ;;  %v900_v28 = vmul.f32 %v12820_v24, %v14275_v9  ;;  %12829 = vrsqrt.f32 %v875_v19  ;;  %v861_v31 = vmul.f32 0.0078125, %v842_v25  ;;  %v14373_v9 = vadd.f32 %v14355_v6, %v919_v2 }
 0x30f   : > { %v860_v32 = vmul.f32 0.0078125, %v840_v26  ;;  %12831 = vrsqrt.f32 %v874_v20  ;;  %1270 = vmatmul.mubr.bf16.vlgmr.msra.gmra.mrb[0].mxu1 %v1101_v22  ;;  %11590 = vmatprep.mubr.bf16.mxu0 %v1101_v22  ;;  %v921_v55 = vmul.f32 %v14346_v35, %v901_v36 }
 0x310   : > { %v12822_v37 = vpop.eup %12821  ;;  %v920_v38 = vmul.f32 %v14346_v35, %v900_v28  ;;  %v877_v39 = vadd.f32 1e-12, %v861_v31  ;;  %1279 = vmatprep.mubr.bf16.mxu1 %v19603_v0  ;;  %19785 = vst [vmem:[#allocation23_spill] sm:$0xff] %v14373_v9 }
 0x311   : > { %v876_v40 = vadd.f32 1e-12, %v860_v32  ;;  %v12824_v44 = vpop.eup %12823  ;;  %v846_v45 = vpop.xlane.xlu1 %845  ;;  %v903_v50 = vmul.f32 %v12822_v37, %v14282_v18  ;;  %v14388_v5 = vadd.f32 %v14355_v6, %v921_v55 }
 0x312   : > { %v844_v48 = vpop.xlane.xlu0 %843  ;;  %12833 = vrsqrt.f32 %v877_v39  ;;  %v863_v51 = vmul.f32 0.0078125, %v846_v45  ;;  %v14377_v8 = vadd.f32 %v14355_v6, %v920_v38  ;;  %v902_v52 = vmul.f32 %v12824_v44, %v14285_v17 }
 0x313   : > { %v862_v21 = vmul.f32 0.0078125, %v844_v48  ;;  %12835 = vrsqrt.f32 %v876_v40  ;;  %v923_v1 = vmul.f32 %v14346_v35, %v903_v50  ;;  %19787 = vst [vmem:[#allocation25_spill] sm:$0xff] %v14388_v5 }
 0x314   : > { %19786 = vst [vmem:[#allocation24_spill] sm:$0xff] %v14377_v8  ;;  %v12826_v56 = vpop.eup %12825  ;;  %v879_v57 = vadd.f32 1e-12, %v863_v51  ;;  %v1102_v60 = vpack.c.bf16 %v14377_v8, %v14373_v9  ;;  %v922_v18 = vmul.f32 %v14346_v35, %v902_v52 }
 0x315   : > { %v878_v58 = vadd.f32 1e-12, %v862_v21  ;;  %v12828_v61 = vpop.eup %12827  ;;  %v905_v3 = vmul.f32 %v12826_v56, %v14292_v27 }
 0x316   : > { %v848_v62 = vpop.xlane.xlu0 %847  ;;  %12837 = vrsqrt.f32 %v879_v57  ;;  %11591 = vmatmul.mubr.bf16.vlgmr.msra.gmra.mrb[16].mxu0 %v1102_v60  ;;  %v904_v17 = vmul.f32 %v12828_v61, %v14295_v23  ;;  %v14391_v7 = vadd.f32 %v14355_v6, %v922_v18  ;;  %v14398_v23 = vadd.f32 %v14355_v6, %v923_v1 }
 0x317   : > { %v864_v4 = vmul.f32 0.0078125, %v848_v62  ;;  %12839 = vrsqrt.f32 %v878_v58  ;;  %1280 = vmatmul.mubr.bf16.gmra.mrb[4].mxu1 %v1102_v60  ;;  %v925_v10 = vmul.f32 %v14346_v35, %v905_v3  ;;  %v14467_v60 = vsub.s32 2, %v14337_v33 }
 0x318   : > { %19788 = vst [vmem:[#allocation26_spill] sm:$0xff] %v14391_v7  ;;  %v12830_v11 = vpop.eup %12829  ;;  %v924_v12 = vmul.f32 %v14346_v35, %v904_v17  ;;  %1289 = vmatprep.mubr.bf16.mxu1 %v19603_v0  ;;  %v1103_v13 = vpack.c.bf16 %v14391_v7, %v14388_v5  ;;  %19789 = vst [vmem:[#allocation27_spill] sm:$0xff] %v14398_v23 }
 0x319   : > { %v880_v47 = vadd.f32 1e-12, %v864_v4  ;;  %v12832_v27 = vpop.eup %12831  ;;  %v907_v15 = vmul.f32 %v12830_v11, %v14302_v30  ;;  %v14410_v2 = vadd.f32 %v14355_v6, %v925_v10  ;;  %19799 = vst [vmem:[#allocation37_spill] sm:$0xff] %v14467_v60 }
 0x31a   : > { %v14402_v59 = vadd.f32 %v14355_v6, %v924_v12  ;;  %v906_v14 = vmul.f32 %v12832_v27, %v14305_v29  ;;  %11594 = vmatprep.mubr.bf16.mxu0 %v1103_v13 }
 0x31b   : > { %12841 = vrsqrt.f32 %v880_v47  ;;  %19791 = vst [vmem:[#allocation29_spill] sm:$0xff] %v14410_v2  ;;  %v927_v29 = vmul.f32 %v14346_v35, %v907_v15 }
 0x31c   : > { %19790 = vst [vmem:[#allocation28_spill] sm:$0xff] %v14402_v59  ;;  %v12834_v49 = vpop.eup %12833  ;;  %v1104_v19 = vpack.c.bf16 %v14402_v59, %v14398_v23  ;;  %v926_v20 = vmul.f32 %v14346_v35, %v906_v14 }
 0x31d   : > { %v12836_v24 = vpop.eup %12835  ;;  %v909_v30 = vmul.f32 %v12834_v49, %v14312_v34  ;;  %v14424_v37 = vadd.f32 %v14355_v6, %v927_v29 }
 0x31e   : > { %11595 = vmatmul.mubr.bf16.gmra.mrb[20].mxu0 %v1104_v19  ;;  %v14413_v25 = vadd.f32 %v14355_v6, %v926_v20  ;;  %v908_v26 = vmul.f32 %v12836_v24, %v14315_v53 }
 0x31f   : > { %1290 = vmatmul.mubr.bf16.gmra.mrb[8].mxu1 %v1103_v13  ;;  %19793 = vst [vmem:[#allocation31_spill] sm:$0xff] %v14424_v37  ;;  %v929_v38 = vmul.f32 %v14346_v35, %v909_v30 }
 0x320   : > { %19792 = vst [vmem:[#allocation30_spill] sm:$0xff] %v14413_v25  ;;  %v12838_v22 = vpop.eup %12837  ;;  %v1105_v28 = vpack.c.bf16 %v14413_v25, %v14410_v2  ;;  %v928_v31 = vmul.f32 %v14346_v35, %v908_v26  ;;  %1299 = vmatprep.mubr.bf16.mxu1 %v19603_v0 }
 0x321   : > { %v12840_v32 = vpop.eup %12839  ;;  %v911_v36 = vmul.f32 %v12838_v22, %v14322_v41  ;;  %v14437_v48 = vadd.f32 %v14355_v6, %v929_v38 }
 0x322   : > { %11598 = vmatprep.mubr.bf16.mxu0 %v1105_v28  ;;  %v14427_v53 = vadd.f32 %v14355_v6, %v928_v31  ;;  %v910_v34 = vmul.f32 %v12840_v32, %v14325_v42 }
 0x323   : > { %v931_v41 = vmul.f32 %v14346_v35, %v911_v36  ;;  %19795 = vst [vmem:[#allocation33_spill] sm:$0xff] %v14437_v48 }
 0x324   : > { %19794 = vst [vmem:[#allocation32_spill] sm:$0xff] %v14427_v53  ;;  %v1106_v40 = vpack.c.bf16 %v14427_v53, %v14424_v37  ;;  %v930_v44 = vmul.f32 %v14346_v35, %v910_v34 }
 0x325   : > { %v12842_v39 = vpop.eup %12841  ;;  %v14447_v21 = vadd.f32 %v14355_v6, %v931_v41 }
 0x326   : > { %v912_v45 = vmul.f32 %v12842_v39, %v14332_v46  ;;  %11599 = vmatmul.mubr.bf16.gmra.mrb[24].mxu0 %v1106_v40  ;;  %v14440_v50 = vadd.f32 %v14355_v6, %v930_v44 }
 0x327   : > { %1300 = vmatmul.mubr.bf16.gmra.mrb[12].mxu1 %v1104_v19  ;;  %19797 = vst [vmem:[#allocation35_spill] sm:$0xff] %v14447_v21 }
 0x328   : > { %19796 = vst [vmem:[#allocation34_spill] sm:$0xff] %v14440_v50  ;;  %v932_v42 = vmul.f32 %v14346_v35, %v912_v45  ;;  %v1107_v51 = vpack.c.bf16 %v14440_v50, %v14437_v48  ;;  %1309 = vmatprep.mubr.bf16.mxu1 %v19603_v0  ;;  %v1098_v35 = vld [vmem:[%s19589_s9] sm:$0xff] }
 0x329   : > { %v14464_v56 = vrot.slane %v1098_v35, %v14349_v54  ;;  %v14478_v11 = vrot.slane %v1098_v35, %v14467_v60 }
 0x32a   : > { %v14450_v46 = vadd.f32 %v14355_v6, %v932_v42  ;;  %11602 = vmatprep.mubr.bf16.mxu0 %v1107_v51  ;;  %v14461_v6 = vrot.slane %v1098_v35, %v14340_v43 }
 0x32c   : > { %19798 = vst [vmem:[#allocation36_spill] sm:$0xff] %v14450_v46  ;;  %v1108_v52 = vpack.c.bf16 %v14450_v46, %v14447_v21 }
 0x32e   : > { %11603 = vmatmul.mubr.bf16.gmra.mrb[28].mxu0 %v1108_v52 }
 0x32f   : > { %1310 = vmatmul.mubr.bf16.gmra.mrb[16].mxu1 %v1105_v28 }
 0x330   : > { %1319 = vmatprep.mubr.bf16.mxu1 %v19603_v0 }
 0x337   : > { %1320 = vmatmul.mubr.bf16.gmra.mrb[20].mxu1 %v1106_v40 }
 0x338   : > { %1329 = vmatprep.mubr.bf16.mxu1 %v19603_v0 }
 0x33f   : > { %1330 = vmatmul.mubr.bf16.gmra.mrb[24].mxu1 %v1107_v51 }
 0x340   : > { %1339 = vmatprep.mubr.bf16.mxu1 %v19603_v0 }
 0x347   : > { %1340 = vmatmul.mubr.bf16.gmra.mrb[28].mxu1 %v1108_v52 }
 0x3e2   : > { %v1271_v55 = vpop.f32.mrb[0].mxu1 }
 0x3e3   : > { %v1273_v57 = vpop.f32.mrb[1].mxu1  ;;  %v1451_v61 = vadd.f32 %v14461_v6, %v1271_v55 }
 0x3e4   : > { %v1275_v58 = vpop.f32.mrb[2].mxu1  ;;  %v1479_v1 = vadd.f32 %v14464_v56, %v1273_v57 }
 0x3e5   : > { %v1452_v62 = vadd.f32 %v14461_v6, %v1275_v58  ;;  %v1277_v18 = vpop.f32.mrb[3].mxu1 }
 0x3e6   : > { %v1480_v3 = vadd.f32 %v14464_v56, %v1277_v18 }
 0x3e7   : > { %v14473_v4 = vpack.c.bf16 %v1452_v62, %v1451_v61 }
 0x3e8   : > { %v14475_v17 = vpack.c.bf16 %v1480_v3, %v1479_v1 }
 0x3e9   : > { %v11592_v47 = vpop.f32.mrb[16].mxu0  ;;  %11622 = vmatprep.mubr.msk.bf16.mxu1 %vm1537_vm1, %v14473_v4 }
 0x3ea   : > { %v1384_v12 = vpop.f32.mrb[17].mxu0  ;;  %1972 = vrot.lane.b32.xlu1 %v14475_v17, %s13884_s13  ;;  %v1281_v27 = vpop.f32.mrb[4].mxu1  ;;  %12422 = vmatprep.subr.msk.bf16.mxu1 %vm1537_vm1, %v14475_v17  ;;  %v1563_v13 = vsel %vm1537_vm1, %v14475_v17, 0  ;;  %v1509_v49 = vadd.f32 %v11592_v47, %v14478_v11 }
 0x3eb   : > { %v1453_v10 = vadd.f32 %v14461_v6, %v1281_v27  ;;  %v11593_v14 = vpop.f32.mrb[18].mxu0  ;;  %v1283_v15 = vpop.f32.mrb[5].mxu1  ;;  %11607 = vmatpush3.bf16.xpose.msra.mxu1 %v1563_v13  ;;  %v1507_v26 = vadd.f32 %v14478_v11, %v1384_v12 }
 0x3ec   : > { %v1510_v19 = vadd.f32 %v11593_v14, %v14478_v11  ;;  %v1387_v20 = vpop.f32.mrb[19].mxu0  ;;  %v1285_v24 = vpop.f32.mrb[6].mxu1  ;;  %v1481_v31 = vadd.f32 %v14464_v56, %v1283_v15 }
 0x3ed   : > { %v1508_v29 = vadd.f32 %v14478_v11, %v1387_v20  ;;  %v1454_v30 = vadd.f32 %v14461_v6, %v1285_v24  ;;  %v1287_v22 = vpop.f32.mrb[7].mxu1 }
 0x3ee   : > { %v14494_v28 = vpack.c.bf16 %v1510_v19, %v1509_v49  ;;  %v1482_v32 = vadd.f32 %v14464_v56, %v1287_v22 }
 0x3ef   : > { %v14498_v36 = vpack.c.bf16 %v1508_v29, %v1507_v26  ;;  %v14500_v34 = vpack.c.bf16 %v1454_v30, %v1453_v10 }
 0x3f0   : > { %v14502_v38 = vpack.c.bf16 %v1482_v32, %v1481_v31 }
 0x3f1   : > { %v11596_v39 = vpop.f32.mrb[20].mxu0  ;;  %11638 = vmatprep.subr.bf16.mxu0 %v14498_v36 }
 0x3f2   : > { %v1400_v40 = vpop.f32.mrb[21].mxu0  ;;  %11639 = vmatpush3.bf16.msra.mxu0 %v14498_v36  ;;  %v1291_v44 = vpop.f32.mrb[8].mxu1  ;;  %12423 = vmatprep.subr.msk.bf16.mxu1 %vm1537_vm1, %v14502_v38  ;;  %v1566_v45 = vsel %vm1537_vm1, %v14502_v38, 0  ;;  %v1513_v52 = vadd.f32 %v11596_v39, %v14478_v11 }
 0x3f3   : > { %v1455_v41 = vadd.f32 %v14461_v6, %v1291_v44  ;;  %v11597_v42 = vpop.f32.mrb[22].mxu0  ;;  %11640 = vmatprep.subr.bf16.mxu0 %v14494_v28  ;;  %v1293_v51 = vpop.f32.mrb[9].mxu1  ;;  %11609 = vmatpush3.bf16.xpose.msra.mxu1 %v1566_v45  ;;  %v1511_v58 = vadd.f32 %v14478_v11, %v1400_v40 }
 0x3f4   : > { %v1514_v35 = vadd.f32 %v11597_v42, %v14478_v11  ;;  %v1403_v55 = vpop.f32.mrb[23].mxu0  ;;  %v1295_v57 = vpop.f32.mrb[10].mxu1  ;;  %v1483_v3 = vadd.f32 %v14464_v56, %v1293_v51 }
 0x3f5   : > { %v1512_v61 = vadd.f32 %v14478_v11, %v1403_v55  ;;  %v1456_v62 = vadd.f32 %v14461_v6, %v1295_v57  ;;  %v1297_v18 = vpop.f32.mrb[11].mxu1 }
 0x3f6   : > { %v14517_v1 = vpack.c.bf16 %v1514_v35, %v1513_v52  ;;  %v1484_v47 = vadd.f32 %v14464_v56, %v1297_v18  ;;  %11641 = vmatpush3.bf16.msra.mxu0 %v14494_v28 }
 0x3f7   : > { %v14522_v12 = vpack.c.bf16 %v1512_v61, %v1511_v58  ;;  %v14524_v27 = vpack.c.bf16 %v1456_v62, %v1455_v41 }
 0x3f8   : > { %v14526_v13 = vpack.c.bf16 %v1484_v47, %v1483_v3 }
 0x3f9   : > { %v11600_v10 = vpop.f32.mrb[24].mxu0  ;;  %11642 = vmatprep.subr.bf16.mxu0 %v14522_v12 }
 0x3fa   : > { %v1416_v14 = vpop.f32.mrb[25].mxu0  ;;  %11643 = vmatpush3.bf16.msra.mxu0 %v14522_v12  ;;  %v1301_v15 = vpop.f32.mrb[12].mxu1  ;;  %12424 = vmatprep.subr.msk.bf16.mxu1 %vm1537_vm1, %v14526_v13  ;;  %v1569_v49 = vsel %vm1537_vm1, %v14526_v13, 0  ;;  %v1517_v26 = vadd.f32 %v11600_v10, %v14478_v11 }
 0x3fb   : > { %v1457_v19 = vadd.f32 %v14461_v6, %v1301_v15  ;;  %v11601_v20 = vpop.f32.mrb[26].mxu0  ;;  %11644 = vmatprep.subr.bf16.mxu0 %v14517_v1  ;;  %v1303_v24 = vpop.f32.mrb[13].mxu1  ;;  %11611 = vmatpush3.bf16.xpose.msra.mxu1 %v1569_v49  ;;  %v1515_v31 = vadd.f32 %v14478_v11, %v1416_v14 }
 0x3fc   : > { %v1518_v29 = vadd.f32 %v11601_v20, %v14478_v11  ;;  %v1419_v30 = vpop.f32.mrb[27].mxu0  ;;  %v1305_v22 = vpop.f32.mrb[14].mxu1  ;;  %v1485_v45 = vadd.f32 %v14464_v56, %v1303_v24 }
 0x3fd   : > { %v1516_v32 = vadd.f32 %v14478_v11, %v1419_v30  ;;  %v1458_v39 = vadd.f32 %v14461_v6, %v1305_v22  ;;  %v1307_v40 = vpop.f32.mrb[15].mxu1 }
 0x3fe   : > { %v14541_v44 = vpack.c.bf16 %v1518_v29, %v1517_v26  ;;  %v1486_v41 = vadd.f32 %v14464_v56, %v1307_v40  ;;  %11645 = vmatpush3.bf16.msra.mxu0 %v14517_v1 }
 0x3ff   : > { %v14546_v42 = vpack.c.bf16 %v1516_v32, %v1515_v31  ;;  %v14548_v51 = vpack.c.bf16 %v1458_v39, %v1457_v19 }
 0x400   : > { %v14550_v52 = vpack.c.bf16 %v1486_v41, %v1485_v45 }
 0x401   : > { %v11604_v35 = vpop.f32.mrb[28].mxu0  ;;  %11646 = vmatprep.subr.bf16.mxu0 %v14546_v42 }
 0x402   : > { %v1432_v55 = vpop.f32.mrb[29].mxu0  ;;  %11647 = vmatpush3.bf16.msra.mxu0 %v14546_v42  ;;  %v1311_v57 = vpop.f32.mrb[16].mxu1  ;;  %12425 = vmatprep.subr.msk.bf16.mxu1 %vm1537_vm1, %v14550_v52  ;;  %v1572_v58 = vsel %vm1537_vm1, %v14550_v52, 0  ;;  %v1521_v3 = vadd.f32 %v11604_v35, %v14478_v11 }
 0x403   : > { %v1459_v61 = vadd.f32 %v14461_v6, %v1311_v57  ;;  %v11605_v62 = vpop.f32.mrb[30].mxu0  ;;  %11648 = vmatprep.subr.bf16.mxu0 %v14541_v44  ;;  %v1313_v18 = vpop.f32.mrb[17].mxu1  ;;  %11613 = vmatpush3.bf16.xpose.msra.mxu1 %v1572_v58  ;;  %v1519_v15 = vadd.f32 %v14478_v11, %v1432_v55 }
 0x404   : > { %v1522_v47 = vadd.f32 %v11605_v62, %v14478_v11  ;;  %v1435_v10 = vpop.f32.mrb[31].mxu0  ;;  %v1315_v14 = vpop.f32.mrb[18].mxu1  ;;  %v1487_v26 = vadd.f32 %v14464_v56, %v1313_v18 }
 0x405   : > { %v1520_v49 = vadd.f32 %v14478_v11, %v1435_v10  ;;  %v1460_v19 = vadd.f32 %v14461_v6, %v1315_v14  ;;  %v1317_v20 = vpop.f32.mrb[19].mxu1 }
 0x406   : > { %v14565_v24 = vpack.c.bf16 %v1522_v47, %v1521_v3  ;;  %v1488_v29 = vadd.f32 %v14464_v56, %v1317_v20  ;;  %11649 = vmatpush3.bf16.msra.mxu0 %v14541_v44 }
 0x407   : > { %v14570_v30 = vpack.c.bf16 %v1520_v49, %v1519_v15  ;;  %v14572_v22 = vpack.c.bf16 %v1460_v19, %v1459_v61 }
 0x408   : > { %19800 = vst [vmem:[#allocation38_spill] sm:$0xff] %v14565_v24  ;;  %v14574_v31 = vpack.c.bf16 %v1488_v29, %v1487_v26 }
 0x409   : > { %11650 = vmatprep.subr.bf16.mxu0 %v14570_v30 }
 0x40a   : > { %11651 = vmatpush3.bf16.msra.mxu0 %v14570_v30  ;;  %v1321_v11 = vpop.f32.mrb[20].mxu1  ;;  %12426 = vmatprep.subr.msk.bf16.mxu1 %vm1537_vm1, %v14574_v31  ;;  %v1575_v32 = vsel %vm1537_vm1, %v14574_v31, 0 }
 0x40b   : > { %v1461_v39 = vadd.f32 %v14461_v6, %v1321_v11  ;;  %11652 = vmatprep.subr.bf16.mxu0 %v14565_v24  ;;  %v1323_v40 = vpop.f32.mrb[21].mxu1  ;;  %11615 = vmatpush3.bf16.xpose.msra.mxu1 %v1575_v32 }
 0x40c   : > { %v1325_v45 = vpop.f32.mrb[22].mxu1  ;;  %v1489_v55 = vadd.f32 %v14464_v56, %v1323_v40 }
 0x40d   : > { %v1462_v41 = vadd.f32 %v14461_v6, %v1325_v45  ;;  %v1327_v35 = vpop.f32.mrb[23].mxu1 }
 0x40e   : > { %v1490_v57 = vadd.f32 %v14464_v56, %v1327_v35  ;;  %11653 = vmatpush3.bf16.msra.mxu0 %v14565_v24 }
 0x40f   : > { %v14588_v58 = vpack.c.bf16 %v1462_v41, %v1461_v39 }
 0x410   : > { %v14590_v61 = vpack.c.bf16 %v1490_v57, %v1489_v55 }
 0x412   : > { %v1331_v62 = vpop.f32.mrb[24].mxu1  ;;  %12427 = vmatprep.subr.msk.bf16.mxu1 %vm1537_vm1, %v14590_v61  ;;  %v1578_v18 = vsel %vm1537_vm1, %v14590_v61, 0 }
 0x413   : > { %v1463_v3 = vadd.f32 %v14461_v6, %v1331_v62  ;;  %v1333_v47 = vpop.f32.mrb[25].mxu1  ;;  %11617 = vmatpush3.bf16.xpose.msra.mxu1 %v1578_v18 }
 0x414   : > { %v1335_v10 = vpop.f32.mrb[26].mxu1  ;;  %v1491_v49 = vadd.f32 %v14464_v56, %v1333_v47 }
 0x415   : > { %v1464_v14 = vadd.f32 %v14461_v6, %v1335_v10  ;;  %v1337_v15 = vpop.f32.mrb[27].mxu1 }
 0x416   : > { %v1492_v19 = vadd.f32 %v14464_v56, %v1337_v15 }
 0x417   : > { %v14600_v20 = vpack.c.bf16 %v1464_v14, %v1463_v3 }
 0x418   : > { %v14602_v26 = vpack.c.bf16 %v1492_v19, %v1491_v49 }
 0x41a   : > { %v1341_v29 = vpop.f32.mrb[28].mxu1  ;;  %12428 = vmatprep.subr.msk.bf16.mxu1 %vm1537_vm1, %v14602_v26  ;;  %v1581_v11 = vsel %vm1537_vm1, %v14602_v26, 0 }
 0x41b   : > { %v1465_v32 = vadd.f32 %v14461_v6, %v1341_v29  ;;  %v1343_v39 = vpop.f32.mrb[29].mxu1  ;;  %11619 = vmatpush3.bf16.xpose.msra.mxu1 %v1581_v11 }
 0x41c   : > { %v1345_v40 = vpop.f32.mrb[30].mxu1  ;;  %v1493_v35 = vadd.f32 %v14464_v56, %v1343_v39 }
 0x41d   : > { %v1466_v45 = vadd.f32 %v14461_v6, %v1345_v40  ;;  %v1347_v41 = vpop.f32.mrb[31].mxu1 }
 0x41e   : > { %v1494_v55 = vadd.f32 %v14464_v56, %v1347_v41  ;;  %v14645_v56 = vld [vmem:[%s14642_s20] ss:$0 sm:$0xff] }
 0x41f   : > { %v14612_v57 = vpack.c.bf16 %v1466_v45, %v1465_v32 }
 0x420   : > { %v14614_v62 = vpack.c.bf16 %v1494_v55, %v1493_v35 }
 0x422   : > { %12429 = vmatprep.subr.msk.bf16.mxu1 %vm1537_vm1, %v14614_v62  ;;  %v1584_v18 = vsel %vm1537_vm1, %v14614_v62, 0 }
 0x423   : > { %11621 = vmatpush3.bf16.xpose.msra.mxu1 %v1584_v18 }
 0x42a   : > { %11623 = vmatmul.mubr.msk.bf16.vlgmr.msra.gmra.mrb[32].mxu1 %vm1537_vm1, %v14500_v34 }
 0x42b   : > { %11626 = vmatprep.mubr.msk.bf16.mxu1 %vm1537_vm1, %v14524_v27 }
 0x432   : > { %11627 = vmatmul.mubr.msk.bf16.gmra.mrb[36].mxu1 %vm1537_vm1, %v14548_v51 }
 0x433   : > { %11630 = vmatprep.mubr.msk.bf16.mxu1 %vm1537_vm1, %v14572_v22 }
 0x43a   : > { %11631 = vmatmul.mubr.msk.bf16.gmra.mrb[40].mxu1 %vm1537_vm1, %v14588_v58 }
 0x43b   : > { %11634 = vmatprep.mubr.msk.bf16.mxu1 %vm1537_vm1, %v14600_v20 }
 0x442   : > { %11635 = vmatmul.mubr.msk.bf16.gmra.mrb[44].mxu1 %vm1537_vm1, %v14612_v57 }
 0x45c   : > { %v14634_v6 = vpop.permute.xlu1 %1972 }
 0x45d   : > { %12430 = vmatprep.subr.msk.bf16.mxu0 %vm1537_vm1, %v14634_v6 }
 0x4fd   : > { %v11624_v3 = vpop.f32.mrb[32].mxu1 }
 0x4fe   : > { %v1620_v47 = vpop.f32.mrb[33].mxu1  ;;  %v1629_v10 = vadd.f32 %v11624_v3, %v14645_v56 }
 0x4ff   : > { %v11625_v14 = vpop.f32.mrb[34].mxu1  ;;  %v1621_v19 = vadd.f32 %v14645_v56, %v1620_v47 }
 0x500   : > { %1687 = vmax.xlane.f32.xlu1 %v1629_v10  ;;  %v1623_v15 = vpop.f32.mrb[35].mxu1  ;;  %v1632_v49 = vadd.f32 %v11625_v14, %v14645_v56 }
 0x501   : > { %v1624_v29 = vadd.f32 %v14645_v56, %v1623_v15 }
 0x502   : > { %1689 = vmax.xlane.f32.xlu0 %v1632_v49 }
 0x504   : > { %1683 = vmax.xlane.f32.xlu1 %v1621_v19 }
 0x505   : > { %v11628_v11 = vpop.f32.mrb[36].mxu1 }
 0x506   : > { %v1636_v32 = vpop.f32.mrb[37].mxu1  ;;  %1685 = vmax.xlane.f32.xlu0 %v1624_v29  ;;  %v1645_v39 = vadd.f32 %v11628_v11, %v14645_v56 }
 0x507   : > { %v11629_v40 = vpop.f32.mrb[38].mxu1  ;;  %v1637_v41 = vadd.f32 %v14645_v56, %v1636_v32 }
 0x508   : > { %v1639_v45 = vpop.f32.mrb[39].mxu1  ;;  %1695 = vmax.xlane.f32.xlu1 %v1645_v39 }
 0x50c   : > { %1691 = vmax.xlane.f32.xlu1 %v1637_v41 }
 0x50d   : > { %v11632_v35 = vpop.f32.mrb[40].mxu1 }
 0x50e   : > { %v1652_v55 = vpop.f32.mrb[41].mxu1  ;;  %v14654_v18 = vadd.f32 %v11632_v35, %v14645_v56 }
 0x50f   : > { %v11633_v3 = vpop.f32.mrb[42].mxu1  ;;  %v14658_v14 = vadd.f32 %v14645_v56, %v1652_v55  ;;  %v1648_v55 = vadd.f32 %v11629_v40, %v14645_v56 }
 0x510   : > { %v1655_v47 = vpop.f32.mrb[43].mxu1  ;;  %1703 = vmax.xlane.f32.xlu1 %v14654_v18  ;;  %v14676_v60 = vadd.f32 %v11633_v3, %v14645_v56 }
 0x514   : > { %1699 = vmax.xlane.f32.xlu1 %v14658_v14 }
 0x515   : > { %v11636_v15 = vpop.f32.mrb[44].mxu1 }
 0x516   : > { %v1668_v11 = vpop.f32.mrb[45].mxu1  ;;  %v14662_v0 = vadd.f32 %v11636_v15, %v14645_v56  ;;  %v1640_v15 = vadd.f32 %v14645_v56, %v1639_v45 }
 0x517   : > { %v11637_v32 = vpop.f32.mrb[46].mxu1  ;;  %v14666_v35 = vadd.f32 %v14645_v56, %v1668_v11  ;;  %v14680_v11 = vadd.f32 %v14645_v56, %v1655_v47 }
 0x518   : > { %v1671_v54 = vpop.f32.mrb[47].mxu1  ;;  %1711 = vmax.xlane.f32.xlu1 %v14662_v0  ;;  %v14684_v43 = vadd.f32 %v11637_v32, %v14645_v56 }
 0x519   : > { %v14688_v40 = vadd.f32 %v14645_v56, %v1671_v54 }
 0x51c   : > { %1974 = vrot.lane.b32.xlu0 %v14502_v38, %s13884_s13  ;;  %1707 = vmax.xlane.f32.xlu1 %v14666_v35 }
 0x52d   : > { %1976 = vrot.lane.b32.xlu1 %v14526_v13, %s13884_s13 }
 0x53b   : > { %1697 = vmax.xlane.f32.xlu0 %v1648_v55 }
 0x53f   : > { %1693 = vmax.xlane.f32.xlu0 %v1640_v15 }
 0x543   : > { %1705 = vmax.xlane.f32.xlu0 %v14676_v60 }
 0x547   : > { %1701 = vmax.xlane.f32.xlu0 %v14680_v11 }
 0x54b   : > { %1713 = vmax.xlane.f32.xlu0 %v14684_v43 }
 0x54f   : > { %1709 = vmax.xlane.f32.xlu0 %v14688_v40 }
 0x58d   : > { %v1688_v45 = vpop.xlane.xlu1 %1687 }
 0x58e   : > { %v1717_v3 = vsub.f32 %v1629_v10, %v1688_v45 }
 0x58f   : > { %v1690_v46 = vpop.xlane.xlu0 %1689 }
 0x590   : > { %v1735_v21 = vmul.f32 1.442695, %v1717_v3  ;;  %v1718_v50 = vsub.f32 %v1632_v49, %v1690_v46 }
 0x591   : > { %v1684_v48 = vpop.xlane.xlu1 %1683 }
 0x592   : > { %12843 = vpow2.f32 %v1735_v21  ;;  %v1737_v47 = vmul.f32 1.442695, %v1718_v50  ;;  %v1715_v53 = vsub.f32 %v1621_v19, %v1684_v48 }
 0x593   : > { %v1686_v37 = vpop.xlane.xlu0 %1685 }
 0x594   : > { %12845 = vpow2.f32 %v1737_v47  ;;  %v1731_v32 = vmul.f32 1.442695, %v1715_v53  ;;  %v1716_v25 = vsub.f32 %v1624_v29, %v1686_v37 }
 0x595   : > { %v1696_v2 = vpop.xlane.xlu1 %1695 }
 0x596   : > { %12847 = vpow2.f32 %v1731_v32  ;;  %v1733_v59 = vmul.f32 1.442695, %v1716_v25  ;;  %v1721_v54 = vsub.f32 %v1645_v39, %v1696_v2 }
 0x598   : > { %12849 = vpow2.f32 %v1733_v59  ;;  %v1743_v23 = vmul.f32 1.442695, %v1721_v54  ;;  %v14715_v59 = vpop.permute.xlu0 %1974 }
 0x599   : > { %v1692_v7 = vpop.xlane.xlu1 %1691 }
 0x59a   : > { %12851 = vpow2.f32 %v1743_v23  ;;  %v1719_v10 = vsub.f32 %v1637_v41, %v1692_v7 }
 0x59c   : > { %v14691_v45 = vpop.eup %12843  ;;  %v1739_v46 = vmul.f32 1.442695, %v1719_v10 }
 0x59d   : > { %1767 = vadd.xlane.f32.xlu1 %v14691_v45  ;;  %v1704_v48 = vpop.xlane.xlu1 %1703 }
 0x59e   : > { %v14694_v50 = vpop.eup %12845  ;;  %12853 = vpow2.f32 %v1739_v46  ;;  %v1725_v39 = vsub.f32 %v14654_v18, %v1704_v48 }
 0x59f   : > { %1769 = vadd.xlane.f32.xlu0 %v14694_v50 }
 0x5a0   : > { %v14697_v37 = vpop.eup %12847  ;;  %v1751_v32 = vmul.f32 1.442695, %v1725_v39 }
 0x5a1   : > { %1763 = vadd.xlane.f32.xlu1 %v14697_v37  ;;  %v1700_v3 = vpop.xlane.xlu1 %1699 }
 0x5a2   : > { %v14700_v2 = vpop.eup %12849  ;;  %v1723_v54 = vsub.f32 %v14658_v14, %v1700_v3 }
 0x5a3   : > { %1765 = vadd.xlane.f32.xlu0 %v14700_v2 }
 0x5a4   : > { %v14703_v23 = vpop.eup %12851 }
 0x5a5   : > { %1775 = vadd.xlane.f32.xlu1 %v14703_v23 }
 0x5a8   : > { %v14706_v7 = vpop.eup %12853 }
 0x5a9   : > { %1771 = vadd.xlane.f32.xlu1 %v14706_v7 }
 0x5b9   : > { %1980 = vrot.lane.b32.xlu0 %v14574_v31, %s13884_s13 }
 0x5ba   : > { %1978 = vrot.lane.b32.xlu1 %v14550_v52, %s13884_s13 }
 0x5bd   : > { %1982 = vrot.lane.b32.xlu0 %v14590_v61, %s13884_s13 }
 0x5c8   : > { %v1698_v25 = vpop.xlane.xlu0 %1697 }
 0x5c9   : > { %v1722_v53 = vsub.f32 %v1648_v55, %v1698_v25  ;;  %v1747_v55 = vmul.f32 1.442695, %v1723_v54 }
 0x5cb   : > { %v1745_v49 = vmul.f32 1.442695, %v1722_v53  ;;  %v1712_v53 = vpop.xlane.xlu1 %1711 }
 0x5cc   : > { %v1694_v21 = vpop.xlane.xlu0 %1693 }
 0x5cd   : > { %v1720_v19 = vsub.f32 %v1640_v15, %v1694_v21  ;;  %12855 = vpow2.f32 %v1745_v49 }
 0x5cf   : > { %v1741_v41 = vmul.f32 1.442695, %v1720_v19 }
 0x5d0   : > { %v1706_v29 = vpop.xlane.xlu0 %1705 }
 0x5d1   : > { %12857 = vpow2.f32 %v1741_v41  ;;  %v1726_v10 = vsub.f32 %v14676_v60, %v1706_v29  ;;  %v1729_v60 = vsub.f32 %v14662_v0, %v1712_v53  ;;  %v1708_v29 = vpop.xlane.xlu1 %1707 }
 0x5d2   : > { %12859 = vpow2.f32 %v1751_v32 }
 0x5d3   : > { %v1753_v15 = vmul.f32 1.442695, %v1726_v10  ;;  %12861 = vpow2.f32 %v1747_v55  ;;  %v1759_v41 = vmul.f32 1.442695, %v1729_v60 }
 0x5d4   : > { %v1702_v47 = vpop.xlane.xlu0 %1701 }
 0x5d5   : > { %v1724_v48 = vsub.f32 %v14680_v11, %v1702_v47  ;;  %12863 = vpow2.f32 %v1753_v15  ;;  %v1727_v11 = vsub.f32 %v14666_v35, %v1708_v29  ;;  %v1977_v55 = vpop.permute.xlu1 %1976 }
 0x5d7   : > { %v14720_v25 = vpop.eup %12855  ;;  %v1749_v19 = vmul.f32 1.442695, %v1724_v48  ;;  %v1755_v3 = vmul.f32 1.442695, %v1727_v11 }
 0x5d8   : > { %v1714_v46 = vpop.xlane.xlu0 %1713 }
 0x5d9   : > { %v1730_v47 = vsub.f32 %v14684_v43, %v1714_v46 }
 0x5db   : > { %v14725_v49 = vpop.eup %12857  ;;  %v1761_v54 = vmul.f32 1.442695, %v1730_v47 }
 0x5dc   : > { %1777 = vadd.xlane.f32.xlu0 %v14720_v25  ;;  %v1710_v18 = vpop.xlane.xlu0 %1709  ;;  %v14729_v39 = vpop.eup %12859 }
 0x5dd   : > { %v1728_v21 = vsub.f32 %v14688_v40, %v1710_v18  ;;  %v14733_v40 = vpop.eup %12861 }
 0x5df   : > { %v1757_v14 = vmul.f32 1.442695, %v1728_v21  ;;  %v14737_v0 = vpop.eup %12863 }
 0x5e0   : > { %1773 = vadd.xlane.f32.xlu0 %v14725_v49 }
 0x5e1   : > { %12865 = vpow2.f32 %v1757_v14 }
 0x5e2   : > { %12867 = vpow2.f32 %v1749_v19 }
 0x5e3   : > { %12869 = vpow2.f32 %v1759_v41 }
 0x5e4   : > { %1783 = vadd.xlane.f32.xlu0 %v14729_v39  ;;  %12871 = vpow2.f32 %v1755_v3 }
 0x5e5   : > { %12873 = vpow2.f32 %v1761_v54 }
 0x5e8   : > { %1779 = vadd.xlane.f32.xlu0 %v14733_v40 }
 0x5eb   : > { %v14739_v32 = vpop.eup %12865 }
 0x5ec   : > { %1789 = vadd.xlane.f32.xlu1 %v14739_v32  ;;  %1785 = vadd.xlane.f32.xlu0 %v14737_v0  ;;  %v14743_v35 = vpop.eup %12867 }
 0x5ed   : > { %v14746_v10 = vpop.eup %12869 }
 0x5ee   : > { %v14749_v43 = vpop.eup %12871 }
 0x5ef   : > { %v14752_v46 = vpop.eup %12873 }
 0x5f0   : > { %1781 = vadd.xlane.f32.xlu0 %v14743_v35 }
 0x5f4   : > { %1791 = vadd.xlane.f32.xlu0 %v14746_v10 }
 0x5f8   : > { %1787 = vadd.xlane.f32.xlu0 %v14749_v43 }
 0x5fc   : > { %1793 = vadd.xlane.f32.xlu0 %v14752_v46 }
 0x5fd   : > { %1986 = vrot.lane.b32.xlu1 %v14614_v62, %s13884_s13 }
 0x601   : > { %1956 = vrot.lane.b32.xlu1 %v14572_v22, %s13884_s13 }
 0x605   : > { %1960 = vrot.lane.b32.xlu1 %v14600_v20, %s13884_s13 }
 0x609   : > { %2704 = vrot.lane.b32.xlu1 %v14475_v17, %s13885_s29 }
 0x60d   : > { %2708 = vrot.lane.b32.xlu1 %v14526_v13, %s13885_s29 }
 0x611   : > { %2712 = vrot.lane.b32.xlu1 %v14574_v31, %s13885_s29 }
 0x612   : > { %1984 = vrot.lane.b32.xlu0 %v14602_v26, %s13884_s13 }
 0x615   : > { %2716 = vrot.lane.b32.xlu1 %v14602_v26, %s13885_s29 }
 0x616   : > { %1948 = vrot.lane.b32.xlu0 %v14473_v4, %s13884_s13 }
 0x619   : > { %2690 = vrot.lane.b32.xlu1 %v14500_v34, %s13885_s29 }
 0x61a   : > { %1950 = vrot.lane.b32.xlu0 %v14500_v34, %s13884_s13 }
 0x61d   : > { %2694 = vrot.lane.b32.xlu1 %v14548_v51, %s13885_s29 }
 0x61e   : > { %1952 = vrot.lane.b32.xlu0 %v14524_v27, %s13884_s13 }
 0x621   : > { %2698 = vrot.lane.b32.xlu1 %v14588_v58, %s13885_s29 }
 0x622   : > { %1954 = vrot.lane.b32.xlu0 %v14548_v51, %s13884_s13 }
 0x625   : > { %2702 = vrot.lane.b32.xlu1 %v14612_v57, %s13885_s29 }
 0x626   : > { %1958 = vrot.lane.b32.xlu0 %v14588_v58, %s13884_s13 }
 0x629   : > { %2293 = vrot.lane.b32.xlu1 %v14498_v36, %s13884_s13 }
 0x62a   : > { %1962 = vrot.lane.b32.xlu0 %v14612_v57, %s13884_s13  ;;  %v1768_v53 = vpop.xlane.xlu1 %1767 }
 0x62c   : > { %v1770_v15 = vpop.xlane.xlu0 %1769 }
 0x62d   : > { %2295 = vrot.lane.b32.xlu1 %v14494_v28, %s13884_s13  ;;  %12875 = vrcp.f32 %v1770_v15 }
 0x62e   : > { %2706 = vrot.lane.b32.xlu0 %v14502_v38, %s13885_s29  ;;  %v1764_v18 = vpop.xlane.xlu1 %1763 }
 0x62f   : > { %12877 = vrcp.f32 %v1764_v18 }
 0x630   : > { %12879 = vrcp.f32 %v1768_v53  ;;  %v1766_v48 = vpop.xlane.xlu0 %1765  ;;  %v2013_v53 = vsel %vm1537_vm1, %v14634_v6, 0 }
 0x631   : > { %12881 = vrcp.f32 %v1766_v48  ;;  %2299 = vrot.lane.b32.xlu1 %v14517_v1, %s13884_s13 }
 0x632   : > { %2710 = vrot.lane.b32.xlu0 %v14550_v52, %s13885_s29 }
 0x634   : > { %v1981_v15 = vpop.permute.xlu0 %1980 }
 0x635   : > { %2303 = vrot.lane.b32.xlu1 %v14541_v44, %s13884_s13  ;;  %v2025_v18 = vsel %vm1537_vm1, %v1981_v15, 0 }
 0x636   : > { %2714 = vrot.lane.b32.xlu0 %v14590_v61, %s13885_s29 }
 0x637   : > { %v12876_v21 = vpop.eup %12875 }
 0x638   : > { %v1814_v29 = vmul.f32 %v12876_v21, %v14694_v50  ;;  %v1776_v50 = vpop.xlane.xlu1 %1775  ;;  %v1983_v48 = vpop.permute.xlu0 %1982 }
 0x639   : > { %v12878_v14 = vpop.eup %12877  ;;  %2307 = vrot.lane.b32.xlu1 %v14565_v24, %s13884_s13  ;;  %v2028_v21 = vsel %vm1537_vm1, %v1983_v48, 0 }
 0x63a   : > { %v12880_v60 = vpop.eup %12879  ;;  %2718 = vrot.lane.b32.xlu0 %v14614_v62, %s13885_s29  ;;  %v1811_v41 = vmul.f32 %v12878_v14, %v14697_v37  ;;  %v2019_v37 = vsel %vm1537_vm1, %v1977_v55, 0 }
 0x63b   : > { %v12882_v19 = vpop.eup %12881  ;;  %v1813_v3 = vmul.f32 %v12880_v60, %v14691_v45  ;;  %v2016_v45 = vsel %vm1537_vm1, %v14715_v59, 0 }
 0x63c   : > { %v1812_v11 = vmul.f32 %v12882_v19, %v14700_v2  ;;  %v1772_v6 = vpop.xlane.xlu1 %1771 }
 0x63d   : > { %v1828_v54 = vpack.c.bf16 %v1814_v29, %v1813_v3 }
 0x63e   : > { %2688 = vrot.lane.b32.xlu0 %v14473_v4, %s13885_s29  ;;  %v1827_v47 = vpack.c.bf16 %v1812_v11, %v1811_v41 }
 0x640   : > { %11654 = vmatprep.mubr.bf16.mxu0 %v1827_v47  ;;  %v1979_v2 = vpop.permute.xlu1 %1978 }
 0x641   : > { %11655 = vmatmul.mubr.bf16.vlgmr.msra.gmra.mrb[32].mxu0 %v1828_v54 }
 0x642   : > { %11671 = vmatpush3.bf16.xpose.msra.mxu0 %v2013_v53  ;;  %2692 = vrot.lane.b32.xlu0 %v14524_v27, %s13885_s29 }
 0x643   : > { %12431 = vmatprep.subr.msk.bf16.mxu0 %vm1537_vm1, %v14715_v59  ;;  %v2022_v59 = vsel %vm1537_vm1, %v1979_v2, 0 }
 0x646   : > { %2696 = vrot.lane.b32.xlu0 %v14572_v22, %s13885_s29 }
 0x64a   : > { %11673 = vmatpush3.bf16.xpose.msra.mxu0 %v2016_v45  ;;  %2700 = vrot.lane.b32.xlu0 %v14600_v20, %s13885_s29 }
 0x64b   : > { %12432 = vmatprep.subr.msk.bf16.mxu0 %vm1537_vm1, %v1977_v55 }
 0x64e   : > { %2297 = vrot.lane.b32.xlu0 %v14522_v12, %s13884_s13 }
 0x652   : > { %11675 = vmatpush3.bf16.xpose.msra.mxu0 %v2019_v37  ;;  %2301 = vrot.lane.b32.xlu0 %v14546_v42, %s13884_s13 }
 0x653   : > { %12433 = vmatprep.subr.msk.bf16.mxu0 %vm1537_vm1, %v1979_v2 }
 0x656   : > { %2305 = vrot.lane.b32.xlu0 %v14570_v30, %s13884_s13 }
 0x65a   : > { %11677 = vmatpush3.bf16.xpose.msra.mxu0 %v2022_v59 }
 0x65b   : > { %12434 = vmatprep.subr.msk.bf16.mxu0 %vm1537_vm1, %v1981_v15 }
 0x662   : > { %11679 = vmatpush3.bf16.xpose.msra.mxu0 %v2025_v18 }
 0x663   : > { %12435 = vmatprep.subr.msk.bf16.mxu0 %vm1537_vm1, %v1983_v48 }
 0x669   : > { %v1778_v55 = vpop.xlane.xlu0 %1777 }
 0x66a   : > { %11681 = vmatpush3.bf16.xpose.msra.mxu0 %v2028_v21  ;;  %12883 = vrcp.f32 %v1778_v55 }
 0x66b   : > { %12885 = vrcp.f32 %v1772_v6 }
 0x66c   : > { %12887 = vrcp.f32 %v1776_v50 }
 0x66d   : > { %v1774_v14 = vpop.xlane.xlu0 %1773 }
 0x66e   : > { %12889 = vrcp.f32 %v1774_v14 }
 0x671   : > { %v1784_v60 = vpop.xlane.xlu0 %1783 }
 0x674   : > { %v12884_v19 = vpop.eup %12883 }
 0x675   : > { %v1780_v29 = vpop.xlane.xlu0 %1779  ;;  %v12886_v41 = vpop.eup %12885  ;;  %v1818_v47 = vmul.f32 %v12884_v19, %v14720_v25 }
 0x676   : > { %v12888_v11 = vpop.eup %12887  ;;  %v1815_v45 = vmul.f32 %v12886_v41, %v14706_v7 }
 0x677   : > { %v1817_v2 = vmul.f32 %v12888_v11, %v14703_v23 }
 0x678   : > { %v12890_v3 = vpop.eup %12889 }
 0x679   : > { %v1786_v54 = vpop.xlane.xlu0 %1785  ;;  %v1790_v53 = vpop.xlane.xlu1 %1789  ;;  %v1816_v37 = vmul.f32 %v12890_v3, %v14725_v49  ;;  %v1830_v6 = vpack.c.bf16 %v1818_v47, %v1817_v2 }
 0x67a   : > { %12891 = vrcp.f32 %v1786_v54 }
 0x67b   : > { %v1829_v50 = vpack.c.bf16 %v1816_v37, %v1815_v45  ;;  %12893 = vrcp.f32 %v1780_v29 }
 0x67c   : > { %12895 = vrcp.f32 %v1784_v60 }
 0x67d   : > { %v1782_v59 = vpop.xlane.xlu0 %1781  ;;  %11658 = vmatprep.mubr.bf16.mxu0 %v1829_v50  ;;  %v1987_v15 = vpop.permute.xlu1 %1986 }
 0x67e   : > { %12897 = vrcp.f32 %v1782_v59  ;;  %11659 = vmatmul.mubr.bf16.gmra.mrb[36].mxu0 %v1830_v6 }
 0x67f   : > { %12899 = vrcp.f32 %v1790_v53 }
 0x681   : > { %v1792_v18 = vpop.xlane.xlu0 %1791  ;;  %v1957_v25 = vpop.permute.xlu1 %1956 }
 0x684   : > { %v12892_v48 = vpop.eup %12891 }
 0x685   : > { %v1788_v55 = vpop.xlane.xlu0 %1787  ;;  %v14845_v7 = vpop.permute.xlu1 %1960  ;;  %v1822_v14 = vmul.f32 %v12892_v48, %v14737_v0 }
 0x686   : > { %v12894_v49 = vpop.eup %12893  ;;  %12901 = vrcp.f32 %v1788_v55 }
 0x687   : > { %v12896_v23 = vpop.eup %12895  ;;  %12903 = vrcp.f32 %v1792_v18  ;;  %v1819_v29 = vmul.f32 %v12894_v49, %v14733_v40 }
 0x688   : > { %v12898_v21 = vpop.eup %12897  ;;  %v1821_v11 = vmul.f32 %v12896_v23, %v14729_v39  ;;  %v2034_v23 = vsel %vm1537_vm1, %v1987_v15, 0 }
 0x689   : > { %v1794_v60 = vpop.xlane.xlu0 %1793  ;;  %v2705_v19 = vpop.permute.xlu1 %2704  ;;  %v1820_v41 = vmul.f32 %v12898_v21, %v14743_v35 }
 0x68a   : > { %12905 = vrcp.f32 %v1794_v60  ;;  %v1832_v47 = vpack.c.bf16 %v1822_v14, %v1821_v11  ;;  %v12900_v45 = vpop.eup %12899 }
 0x68b   : > { %v1831_v3 = vpack.c.bf16 %v1820_v41, %v1819_v29  ;;  %v1824_v39 = vmul.f32 %v12900_v45, %v14739_v32 }
 0x68d   : > { %v1985_v54 = vpop.permute.xlu0 %1984  ;;  %11662 = vmatprep.mubr.bf16.mxu0 %v1831_v3  ;;  %v2709_v53 = vpop.permute.xlu1 %2708 }
 0x68e   : > { %11663 = vmatmul.mubr.bf16.gmra.mrb[40].mxu0 %v1832_v47  ;;  %12436 = vmatprep.subr.msk.bf16.mxu0 %vm1537_vm1, %v1985_v54  ;;  %v2031_v0 = vsel %vm1537_vm1, %v1985_v54, 0 }
 0x68f   : > { %11683 = vmatpush3.bf16.xpose.msra.mxu0 %v2031_v0 }
 0x690   : > { %v12902_v37 = vpop.eup %12901  ;;  %12437 = vmatprep.subr.msk.bf16.mxu0 %vm1537_vm1, %v1987_v15 }
 0x691   : > { %v1949_v40 = vpop.permute.xlu0 %1948  ;;  %v2713_v35 = vpop.permute.xlu1 %2712  ;;  %v1823_v2 = vmul.f32 %v12902_v37, %v14749_v43 }
 0x692   : > { %v12904_v50 = vpop.eup %12903 }
 0x693   : > { %v1833_v6 = vpack.c.bf16 %v1824_v39, %v1823_v2  ;;  %v1825_v55 = vmul.f32 %v12904_v50, %v14746_v10  ;;  %v2745_v10 = vsel %vm1537_vm1, %v2705_v19, 0 }
 0x694   : > { %v12906_v59 = vpop.eup %12905 }
 0x695   : > { %v1951_v18 = vpop.permute.xlu0 %1950  ;;  %11666 = vmatprep.mubr.bf16.mxu0 %v1833_v6  ;;  %v14856_v48 = vpop.permute.xlu1 %2716  ;;  %v1826_v49 = vmul.f32 %v12906_v59, %v14752_v46 }
 0x697   : > { %11685 = vmatpush3.bf16.xpose.msra.mxu0 %v2034_v23  ;;  %v1834_v21 = vpack.c.bf16 %v1826_v49, %v1825_v55 }
 0x698   : > { %12438 = vmatprep.subr.msk.bf16.mxu0 %vm1537_vm1, %v2705_v19 }
 0x699   : > { %v1953_v43 = vpop.permute.xlu0 %1952  ;;  %11667 = vmatmul.mubr.bf16.gmra.mrb[44].mxu0 %v1834_v21  ;;  %v14862_v32 = vpop.permute.xlu1 %2690 }
 0x69a   : > { %11686 = vmatprep.mubr.msk.bf16.mxu0 %vm1537_vm1, %v1949_v40 }
 0x69d   : > { %v1955_v14 = vpop.permute.xlu0 %1954  ;;  %v14865_v60 = vpop.permute.xlu1 %2694 }
 0x6a1   : > { %v1959_v29 = vpop.permute.xlu0 %1958  ;;  %11687 = vmatmul.mubr.msk.bf16.vlgmr.msra.gmra.mrb[48].mxu0 %vm1537_vm1, %v1951_v18  ;;  %v14869_v46 = vpop.permute.xlu1 %2698 }
 0x6a2   : > { %11775 = vmatpush3.bf16.xpose.msra.mxu0 %v2745_v10  ;;  %11690 = vmatprep.mubr.msk.bf16.mxu0 %vm1537_vm1, %v1953_v43 }
 0x6a5   : > { %v1963_v15 = vpop.permute.xlu0 %1962  ;;  %v14872_v41 = vpop.permute.xlu1 %2702 }
 0x6a9   : > { %v2707_v11 = vpop.permute.xlu0 %2706  ;;  %11691 = vmatmul.mubr.msk.bf16.gmra.mrb[52].mxu0 %vm1537_vm1, %v1955_v14  ;;  %v2294_v3 = vpop.permute.xlu1 %2293 }
 0x6aa   : > { %11694 = vmatprep.mubr.msk.bf16.mxu0 %vm1537_vm1, %v1957_v25  ;;  %11702 = vmatprep.subr.bf16.mxu1 %v2294_v3  ;;  %v2748_v47 = vsel %vm1537_vm1, %v2707_v11, 0  ;;  %v2751_v25 = vsel %vm1537_vm1, %v2709_v53, 0 }
 0x6ab   : > { %12439 = vmatprep.subr.msk.bf16.mxu0 %vm1537_vm1, %v2707_v11  ;;  %11703 = vmatpush3.bf16.msra.mxu1 %v2294_v3 }
 0x6ac   : > { %11777 = vmatpush3.bf16.xpose.msra.mxu0 %v2748_v47 }
 0x6ad   : > { %12440 = vmatprep.subr.msk.bf16.mxu0 %vm1537_vm1, %v2709_v53  ;;  %v2711_v19 = vpop.permute.xlu0 %2710  ;;  %v2296_v54 = vpop.permute.xlu1 %2295 }
 0x6ae   : > { %11704 = vmatprep.subr.bf16.mxu1 %v2296_v54  ;;  %v2754_v40 = vsel %vm1537_vm1, %v2711_v19, 0 }
 0x6af   : > { %11705 = vmatpush3.bf16.msra.mxu1 %v2296_v54 }
 0x6b1   : > { %v2715_v45 = vpop.permute.xlu0 %2714  ;;  %11695 = vmatmul.mubr.msk.bf16.gmra.mrb[56].mxu0 %vm1537_vm1, %v1959_v29  ;;  %v2300_v6 = vpop.permute.xlu1 %2299 }
 0x6b2   : > { %11698 = vmatprep.mubr.msk.bf16.mxu0 %vm1537_vm1, %v14845_v7  ;;  %v2757_v7 = vsel %vm1537_vm1, %v2713_v35, 0  ;;  %v2760_v59 = vsel %vm1537_vm1, %v2715_v45, 0 }
 0x6b4   : > { %11779 = vmatpush3.bf16.xpose.msra.mxu0 %v2751_v25 }
 0x6b5   : > { %12441 = vmatprep.subr.msk.bf16.mxu0 %vm1537_vm1, %v2711_v19  ;;  %v2719_v0 = vpop.permute.xlu0 %2718  ;;  %v2304_v55 = vpop.permute.xlu1 %2303 }
 0x6b6   : > { %v2766_v21 = vsel %vm1537_vm1, %v2719_v0, 0 }
 0x6b9   : > { %v2689_v37 = vpop.permute.xlu0 %2688  ;;  %11699 = vmatmul.mubr.msk.bf16.gmra.mrb[60].mxu0 %vm1537_vm1, %v1963_v15  ;;  %v2308_v23 = vpop.permute.xlu1 %2307 }
 0x6ba   : > { %11790 = vmatprep.mubr.msk.bf16.mxu0 %vm1537_vm1, %v2689_v37 }
 0x6bc   : > { %11781 = vmatpush3.bf16.xpose.msra.mxu0 %v2754_v40 }
 0x6bd   : > { %12442 = vmatprep.subr.msk.bf16.mxu0 %vm1537_vm1, %v2713_v35  ;;  %v2693_v2 = vpop.permute.xlu0 %2692  ;;  %v2763_v35 = vsel %vm1537_vm1, %v14856_v48, 0 }
 0x6c1   : > { %v2697_v39 = vpop.permute.xlu0 %2696 }
 0x6c4   : > { %11783 = vmatpush3.bf16.xpose.msra.mxu0 %v2757_v7 }
 0x6c5   : > { %12443 = vmatprep.subr.msk.bf16.mxu0 %vm1537_vm1, %v2715_v45  ;;  %v2701_v53 = vpop.permute.xlu0 %2700 }
 0x6c9   : > { %v2298_v50 = vpop.permute.xlu0 %2297 }
 0x6ca   : > { %11706 = vmatprep.subr.bf16.mxu1 %v2298_v50 }
 0x6cb   : > { %11707 = vmatpush3.bf16.msra.mxu1 %v2298_v50 }
 0x6cc   : > { %11785 = vmatpush3.bf16.xpose.msra.mxu0 %v2760_v59  ;;  %11708 = vmatprep.subr.bf16.mxu1 %v2300_v6 }
 0x6cd   : > { %12444 = vmatprep.subr.msk.bf16.mxu0 %vm1537_vm1, %v14856_v48  ;;  %v2302_v18 = vpop.permute.xlu0 %2301 }
 0x6cf   : > { %11709 = vmatpush3.bf16.msra.mxu1 %v2300_v6 }
 0x6d0   : > { %11710 = vmatprep.subr.bf16.mxu1 %v2302_v18 }
 0x6d1   : > { %v2306_v49 = vpop.permute.xlu0 %2305 }
 0x6d3   : > { %11711 = vmatpush3.bf16.msra.mxu1 %v2302_v18 }
 0x6d4   : > { %11787 = vmatpush3.bf16.xpose.msra.mxu0 %v2763_v35  ;;  %11712 = vmatprep.subr.bf16.mxu1 %v2304_v55 }
 0x6d5   : > { %12445 = vmatprep.subr.msk.bf16.mxu0 %vm1537_vm1, %v2719_v0 }
 0x6d7   : > { %11713 = vmatpush3.bf16.msra.mxu1 %v2304_v55 }
 0x6d8   : > { %11714 = vmatprep.subr.bf16.mxu1 %v2306_v49 }
 0x6db   : > { %11715 = vmatpush3.bf16.msra.mxu1 %v2306_v49 }
 0x6dc   : > { %11789 = vmatpush3.bf16.xpose.msra.mxu0 %v2766_v21  ;;  %11716 = vmatprep.subr.bf16.mxu1 %v2308_v23 }
 0x6df   : > { %11717 = vmatpush3.bf16.msra.mxu1 %v2308_v23 }
 0x6e3   : > { %11791 = vmatmul.mubr.msk.bf16.vlgmr.msra.gmra.mrb[64].mxu0 %vm1537_vm1, %v14862_v32 }
 0x6e4   : > { %11794 = vmatprep.mubr.msk.bf16.mxu0 %vm1537_vm1, %v2693_v2 }
 0x6eb   : > { %11795 = vmatmul.mubr.msk.bf16.gmra.mrb[68].mxu0 %vm1537_vm1, %v14865_v60 }
 0x6ec   : > { %11798 = vmatprep.mubr.msk.bf16.mxu0 %vm1537_vm1, %v2697_v39 }
 0x6f3   : > { %11799 = vmatmul.mubr.msk.bf16.gmra.mrb[72].mxu0 %vm1537_vm1, %v14869_v46 }
 0x6f4   : > { %11802 = vmatprep.mubr.msk.bf16.mxu0 %vm1537_vm1, %v2701_v53 }
 0x6fb   : > { %11803 = vmatmul.mubr.msk.bf16.gmra.mrb[76].mxu0 %vm1537_vm1, %v14872_v41 }
 0x714   : > { %v14908_v48 = vpop.f32.mrb[32].mxu0 }
 0x715   : > { %19801 = vst [vmem:[#allocation39_spill] sm:$0xff] %v14908_v48  ;;  %v14910_v43 = vpop.f32.mrb[33].mxu0 }
 0x716   : > { %19802 = vst [vmem:[#allocation40_spill] sm:$0xff] %v14910_v43  ;;  %v14912_v32 = vpop.f32.mrb[34].mxu0 }
 0x717   : > { %19803 = vst [vmem:[#allocation41_spill] sm:$0xff] %v14912_v32  ;;  %v14916_v60 = vpop.f32.mrb[35].mxu0 }
 0x718   : > { %19804 = vst [vmem:[#allocation42_spill] sm:$0xff] %v14916_v60 }
 0x751   : > { %v14920_v10 = vpop.f32.mrb[36].mxu0 }
 0x752   : > { %19805 = vst [vmem:[#allocation43_spill] sm:$0xff] %v14920_v10  ;;  %v14922_v46 = vpop.f32.mrb[37].mxu0 }
 0x753   : > { %19806 = vst [vmem:[#allocation44_spill] sm:$0xff] %v14922_v46  ;;  %v14924_v15 = vpop.f32.mrb[38].mxu0 }
 0x754   : > { %19807 = vst [vmem:[#allocation45_spill] sm:$0xff] %v14924_v15  ;;  %v14928_v11 = vpop.f32.mrb[39].mxu0 }
 0x755   : > { %19808 = vst [vmem:[#allocation46_spill] sm:$0xff] %v14928_v11 }
 0x761   : > { %v14932_v47 = vpop.f32.mrb[40].mxu0 }
 0x762   : > { %19809 = vst [vmem:[#allocation47_spill] sm:$0xff] %v14932_v47  ;;  %v14934_v19 = vpop.f32.mrb[41].mxu0 }
 0x763   : > { %19810 = vst [vmem:[#allocation48_spill] sm:$0xff] %v14934_v19  ;;  %v14936_v54 = vpop.f32.mrb[42].mxu0 }
 0x764   : > { %19811 = vst [vmem:[#allocation49_spill] sm:$0xff] %v14936_v54  ;;  %v14940_v25 = vpop.f32.mrb[43].mxu0 }
 0x765   : > { %19812 = vst [vmem:[#allocation50_spill] sm:$0xff] %v14940_v25 }
 0x76c   : > { %v14944_v37 = vpop.f32.mrb[44].mxu0 }
 0x76d   : > { %19813 = vst [vmem:[#allocation51_spill] sm:$0xff] %v14944_v37  ;;  %v14946_v40 = vpop.f32.mrb[45].mxu0 }
 0x76e   : > { %19814 = vst [vmem:[#allocation52_spill] sm:$0xff] %v14946_v40  ;;  %v14948_v2 = vpop.f32.mrb[46].mxu0 }
 0x76f   : > { %19815 = vst [vmem:[#allocation53_spill] sm:$0xff] %v14948_v2  ;;  %v14952_v7 = vpop.f32.mrb[47].mxu0 }
 0x770   : > { %19816 = vst [vmem:[#allocation54_spill] sm:$0xff] %v14952_v7 }
 0x774   : > { %v11688_v50 = vpop.f32.mrb[48].mxu0 }
 0x775   : > { %v14957_v6 = vadd.f32 %v11688_v50, %v14645_v56  ;;  %v2070_v59 = vpop.f32.mrb[49].mxu0 }
 0x776   : > { %v14960_v18 = vadd.f32 %v14645_v56, %v2070_v59  ;;  %v11689_v55 = vpop.f32.mrb[50].mxu0 }
 0x777   : > { %2137 = vmax.xlane.f32.xlu0 %v14957_v6  ;;  %v2073_v35 = vpop.f32.mrb[51].mxu0  ;;  %v14968_v23 = vadd.f32 %v11689_v55, %v14645_v56 }
 0x778   : > { %v14964_v49 = vadd.f32 %v14645_v56, %v2073_v35  ;;  %2133 = vmax.xlane.f32.xlu1 %v14960_v18 }
 0x77b   : > { %2135 = vmax.xlane.f32.xlu0 %v14964_v49 }
 0x77c   : > { %v11692_v21 = vpop.f32.mrb[52].mxu0  ;;  %2139 = vmax.xlane.f32.xlu1 %v14968_v23 }
 0x77d   : > { %v14973_v50 = vadd.f32 %v11692_v21, %v14645_v56  ;;  %v2086_v59 = vpop.f32.mrb[53].mxu0 }
 0x77e   : > { %v14976_v39 = vadd.f32 %v14645_v56, %v2086_v59  ;;  %v11693_v53 = vpop.f32.mrb[54].mxu0 }
 0x77f   : > { %v2089_v35 = vpop.f32.mrb[55].mxu0  ;;  %2145 = vmax.xlane.f32.xlu0 %v14973_v50  ;;  %v14984_v55 = vadd.f32 %v11693_v53, %v14645_v56 }
 0x780   : > { %v14980_v45 = vadd.f32 %v14645_v56, %v2089_v35  ;;  %2141 = vmax.xlane.f32.xlu1 %v14976_v39 }
 0x783   : > { %2143 = vmax.xlane.f32.xlu0 %v14980_v45 }
 0x784   : > { %2147 = vmax.xlane.f32.xlu1 %v14984_v55  ;;  %v11696_v21 = vpop.f32.mrb[56].mxu0 }
 0x785   : > { %v14989_v59 = vadd.f32 %v11696_v21, %v14645_v56  ;;  %v2102_v0 = vpop.f32.mrb[57].mxu0 }
 0x786   : > { %v14992_v41 = vadd.f32 %v14645_v56, %v2102_v0  ;;  %v11697_v3 = vpop.f32.mrb[58].mxu0 }
 0x787   : > { %2153 = vmax.xlane.f32.xlu0 %v14989_v59  ;;  %v2105_v35 = vpop.f32.mrb[59].mxu0  ;;  %v15000_v53 = vadd.f32 %v11697_v3, %v14645_v56 }
 0x788   : > { %v14996_v14 = vadd.f32 %v14645_v56, %v2105_v35  ;;  %2149 = vmax.xlane.f32.xlu1 %v14992_v41 }
 0x78b   : > { %2151 = vmax.xlane.f32.xlu0 %v14996_v14 }
 0x78c   : > { %2155 = vmax.xlane.f32.xlu1 %v15000_v53  ;;  %v11700_v21 = vpop.f32.mrb[60].mxu0 }
 0x78d   : > { %v15005_v0 = vadd.f32 %v11700_v21, %v14645_v56  ;;  %v2118_v29 = vpop.f32.mrb[61].mxu0 }
 0x78e   : > { %v15008_v5 = vadd.f32 %v14645_v56, %v2118_v29  ;;  %v11701_v8 = vpop.f32.mrb[62].mxu0 }
 0x78f   : > { %2161 = vmax.xlane.f32.xlu0 %v15005_v0  ;;  %v2121_v35 = vpop.f32.mrb[63].mxu0  ;;  %v15016_v3 = vadd.f32 %v11701_v8, %v14645_v56 }
 0x790   : > { %v15012_v9 = vadd.f32 %v14645_v56, %v2121_v35  ;;  %2157 = vmax.xlane.f32.xlu1 %v15008_v5 }
 0x793   : > { %2159 = vmax.xlane.f32.xlu0 %v15012_v9 }
 0x794   : > { %2163 = vmax.xlane.f32.xlu1 %v15016_v3 }
 0x7a5   : > { %3313 = vrot.lane.b32.xlu1 %v14502_v38, %s13886_s23 }
 0x7a9   : > { %3311 = vrot.lane.b32.xlu0 %v14475_v17, %s13886_s23  ;;  %3315 = vrot.lane.b32.xlu1 %v14526_v13, %s13886_s23 }
 0x7ad   : > { %3317 = vrot.lane.b32.xlu0 %v14550_v52, %s13886_s23  ;;  %3319 = vrot.lane.b32.xlu1 %v14574_v31, %s13886_s23 }
 0x7b6   : > { %v15030_v8 = vpop.f32.mrb[64].mxu0 }
 0x7b7   : > { %v15032_v56 = vpop.f32.mrb[65].mxu0 }
 0x7b8   : > { %v15034_v29 = vpop.f32.mrb[66].mxu0 }
 0x7b9   : > { %v15036_v21 = vpop.f32.mrb[67].mxu0 }
 0x7be   : > { %v15038_v38 = vpop.f32.mrb[68].mxu0 }
 0x7bf   : > { %v15040_v17 = vpop.f32.mrb[69].mxu0 }
 0x7c0   : > { %v15042_v35 = vpop.f32.mrb[70].mxu0 }
 0x7c1   : > { %v15044_v13 = vpop.f32.mrb[71].mxu0 }
 0x7c6   : > { %v15046_v52 = vpop.f32.mrb[72].mxu0 }
 0x7c7   : > { %v15048_v16 = vpop.f32.mrb[73].mxu0 }
 0x7c8   : > { %v15050_v31 = vpop.f32.mrb[74].mxu0 }
 0x7c9   : > { %v15052_v63 = vpop.f32.mrb[75].mxu0 }
 0x7ce   : > { %v15054_v33 = vpop.f32.mrb[76].mxu0 }
 0x7cf   : > { %v15056_v37 = vpop.f32.mrb[77].mxu0 }
 0x7d0   : > { %v15058_v2 = vpop.f32.mrb[78].mxu0 }
 0x7d1   : > { %v15060_v40 = vpop.f32.mrb[79].mxu0 }
 0x804   : > { %v2138_v7 = vpop.xlane.xlu0 %2137 }
 0x805   : > { %v2167_v47 = vsub.f32 %v14957_v6, %v2138_v7  ;;  %v2134_v54 = vpop.xlane.xlu1 %2133 }
 0x806   : > { %v2165_v19 = vsub.f32 %v14960_v18, %v2134_v54 }
 0x807   : > { %v2185_v25 = vmul.f32 1.442695, %v2167_v47 }
 0x808   : > { %v2181_v10 = vmul.f32 1.442695, %v2165_v19  ;;  %v2136_v15 = vpop.xlane.xlu0 %2135 }
 0x809   : > { %12907 = vpow2.f32 %v2185_v25  ;;  %v2166_v46 = vsub.f32 %v14964_v49, %v2136_v15  ;;  %v2140_v11 = vpop.xlane.xlu1 %2139 }
 0x80a   : > { %v2168_v48 = vsub.f32 %v14968_v23, %v2140_v11  ;;  %12909 = vpow2.f32 %v2181_v10 }
 0x80b   : > { %v2183_v32 = vmul.f32 1.442695, %v2166_v46 }
 0x80c   : > { %v2187_v43 = vmul.f32 1.442695, %v2168_v48  ;;  %v2146_v60 = vpop.xlane.xlu0 %2145 }
 0x80d   : > { %12911 = vpow2.f32 %v2183_v32  ;;  %v2171_v24 = vsub.f32 %v14973_v50, %v2146_v60  ;;  %v2142_v7 = vpop.xlane.xlu1 %2141 }
 0x80e   : > { %v2169_v6 = vsub.f32 %v14976_v39, %v2142_v7  ;;  %12913 = vpow2.f32 %v2187_v43 }
 0x80f   : > { %v2193_v54 = vmul.f32 1.442695, %v2171_v24 }
 0x810   : > { %v2144_v47 = vpop.xlane.xlu0 %2143  ;;  %v2189_v19 = vmul.f32 1.442695, %v2169_v6 }
 0x811   : > { %12915 = vpow2.f32 %v2193_v54  ;;  %v2148_v25 = vpop.xlane.xlu1 %2147  ;;  %v2170_v15 = vsub.f32 %v14980_v45, %v2144_v47 }
 0x812   : > { %v2172_v11 = vsub.f32 %v14984_v55, %v2148_v25  ;;  %12917 = vpow2.f32 %v2189_v19 }
 0x813   : > { %v15070_v46 = vpop.eup %12907  ;;  %v2191_v43 = vmul.f32 1.442695, %v2170_v15 }
 0x814   : > { %v2195_v48 = vmul.f32 1.442695, %v2172_v11  ;;  %v2154_v10 = vpop.xlane.xlu0 %2153  ;;  %2217 = vadd.xlane.f32.xlu0 %v15070_v46  ;;  %v15074_v24 = vpop.eup %12909 }
 0x815   : > { %v2175_v32 = vsub.f32 %v14989_v59, %v2154_v10  ;;  %v2150_v60 = vpop.xlane.xlu1 %2149 }
 0x816   : > { %12919 = vpow2.f32 %v2195_v48  ;;  %v2173_v39 = vsub.f32 %v14992_v41, %v2150_v60 }
 0x817   : > { %v15077_v18 = vpop.eup %12911  ;;  %v2201_v45 = vmul.f32 1.442695, %v2175_v32 }
 0x818   : > { %v2152_v49 = vpop.xlane.xlu0 %2151  ;;  %2215 = vadd.xlane.f32.xlu1 %v15077_v18  ;;  %2213 = vadd.xlane.f32.xlu0 %v15074_v24  ;;  %v2197_v23 = vmul.f32 1.442695, %v2173_v39  ;;  %v15081_v55 = vpop.eup %12913 }
 0x819   : > { %12921 = vpow2.f32 %v2201_v45  ;;  %v2156_v50 = vpop.xlane.xlu1 %2155  ;;  %v2174_v59 = vsub.f32 %v14996_v14, %v2152_v49 }
 0x81a   : > { %12923 = vpow2.f32 %v2191_v43  ;;  %v2176_v7 = vsub.f32 %v15000_v53, %v2156_v50 }
 0x81b   : > { %v15085_v6 = vpop.eup %12915  ;;  %12925 = vpow2.f32 %v2197_v23  ;;  %v2199_v25 = vmul.f32 1.442695, %v2174_v59 }
 0x81c   : > { %v2203_v41 = vmul.f32 1.442695, %v2176_v7  ;;  %v2162_v54 = vpop.xlane.xlu0 %2161  ;;  %2225 = vadd.xlane.f32.xlu1 %v15085_v6  ;;  %2219 = vadd.xlane.f32.xlu0 %v15081_v55  ;;  %v15091_v11 = vpop.eup %12917 }
 0x81d   : > { %v2179_v47 = vsub.f32 %v15005_v0, %v2162_v54  ;;  %v2158_v19 = vpop.xlane.xlu1 %2157 }
 0x81e   : > { %12927 = vpow2.f32 %v2203_v41  ;;  %v2177_v15 = vsub.f32 %v15008_v5, %v2158_v19 }
 0x81f   : > { %v2209_v14 = vmul.f32 1.442695, %v2179_v47 }
 0x820   : > { %v15093_v53 = vpop.eup %12919  ;;  %v2160_v48 = vpop.xlane.xlu0 %2159  ;;  %2221 = vadd.xlane.f32.xlu1 %v15091_v11  ;;  %v2205_v10 = vmul.f32 1.442695, %v2177_v15 }
 0x821   : > { %12929 = vpow2.f32 %v2209_v14  ;;  %2227 = vadd.xlane.f32.xlu0 %v15093_v53  ;;  %v2164_v32 = vpop.xlane.xlu1 %2163  ;;  %v2178_v0 = vsub.f32 %v15012_v9, %v2160_v48 }
 0x822   : > { %12931 = vpow2.f32 %v2199_v25  ;;  %v2180_v60 = vsub.f32 %v15016_v3, %v2164_v32 }
 0x823   : > { %v15099_v43 = vpop.eup %12921  ;;  %12933 = vpow2.f32 %v2205_v10  ;;  %v2207_v50 = vmul.f32 1.442695, %v2178_v0 }
 0x824   : > { %v15101_v5 = vpop.eup %12923  ;;  %v2211_v39 = vmul.f32 1.442695, %v2180_v60  ;;  %v3312_v45 = vpop.permute.xlu0 %3311  ;;  %2233 = vadd.xlane.f32.xlu1 %v15099_v43 }
 0x825   : > { %12446 = vmatprep.subr.msk.bf16.mxu0 %vm1537_vm1, %v3312_v45  ;;  %2223 = vadd.xlane.f32.xlu0 %v15101_v5  ;;  %v3314_v49 = vpop.permute.xlu1 %3313  ;;  %v3352_v23 = vsel %vm1537_vm1, %v3312_v45, 0  ;;  %v15107_v9 = vpop.eup %12925 }
 0x826   : > { %12935 = vpow2.f32 %v2211_v39  ;;  %11859 = vmatpush3.bf16.xpose.msra.mxu0 %v3352_v23  ;;  %v3355_v41 = vsel %vm1537_vm1, %v3314_v49, 0 }
 0x827   : > { %12447 = vmatprep.subr.msk.bf16.mxu0 %vm1537_vm1, %v3314_v49  ;;  %12937 = vpow2.f32 %v2207_v50 }
 0x828   : > { %v15110_v3 = vpop.eup %12927  ;;  %2229 = vadd.xlane.f32.xlu1 %v15107_v9  ;;  %v3318_v14 = vpop.permute.xlu0 %3317 }
 0x829   : > { %2235 = vadd.xlane.f32.xlu0 %v15110_v3  ;;  %v3316_v54 = vpop.permute.xlu1 %3315  ;;  %v3361_v48 = vsel %vm1537_vm1, %v3318_v14, 0 }
 0x82a   : > { %v3358_v15 = vsel %vm1537_vm1, %v3316_v54, 0 }
 0x82b   : > { %v15114_v59 = vpop.eup %12929 }
 0x82c   : > { %v15116_v7 = vpop.eup %12931  ;;  %2241 = vadd.xlane.f32.xlu1 %v15114_v59 }
 0x82d   : > { %2231 = vadd.xlane.f32.xlu0 %v15116_v7  ;;  %v15121_v47 = vpop.eup %12933  ;;  %v3320_v10 = vpop.permute.xlu1 %3319 }
 0x82e   : > { %11861 = vmatpush3.bf16.xpose.msra.mxu0 %v3355_v41  ;;  %v3364_v32 = vsel %vm1537_vm1, %v3320_v10, 0 }
 0x82f   : > { %12448 = vmatprep.subr.msk.bf16.mxu0 %vm1537_vm1, %v3316_v54 }
 0x830   : > { %v15124_v19 = vpop.eup %12935  ;;  %2237 = vadd.xlane.f32.xlu1 %v15121_v47 }
 0x831   : > { %2243 = vadd.xlane.f32.xlu0 %v15124_v19  ;;  %v15128_v25 = vpop.eup %12937 }
 0x835   : > { %2239 = vadd.xlane.f32.xlu0 %v15128_v25 }
 0x836   : > { %11863 = vmatpush3.bf16.xpose.msra.mxu0 %v3358_v15 }
 0x837   : > { %12449 = vmatprep.subr.msk.bf16.mxu0 %vm1537_vm1, %v3318_v14 }
 0x83e   : > { %11865 = vmatpush3.bf16.xpose.msra.mxu0 %v3361_v48 }
 0x83f   : > { %12450 = vmatprep.subr.msk.bf16.mxu0 %vm1537_vm1, %v3320_v10 }
 0x841   : > { %3323 = vrot.lane.b32.xlu1 %v14602_v26, %s13886_s23  ;;  %v15151_v26 = vld [vmem:[%s14642_s20] ss:$0 sm:$0xff] }
 0x842   : > { %v15199_v39 = vadd.f32 %v15151_v26, %v15050_v31 }
 0x845   : > { %3295 = vrot.lane.b32.xlu1 %v14473_v4, %s13886_s23  ;;  %v15155_v4 = vadd.f32 %v15151_v26, %v15032_v56 }
 0x846   : > { %11867 = vmatpush3.bf16.xpose.msra.mxu0 %v3364_v32 }
 0x849   : > { %3299 = vrot.lane.b32.xlu1 %v14524_v27, %s13886_s23  ;;  %v15160_v27 = vadd.f32 %v15151_v26, %v15034_v29 }
 0x84b   : > { %3321 = vrot.lane.b32.xlu0 %v14590_v61, %s13886_s23 }
 0x84f   : > { %3325 = vrot.lane.b32.xlu0 %v14614_v62, %s13886_s23  ;;  %v15179_v62 = vadd.f32 %v15151_v26, %v15040_v17  ;;  %v15193_v17 = vadd.f32 %v15151_v26, %v15044_v13 }
 0x853   : > { %3297 = vrot.lane.b32.xlu0 %v14500_v34, %s13886_s23  ;;  %v15165_v34 = vadd.f32 %v15151_v26, %v15036_v21 }
 0x857   : > { %3301 = vrot.lane.b32.xlu0 %v14548_v51, %s13886_s23  ;;  %v15170_v51 = vadd.f32 %v15151_v26, %v15030_v8  ;;  %v15184_v8 = vadd.f32 %v15151_v26, %v15042_v35 }
 0x86d   : > { %2865 = vmax.xlane.f32.xlu1 %v15155_v4 }
 0x871   : > { %2871 = vmax.xlane.f32.xlu1 %v15160_v27 }
 0x876   : > { %2867 = vmax.xlane.f32.xlu0 %v15165_v34 }
 0x87a   : > { %2869 = vmax.xlane.f32.xlu0 %v15170_v51 }
 0x882   : > { %3305 = vrot.lane.b32.xlu1 %v14588_v58, %s13886_s23 }
 0x890   : > { %3303 = vrot.lane.b32.xlu0 %v14572_v22, %s13886_s23  ;;  %v15189_v22 = vadd.f32 %v15151_v26, %v15052_v63  ;;  %v15203_v63 = vadd.f32 %v15151_v26, %v15038_v38  ;;  %v15211_v38 = vadd.f32 %v15151_v26, %v15048_v16 }
 0x8a1   : > { %v2218_v61 = vpop.xlane.xlu0 %2217 }
 0x8a5   : > { %v2214_v56 = vpop.xlane.xlu0 %2213  ;;  %v2216_v29 = vpop.xlane.xlu1 %2215 }
 0x8a6   : > { %12939 = vrcp.f32 %v2214_v56  ;;  %2873 = vmax.xlane.f32.xlu1 %v15179_v62 }
 0x8a7   : > { %12941 = vrcp.f32 %v2216_v29 }
 0x8a8   : > { %12943 = vrcp.f32 %v2218_v61 }
 0x8a9   : > { %v2220_v58 = vpop.xlane.xlu0 %2219  ;;  %v2226_v21 = vpop.xlane.xlu1 %2225 }
 0x8aa   : > { %12945 = vrcp.f32 %v2220_v58  ;;  %2879 = vmax.xlane.f32.xlu1 %v15184_v8 }
 0x8ad   : > { %v2222_v0 = vpop.xlane.xlu1 %2221 }
 0x8ae   : > { %v2228_v60 = vpop.xlane.xlu0 %2227  ;;  %2883 = vmax.xlane.f32.xlu1 %v15189_v22 }
 0x8af   : > { %2875 = vmax.xlane.f32.xlu0 %v15193_v17  ;;  %12947 = vrcp.f32 %v2228_v60 }
 0x8b0   : > { %v12940_v35 = vpop.eup %12939  ;;  %12949 = vrcp.f32 %v2222_v0 }
 0x8b1   : > { %v12942_v45 = vpop.eup %12941  ;;  %v2234_v13 = vpop.xlane.xlu1 %2233  ;;  %v2261_v49 = vmul.f32 %v12940_v35, %v15074_v24  ;;  %12951 = vrcp.f32 %v2226_v21 }
 0x8b2   : > { %v12944_v23 = vpop.eup %12943  ;;  %v2224_v50 = vpop.xlane.xlu0 %2223  ;;  %2887 = vmax.xlane.f32.xlu1 %v15199_v39  ;;  %v2262_v41 = vmul.f32 %v12942_v45, %v15077_v18  ;;  %v15218_v18 = vadd.f32 %v15151_v26, %v15046_v52 }
 0x8b3   : > { %12953 = vrcp.f32 %v2224_v50  ;;  %2877 = vmax.xlane.f32.xlu0 %v15203_v63  ;;  %v2263_v15 = vmul.f32 %v12944_v23, %v15070_v46 }
 0x8b4   : > { %v12946_v31 = vpop.eup %12945  ;;  %v2277_v54 = vpack.c.bf16 %v2262_v41, %v2261_v49 }
 0x8b5   : > { %v2264_v24 = vmul.f32 %v12946_v31, %v15081_v55  ;;  %v2230_v14 = vpop.xlane.xlu1 %2229 }
 0x8b6   : > { %11718 = vmatprep.mubr.bf16.mxu1 %v2277_v54  ;;  %v2236_v48 = vpop.xlane.xlu0 %2235 }
 0x8b7   : > { %2881 = vmax.xlane.f32.xlu0 %v15211_v38  ;;  %v2278_v10 = vpack.c.bf16 %v2264_v24, %v2263_v15  ;;  %12955 = vrcp.f32 %v2236_v48 }
 0x8b8   : > { %12957 = vrcp.f32 %v2230_v14 }
 0x8b9   : > { %11719 = vmatmul.mubr.bf16.vlgmr.msra.gmra.mrb[48].mxu1 %v2278_v10  ;;  %v2242_v32 = vpop.xlane.xlu1 %2241  ;;  %v12948_v16 = vpop.eup %12947  ;;  %12959 = vrcp.f32 %v2234_v13 }
 0x8ba   : > { %v2232_v61 = vpop.xlane.xlu0 %2231  ;;  %v12950_v46 = vpop.eup %12949  ;;  %v2268_v58 = vmul.f32 %v12948_v16, %v15093_v53 }
 0x8bb   : > { %12961 = vrcp.f32 %v2232_v61  ;;  %2885 = vmax.xlane.f32.xlu0 %v15218_v18  ;;  %v12952_v55 = vpop.eup %12951  ;;  %v2265_v0 = vmul.f32 %v12950_v46, %v15091_v11 }
 0x8bc   : > { %v2267_v60 = vmul.f32 %v12952_v55, %v15085_v6 }
 0x8bd   : > { %v12954_v56 = vpop.eup %12953  ;;  %v2238_v29 = vpop.xlane.xlu1 %2237 }
 0x8be   : > { %v2244_v21 = vpop.xlane.xlu0 %2243  ;;  %v2266_v52 = vmul.f32 %v12954_v56, %v15101_v5  ;;  %v2280_v13 = vpack.c.bf16 %v2268_v58, %v2267_v60  ;;  %v15259_v58 = vadd.f32 %v15151_v26, %v15060_v40 }
 0x8bf   : > { %12963 = vrcp.f32 %v2244_v21 }
 0x8c0   : > { %v2279_v35 = vpack.c.bf16 %v2266_v52, %v2265_v0  ;;  %12965 = vrcp.f32 %v2238_v29  ;;  %v12603_v52 = vld [vmem:[#allocation5 + $0x10] sm:$0xff]  }
 0x8c1   : > { %v3324_v45 = vpop.permute.xlu1 %3323  ;;  %v12956_v49 = vpop.eup %12955  ;;  %12967 = vrcp.f32 %v2242_v32  ;;  %11734 = vmatprep.subr.bf16.mxu1 %v12603_v52 }
 0x8c2   : > { %v2240_v23 = vpop.xlane.xlu0 %2239  ;;  %11722 = vmatprep.mubr.bf16.mxu1 %v2279_v35  ;;  %v12958_v50 = vpop.eup %12957  ;;  %v2272_v6 = vmul.f32 %v12956_v49, %v15110_v3  ;;  %v3370_v61 = vsel %vm1537_vm1, %v3324_v45, 0  ;;  %11735 = vmatpush3.bf16.msra.mxu1 %v12603_v52  ;;  %v12604_v35 = vld [vmem:[#allocation5 + $0x18] sm:$0xff]  }
 0x8c3   : > { %12969 = vrcp.f32 %v2240_v23  ;;  %3309 = vrot.lane.b32.xlu1 %v14612_v57, %s13886_s23  ;;  %11723 = vmatmul.mubr.bf16.gmra.mrb[52].mxu1 %v2280_v13  ;;  %v12960_v11 = vpop.eup %12959  ;;  %v2269_v31 = vmul.f32 %v12958_v50, %v15107_v9 }
 0x8c4   : > { %v2271_v24 = vmul.f32 %v12960_v11, %v15099_v43  ;;  %11736 = vmatprep.subr.bf16.mxu1 %v12604_v35 }
 0x8c5   : > { %v12962_v53 = vpop.eup %12961  ;;  %v3296_v5 = vpop.permute.xlu1 %3295 }
 0x8c6   : > { %v3322_v41 = vpop.permute.xlu0 %3321  ;;  %11874 = vmatprep.mubr.msk.bf16.mxu0 %vm1537_vm1, %v3296_v5  ;;  %v2270_v54 = vmul.f32 %v12962_v53, %v15116_v7  ;;  %v2282_v14 = vpack.c.bf16 %v2272_v6, %v2271_v24  ;;  %11737 = vmatpush3.bf16.msra.mxu1 %v12604_v35 }
 0x8c7   : > { %12451 = vmatprep.subr.msk.bf16.mxu0 %vm1537_vm1, %v3322_v41  ;;  %v3367_v15 = vsel %vm1537_vm1, %v3322_v41, 0 }
 0x8c8   : > { %11869 = vmatpush3.bf16.xpose.msra.mxu0 %v3367_v15  ;;  %v2281_v57 = vpack.c.bf16 %v2270_v54, %v2269_v31 }
 0x8c9   : > { %12452 = vmatprep.subr.msk.bf16.mxu0 %vm1537_vm1, %v3324_v45  ;;  %v12964_v48 = vpop.eup %12963  ;;  %v15281_v45 = vld [vmem:[#allocation5] sm:$0xff]  }
 0x8ca   : > { %11726 = vmatprep.mubr.bf16.mxu1 %v2281_v57  ;;  %v12966_v3 = vpop.eup %12965  ;;  %v2276_v9 = vmul.f32 %v12964_v48, %v15124_v19  ;;  %v3326_v46 = vpop.permute.xlu0 %3325  ;;  %11754 = vmatprep.subr.bf16.mxu1 %v15281_v45 }
 0x8cb   : > { %11727 = vmatmul.mubr.bf16.gmra.mrb[56].mxu1 %v2282_v14  ;;  %v12968_v10 = vpop.eup %12967  ;;  %v2273_v7 = vmul.f32 %v12966_v3, %v15121_v47  ;;  %v3373_v19 = vsel %vm1537_vm1, %v3326_v46, 0 }
 0x8cc   : > { %v2275_v43 = vmul.f32 %v12968_v10, %v15114_v59  ;;  %v15248_v59 = vadd.f32 %v15151_v26, %v15056_v37  ;;  %v15264_v37 = vadd.f32 %v15151_v26, %v15054_v33 }
 0x8cd   : > { %v12970_v32 = vpop.eup %12969 }
 0x8ce   : > { %v2274_v16 = vmul.f32 %v12970_v32, %v15128_v25  ;;  %v2284_v56 = vpack.c.bf16 %v2276_v9, %v2275_v43  ;;  %v3298_v47 = vpop.permute.xlu0 %3297  ;;  %v3300_v25 = vpop.permute.xlu1 %3299 }
 0x8d0   : > { %11871 = vmatpush3.bf16.xpose.msra.mxu0 %v3370_v61  ;;  %v2283_v55 = vpack.c.bf16 %v2274_v16, %v2273_v7 }
 0x8d1   : > { %3307 = vrot.lane.b32.xlu0 %v14600_v20, %s13886_s23  ;;  %12453 = vmatprep.subr.msk.bf16.mxu0 %vm1537_vm1, %v3326_v46  ;;  %v15254_v20 = vadd.f32 %v15151_v26, %v15058_v2 }
 0x8d2   : > { %11730 = vmatprep.mubr.bf16.mxu1 %v2283_v55  ;;  %v3302_v29 = vpop.permute.xlu0 %3301 }
 0x8d3   : > { %11731 = vmatmul.mubr.bf16.gmra.mrb[60].mxu1 %v2284_v56 }
 0x8d8   : > { %11873 = vmatpush3.bf16.xpose.msra.mxu0 %v3373_v19 }
 0x8df   : > { %11875 = vmatmul.mubr.msk.bf16.vlgmr.msra.gmra.mrb[80].mxu0 %vm1537_vm1, %v3298_v47 }
 0x8e0   : > { %11878 = vmatprep.mubr.msk.bf16.mxu0 %vm1537_vm1, %v3300_v25  ;;  %v19817_v25 = vmov 0  }
 0x8e7   : > { %2889 = vmax.xlane.f32.xlu1 %v15248_v59  ;;  %11879 = vmatmul.mubr.msk.bf16.gmra.mrb[84].mxu0 %vm1537_vm1, %v3302_v29 }
 0x8eb   : > { %2895 = vmax.xlane.f32.xlu1 %v15254_v20 }
 0x8f0   : > { %2891 = vmax.xlane.f32.xlu0 %v15259_v58 }
 0x8f4   : > { %2893 = vmax.xlane.f32.xlu0 %v15264_v37 }
 0x8fa   : > { %v2866_v21 = vpop.xlane.xlu1 %2865 }
 0x8fb   : > { %v2897_v49 = vsub.f32 %v15155_v4, %v2866_v21 }
 0x8fc   : > { %3019 = vrot.lane.b32.xlu1 %v14494_v28, %s13885_s29 }
 0x8fd   : > { %v2913_v50 = vmul.f32 1.442695, %v2897_v49 }
 0x8fe   : > { %v2872_v40 = vpop.xlane.xlu1 %2871 }
 0x8ff   : > { %v2900_v11 = vsub.f32 %v15160_v27, %v2872_v40 }
 0x900   : > { %3025 = vrot.lane.b32.xlu1 %v14546_v42, %s13885_s29 }
 0x901   : > { %v2919_v53 = vmul.f32 1.442695, %v2900_v11 }
 0x902   : > { %v3306_v60 = vpop.permute.xlu1 %3305 }
 0x903   : > { %v2868_v2 = vpop.xlane.xlu0 %2867 }
 0x904   : > { %3027 = vrot.lane.b32.xlu1 %v14541_v44, %s13885_s29  ;;  %v2898_v5 = vsub.f32 %v15165_v34, %v2868_v2 }
 0x906   : > { %v2915_v6 = vmul.f32 1.442695, %v2898_v5 }
 0x907   : > { %v2870_v0 = vpop.xlane.xlu0 %2869 }
 0x908   : > { %v2899_v13 = vsub.f32 %v15170_v51, %v2870_v0 }
 0x90a   : > { %3017 = vrot.lane.b32.xlu0 %v14498_v36, %s13885_s29  ;;  %v2917_v23 = vmul.f32 1.442695, %v2899_v13 }
 0x90b   : > { %v3304_v33 = vpop.permute.xlu0 %3303 }
 0x90c   : > { %11882 = vmatprep.mubr.msk.bf16.mxu0 %vm1537_vm1, %v3304_v33  ;;  %12971 = vpow2.f32 %v2917_v23 }
 0x90d   : > { %11883 = vmatmul.mubr.msk.bf16.gmra.mrb[88].mxu0 %vm1537_vm1, %v3306_v60  ;;  %12973 = vpow2.f32 %v2913_v50 }
 0x90e   : > { %3021 = vrot.lane.b32.xlu0 %v14522_v12, %s13885_s29  ;;  %12975 = vpow2.f32 %v2919_v53 }
 0x90f   : > { %12977 = vpow2.f32 %v2915_v6 }
 0x912   : > { %3023 = vrot.lane.b32.xlu0 %v14517_v1, %s13885_s29 }
 0x916   : > { %3029 = vrot.lane.b32.xlu0 %v14570_v30, %s13885_s29  ;;  %v15290_v41 = vpop.eup %12971 }
 0x917   : > { %v15293_v51 = vpop.eup %12973 }
 0x918   : > { %v15296_v4 = vpop.eup %12975 }
 0x919   : > { %v15299_v27 = vpop.eup %12977 }
 0x928   : > { %2949 = vadd.xlane.f32.xlu1 %v15290_v41 }
 0x92c   : > { %2945 = vadd.xlane.f32.xlu1 %v15293_v51 }
 0x930   : > { %2951 = vadd.xlane.f32.xlu1 %v15296_v4 }
 0x933   : > { %v2874_v31 = vpop.xlane.xlu1 %2873 }
 0x934   : > { %2947 = vadd.xlane.f32.xlu1 %v15299_v27  ;;  %v2901_v10 = vsub.f32 %v15179_v62, %v2874_v31 }
 0x936   : > { %v2921_v16 = vmul.f32 1.442695, %v2901_v10 }
 0x937   : > { %v2880_v34 = vpop.xlane.xlu1 %2879 }
 0x938   : > { %v2904_v61 = vsub.f32 %v15184_v8, %v2880_v34 }
 0x93a   : > { %v2927_v46 = vmul.f32 1.442695, %v2904_v61 }
 0x93b   : > { %v2884_v54 = vpop.xlane.xlu1 %2883 }
 0x93c   : > { %v2906_v15 = vsub.f32 %v15189_v22, %v2884_v54  ;;  %v2876_v24 = vpop.xlane.xlu0 %2875 }
 0x93d   : > { %v2902_v57 = vsub.f32 %v15193_v17, %v2876_v24 }
 0x93e   : > { %v2931_v48 = vmul.f32 1.442695, %v2906_v15 }
 0x93f   : > { %v2923_v14 = vmul.f32 1.442695, %v2902_v57  ;;  %v2888_v43 = vpop.xlane.xlu1 %2887 }
 0x940   : > { %v2878_v3 = vpop.xlane.xlu0 %2877 }
 0x941   : > { %12979 = vpow2.f32 %v2923_v14  ;;  %v2903_v32 = vsub.f32 %v15203_v63, %v2878_v3 }
 0x942   : > { %12981 = vpow2.f32 %v2931_v48 }
 0x943   : > { %v2925_v9 = vmul.f32 1.442695, %v2903_v32  ;;  %v3310_v62 = vpop.permute.xlu1 %3309 }
 0x944   : > { %v2882_v7 = vpop.xlane.xlu0 %2881 }
 0x945   : > { %12983 = vpow2.f32 %v2925_v9  ;;  %v2905_v63 = vsub.f32 %v15211_v38, %v2882_v7 }
 0x946   : > { %12985 = vpow2.f32 %v2921_v16 }
 0x947   : > { %12987 = vpow2.f32 %v2927_v46  ;;  %v2929_v29 = vmul.f32 1.442695, %v2905_v63  ;;  %v19818_v63 = vld [vmem:[#allocation38_spill] sm:$0xff] }
 0x948   : > { %v2886_v22 = vpop.xlane.xlu0 %2885 }
 0x949   : > { %v2907_v17 = vsub.f32 %v15218_v18, %v2886_v22  ;;  %v2908_v18 = vsub.f32 %v15199_v39, %v2888_v43 }
 0x94b   : > { %v15308_v55 = vpop.eup %12979  ;;  %v2933_v19 = vmul.f32 1.442695, %v2907_v17  ;;  %v2935_v21 = vmul.f32 1.442695, %v2908_v18 }
 0x94c   : > { %v3308_v56 = vpop.permute.xlu0 %3307  ;;  %2955 = vadd.xlane.f32.xlu1 %v15308_v55  ;;  %v15313_v8 = vpop.eup %12981 }
 0x94d   : > { %11886 = vmatprep.mubr.msk.bf16.mxu0 %vm1537_vm1, %v3308_v56  ;;  %12989 = vpow2.f32 %v2933_v19 }
 0x94e   : > { %11887 = vmatmul.mubr.msk.bf16.gmra.mrb[92].mxu0 %vm1537_vm1, %v3310_v62  ;;  %12991 = vpow2.f32 %v2929_v29 }
 0x94f   : > { %v15316_v47 = vpop.eup %12983  ;;  %4375 = vmatprep.mubr.bf16.mxu0 %v19817_v25  ;;  %12993 = vpow2.f32 %v2935_v21 }
 0x950   : > { %2957 = vadd.xlane.f32.xlu0 %v15316_v47  ;;  %2963 = vadd.xlane.f32.xlu1 %v15313_v8  ;;  %v15322_v38 = vpop.eup %12985 }
 0x951   : > { %v15325_v2 = vpop.eup %12987 }
 0x954   : > { %2953 = vadd.xlane.f32.xlu0 %v15322_v38 }
 0x957   : > { %v15328_v40 = vpop.eup %12989 }
 0x958   : > { %2959 = vadd.xlane.f32.xlu0 %v15325_v2  ;;  %v15331_v0 = vpop.eup %12991 }
 0x959   : > { %v15334_v39 = vpop.eup %12993 }
 0x95c   : > { %2965 = vadd.xlane.f32.xlu0 %v15328_v40 }
 0x960   : > { %2961 = vadd.xlane.f32.xlu0 %v15331_v0 }
 0x964   : > { %2967 = vadd.xlane.f32.xlu0 %v15334_v39 }
 0x974   : > { %v2890_v52 = vpop.xlane.xlu1 %2889 }
 0x975   : > { %v2909_v11 = vsub.f32 %v15248_v59, %v2890_v52 }
 0x977   : > { %v2937_v6 = vmul.f32 1.442695, %v2909_v11 }
 0x978   : > { %v2896_v33 = vpop.xlane.xlu1 %2895 }
 0x979   : > { %v2912_v60 = vsub.f32 %v15254_v20, %v2896_v33 }
 0x97b   : > { %v2943_v23 = vmul.f32 1.442695, %v2912_v60  ;;  %v19819_v60 = vld [vmem:[#allocation42_spill] sm:$0xff] }
 0x97c   : > { %v3020_v56 = vpop.permute.xlu1 %3019 }
 0x97d   : > { %v2892_v35 = vpop.xlane.xlu0 %2891 }
 0x97e   : > { %v2910_v13 = vsub.f32 %v15259_v58, %v2892_v35  ;;  %v19820_v35 = vld [vmem:[#allocation40_spill] sm:$0xff] }
 0x980   : > { %v2939_v49 = vmul.f32 1.442695, %v2910_v13  ;;  %v3026_v33 = vpop.permute.xlu1 %3025  ;;  %v19821_v13 = vpack.c.bf16 %v19819_v60, %v19820_v35  ;;  %v19837_v35 = vld [vmem:[#allocation54_spill] sm:$0xff] }
 0x981   : > { %v2894_v50 = vpop.xlane.xlu0 %2893 }
 0x982   : > { %12995 = vpow2.f32 %v2939_v49  ;;  %v2911_v53 = vsub.f32 %v15264_v37, %v2894_v50  ;;  %v12606_v37 = vld [vmem:[#allocation5 + $0x8] sm:$0xff]  }
 0x983   : > { %12997 = vpow2.f32 %v2943_v23 }
 0x984   : > { %v2941_v5 = vmul.f32 1.442695, %v2911_v53  ;;  %v3028_v49 = vpop.permute.xlu1 %3027 }
 0x985   : > { %v3018_v10 = vpop.permute.xlu0 %3017 }
 0x986   : > { %12999 = vpow2.f32 %v2941_v5  ;;  %v19822_v5 = vld [vmem:[#allocation41_spill] sm:$0xff] }
 0x987   : > { %13001 = vpow2.f32 %v2937_v6  ;;  %v19823_v6 = vld [vmem:[#allocation39_spill] sm:$0xff] }
 0x98c   : > { %v15341_v31 = vpop.eup %12995  ;;  %v11720_v34 = vpop.f32.mrb[48].mxu1 }
 0x98d   : > { %v2351_v20 = vpop.f32.mrb[49].mxu1  ;;  %2971 = vadd.xlane.f32.xlu0 %v15341_v31  ;;  %v15344_v54 = vpop.eup %12997 }
 0x98e   : > { %v11721_v58 = vpop.f32.mrb[50].mxu1 }
 0x98f   : > { %v2415_v15 = vpack.c.bf16 %v11721_v58, %v11720_v34  ;;  %v2354_v24 = vpop.f32.mrb[51].mxu1  ;;  %v19824_v34 = vpack.c.bf16 %v19822_v5, %v19823_v6 }
 0x990   : > { %v15346_v59 = vpop.eup %12999  ;;  %v2414_v57 = vpack.c.bf16 %v2354_v24, %v2351_v20  ;;  %v19826_v24 = vld [vmem:[#allocation44_spill] sm:$0xff] }
 0x991   : > { %2973 = vadd.xlane.f32.xlu1 %v15346_v59  ;;  %2975 = vadd.xlane.f32.xlu0 %v15344_v54  ;;  %v15352_v14 = vpop.eup %13001 }
 0x992   : > { %11738 = vmatprep.mubr.msk.bf16.mxu1 %vm1537_vm1, %v2414_v57 }
 0x993   : > { %11739 = vmatmul.mubr.msk.bf16.vlgmr.msra.gmra.mrb[64].mxu1 %vm1537_vm1, %v2415_v15  ;;  %v19825_v15 = vld [vmem:[#allocation46_spill] sm:$0xff] }
 0x994   : > { %11755 = vmatpush3.bf16.msra.mxu1 %v15281_v45  ;;  %v19827_v57 = vpack.c.bf16 %v19825_v15, %v19826_v24  ;;  %v19841_v15 = vld [vmem:[#allocation51_spill] sm:$0xff] }
 0x995   : > { %2969 = vadd.xlane.f32.xlu1 %v15352_v14  ;;  %11756 = vmatprep.subr.bf16.mxu1 %v12606_v37 }
 0x996   : > { %v11724_v48 = vpop.f32.mrb[52].mxu1 }
 0x997   : > { %v2367_v3 = vpop.f32.mrb[53].mxu1 }
 0x998   : > { %11757 = vmatpush3.bf16.msra.mxu1 %v12606_v37  ;;  %v11725_v32 = vpop.f32.mrb[54].mxu1  ;;  %v3022_v37 = vpop.permute.xlu0 %3021 }
 0x999   : > { %v2417_v9 = vpack.c.bf16 %v11725_v32, %v11724_v48  ;;  %11806 = vmatprep.subr.bf16.mxu1 %v3018_v10  ;;  %v2370_v7 = vpop.f32.mrb[55].mxu1 }
 0x99a   : > { %v2416_v16 = vpack.c.bf16 %v2370_v7, %v2367_v3 }
 0x99c   : > { %11742 = vmatprep.mubr.msk.bf16.mxu1 %vm1537_vm1, %v2416_v16  ;;  %v19828_v16 = vld [vmem:[#allocation45_spill] sm:$0xff] }
 0x99d   : > { %11743 = vmatmul.mubr.msk.bf16.gmra.mrb[68].mxu1 %vm1537_vm1, %v2417_v9 }
 0x99e   : > { %v11728_v61 = vpop.f32.mrb[56].mxu1 }
 0x99f   : > { %v2383_v43 = vpop.f32.mrb[57].mxu1 }
 0x9a0   : > { %v11729_v22 = vpop.f32.mrb[58].mxu1 }
 0x9a1   : > { %v2419_v45 = vpack.c.bf16 %v11729_v22, %v11728_v61  ;;  %v2386_v46 = vpop.f32.mrb[59].mxu1  ;;  %v19829_v61 = vld [vmem:[#allocation43_spill] sm:$0xff] }
 0x9a2   : > { %v2418_v17 = vpack.c.bf16 %v2386_v46, %v2383_v43  ;;  %v19830_v43 = vpack.c.bf16 %v19828_v16, %v19829_v61  ;;  %v3024_v46 = vpop.permute.xlu0 %3023 }
 0x9a4   : > { %11746 = vmatprep.mubr.msk.bf16.mxu1 %vm1537_vm1, %v2418_v17  ;;  %v19831_v17 = vld [vmem:[#allocation50_spill] sm:$0xff] }
 0x9a5   : > { %11747 = vmatmul.mubr.msk.bf16.gmra.mrb[72].mxu1 %vm1537_vm1, %v2419_v45 }
 0x9a6   : > { %v11732_v62 = vpop.f32.mrb[60].mxu1  ;;  %3031 = vrot.lane.b32.xlu1 %v19818_v63, %s13885_s29  ;;  %v3030_v6 = vpop.permute.xlu0 %3029 }
 0x9a7   : > { %v2399_v19 = vpop.f32.mrb[61].mxu1 }
 0x9a8   : > { %v11733_v18 = vpop.f32.mrb[62].mxu1 }
 0x9a9   : > { %v2421_v29 = vpack.c.bf16 %v11733_v18, %v11732_v62  ;;  %v2402_v21 = vpop.f32.mrb[63].mxu1 }
 0x9aa   : > { %v2420_v52 = vpack.c.bf16 %v2402_v21, %v2399_v19  ;;  %v19834_v21 = vld [vmem:[#allocation49_spill] sm:$0xff] }
 0x9ac   : > { %11750 = vmatprep.mubr.msk.bf16.mxu1 %vm1537_vm1, %v2420_v52  ;;  %v19835_v52 = vld [vmem:[#allocation47_spill] sm:$0xff] }
 0x9ad   : > { %11751 = vmatmul.mubr.msk.bf16.gmra.mrb[76].mxu1 %vm1537_vm1, %v2421_v29  ;;  %v19836_v60 = vpack.c.bf16 %v19834_v21, %v19835_v52 }
 0x9ae   : > { %11758 = vmatprep.mubr.msk.bf16.mxu1 %vm1537_vm1, %v19821_v13  ;;  %v19838_v13 = vld [vmem:[#allocation52_spill] sm:$0xff] }
 0x9b2   : > { %v11876_v23 = vpop.f32.mrb[80].mxu0 }
 0x9b3   : > { %v3409_v50 = vpop.f32.mrb[81].mxu0  ;;  %v15387_v7 = vadd.f32 %v15151_v26, %v11876_v23  ;;  %v19839_v23 = vpack.c.bf16 %v19837_v35, %v19838_v13 }
 0x9b4   : > { %v15369_v11 = vadd.f32 %v15151_v26, %v3409_v50  ;;  %v11877_v53 = vpop.f32.mrb[82].mxu0 }
 0x9b5   : > { %11759 = vmatmul.mubr.msk.bf16.vlgmr.msra.gmra.mrb[64].mxu1 %vm1537_vm1, %v19824_v34  ;;  %v3412_v20 = vpop.f32.mrb[83].mxu0  ;;  %v15375_v58 = vpop.xlane.xlu1 %2949  ;;  %v15399_v19 = vadd.f32 %v15151_v26, %v11877_v53 }
 0x9b6   : > { %11807 = vmatpush3.bf16.msra.mxu1 %v3018_v10  ;;  %11762 = vmatprep.mubr.msk.bf16.mxu1 %vm1537_vm1, %v19827_v57  ;;  %v15383_v48 = vadd.f32 %v15151_v26, %v3412_v20  ;;  %v19840_v20 = vld [vmem:[#allocation53_spill] sm:$0xff] }
 0x9b7   : > { %3472 = vmax.xlane.f32.xlu0 %v15369_v11  ;;  %11808 = vmatprep.subr.bf16.mxu1 %v3020_v56  ;;  %v19842_v24 = vpack.c.bf16 %v19840_v20, %v19841_v15 }
 0x9b9   : > { %v2946_v3 = vpop.xlane.xlu1 %2945 }
 0x9ba   : > { %11809 = vmatpush3.bf16.msra.mxu1 %v3020_v56  ;;  %v11880_v32 = vpop.f32.mrb[84].mxu0  ;;  %v19832_v56 = vld [vmem:[#allocation48_spill] sm:$0xff]  ;;  %13003 = vrcp.f32 %v2946_v3 }
 0x9bb   : > { %3474 = vmax.xlane.f32.xlu0 %v15383_v48  ;;  %11810 = vmatprep.subr.bf16.mxu1 %v3022_v37  ;;  %v3425_v9 = vpop.f32.mrb[85].mxu0  ;;  %v19833_v62 = vpack.c.bf16 %v19831_v17, %v19832_v56  ;;  %v15418_v53 = vadd.f32 %v15151_v26, %v11880_v32 }
 0x9bc   : > { %v11881_v10 = vpop.f32.mrb[86].mxu0  ;;  %v15415_v50 = vadd.f32 %v15151_v26, %v3425_v9 }
 0x9bd   : > { %11763 = vmatmul.mubr.msk.bf16.gmra.mrb[68].mxu1 %vm1537_vm1, %v19830_v43  ;;  %v3428_v22 = vpop.f32.mrb[87].mxu0  ;;  %v2952_v45 = vpop.xlane.xlu1 %2951  ;;  %v15423_v34 = vadd.f32 %v15151_v26, %v11881_v10 }
 0x9be   : > { %11811 = vmatpush3.bf16.msra.mxu1 %v3022_v37  ;;  %11766 = vmatprep.mubr.msk.bf16.mxu1 %vm1537_vm1, %v19833_v62  ;;  %v15403_v29 = vadd.f32 %v15151_v26, %v3428_v22 }
 0x9bf   : > { %3476 = vmax.xlane.f32.xlu0 %v15387_v7  ;;  %11812 = vmatprep.subr.bf16.mxu1 %v3024_v46 }
 0x9c1   : > { %v2948_v18 = vpop.xlane.xlu1 %2947 }
 0x9c2   : > { %11813 = vmatpush3.bf16.msra.mxu1 %v3024_v46  ;;  %13005 = vrcp.f32 %v2948_v18 }
 0x9c3   : > { %3478 = vmax.xlane.f32.xlu0 %v15399_v19  ;;  %11814 = vmatprep.subr.bf16.mxu1 %v3026_v33  ;;  %13007 = vrcp.f32 %v2952_v45 }
 0x9c4   : > { %v13004_v5 = vpop.eup %13003 }
 0x9c5   : > { %11767 = vmatmul.mubr.msk.bf16.gmra.mrb[72].mxu1 %vm1537_vm1, %v19836_v60  ;;  %v2993_v57 = vmul.f32 %v13004_v5, %v15293_v51 }
 0x9c6   : > { %11815 = vmatpush3.bf16.msra.mxu1 %v3026_v33  ;;  %11770 = vmatprep.mubr.msk.bf16.mxu1 %vm1537_vm1, %v19839_v23 }
 0x9c7   : > { %3482 = vmax.xlane.f32.xlu0 %v15403_v29  ;;  %11816 = vmatprep.subr.bf16.mxu1 %v3028_v49 }
 0x9ca   : > { %11817 = vmatpush3.bf16.msra.mxu1 %v3028_v49  ;;  %3480 = vmax.xlane.f32.xlu1 %v15415_v50 }
 0x9cb   : > { %3484 = vmax.xlane.f32.xlu0 %v15418_v53  ;;  %11818 = vmatprep.subr.bf16.mxu1 %v3030_v6 }
 0x9cc   : > { %v13006_v33 = vpop.eup %13005 }
 0x9cd   : > { %11771 = vmatmul.mubr.msk.bf16.gmra.mrb[76].mxu1 %vm1537_vm1, %v19842_v24  ;;  %v2994_v37 = vmul.f32 %v13006_v33, %v15299_v27  ;;  %v13008_v35 = vpop.eup %13007 }
 0x9ce   : > { %11819 = vmatpush3.bf16.msra.mxu1 %v3030_v6  ;;  %v2996_v24 = vmul.f32 %v13008_v35, %v15296_v4 }
 0x9cf   : > { %3486 = vmax.xlane.f32.xlu0 %v15423_v34  ;;  %v3009_v49 = vpack.c.bf16 %v2994_v37, %v2993_v57 }
 0x9d1   : > { %11822 = vmatprep.mubr.bf16.mxu1 %v3009_v49 }
 0x9d9   : > { %v2956_v17 = vpop.xlane.xlu1 %2955 }
 0x9dd   : > { %v2958_v43 = vpop.xlane.xlu0 %2957  ;;  %v2964_v62 = vpop.xlane.xlu1 %2963 }
 0x9e0   : > { %v11884_v3 = vpop.f32.mrb[88].mxu0 }
 0x9e1   : > { %v3441_v32 = vpop.f32.mrb[89].mxu0  ;;  %v15441_v51 = vadd.f32 %v15151_v26, %v11884_v3  ;;  %v2954_v22 = vpop.xlane.xlu0 %2953 }
 0x9e2   : > { %v15433_v9 = vadd.f32 %v15151_v26, %v3441_v32  ;;  %v11885_v10 = vpop.f32.mrb[90].mxu0  ;;  %13009 = vrcp.f32 %v2954_v22 }
 0x9e3   : > { %v3444_v16 = vpop.f32.mrb[91].mxu0  ;;  %v15445_v27 = vadd.f32 %v15151_v26, %v11885_v10  ;;  %13011 = vrcp.f32 %v15375_v58 }
 0x9e4   : > { %3488 = vmax.xlane.f32.xlu0 %v15433_v9  ;;  %v15437_v61 = vadd.f32 %v15151_v26, %v3444_v16  ;;  %13013 = vrcp.f32 %v2956_v17 }
 0x9e5   : > { %v2960_v46 = vpop.xlane.xlu0 %2959 }
 0x9e6   : > { %13015 = vrcp.f32 %v2960_v46 }
 0x9e8   : > { %3490 = vmax.xlane.f32.xlu0 %v15437_v61 }
 0x9e9   : > { %v2966_v56 = vpop.xlane.xlu0 %2965 }
 0x9ec   : > { %3492 = vmax.xlane.f32.xlu0 %v15441_v51  ;;  %v13010_v6 = vpop.eup %13009 }
 0x9ed   : > { %v2962_v18 = vpop.xlane.xlu0 %2961  ;;  %v13012_v33 = vpop.eup %13011  ;;  %v2997_v49 = vmul.f32 %v13010_v6, %v15322_v38  ;;  %v12608_v6 = vld [vmem:[#allocation5 + $0x28] sm:$0xff]  }
 0x9ee   : > { %13017 = vrcp.f32 %v2962_v18  ;;  %v13014_v15 = vpop.eup %13013  ;;  %v2995_v3 = vmul.f32 %v13012_v33, %v15290_v41  ;;  %v12607_v18 = vld [vmem:[#allocation5 + $0x20] sm:$0xff]  }
 0x9ef   : > { %13019 = vrcp.f32 %v2958_v43  ;;  %v2998_v10 = vmul.f32 %v13014_v15, %v15308_v55 }
 0x9f0   : > { %3494 = vmax.xlane.f32.xlu0 %v15445_v27  ;;  %13021 = vrcp.f32 %v2964_v62  ;;  %v3010_v4 = vpack.c.bf16 %v2996_v24, %v2995_v3  ;;  %v13016_v16 = vpop.eup %13015 }
 0x9f1   : > { %v2968_v52 = vpop.xlane.xlu0 %2967  ;;  %v3011_v43 = vpack.c.bf16 %v2998_v10, %v2997_v49  ;;  %v3000_v55 = vmul.f32 %v13016_v16, %v15325_v2 }
 0x9f2   : > { %13023 = vrcp.f32 %v2968_v52 }
 0x9f8   : > { %v13018_v22 = vpop.eup %13017 }
 0x9f9   : > { %v13020_v41 = vpop.eup %13019  ;;  %v3001_v62 = vmul.f32 %v13018_v22, %v15331_v0 }
 0x9fa   : > { %v13022_v17 = vpop.eup %13021 }
 0x9fb   : > { %v3002_v52 = vmul.f32 %v13022_v17, %v15313_v8 }
 0x9fd   : > { %v3013_v35 = vpack.c.bf16 %v3002_v52, %v3001_v62 }
 0xa1a   : > { %v2972_v57 = vpop.xlane.xlu0 %2971 }
 0xa1e   : > { %v2974_v21 = vpop.xlane.xlu1 %2973  ;;  %v2976_v46 = vpop.xlane.xlu0 %2975 }
 0xa21   : > { %v11888_v60 = vpop.f32.mrb[92].mxu0 }
 0xa22   : > { %v15450_v13 = vadd.f32 %v15151_v26, %v11888_v60  ;;  %v3457_v23 = vpop.f32.mrb[93].mxu0  ;;  %v2970_v5 = vpop.xlane.xlu1 %2969 }
 0xa23   : > { %v15453_v45 = vadd.f32 %v15151_v26, %v3457_v23  ;;  %v11889_v58 = vpop.f32.mrb[94].mxu0  ;;  %13025 = vrcp.f32 %v2970_v5  ;;  %v13024_v60 = vpop.eup %13023 }
 0xa24   : > { %v3460_v20 = vpop.f32.mrb[95].mxu0  ;;  %3500 = vmax.xlane.f32.xlu1 %v15450_v13  ;;  %13027 = vrcp.f32 %v2966_v56  ;;  %v15466_v38 = vadd.f32 %v15151_v26, %v11889_v58  ;;  %v2999_v56 = vmul.f32 %v13020_v41, %v15316_v47  ;;  %v3004_v47 = vmul.f32 %v13024_v60, %v15334_v39 }
 0xa25   : > { %3496 = vmax.xlane.f32.xlu0 %v15453_v45  ;;  %v15461_v32 = vadd.f32 %v15151_v26, %v3460_v20  ;;  %13029 = vrcp.f32 %v2972_v57 }
 0xa26   : > { %v3032_v37 = vpop.permute.xlu1 %3031  ;;  %13031 = vrcp.f32 %v2976_v46  ;;  %v3012_v26 = vpack.c.bf16 %v3000_v55, %v2999_v56 }
 0xa27   : > { %11820 = vmatprep.subr.bf16.mxu1 %v3032_v37  ;;  %13033 = vrcp.f32 %v2974_v21 }
 0xa28   : > { %11821 = vmatpush3.bf16.msra.mxu1 %v3032_v37 }
 0xa29   : > { %3498 = vmax.xlane.f32.xlu0 %v15461_v32  ;;  %11838 = vmatprep.subr.bf16.mxu1 %v12607_v18 }
 0xa2b   : > { %11823 = vmatmul.mubr.bf16.vlgmr.msra.gmra.mrb[80].mxu1 %v3010_v4 }
 0xa2c   : > { %11826 = vmatprep.mubr.bf16.mxu1 %v3011_v43  ;;  %11839 = vmatpush3.bf16.msra.mxu1 %v12607_v18 }
 0xa2d   : > { %3502 = vmax.xlane.f32.xlu0 %v15466_v38  ;;  %v13026_v23 = vpop.eup %13025  ;;  %11840 = vmatprep.subr.bf16.mxu1 %v12608_v6 }
 0xa2e   : > { %v13028_v5 = vpop.eup %13027  ;;  %v3005_v0 = vmul.f32 %v13026_v23, %v15352_v14 }
 0xa2f   : > { %v13030_v2 = vpop.eup %13029  ;;  %v3003_v8 = vmul.f32 %v13028_v5, %v15328_v40 }
 0xa30   : > { %11841 = vmatpush3.bf16.msra.mxu1 %v12608_v6  ;;  %v3006_v21 = vmul.f32 %v13030_v2, %v15341_v31  ;;  %v13032_v58 = vpop.eup %13031 }
 0xa31   : > { %v3014_v33 = vpack.c.bf16 %v3004_v47, %v3003_v8  ;;  %v13034_v20 = vpop.eup %13033  ;;  %v3008_v39 = vmul.f32 %v13032_v58, %v15344_v54 }
 0xa32   : > { %v3015_v15 = vpack.c.bf16 %v3006_v21, %v3005_v0 }
 0xa33   : > { %11827 = vmatmul.mubr.bf16.gmra.mrb[84].mxu1 %v3012_v26 }
 0xa34   : > { %11830 = vmatprep.mubr.bf16.mxu1 %v3013_v35 }
 0xa35   : > { %3624 = vrot.lane.b32.xlu1 %v14498_v36, %s13886_s23  ;;  %v3007_v36 = vmul.f32 %v13034_v20, %v15346_v59 }
 0xa37   : > { %v3016_v40 = vpack.c.bf16 %v3008_v39, %v3007_v36 }
 0xa39   : > { %3628 = vrot.lane.b32.xlu1 %v14522_v12, %s13886_s23 }
 0xa3b   : > { %11831 = vmatmul.mubr.bf16.gmra.mrb[88].mxu1 %v3014_v33 }
 0xa3c   : > { %11834 = vmatprep.mubr.bf16.mxu1 %v3015_v15 }
 0xa3d   : > { %3630 = vrot.lane.b32.xlu1 %v14517_v1, %s13886_s23 }
 0xa41   : > { %3632 = vrot.lane.b32.xlu1 %v14546_v42, %s13886_s23 }
 0xa43   : > { %3626 = vrot.lane.b32.xlu0 %v14494_v28, %s13886_s23  ;;  %11835 = vmatmul.mubr.bf16.gmra.mrb[92].mxu1 %v3016_v40 }
 0xa44   : > { %v3473_v12 = vpop.xlane.xlu0 %3472 }
 0xa45   : > { %v3504_v1 = vsub.f32 %v15369_v11, %v3473_v12 }
 0xa47   : > { %v3520_v49 = vmul.f32 1.442695, %v3504_v1 }
 0xa48   : > { %v3475_v31 = vpop.xlane.xlu0 %3474 }
 0xa49   : > { %v3505_v4 = vsub.f32 %v15383_v48, %v3475_v31 }
 0xa4b   : > { %v3522_v41 = vmul.f32 1.442695, %v3505_v4 }
 0xa4c   : > { %v3477_v14 = vpop.xlane.xlu0 %3476 }
 0xa4d   : > { %v3506_v24 = vsub.f32 %v15387_v7, %v3477_v14 }
 0xa4f   : > { %v3524_v37 = vmul.f32 1.442695, %v3506_v24 }
 0xa50   : > { %v3479_v57 = vpop.xlane.xlu0 %3478 }
 0xa51   : > { %13035 = vpow2.f32 %v3524_v37  ;;  %v3507_v54 = vsub.f32 %v15399_v19, %v3479_v57 }
 0xa52   : > { %13037 = vpow2.f32 %v3520_v49 }
 0xa53   : > { %v3526_v16 = vmul.f32 1.442695, %v3507_v54 }
 0xa54   : > { %v3483_v59 = vpop.xlane.xlu0 %3482 }
 0xa55   : > { %v3509_v19 = vsub.f32 %v15403_v29, %v3483_v59 }
 0xa57   : > { %v3481_v42 = vpop.xlane.xlu1 %3480 }
 0xa58   : > { %v3485_v3 = vpop.xlane.xlu0 %3484  ;;  %v3508_v28 = vsub.f32 %v15415_v50, %v3481_v42  ;;  %v3530_v50 = vmul.f32 1.442695, %v3509_v19 }
 0xa59   : > { %v3510_v10 = vsub.f32 %v15418_v53, %v3485_v3 }
 0xa5a   : > { %v3528_v11 = vmul.f32 1.442695, %v3508_v28 }
 0xa5b   : > { %v3532_v7 = vmul.f32 1.442695, %v3510_v10  ;;  %v15497_v46 = vpop.eup %13035 }
 0xa5c   : > { %v3487_v43 = vpop.xlane.xlu0 %3486  ;;  %v15500_v48 = vpop.eup %13037 }
 0xa5d   : > { %13039 = vpow2.f32 %v3532_v7  ;;  %v3511_v22 = vsub.f32 %v15423_v34, %v3487_v43 }
 0xa5e   : > { %13041 = vpow2.f32 %v3526_v16 }
 0xa5f   : > { %13043 = vpow2.f32 %v3528_v11  ;;  %v3534_v53 = vmul.f32 1.442695, %v3511_v22 }
 0xa60   : > { %13045 = vpow2.f32 %v3522_v41 }
 0xa61   : > { %13047 = vpow2.f32 %v3534_v53 }
 0xa62   : > { %3556 = vadd.xlane.f32.xlu0 %v15497_v46  ;;  %13049 = vpow2.f32 %v3530_v50 }
 0xa66   : > { %3552 = vadd.xlane.f32.xlu0 %v15500_v48 }
 0xa67   : > { %v15503_v17 = vpop.eup %13039 }
 0xa68   : > { %3564 = vadd.xlane.f32.xlu1 %v15503_v17  ;;  %v15506_v34 = vpop.eup %13041 }
 0xa69   : > { %v15509_v29 = vpop.eup %13043 }
 0xa6a   : > { %3558 = vadd.xlane.f32.xlu0 %v15506_v34  ;;  %v15512_v55 = vpop.eup %13045 }
 0xa6b   : > { %v15515_v62 = vpop.eup %13047 }
 0xa6c   : > { %3560 = vadd.xlane.f32.xlu1 %v15509_v29  ;;  %v15518_v56 = vpop.eup %13049 }
 0xa6e   : > { %3554 = vadd.xlane.f32.xlu0 %v15512_v55 }
 0xa70   : > { %3566 = vadd.xlane.f32.xlu1 %v15515_v62 }
 0xa71   : > { %v3489_v18 = vpop.xlane.xlu0 %3488 }
 0xa72   : > { %3562 = vadd.xlane.f32.xlu0 %v15518_v56  ;;  %v3512_v60 = vsub.f32 %v15433_v9, %v3489_v18 }
 0xa74   : > { %v3536_v23 = vmul.f32 1.442695, %v3512_v60 }
 0xa75   : > { %v3491_v52 = vpop.xlane.xlu0 %3490 }
 0xa76   : > { %v3513_v35 = vsub.f32 %v15437_v61, %v3491_v52  ;;  %13051 = vpow2.f32 %v3536_v23 }
 0xa78   : > { %v3538_v2 = vmul.f32 1.442695, %v3513_v35 }
 0xa79   : > { %v3493_v26 = vpop.xlane.xlu0 %3492 }
 0xa7a   : > { %v3514_v5 = vsub.f32 %v15441_v51, %v3493_v26  ;;  %13053 = vpow2.f32 %v3538_v2 }
 0xa7d   : > { %v3495_v6 = vpop.xlane.xlu0 %3494 }
 0xa7e   : > { %v3515_v47 = vsub.f32 %v15445_v27, %v3495_v6 }
 0xa81   : > { %3636 = vrot.lane.b32.xlu1 %v14570_v30, %s13886_s23  ;;  %v3540_v30 = vmul.f32 1.442695, %v3514_v5 }
 0xa83   : > { %13055 = vpow2.f32 %v3540_v30 }
 0xa85   : > { %3638 = vrot.lane.b32.xlu1 %v19818_v63, %s13886_s23  ;;  %v3542_v63 = vmul.f32 1.442695, %v3515_v47 }
 0xa87   : > { %13057 = vpow2.f32 %v3542_v63 }
 0xa88   : > { %3634 = vrot.lane.b32.xlu0 %v14541_v44, %s13886_s23  ;;  %v15531_v44 = vpop.eup %13051 }
 0xa89   : > { %v15534_v9 = vpop.eup %13053 }
 0xa8d   : > { %v15537_v61 = vpop.eup %13055 }
 0xa91   : > { %v15540_v51 = vpop.eup %13057 }
 0xaa7   : > { %3568 = vadd.xlane.f32.xlu0 %v15531_v44 }
 0xaa9   : > { %3570 = vadd.xlane.f32.xlu1 %v15534_v9 }
 0xaab   : > { %3572 = vadd.xlane.f32.xlu0 %v15537_v61 }
 0xaaf   : > { %3574 = vadd.xlane.f32.xlu0 %v15540_v51 }
 0xab1   : > { %v3501_v27 = vpop.xlane.xlu1 %3500 }
 0xab2   : > { %v3518_v0 = vsub.f32 %v15450_v13, %v3501_v27  ;;  %v3497_v8 = vpop.xlane.xlu0 %3496 }
 0xab3   : > { %v3516_v21 = vsub.f32 %v15453_v45, %v3497_v8 }
 0xab4   : > { %v3548_v20 = vmul.f32 1.442695, %v3518_v0 }
 0xab5   : > { %v3544_v58 = vmul.f32 1.442695, %v3516_v21  ;;  %v3625_v33 = vpop.permute.xlu1 %3624 }
 0xab6   : > { %v3499_v15 = vpop.xlane.xlu0 %3498  ;;  %11890 = vmatprep.subr.bf16.mxu1 %v3625_v33 }
 0xab7   : > { %13059 = vpow2.f32 %v3544_v58  ;;  %v3517_v36 = vsub.f32 %v15461_v32, %v3499_v15 }
 0xab8   : > { %13061 = vpow2.f32 %v3548_v20 }
 0xab9   : > { %v3546_v39 = vmul.f32 1.442695, %v3517_v36 }
 0xaba   : > { %v3503_v40 = vpop.xlane.xlu0 %3502 }
 0xabb   : > { %13063 = vpow2.f32 %v3546_v39  ;;  %v3519_v12 = vsub.f32 %v15466_v38, %v3503_v40  ;;  %v3629_v38 = vpop.permute.xlu1 %3628 }
 0xabd   : > { %v3550_v31 = vmul.f32 1.442695, %v3519_v12 }
 0xabe   : > { %v3627_v24 = vpop.permute.xlu0 %3626 }
 0xabf   : > { %13065 = vpow2.f32 %v3550_v31  ;;  %v3631_v1 = vpop.permute.xlu1 %3630 }
 0xac1   : > { %v15547_v13 = vpop.eup %13059 }
 0xac2   : > { %3576 = vadd.xlane.f32.xlu1 %v15547_v13  ;;  %v15550_v45 = vpop.eup %13061 }
 0xac3   : > { %v3633_v10 = vpop.permute.xlu1 %3632 }
 0xac5   : > { %v15552_v14 = vpop.eup %13063 }
 0xac6   : > { %3578 = vadd.xlane.f32.xlu0 %v15552_v14  ;;  %3580 = vadd.xlane.f32.xlu1 %v15550_v45 }
 0xac9   : > { %v15556_v32 = vpop.eup %13065 }
 0xaca   : > { %3582 = vadd.xlane.f32.xlu0 %v15556_v32 }
 0xaef   : > { %v3557_v57 = vpop.xlane.xlu0 %3556 }
 0xaf3   : > { %v3553_v37 = vpop.xlane.xlu0 %3552 }
 0xaf5   : > { %v3565_v16 = vpop.xlane.xlu1 %3564 }
 0xaf7   : > { %v3559_v28 = vpop.xlane.xlu0 %3558 }
 0xaf9   : > { %v3561_v50 = vpop.xlane.xlu1 %3560 }
 0xafb   : > { %v3555_v11 = vpop.xlane.xlu0 %3554 }
 0xafc   : > { %13067 = vrcp.f32 %v3555_v11 }
 0xafd   : > { %13069 = vrcp.f32 %v3553_v37  ;;  %v3567_v5 = vpop.xlane.xlu1 %3566 }
 0xafe   : > { %v11824_v59 = vpop.f32.mrb[80].mxu1  ;;  %13071 = vrcp.f32 %v3559_v28 }
 0xaff   : > { %v3075_v49 = vpop.f32.mrb[81].mxu1  ;;  %v3563_v26 = vpop.xlane.xlu0 %3562 }
 0xb00   : > { %v11825_v54 = vpop.f32.mrb[82].mxu1  ;;  %13073 = vrcp.f32 %v3563_v26 }
 0xb01   : > { %v3139_v42 = vpack.c.bf16 %v11825_v54, %v11824_v59  ;;  %v3078_v3 = vpop.f32.mrb[83].mxu1  ;;  %13075 = vrcp.f32 %v3557_v57  ;;  %v3637_v0 = vpop.permute.xlu1 %3636 }
 0xb02   : > { %v3138_v4 = vpack.c.bf16 %v3078_v3, %v3075_v49  ;;  %13077 = vrcp.f32 %v3561_v50 }
 0xb03   : > { %v3635_v30 = vpop.permute.xlu0 %3634  ;;  %13079 = vrcp.f32 %v3567_v5 }
 0xb04   : > { %11842 = vmatprep.mubr.msk.bf16.mxu1 %vm1537_vm1, %v3138_v4  ;;  %13081 = vrcp.f32 %v3565_v16 }
 0xb05   : > { %11843 = vmatmul.mubr.msk.bf16.vlgmr.msra.gmra.mrb[64].mxu1 %vm1537_vm1, %v3139_v42  ;;  %v3639_v31 = vpop.permute.xlu1 %3638 }
 0xb06   : > { %11891 = vmatpush3.bf16.msra.mxu1 %v3625_v33  ;;  %v11828_v7 = vpop.f32.mrb[84].mxu1  ;;  %v13068_v2 = vpop.eup %13067 }
 0xb07   : > { %11892 = vmatprep.subr.bf16.mxu1 %v3627_v24  ;;  %v3091_v43 = vpop.f32.mrb[85].mxu1  ;;  %v13070_v63 = vpop.eup %13069  ;;  %v3601_v21 = vmul.f32 %v13068_v2, %v15512_v55 }
 0xb08   : > { %v11829_v22 = vpop.f32.mrb[86].mxu1  ;;  %v3600_v15 = vmul.f32 %v13070_v63, %v15500_v48  ;;  %v13072_v36 = vpop.eup %13071 }
 0xb09   : > { %v3141_v41 = vpack.c.bf16 %v11829_v22, %v11828_v7  ;;  %v3094_v19 = vpop.f32.mrb[87].mxu1 }
 0xb0a   : > { %v3140_v53 = vpack.c.bf16 %v3094_v19, %v3091_v43  ;;  %11893 = vmatpush3.bf16.msra.mxu1 %v3627_v24  ;;  %v3616_v39 = vpack.c.bf16 %v3601_v21, %v3600_v15  ;;  %v13074_v40 = vpop.eup %13073  ;;  %v3603_v24 = vmul.f32 %v13072_v36, %v15506_v34 }
 0xb0b   : > { %11894 = vmatprep.subr.bf16.mxu1 %v3629_v38  ;;  %v13076_v12 = vpop.eup %13075  ;;  %v3605_v48 = vmul.f32 %v13074_v40, %v15518_v56 }
 0xb0c   : > { %11846 = vmatprep.mubr.msk.bf16.mxu1 %vm1537_vm1, %v3140_v53  ;;  %v13078_v55 = vpop.eup %13077  ;;  %v3602_v57 = vmul.f32 %v13076_v12, %v15497_v46 }
 0xb0d   : > { %11847 = vmatmul.mubr.msk.bf16.gmra.mrb[68].mxu1 %vm1537_vm1, %v3141_v41  ;;  %v13080_v59 = vpop.eup %13079 }
 0xb0e   : > { %11895 = vmatpush3.bf16.msra.mxu1 %v3629_v38  ;;  %v11832_v18 = vpop.f32.mrb[88].mxu1  ;;  %v12609_v38 = vld [vmem:[#allocation5 + $0x30] sm:$0xff]   ;;  %v3617_v37 = vpack.c.bf16 %v3603_v24, %v3602_v57  ;;  %v13082_v54 = vpop.eup %13081  ;;  %v3607_v42 = vmul.f32 %v13080_v59, %v15515_v62 }
 0xb0f   : > { %11896 = vmatprep.subr.bf16.mxu1 %v3631_v1  ;;  %v3107_v52 = vpop.f32.mrb[89].mxu1  ;;  %v3606_v34 = vmul.f32 %v13082_v54, %v15503_v17 }
 0xb10   : > { %v11833_v60 = vpop.f32.mrb[90].mxu1 }
 0xb11   : > { %v3143_v35 = vpack.c.bf16 %v11833_v60, %v11832_v18  ;;  %v3110_v23 = vpop.f32.mrb[91].mxu1  ;;  %v3619_v3 = vpack.c.bf16 %v3607_v42, %v3606_v34 }
 0xb12   : > { %v3142_v6 = vpack.c.bf16 %v3110_v23, %v3107_v52  ;;  %11897 = vmatpush3.bf16.msra.mxu1 %v3631_v1  ;;  %v3604_v1 = vmul.f32 %v13078_v55, %v15509_v29 }
 0xb13   : > { %11898 = vmatprep.subr.bf16.mxu1 %v3633_v10 }
 0xb14   : > { %11850 = vmatprep.mubr.msk.bf16.mxu1 %vm1537_vm1, %v3142_v6  ;;  %v3618_v49 = vpack.c.bf16 %v3605_v48, %v3604_v1  ;;  %v12610_v6 = vld [vmem:[#allocation5 + $0x38] sm:$0xff]   ;;  %v19843_v48 = vld [vmem:[#allocation18_spill] sm:$0xff] }
 0xb15   : > { %11851 = vmatmul.mubr.msk.bf16.gmra.mrb[72].mxu1 %vm1537_vm1, %v3143_v35  ;;  %v15593_v57 = vsub.s32 3, %v19843_v48  ;;  %v15598_v1 = vld [vmem:[%s19589_s9] sm:$0xff] }
 0xb16   : > { %11899 = vmatpush3.bf16.msra.mxu1 %v3633_v10  ;;  %v11836_v47 = vpop.f32.mrb[92].mxu1 }
 0xb17   : > { %11900 = vmatprep.subr.bf16.mxu1 %v3635_v30  ;;  %v3123_v27 = vpop.f32.mrb[93].mxu1  ;;  %19844 = vst [vmem:[#allocation38_spill] sm:$0xff] %v15593_v57 }
 0xb18   : > { %v11837_v8 = vpop.f32.mrb[94].mxu1 }
 0xb19   : > { %v3145_v58 = vpack.c.bf16 %v11837_v8, %v11836_v47  ;;  %v3126_v33 = vpop.f32.mrb[95].mxu1 }
 0xb1a   : > { %v3144_v20 = vpack.c.bf16 %v3126_v33, %v3123_v27  ;;  %11901 = vmatpush3.bf16.msra.mxu1 %v3635_v30 }
 0xb1b   : > { %11902 = vmatprep.subr.bf16.mxu1 %v3637_v0 }
 0xb1c   : > { %11854 = vmatprep.mubr.msk.bf16.mxu1 %vm1537_vm1, %v3144_v20 }
 0xb1d   : > { %11855 = vmatmul.mubr.msk.bf16.gmra.mrb[76].mxu1 %vm1537_vm1, %v3145_v58 }
 0xb1e   : > { %11903 = vmatpush3.bf16.msra.mxu1 %v3637_v0  ;;  %11906 = vmatprep.mubr.bf16.mxu1 %v3616_v39 }
 0xb1f   : > { %11904 = vmatprep.subr.bf16.mxu1 %v3639_v31 }
 0xb22   : > { %11905 = vmatpush3.bf16.msra.mxu1 %v3639_v31 }
 0xb23   : > { %11922 = vmatprep.subr.bf16.mxu1 %v12609_v38 }
 0xb25   : > { %11907 = vmatmul.mubr.bf16.vlgmr.msra.gmra.mrb[96].mxu1 %v3617_v37  ;;  %v3905_v37 = vrot.slane %v15598_v1, %v15593_v57 }
 0xb26   : > { %11910 = vmatprep.mubr.bf16.mxu1 %v3618_v49  ;;  %11923 = vmatpush3.bf16.msra.mxu1 %v12609_v38 }
 0xb27   : > { %11924 = vmatprep.subr.bf16.mxu1 %v12610_v6 }
 0xb2a   : > { %11925 = vmatpush3.bf16.msra.mxu1 %v12610_v6 }
 0xb2d   : > { %11911 = vmatmul.mubr.bf16.gmra.mrb[100].mxu1 %v3619_v3 }
 0xb34   : > { %v3569_v56 = vpop.xlane.xlu0 %3568 }
 0xb35   : > { %13083 = vrcp.f32 %v3569_v56  ;;  %v19845_v56 = vld [vmem:[#allocation21_spill] sm:$0xff] }
 0xb36   : > { %v3571_v46 = vpop.xlane.xlu1 %3570 }
 0xb37   : > { %13085 = vrcp.f32 %v3571_v46 }
 0xb38   : > { %v3573_v10 = vpop.xlane.xlu0 %3572 }
 0xb39   : > { %13087 = vrcp.f32 %v3573_v10 }
 0xb3c   : > { %v3575_v29 = vpop.xlane.xlu0 %3574 }
 0xb3d   : > { %13089 = vrcp.f32 %v3575_v29 }
 0xb3f   : > { %v13084_v28 = vpop.eup %13083 }
 0xb40   : > { %v3608_v4 = vmul.f32 %v13084_v28, %v15531_v44  ;;  %v19846_v28 = vld [vmem:[#allocation22_spill] sm:$0xff] }
 0xb41   : > { %v13086_v16 = vpop.eup %13085 }
 0xb42   : > { %v3609_v7 = vmul.f32 %v13086_v16, %v15534_v9  ;;  %v19847_v16 = vld [vmem:[#allocation23_spill] sm:$0xff] }
 0xb43   : > { %v13088_v62 = vpop.eup %13087 }
 0xb44   : > { %v3620_v43 = vpack.c.bf16 %v3609_v7, %v3608_v4  ;;  %v3610_v11 = vmul.f32 %v13088_v62, %v15537_v61 }
 0xb46   : > { %11914 = vmatprep.mubr.bf16.mxu1 %v3620_v43 }
 0xb47   : > { %v13090_v17 = vpop.eup %13089 }
 0xb48   : > { %v3611_v22 = vmul.f32 %v13090_v17, %v15540_v51  ;;  %v19848_v17 = vld [vmem:[#allocation24_spill] sm:$0xff] }
 0xb4a   : > { %v3621_v41 = vpack.c.bf16 %v3611_v22, %v3610_v11 }
 0xb4c   : > { %11915 = vmatmul.mubr.bf16.gmra.mrb[104].mxu1 %v3621_v41 }
 0xb4f   : > { %v3577_v19 = vpop.xlane.xlu1 %3576 }
 0xb50   : > { %13091 = vrcp.f32 %v3577_v19 }
 0xb53   : > { %v3579_v53 = vpop.xlane.xlu0 %3578  ;;  %v3581_v50 = vpop.xlane.xlu1 %3580 }
 0xb54   : > { %13093 = vrcp.f32 %v3579_v53 }
 0xb55   : > { %13095 = vrcp.f32 %v3581_v50  ;;  %v19849_v50 = vld [vmem:[#allocation25_spill] sm:$0xff] }
 0xb57   : > { %v3583_v44 = vpop.xlane.xlu0 %3582 }
 0xb58   : > { %13097 = vrcp.f32 %v3583_v44 }
 0xb5a   : > { %v13092_v18 = vpop.eup %13091 }
 0xb5b   : > { %v3612_v52 = vmul.f32 %v13092_v18, %v15547_v13 }
 0xb5e   : > { %v13094_v9 = vpop.eup %13093 }
 0xb5f   : > { %v3613_v26 = vmul.f32 %v13094_v9, %v15552_v14  ;;  %v13096_v60 = vpop.eup %13095 }
 0xb60   : > { %v3614_v51 = vmul.f32 %v13096_v60, %v15550_v45  ;;  %v19851_v60 = vld [vmem:[#allocation27_spill] sm:$0xff] }
 0xb61   : > { %v3622_v61 = vpack.c.bf16 %v3613_v26, %v3612_v52  ;;  %v19850_v52 = vld [vmem:[#allocation26_spill] sm:$0xff] }
 0xb62   : > { %v13098_v35 = vpop.eup %13097 }
 0xb63   : > { %11918 = vmatprep.mubr.bf16.mxu1 %v3622_v61  ;;  %v3615_v23 = vmul.f32 %v13098_v35, %v15556_v32  ;;  %v19852_v35 = vld [vmem:[#allocation28_spill] sm:$0xff] }
 0xb65   : > { %v3623_v5 = vpack.c.bf16 %v3615_v23, %v3614_v51 }
 0xb67   : > { %11919 = vmatmul.mubr.bf16.gmra.mrb[108].mxu1 %v3623_v5 }
 0xbf8   : > { %v11908_v2 = vpop.f32.mrb[96].mxu1 }
 0xbf9   : > { %v3682_v30 = vpop.f32.mrb[97].mxu1 }
 0xbfa   : > { %v11909_v47 = vpop.f32.mrb[98].mxu1 }
 0xbfb   : > { %v3746_v63 = vpack.c.bf16 %v11909_v47, %v11908_v2  ;;  %v3685_v13 = vpop.f32.mrb[99].mxu1 }
 0xbfc   : > { %v3745_v27 = vpack.c.bf16 %v3685_v13, %v3682_v30 }
 0xbfe   : > { %11926 = vmatprep.mubr.msk.bf16.mxu1 %vm1537_vm1, %v3745_v27 }
 0xbff   : > { %11927 = vmatmul.mubr.msk.bf16.vlgmr.msra.gmra.mrb[64].mxu1 %vm1537_vm1, %v3746_v63  ;;  %v19853_v63 = vld [vmem:[#allocation29_spill] sm:$0xff] }
 0xc00   : > { %v11912_v14 = vpop.f32.mrb[100].mxu1 }
 0xc01   : > { %v3698_v0 = vpop.f32.mrb[101].mxu1 }
 0xc02   : > { %v11913_v45 = vpop.f32.mrb[102].mxu1 }
 0xc03   : > { %v3748_v8 = vpack.c.bf16 %v11913_v45, %v11912_v14  ;;  %v3701_v32 = vpop.f32.mrb[103].mxu1 }
 0xc04   : > { %v3747_v21 = vpack.c.bf16 %v3701_v32, %v3698_v0  ;;  %v19854_v0 = vld [vmem:[#allocation30_spill] sm:$0xff] }
 0xc06   : > { %11930 = vmatprep.mubr.msk.bf16.mxu1 %vm1537_vm1, %v3747_v21  ;;  %v19856_v21 = vld [vmem:[#allocation32_spill] sm:$0xff] }
 0xc07   : > { %11931 = vmatmul.mubr.msk.bf16.gmra.mrb[68].mxu1 %vm1537_vm1, %v3748_v8  ;;  %v19855_v8 = vld [vmem:[#allocation31_spill] sm:$0xff] }
 0xc1f   : > { %v11916_v58 = vpop.f32.mrb[104].mxu1 }
 0xc20   : > { %v3714_v33 = vpop.f32.mrb[105].mxu1 }
 0xc21   : > { %v11917_v20 = vpop.f32.mrb[106].mxu1 }
 0xc22   : > { %v3750_v15 = vpack.c.bf16 %v11917_v20, %v11916_v58  ;;  %v3717_v36 = vpop.f32.mrb[107].mxu1 }
 0xc23   : > { %v3749_v39 = vpack.c.bf16 %v3717_v36, %v3714_v33 }
 0xc25   : > { %11934 = vmatprep.mubr.msk.bf16.mxu1 %vm1537_vm1, %v3749_v39 }
 0xc26   : > { %11935 = vmatmul.mubr.msk.bf16.gmra.mrb[72].mxu1 %vm1537_vm1, %v3750_v15 }
 0xc3a   : > { %v11920_v40 = vpop.f32.mrb[108].mxu1 }
 0xc3b   : > { %v3730_v12 = vpop.f32.mrb[109].mxu1 }
 0xc3c   : > { %v11921_v31 = vpop.f32.mrb[110].mxu1 }
 0xc3d   : > { %v3752_v55 = vpack.c.bf16 %v11921_v31, %v11920_v40  ;;  %v3733_v24 = vpop.f32.mrb[111].mxu1 }
 0xc3e   : > { %v3751_v38 = vpack.c.bf16 %v3733_v24, %v3730_v12  ;;  %v19857_v12 = vld [vmem:[#allocation33_spill] sm:$0xff] }
 0xc40   : > { %11938 = vmatprep.mubr.msk.bf16.mxu1 %vm1537_vm1, %v3751_v38  ;;  %v19858_v38 = vld [vmem:[#allocation34_spill] sm:$0xff] }
 0xc41   : > { %11939 = vmatmul.mubr.msk.bf16.gmra.mrb[76].mxu1 %vm1537_vm1, %v3752_v55 }
 0xc42   : > { %4488 = vmatprep.mubr.bf16.mxu1 %v19817_v25 }
 0xcd2   : > { %v11928_v59 = vpop.f32.mrb[64].mxu1 }
 0xcd3   : > { %v3823_v49 = vpop.f32.mrb[65].mxu1  ;;  %v3908_v3 = vadd.f32 %v11928_v59, %v3905_v37 }
 0xcd4   : > { %v3906_v54 = vadd.f32 %v3905_v37, %v3823_v49  ;;  %v11929_v42 = vpop.f32.mrb[66].mxu1  ;;  %v19859_v49 = vld [vmem:[#allocation35_spill] sm:$0xff] }
 0xcd5   : > { %v3826_v34 = vpop.f32.mrb[67].mxu1  ;;  %v3909_v29 = vadd.f32 %v11929_v42, %v3905_v37  ;;  %v15610_v7 = vadd.f32 %v3908_v3, %v19847_v16  ;;  %v19860_v42 = vld [vmem:[#allocation36_spill] sm:$0xff] }
 0xcd6   : > { %v15603_v46 = vadd.f32 %v3906_v54, %v19845_v56  ;;  %v3907_v10 = vadd.f32 %v3905_v37, %v3826_v34  ;;  %v12613_v3 = vld [vmem:[%s19587_s7 + $0x4] ss:$16 sps:$4 sm:$0xff]   ;;  %v12614_v56 = vld [vmem:[%s19587_s7 + $0x8] ss:$16 sps:$4 sm:$0xff]   ;;  %v12617_v16 = vld [vmem:[%s19587_s7 + $0x20] ss:$16 sps:$4 sm:$0xff]  }
 0xcd7   : > { %v15614_v11 = vadd.f32 %v3909_v29, %v19848_v17  ;;  %v12619_v29 = vld [vmem:[%s19587_s7 + $0x24] ss:$16 sps:$4 sm:$0xff]   ;;  %4343 = vmatprep.subr.bf16.mxu0 %v12613_v3  ;;  %v12646_v3 = vld [vmem:[%s19587_s7 + $0xac] ss:$16 sps:$4 sm:$0xff]  }
 0xcd8   : > { %v15606_v4 = vadd.f32 %v3907_v10, %v19846_v28  ;;  %3938 = vadd.xlane.f32.xlu1 %v15603_v46  ;;  %v12616_v10 = vld [vmem:[%s19587_s7 + $0xc] ss:$16 sps:$4 sm:$0xff]  }
 0xcd9   : > { %v12622_v28 = vld [vmem:[%s19587_s7 + $0x2c] ss:$16 sps:$4 sm:$0xff]   ;;  %4456 = vmatprep.subr.bf16.mxu1 %v12616_v10  ;;  %v12644_v10 = vld [vmem:[%s19587_s7 + $0xa8] ss:$16 sps:$4 sm:$0xff]  }
 0xcda   : > { %3940 = vadd.xlane.f32.xlu0 %v15606_v4  ;;  %v11932_v43 = vpop.f32.mrb[68].mxu1  ;;  %4457 = vmatpush1.bf16.msra.mxu1 %v12614_v56  ;;  %v12641_v56 = vld [vmem:[%s19587_s7 + $0xa0] ss:$16 sps:$4 sm:$0xff]  }
 0xcdb   : > { %v3839_v62 = vpop.f32.mrb[69].mxu1  ;;  %v3912_v53 = vadd.f32 %v11932_v43, %v3905_v37  ;;  %v12620_v43 = vld [vmem:[%s19587_s7 + $0x28] ss:$16 sps:$4 sm:$0xff]   ;;  %4458 = vmatprep.subr.bf16.mxu1 %v12622_v28  ;;  %v12652_v28 = vld [vmem:[%s19587_s7 + $0xcc] ss:$16 sps:$4 sm:$0xff]  }
 0xcdc   : > { %v3910_v22 = vadd.f32 %v3905_v37, %v3839_v62  ;;  %3942 = vadd.xlane.f32.xlu1 %v15610_v7  ;;  %v11933_v41 = vpop.f32.mrb[70].mxu1 }
 0xcdd   : > { %v3842_v19 = vpop.f32.mrb[71].mxu1  ;;  %v3913_v9 = vadd.f32 %v11933_v41, %v3905_v37  ;;  %v15626_v61 = vadd.f32 %v3912_v53, %v19851_v60 }
 0xcde   : > { %v15618_v44 = vadd.f32 %v3910_v22, %v19849_v50  ;;  %v3911_v18 = vadd.f32 %v3905_v37, %v3842_v19  ;;  %3944 = vadd.xlane.f32.xlu0 %v15614_v11  ;;  %4459 = vmatpush1.bf16.msra.mxu1 %v12620_v43  ;;  %v12647_v43 = vld [vmem:[%s19587_s7 + $0xc0] ss:$16 sps:$4 sm:$0xff]  }
 0xcdf   : > { %v15630_v51 = vadd.f32 %v3913_v9, %v19852_v35 }
 0xce0   : > { %v15622_v26 = vadd.f32 %v3911_v18, %v19850_v52  ;;  %3946 = vadd.xlane.f32.xlu1 %v15618_v44 }
 0xce2   : > { %3948 = vadd.xlane.f32.xlu0 %v15622_v26 }
 0xce4   : > { %3950 = vadd.xlane.f32.xlu1 %v15626_v61 }
 0xce6   : > { %3952 = vadd.xlane.f32.xlu0 %v15630_v51 }
 0xcf9   : > { %v11936_v23 = vpop.f32.mrb[72].mxu1 }
 0xcfa   : > { %v3855_v5 = vpop.f32.mrb[73].mxu1  ;;  %v3916_v47 = vadd.f32 %v11936_v23, %v3905_v37 }
 0xcfb   : > { %v3914_v6 = vadd.f32 %v3905_v37, %v3855_v5  ;;  %v11937_v2 = vpop.f32.mrb[74].mxu1 }
 0xcfc   : > { %v3858_v30 = vpop.f32.mrb[75].mxu1  ;;  %v3917_v14 = vadd.f32 %v11937_v2, %v3905_v37  ;;  %v15642_v32 = vadd.f32 %v3916_v47, %v19855_v8 }
 0xcfd   : > { %v15635_v13 = vadd.f32 %v3914_v6, %v19853_v63  ;;  %v3915_v27 = vadd.f32 %v3905_v37, %v3858_v30 }
 0xcfe   : > { %v15646_v58 = vadd.f32 %v3917_v14, %v19856_v21 }
 0xcff   : > { %v15638_v45 = vadd.f32 %v3915_v27, %v19854_v0  ;;  %3954 = vadd.xlane.f32.xlu1 %v15635_v13 }
 0xd01   : > { %3956 = vadd.xlane.f32.xlu0 %v15638_v45 }
 0xd03   : > { %3958 = vadd.xlane.f32.xlu1 %v15642_v32 }
 0xd05   : > { %3960 = vadd.xlane.f32.xlu0 %v15646_v58 }
 0xd14   : > { %v11940_v33 = vpop.f32.mrb[76].mxu1 }
 0xd15   : > { %v3871_v20 = vpop.f32.mrb[77].mxu1  ;;  %v3920_v40 = vadd.f32 %v11940_v33, %v3905_v37 }
 0xd16   : > { %v3918_v15 = vadd.f32 %v3905_v37, %v3871_v20  ;;  %v11941_v36 = vpop.f32.mrb[78].mxu1 }
 0xd17   : > { %v3874_v39 = vpop.f32.mrb[79].mxu1  ;;  %v3921_v24 = vadd.f32 %v11941_v36, %v3905_v37  ;;  %v15658_v54 = vadd.f32 %v3920_v40, %v19859_v49  ;;  %v12626_v36 = vld [vmem:[%s19587_s7 + $0x48] ss:$16 sps:$4 sm:$0xff]   ;;  %v12634_v40 = vld [vmem:[%s19587_s7 + $0x6c] ss:$16 sps:$4 sm:$0xff]  }
 0xd18   : > { %v15651_v31 = vadd.f32 %v3918_v15, %v19857_v12  ;;  %v3919_v55 = vadd.f32 %v3905_v37, %v3874_v39  ;;  %v12611_v37 = vld [vmem:[%s19587_s7] ss:$16 sps:$4 sm:$0xff]   ;;  %v12628_v15 = vld [vmem:[%s19587_s7 + $0x4c] ss:$16 sps:$4 sm:$0xff]   ;;  %v12631_v39 = vld [vmem:[%s19587_s7 + $0x64] ss:$16 sps:$4 sm:$0xff]  }
 0xd19   : > { %v15662_v34 = vadd.f32 %v3921_v24, %v19860_v42  ;;  %4344 = vmatpush1.bf16.msra.mxu0 %v12611_v37  ;;  %4460 = vmatprep.subr.bf16.mxu1 %v12628_v15  ;;  %v12629_v12 = vld [vmem:[%s19587_s7 + $0x60] ss:$16 sps:$4 sm:$0xff]   ;;  %v12637_v24 = vld [vmem:[%s19587_s7 + $0x84] ss:$16 sps:$4 sm:$0xff]   ;;  %v12638_v42 = vld [vmem:[%s19587_s7 + $0x88] ss:$16 sps:$4 sm:$0xff]  }
 0xd1a   : > { %v15654_v59 = vadd.f32 %v3919_v55, %v19858_v38  ;;  %3962 = vadd.xlane.f32.xlu1 %v15651_v31  ;;  %4345 = vmatprep.subr.bf16.mxu0 %v12619_v29  ;;  %v12632_v55 = vld [vmem:[%s19587_s7 + $0x68] ss:$16 sps:$4 sm:$0xff]   ;;  %v12640_v38 = vld [vmem:[%s19587_s7 + $0x8c] ss:$16 sps:$4 sm:$0xff]   ;;  %v12635_v49 = vld [vmem:[%s19587_s7 + $0x80] ss:$16 sps:$4 sm:$0xff]  }
 0xd1b   : > { %4461 = vmatpush1.bf16.msra.mxu1 %v12626_v36  ;;  %v12643_v37 = vld [vmem:[%s19587_s7 + $0xa4] ss:$16 sps:$4 sm:$0xff]  }
 0xd1c   : > { %3964 = vadd.xlane.f32.xlu0 %v15654_v59  ;;  %4462 = vmatprep.subr.bf16.mxu1 %v12634_v40  ;;  %v12649_v29 = vld [vmem:[%s19587_s7 + $0xc4] ss:$16 sps:$4 sm:$0xff]  }
 0xd1d   : > { %4346 = vmatpush1.bf16.msra.mxu0 %v12617_v16 }
 0xd1e   : > { %3966 = vadd.xlane.f32.xlu1 %v15658_v54 }
 0xd1f   : > { %4463 = vmatpush1.bf16.msra.mxu1 %v12632_v55 }
 0xd20   : > { %3968 = vadd.xlane.f32.xlu0 %v15662_v34  ;;  %4464 = vmatprep.subr.bf16.mxu1 %v12640_v38 }
 0xd23   : > { %4465 = vmatpush1.bf16.msra.mxu1 %v12638_v42 }
 0xd24   : > { %4466 = vmatprep.subr.bf16.mxu1 %v12646_v3 }
 0xd27   : > { %4467 = vmatpush1.bf16.msra.mxu1 %v12644_v10 }
 0xd28   : > { %4468 = vmatprep.subr.bf16.mxu1 %v12652_v28 }
 0xd65   : > { %v3939_v62 = vpop.xlane.xlu1 %3938 }
 0xd66   : > { %v3970_v17 = vmul.f32 0.0078125, %v3939_v62  ;;  %v12650_v62 = vld [vmem:[%s19587_s7 + $0xc8] ss:$16 sps:$4 sm:$0xff]  }
 0xd67   : > { %v3941_v22 = vpop.xlane.xlu0 %3940  ;;  %4469 = vmatpush1.bf16.msra.mxu1 %v12650_v62  ;;  %v19648_v62 = vsub.s32 4, %v19843_v48 }
 0xd68   : > { %v15691_v41 = vsub.f32 %v15603_v46, %v3970_v17  ;;  %v3971_v19 = vmul.f32 0.0078125, %v3941_v22  ;;  %v12655_v22 = vld [vmem:[%s19587_s7 + $0xe4] ss:$16 sps:$4 sm:$0xff]  }
 0xd69   : > { %v3943_v53 = vpop.xlane.xlu1 %3942 }
 0xd6a   : > { %v15694_v50 = vsub.f32 %v15606_v4, %v3971_v19  ;;  %v3972_v18 = vmul.f32 0.0078125, %v3943_v53  ;;  %v4002_v9 = vmul.f32 %v15691_v41, %v15691_v41  ;;  %v12653_v53 = vld [vmem:[%s19587_s7 + $0xe0] ss:$16 sps:$4 sm:$0xff]  }
 0xd6b   : > { %v3945_v52 = vpop.xlane.xlu0 %3944 }
 0xd6c   : > { %v15699_v60 = vsub.f32 %v15610_v7, %v3972_v18  ;;  %v3973_v35 = vmul.f32 0.0078125, %v3945_v52  ;;  %4018 = vadd.xlane.f32.xlu1 %v4002_v9  ;;  %v4003_v23 = vmul.f32 %v15694_v50, %v15694_v50  ;;  %v12656_v18 = vld [vmem:[%s19587_s7 + $0xe8] ss:$16 sps:$4 sm:$0xff]   ;;  %v12658_v9 = vld [vmem:[%s19587_s7 + $0xec] ss:$16 sps:$4 sm:$0xff]  }
 0xd6d   : > { %v3947_v46 = vpop.xlane.xlu1 %3946  ;;  %4470 = vmatprep.subr.bf16.mxu1 %v12658_v9 }
 0xd6e   : > { %v15704_v5 = vsub.f32 %v15614_v11, %v3973_v35  ;;  %v3974_v6 = vmul.f32 0.0078125, %v3947_v46  ;;  %4020 = vadd.xlane.f32.xlu0 %v4003_v23  ;;  %v4004_v4 = vmul.f32 %v15699_v60, %v15699_v60  ;;  %4471 = vmatpush1.bf16.msra.mxu1 %v12656_v18  ;;  %v15846_v18 = vrot.slane %v15598_v1, %v19648_v62 }
 0xd6f   : > { %v3949_v2 = vpop.xlane.xlu0 %3948 }
 0xd70   : > { %v15709_v30 = vsub.f32 %v15618_v44, %v3974_v6  ;;  %v3975_v7 = vmul.f32 0.0078125, %v3949_v2  ;;  %4022 = vadd.xlane.f32.xlu1 %v4004_v4  ;;  %v4005_v47 = vmul.f32 %v15704_v5, %v15704_v5 }
 0xd71   : > { %v3951_v63 = vpop.xlane.xlu1 %3950 }
 0xd72   : > { %v15714_v27 = vsub.f32 %v15622_v26, %v3975_v7  ;;  %v3976_v11 = vmul.f32 0.0078125, %v3951_v63  ;;  %4024 = vadd.xlane.f32.xlu0 %v4005_v47  ;;  %v4006_v14 = vmul.f32 %v15709_v30, %v15709_v30 }
 0xd73   : > { %v3953_v0 = vpop.xlane.xlu0 %3952 }
 0xd74   : > { %v15719_v8 = vsub.f32 %v15626_v61, %v3976_v11  ;;  %v3977_v44 = vmul.f32 0.0078125, %v3953_v0  ;;  %4026 = vadd.xlane.f32.xlu1 %v4006_v14  ;;  %v4007_v21 = vmul.f32 %v15714_v27, %v15714_v27  ;;  %v12625_v61 = vld [vmem:[%s19587_s7 + $0x44] ss:$16 sps:$4 sm:$0xff]  }
 0xd75   : > { %4347 = vmatprep.subr.bf16.mxu0 %v12625_v61 }
 0xd76   : > { %v15724_v33 = vsub.f32 %v15630_v51, %v3977_v44  ;;  %4028 = vadd.xlane.f32.xlu0 %v4007_v21  ;;  %v4008_v26 = vmul.f32 %v15719_v8, %v15719_v8  ;;  %v12623_v51 = vld [vmem:[%s19587_s7 + $0x40] ss:$16 sps:$4 sm:$0xff]  }
 0xd77   : > { %4348 = vmatpush1.bf16.msra.mxu0 %v12623_v51 }
 0xd78   : > { %4030 = vadd.xlane.f32.xlu1 %v4008_v26  ;;  %v4009_v20 = vmul.f32 %v15724_v33, %v15724_v33  ;;  %4349 = vmatprep.subr.bf16.mxu0 %v12631_v39 }
 0xd7a   : > { %4032 = vadd.xlane.f32.xlu0 %v4009_v20 }
 0xd7b   : > { %4350 = vmatpush1.bf16.msra.mxu0 %v12629_v12  ;;  %v12659_v12 = vld [vmem:[#allocation7 + $0x40] sm:$0xff]  }
 0xd7c   : > { %4351 = vmatprep.subr.bf16.mxu0 %v12637_v24 }
 0xd7f   : > { %4352 = vmatpush1.bf16.msra.mxu0 %v12635_v49 }
 0xd80   : > { %4353 = vmatprep.subr.bf16.mxu0 %v12643_v37 }
 0xd83   : > { %4354 = vmatpush1.bf16.msra.mxu0 %v12641_v56 }
 0xd84   : > { %4355 = vmatprep.subr.bf16.mxu0 %v12649_v29 }
 0xd87   : > { %4356 = vmatpush1.bf16.msra.mxu0 %v12647_v43 }
 0xd88   : > { %4357 = vmatprep.subr.bf16.mxu0 %v12655_v22 }
 0xd8b   : > { %4358 = vmatpush1.bf16.msra.mxu0 %v12653_v53 }
 0xd8c   : > { %v3955_v16 = vpop.xlane.xlu1 %3954  ;;  %11110 = vmatprep.subr.bf16.mxu0 %v12659_v12  ;;  %v12663_v12 = vld [vmem:[#allocation7 + $0x48] sm:$0xff]  }
 0xd8d   : > { %v3978_v17 = vmul.f32 0.0078125, %v3955_v16 }
 0xd8e   : > { %v3957_v19 = vpop.xlane.xlu0 %3956 }
 0xd8f   : > { %v15803_v52 = vsub.f32 %v15635_v13, %v3978_v17  ;;  %v3979_v35 = vmul.f32 0.0078125, %v3957_v19 }
 0xd90   : > { %v3959_v23 = vpop.xlane.xlu1 %3958 }
 0xd91   : > { %v15806_v46 = vsub.f32 %v15638_v45, %v3979_v35  ;;  %v3980_v6 = vmul.f32 0.0078125, %v3959_v23  ;;  %v4010_v4 = vmul.f32 %v15803_v52, %v15803_v52  ;;  %v19647_v23 = vsub.s32 5, %v19843_v48 }
 0xd92   : > { %v3961_v2 = vpop.xlane.xlu0 %3960 }
 0xd93   : > { %v15811_v7 = vsub.f32 %v15642_v32, %v3980_v6  ;;  %v3981_v47 = vmul.f32 0.0078125, %v3961_v2  ;;  %4034 = vadd.xlane.f32.xlu1 %v4010_v4  ;;  %v4011_v13 = vmul.f32 %v15806_v46, %v15806_v46 }
 0xd95   : > { %v15816_v63 = vsub.f32 %v15646_v58, %v3981_v47  ;;  %4036 = vadd.xlane.f32.xlu0 %v4011_v13  ;;  %v4012_v45 = vmul.f32 %v15811_v7, %v15811_v7 }
 0xd97   : > { %4038 = vadd.xlane.f32.xlu1 %v4012_v45  ;;  %v4013_v11 = vmul.f32 %v15816_v63, %v15816_v63 }
 0xd99   : > { %4040 = vadd.xlane.f32.xlu0 %v4013_v11 }
 0xda7   : > { %v3963_v14 = vpop.xlane.xlu1 %3962 }
 0xda8   : > { %v3982_v32 = vmul.f32 0.0078125, %v3963_v14  ;;  %v15855_v14 = vrot.slane %v15598_v1, %v19647_v23 }
 0xda9   : > { %v3965_v0 = vpop.xlane.xlu0 %3964 }
 0xdaa   : > { %v15823_v44 = vsub.f32 %v15651_v31, %v3982_v32  ;;  %v3983_v21 = vmul.f32 0.0078125, %v3965_v0 }
 0xdab   : > { %v3967_v26 = vpop.xlane.xlu1 %3966 }
 0xdac   : > { %v15826_v58 = vsub.f32 %v15654_v59, %v3983_v21  ;;  %v3984_v20 = vmul.f32 0.0078125, %v3967_v26  ;;  %v4014_v61 = vmul.f32 %v15823_v44, %v15823_v44 }
 0xdad   : > { %v3969_v15 = vpop.xlane.xlu0 %3968 }
 0xdae   : > { %v15831_v51 = vsub.f32 %v15658_v54, %v3984_v20  ;;  %v3985_v36 = vmul.f32 0.0078125, %v3969_v15  ;;  %4042 = vadd.xlane.f32.xlu1 %v4014_v61  ;;  %v4015_v39 = vmul.f32 %v15826_v58, %v15826_v58  ;;  %v12661_v54 = vld [vmem:[#allocation7 + $0xc0] sm:$0xff]  }
 0xdaf   : > { %11174 = vmatprep.subr.bf16.mxu1 %v12661_v54 }
 0xdb0   : > { %v15836_v31 = vsub.f32 %v15662_v34, %v3985_v36  ;;  %4044 = vadd.xlane.f32.xlu0 %v4015_v39  ;;  %v4016_v59 = vmul.f32 %v15831_v51, %v15831_v51  ;;  %v12660_v39 = vld [vmem:[#allocation7] sm:$0xff]  }
 0xdb2   : > { %4046 = vadd.xlane.f32.xlu1 %v4016_v59  ;;  %v4017_v40 = vmul.f32 %v15836_v31, %v15836_v31 }
 0xdb4   : > { %4048 = vadd.xlane.f32.xlu0 %v4017_v40  ;;  %v12662_v40 = vld [vmem:[#allocation7 + $0x80] sm:$0xff]  }
 0xdf9   : > { %v4019_v55 = vpop.xlane.xlu1 %4018 }
 0xdfa   : > { %v4050_v24 = vmul.f32 0.0078125, %v4019_v55 }
 0xdfb   : > { %v4021_v38 = vpop.xlane.xlu0 %4020 }
 0xdfc   : > { %v4066_v49 = vadd.f32 1e-12, %v4050_v24  ;;  %v4051_v42 = vmul.f32 0.0078125, %v4021_v38  ;;  %v12664_v24 = vld [vmem:[#allocation7 + $0x8] sm:$0xff]  }
 0xdfd   : > { %v4023_v34 = vpop.xlane.xlu1 %4022 }
 0xdfe   : > { %13099 = vrsqrt.f32 %v4066_v49  ;;  %v4067_v37 = vadd.f32 1e-12, %v4051_v42  ;;  %v4052_v3 = vmul.f32 0.0078125, %v4023_v34 }
 0xdff   : > { %v4025_v56 = vpop.xlane.xlu0 %4024 }
 0xe00   : > { %13101 = vrsqrt.f32 %v4067_v37  ;;  %v4068_v10 = vadd.f32 1e-12, %v4052_v3  ;;  %v4053_v29 = vmul.f32 0.0078125, %v4025_v56 }
 0xe01   : > { %v4027_v28 = vpop.xlane.xlu1 %4026 }
 0xe02   : > { %13103 = vrsqrt.f32 %v4068_v10  ;;  %v4069_v16 = vadd.f32 1e-12, %v4053_v29  ;;  %v4054_v43 = vmul.f32 0.0078125, %v4027_v28 }
 0xe03   : > { %v4029_v17 = vpop.xlane.xlu0 %4028 }
 0xe04   : > { %13105 = vrsqrt.f32 %v4069_v16  ;;  %v4055_v22 = vmul.f32 0.0078125, %v4029_v17  ;;  %v4070_v19 = vadd.f32 1e-12, %v4054_v43 }
 0xe05   : > { %v4031_v9 = vpop.xlane.xlu1 %4030 }
 0xe06   : > { %v4071_v53 = vadd.f32 1e-12, %v4055_v22  ;;  %v4056_v13 = vmul.f32 0.0078125, %v4031_v9 }
 0xe07   : > { %v4033_v35 = vpop.xlane.xlu0 %4032 }
 0xe08   : > { %v13100_v6 = vpop.eup %13099  ;;  %13107 = vrsqrt.f32 %v4071_v53  ;;  %v4057_v4 = vmul.f32 0.0078125, %v4033_v35  ;;  %v4072_v20 = vadd.f32 1e-12, %v4056_v13 }
 0xe09   : > { %v4098_v2 = vmul.f32 %v13100_v6, %v15691_v41  ;;  %13109 = vrsqrt.f32 %v4070_v19 }
 0xe0a   : > { %v13102_v47 = vpop.eup %13101  ;;  %v4073_v0 = vadd.f32 1e-12, %v4057_v4 }
 0xe0b   : > { %v4118_v45 = vmul.f32 %v15846_v18, %v4098_v2  ;;  %v4099_v11 = vmul.f32 %v13102_v47, %v15694_v50 }
 0xe0c   : > { %v13104_v32 = vpop.eup %13103  ;;  %13111 = vrsqrt.f32 %v4073_v0 }
 0xe0d   : > { %v4119_v21 = vmul.f32 %v15846_v18, %v4099_v11  ;;  %v15859_v41 = vadd.f32 %v15855_v14, %v4118_v45  ;;  %v4100_v15 = vmul.f32 %v13104_v32, %v15699_v60  ;;  %13113 = vrsqrt.f32 %v4072_v20 }
 0xe0e   : > { %v13106_v26 = vpop.eup %13105 }
 0xe0f   : > { %19861 = vst [vmem:[#allocation42_spill] sm:$0xff] %v15859_v41  ;;  %v15862_v61 = vadd.f32 %v15855_v14, %v4119_v21  ;;  %v4101_v50 = vmul.f32 %v13106_v26, %v15704_v5  ;;  %v4120_v54 = vmul.f32 %v15846_v18, %v4100_v15 }
 0xe11   : > { %19862 = vst [vmem:[#allocation40_spill] sm:$0xff] %v15862_v61  ;;  %v4154_v1 = vpack.c.bf16 %v15862_v61, %v15859_v41  ;;  %v4121_v36 = vmul.f32 %v15846_v18, %v4101_v50  ;;  %v15877_v38 = vadd.f32 %v15855_v14, %v4120_v54 }
 0xe12   : > { %v13108_v59 = vpop.eup %13107 }
 0xe13   : > { %4376 = vmatmul.mubr.bf16.vlgmr.msra.gmra.mrb[96].mxu0 %v4154_v1  ;;  %4489 = vmatmul.mubr.bf16.vlgmr.msra.gmra.mrb[112].mxu1 %v4154_v1  ;;  %v13110_v55 = vpop.eup %13109  ;;  %v15873_v60 = vadd.f32 %v15855_v14, %v4121_v36  ;;  %v4103_v5 = vmul.f32 %v13108_v59, %v15714_v27  ;;  %19864 = vst [vmem:[#allocation39_spill] sm:$0xff] %v15877_v38 }
 0xe14   : > { %4385 = vmatprep.mubr.bf16.mxu0 %v19817_v25  ;;  %4498 = vmatprep.mubr.bf16.mxu1 %v19817_v25  ;;  %v4102_v49 = vmul.f32 %v13110_v55, %v15709_v30 }
 0xe15   : > { %19863 = vst [vmem:[#allocation41_spill] sm:$0xff] %v15873_v60  ;;  %11111 = vmatpush3.bf16.msra.mxu0 %v12660_v39  ;;  %11175 = vmatpush3.bf16.msra.mxu1 %v12662_v40  ;;  %v4155_v42 = vpack.c.bf16 %v15873_v60, %v15877_v38  ;;  %v4123_v34 = vmul.f32 %v15846_v18, %v4103_v5 }
 0xe16   : > { %11112 = vmatprep.subr.bf16.mxu0 %v12663_v12  ;;  %v13112_v37 = vpop.eup %13111  ;;  %v4122_v27 = vmul.f32 %v15846_v18, %v4102_v49 }
 0xe17   : > { %v13114_v3 = vpop.eup %13113  ;;  %v15887_v56 = vadd.f32 %v15855_v14, %v4123_v34  ;;  %v4105_v30 = vmul.f32 %v13112_v37, %v15724_v33 }
 0xe18   : > { %v15891_v10 = vadd.f32 %v15855_v14, %v4122_v27  ;;  %v4104_v29 = vmul.f32 %v13114_v3, %v15719_v8 }
 0xe19   : > { %11113 = vmatpush3.bf16.msra.mxu0 %v12664_v24  ;;  %19865 = vst [vmem:[#allocation46_spill] sm:$0xff] %v15887_v56  ;;  %v4125_v17 = vmul.f32 %v15846_v18, %v4105_v30 }
 0xe1a   : > { %19866 = vst [vmem:[#allocation44_spill] sm:$0xff] %v15891_v10  ;;  %v4156_v43 = vpack.c.bf16 %v15887_v56, %v15891_v10  ;;  %v4124_v9 = vmul.f32 %v15846_v18, %v4104_v29 }
 0xe1b   : > { %4386 = vmatmul.mubr.bf16.gmra.mrb[100].mxu0 %v4155_v42  ;;  %4499 = vmatmul.mubr.bf16.gmra.mrb[116].mxu1 %v4155_v42  ;;  %v15901_v6 = vadd.f32 %v15855_v14, %v4125_v17 }
 0xe1c   : > { %4395 = vmatprep.mubr.bf16.mxu0 %v19817_v25  ;;  %4508 = vmatprep.mubr.bf16.mxu1 %v19817_v25  ;;  %v15904_v13 = vadd.f32 %v15855_v14, %v4124_v9 }
 0xe1d   : > { %19867 = vst [vmem:[#allocation45_spill] sm:$0xff] %v15901_v6 }
 0xe1e   : > { %19868 = vst [vmem:[#allocation43_spill] sm:$0xff] %v15904_v13  ;;  %v4157_v11 = vpack.c.bf16 %v15901_v6, %v15904_v13 }
 0xe20   : > { %v4035_v28 = vpop.xlane.xlu1 %4034 }
 0xe21   : > { %v4058_v16 = vmul.f32 0.0078125, %v4035_v28 }
 0xe22   : > { %v4037_v22 = vpop.xlane.xlu0 %4036 }
 0xe23   : > { %v4074_v19 = vadd.f32 1e-12, %v4058_v16  ;;  %v4059_v53 = vmul.f32 0.0078125, %v4037_v22  ;;  %4396 = vmatmul.mubr.bf16.gmra.mrb[104].mxu0 %v4156_v43  ;;  %4509 = vmatmul.mubr.bf16.gmra.mrb[120].mxu1 %v4156_v43 }
 0xe24   : > { %v4039_v33 = vpop.xlane.xlu1 %4038  ;;  %4405 = vmatprep.mubr.bf16.mxu0 %v19817_v25  ;;  %4518 = vmatprep.mubr.bf16.mxu1 %v19817_v25 }
 0xe25   : > { %13115 = vrsqrt.f32 %v4074_v19  ;;  %v4075_v8 = vadd.f32 1e-12, %v4059_v53  ;;  %v4060_v35 = vmul.f32 0.0078125, %v4039_v33 }
 0xe26   : > { %v4041_v4 = vpop.xlane.xlu0 %4040 }
 0xe27   : > { %13117 = vrsqrt.f32 %v4075_v8  ;;  %v4076_v2 = vadd.f32 1e-12, %v4060_v35  ;;  %v4061_v47 = vmul.f32 0.0078125, %v4041_v4 }
 0xe29   : > { %13119 = vrsqrt.f32 %v4076_v2  ;;  %v4077_v45 = vadd.f32 1e-12, %v4061_v47 }
 0xe2b   : > { %13121 = vrsqrt.f32 %v4077_v45  ;;  %4406 = vmatmul.mubr.bf16.gmra.mrb[108].mxu0 %v4157_v11  ;;  %4519 = vmatmul.mubr.bf16.gmra.mrb[124].mxu1 %v4157_v11  ;;  %v12665_v11 = vld [vmem:[#allocation7 + $0xc8] sm:$0xff]  }
 0xe2c   : > { %4415 = vmatprep.mubr.bf16.mxu0 %v19817_v25  ;;  %4528 = vmatprep.mubr.bf16.mxu1 %v19817_v25 }
 0xe2d   : > { %11176 = vmatprep.subr.bf16.mxu1 %v12665_v11 }
 0xe2f   : > { %v13116_v32 = vpop.eup %13115 }
 0xe30   : > { %v4106_v0 = vmul.f32 %v13116_v32, %v15803_v52  ;;  %v12666_v32 = vld [vmem:[#allocation7 + $0x88] sm:$0xff]  }
 0xe31   : > { %v13118_v21 = vpop.eup %13117  ;;  %11177 = vmatpush3.bf16.msra.mxu1 %v12666_v32 }
 0xe32   : > { %v4107_v26 = vmul.f32 %v13118_v21, %v15806_v46  ;;  %v4126_v20 = vmul.f32 %v15846_v18, %v4106_v0  ;;  %v12668_v0 = vld [vmem:[#allocation7 + $0x10] sm:$0xff]  }
 0xe33   : > { %v13120_v15 = vpop.eup %13119  ;;  %v12669_v21 = vld [vmem:[#allocation7 + $0xd0] sm:$0xff]  }
 0xe34   : > { %v4127_v50 = vmul.f32 %v15846_v18, %v4107_v26  ;;  %v15915_v36 = vadd.f32 %v15855_v14, %v4126_v20  ;;  %v4108_v59 = vmul.f32 %v13120_v15, %v15811_v7  ;;  %11178 = vmatprep.subr.bf16.mxu1 %v12669_v21  ;;  %v12670_v26 = vld [vmem:[#allocation7 + $0x90] sm:$0xff]   ;;  %v12671_v20 = vld [vmem:[#allocation7 + $0x58] sm:$0xff]  }
 0xe35   : > { %v13122_v1 = vpop.eup %13121  ;;  %11179 = vmatpush3.bf16.msra.mxu1 %v12670_v26  ;;  %v12672_v15 = vld [vmem:[#allocation7 + $0x18] sm:$0xff]  }
 0xe36   : > { %19869 = vst [vmem:[#allocation50_spill] sm:$0xff] %v15915_v36  ;;  %v15918_v39 = vadd.f32 %v15855_v14, %v4127_v50  ;;  %v4109_v40 = vmul.f32 %v13122_v1, %v15816_v63  ;;  %v4128_v12 = vmul.f32 %v15846_v18, %v4108_v59  ;;  %v12674_v50 = vld [vmem:[#allocation7 + $0x98] sm:$0xff]   ;;  %v12675_v1 = vld [vmem:[#allocation7 + $0x60] sm:$0xff]  }
 0xe37   : > { %v12676_v59 = vld [vmem:[#allocation7 + $0xe0] sm:$0xff]  }
 0xe38   : > { %19870 = vst [vmem:[#allocation48_spill] sm:$0xff] %v15918_v39  ;;  %v4158_v52 = vpack.c.bf16 %v15918_v39, %v15915_v36  ;;  %v4129_v46 = vmul.f32 %v15846_v18, %v4109_v40  ;;  %v15932_v49 = vadd.f32 %v15855_v14, %v4128_v12  ;;  %v12677_v40 = vld [vmem:[#allocation7 + $0x20] sm:$0xff]   ;;  %v12680_v12 = vld [vmem:[#allocation7 + $0xe8] sm:$0xff]  }
 0xe3a   : > { %4416 = vmatmul.mubr.bf16.gmra.mrb[112].mxu0 %v4158_v52  ;;  %4529 = vmatmul.mubr.bf16.gmra.mrb[128].mxu1 %v4158_v52  ;;  %v15929_v5 = vadd.f32 %v15855_v14, %v4129_v46  ;;  %19872 = vst [vmem:[#allocation47_spill] sm:$0xff] %v15932_v49  ;;  %v12678_v52 = vld [vmem:[#allocation7 + $0xa0] sm:$0xff]   ;;  %v12679_v46 = vld [vmem:[#allocation7 + $0x68] sm:$0xff]  }
 0xe3b   : > { %v4043_v54 = vpop.xlane.xlu1 %4042  ;;  %4425 = vmatprep.mubr.bf16.mxu0 %v19817_v25  ;;  %4538 = vmatprep.mubr.bf16.mxu1 %v19817_v25 }
 0xe3c   : > { %v4062_v55 = vmul.f32 0.0078125, %v4043_v54  ;;  %19871 = vst [vmem:[#allocation49_spill] sm:$0xff] %v15929_v5  ;;  %v4159_v27 = vpack.c.bf16 %v15929_v5, %v15932_v49  ;;  %v12681_v54 = vld [vmem:[#allocation7 + $0x28] sm:$0xff]  }
 0xe3d   : > { %v4045_v7 = vpop.xlane.xlu0 %4044 }
 0xe3e   : > { %v4078_v63 = vadd.f32 1e-12, %v4062_v55  ;;  %v4063_v24 = vmul.f32 0.0078125, %v4045_v7  ;;  %v12682_v55 = vld [vmem:[#allocation7 + $0xa8] sm:$0xff]   ;;  %v12683_v7 = vld [vmem:[#allocation7 + $0x70] sm:$0xff]  }
 0xe3f   : > { %v4047_v42 = vpop.xlane.xlu1 %4046 }
 0xe40   : > { %13123 = vrsqrt.f32 %v4078_v63  ;;  %v4079_v34 = vadd.f32 1e-12, %v4063_v24  ;;  %v4064_v37 = vmul.f32 0.0078125, %v4047_v42  ;;  %v12684_v63 = vld [vmem:[#allocation7 + $0xf0] sm:$0xff]  }
 0xe41   : > { %v4049_v3 = vpop.xlane.xlu0 %4048  ;;  %v12685_v24 = vld [vmem:[#allocation7 + $0x30] sm:$0xff]  }
 0xe42   : > { %13125 = vrsqrt.f32 %v4079_v34  ;;  %v4080_v30 = vadd.f32 1e-12, %v4064_v37  ;;  %v4065_v29 = vmul.f32 0.0078125, %v4049_v3  ;;  %4426 = vmatmul.mubr.bf16.gmra.mrb[116].mxu0 %v4159_v27  ;;  %4539 = vmatmul.mubr.bf16.gmra.mrb[132].mxu1 %v4159_v27  ;;  %v12686_v42 = vld [vmem:[#allocation7 + $0xb0] sm:$0xff]   ;;  %v12687_v34 = vld [vmem:[#allocation7 + $0x78] sm:$0xff]  }
 0xe43   : > { %4435 = vmatprep.mubr.bf16.mxu0 %v19817_v25  ;;  %4548 = vmatprep.mubr.bf16.mxu1 %v19817_v25  ;;  %v12688_v37 = vld [vmem:[#allocation7 + $0xf8] sm:$0xff]  }
 0xe44   : > { %13127 = vrsqrt.f32 %v4080_v30  ;;  %v4081_v28 = vadd.f32 1e-12, %v4065_v29  ;;  %v12689_v27 = vld [vmem:[#allocation7 + $0x38] sm:$0xff]   ;;  %v1100_v30 = vld [vmem:[%s19590_s10] sm:$0xf]  ;;  %v19877_v29 = vld [vmem:[#allocation19_spill] sm:$0xff] }
 0xe45   : > { %v12690_v3 = vld [vmem:[#allocation7 + $0xb8] sm:$0xff]  }
 0xe46   : > { %13129 = vrsqrt.f32 %v4081_v28  ;;  %v15968_v28 = vrot.slane %v1100_v30, %v19877_v29 }
 0xe4a   : > { %v13124_v16 = vpop.eup %13123 }
 0xe4b   : > { %v4110_v43 = vmul.f32 %v13124_v16, %v15823_v44  ;;  %v19878_v16 = vld [vmem:[#allocation37_spill] sm:$0xff] }
 0xe4c   : > { %v13126_v17 = vpop.eup %13125 }
 0xe4d   : > { %v4111_v22 = vmul.f32 %v13126_v17, %v15826_v58  ;;  %v4130_v19 = vmul.f32 %v15846_v18, %v4110_v43  ;;  %v15971_v43 = vrot.slane %v1100_v30, %v19878_v16  ;;  %v19879_v17 = vld [vmem:[#allocation20_spill] sm:$0xff] }
 0xe4e   : > { %v13128_v53 = vpop.eup %13127 }
 0xe4f   : > { %v4131_v9 = vmul.f32 %v15846_v18, %v4111_v22  ;;  %v15943_v8 = vadd.f32 %v15855_v14, %v4130_v19  ;;  %v4112_v4 = vmul.f32 %v13128_v53, %v15831_v51  ;;  %v15974_v22 = vrot.slane %v1100_v30, %v19879_v17 }
 0xe50   : > { %v13130_v33 = vpop.eup %13129  ;;  %v15977_v19 = vrot.slane %v1100_v30, %v15593_v57 }
 0xe51   : > { %19873 = vst [vmem:[#allocation54_spill] sm:$0xff] %v15943_v8  ;;  %v15946_v35 = vadd.f32 %v15855_v14, %v4131_v9  ;;  %v4113_v2 = vmul.f32 %v13130_v33, %v15836_v31  ;;  %v4132_v47 = vmul.f32 %v15846_v18, %v4112_v4 }
 0xe53   : > { %19874 = vst [vmem:[#allocation52_spill] sm:$0xff] %v15946_v35  ;;  %v4160_v44 = vpack.c.bf16 %v15946_v35, %v15943_v8  ;;  %v4133_v58 = vmul.f32 %v15846_v18, %v4113_v2  ;;  %v15960_v51 = vadd.f32 %v15855_v14, %v4132_v47  ;;  %v12667_v18 = vld [vmem:[#allocation7 + $0x50] sm:$0xff]  }
 0xe54   : > { %11114 = vmatprep.subr.bf16.mxu0 %v12667_v18 }
 0xe55   : > { %4436 = vmatmul.mubr.bf16.gmra.mrb[120].mxu0 %v4160_v44  ;;  %4549 = vmatmul.mubr.bf16.gmra.mrb[136].mxu1 %v4160_v44  ;;  %v15957_v45 = vadd.f32 %v15855_v14, %v4133_v58  ;;  %19876 = vst [vmem:[#allocation51_spill] sm:$0xff] %v15960_v51  ;;  %v12673_v14 = vld [vmem:[#allocation7 + $0xd8] sm:$0xff]  }
 0xe56   : > { %4445 = vmatprep.mubr.bf16.mxu0 %v19817_v25  ;;  %4558 = vmatprep.mubr.bf16.mxu1 %v19817_v25 }
 0xe57   : > { %19875 = vst [vmem:[#allocation53_spill] sm:$0xff] %v15957_v45  ;;  %v4161_v31 = vpack.c.bf16 %v15957_v45, %v15960_v51  ;;  %11115 = vmatpush3.bf16.msra.mxu0 %v12668_v0  ;;  %11180 = vmatprep.subr.bf16.mxu1 %v12673_v14 }
 0xe58   : > { %11116 = vmatprep.subr.bf16.mxu0 %v12671_v20  ;;  %11181 = vmatpush3.bf16.msra.mxu1 %v12674_v50 }
 0xe59   : > { %11182 = vmatprep.subr.bf16.mxu1 %v12676_v59 }
 0xe5b   : > { %11117 = vmatpush3.bf16.msra.mxu0 %v12672_v15 }
 0xe5c   : > { %11118 = vmatprep.subr.bf16.mxu0 %v12675_v1  ;;  %11183 = vmatpush3.bf16.msra.mxu1 %v12678_v52 }
 0xe5d   : > { %4446 = vmatmul.mubr.bf16.gmra.mrb[124].mxu0 %v4161_v31  ;;  %4559 = vmatmul.mubr.bf16.gmra.mrb[140].mxu1 %v4161_v31 }
 0xe5e   : > { %11184 = vmatprep.subr.bf16.mxu1 %v12680_v12 }
 0xe5f   : > { %11119 = vmatpush3.bf16.msra.mxu0 %v12677_v40 }
 0xe60   : > { %11120 = vmatprep.subr.bf16.mxu0 %v12679_v46  ;;  %11185 = vmatpush3.bf16.msra.mxu1 %v12682_v55 }
 0xe61   : > { %11186 = vmatprep.subr.bf16.mxu1 %v12684_v63 }
 0xe63   : > { %11121 = vmatpush3.bf16.msra.mxu0 %v12681_v54 }
 0xe64   : > { %11122 = vmatprep.subr.bf16.mxu0 %v12683_v7  ;;  %11187 = vmatpush3.bf16.msra.mxu1 %v12686_v42 }
 0xe65   : > { %11188 = vmatprep.subr.bf16.mxu1 %v12688_v37 }
 0xe67   : > { %11123 = vmatpush3.bf16.msra.mxu0 %v12685_v24 }
 0xe68   : > { %11124 = vmatprep.subr.bf16.mxu0 %v12687_v34  ;;  %11189 = vmatpush3.bf16.msra.mxu1 %v12690_v3 }
 0xe6b   : > { %11125 = vmatpush3.bf16.msra.mxu0 %v12689_v27 }
 0xee6   : > { %v4377_v53 = vpop.f32.mrb[96].mxu0  ;;  %v4490_v9 = vpop.f32.mrb[112].mxu1 }
 0xee7   : > { %v15980_v33 = vadd.f32 %v4377_v53, %v15968_v28  ;;  %v15983_v4 = vadd.f32 %v4490_v9, %v15971_v43  ;;  %v4379_v2 = vpop.f32.mrb[97].mxu0  ;;  %v4492_v44 = vpop.f32.mrb[113].mxu1 }
 0xee8   : > { %v15986_v58 = vadd.f32 %v4379_v2, %v15974_v22  ;;  %v15989_v47 = vadd.f32 %v4492_v44, %v15977_v19  ;;  %v4381_v31 = vpop.f32.mrb[98].mxu0  ;;  %v4494_v11 = vpop.f32.mrb[114].mxu1 }
 0xee9   : > { %v4569_v32 = vmul.f32 %v15980_v33, %v15980_v33  ;;  %v4571_v18 = vmul.f32 %v15983_v4, %v15983_v4  ;;  %v15996_v0 = vadd.f32 %v4381_v31, %v15968_v28  ;;  %v15999_v21 = vadd.f32 %v4494_v11, %v15971_v43  ;;  %v4383_v26 = vpop.f32.mrb[99].mxu0  ;;  %v4496_v20 = vpop.f32.mrb[115].mxu1 }
 0xeea   : > { %v4570_v14 = vmul.f32 %v15986_v58, %v15986_v58  ;;  %v4572_v15 = vmul.f32 %v15989_v47, %v15989_v47  ;;  %v16006_v50 = vadd.f32 %v4383_v26, %v15974_v22  ;;  %v16009_v1 = vadd.f32 %v4496_v20, %v15977_v19 }
 0xeeb   : > { %v4633_v59 = vmul.f32 %v4569_v32, %v15980_v33  ;;  %v4635_v40 = vmul.f32 %v4571_v18, %v15983_v4  ;;  %v4573_v52 = vmul.f32 %v15996_v0, %v15996_v0  ;;  %v4575_v46 = vmul.f32 %v15999_v21, %v15999_v21 }
 0xeec   : > { %v4634_v12 = vmul.f32 %v4570_v14, %v15986_v58  ;;  %v4636_v54 = vmul.f32 %v4572_v15, %v15989_v47  ;;  %v4574_v55 = vmul.f32 %v16006_v50, %v16006_v50  ;;  %v4576_v7 = vmul.f32 %v16009_v1, %v16009_v1 }
 0xeed   : > { %v4697_v63 = vmul.f32 0.044715, %v4633_v59  ;;  %v4699_v24 = vmul.f32 0.044715, %v4635_v40  ;;  %v4637_v42 = vmul.f32 %v4573_v52, %v15996_v0  ;;  %v4639_v34 = vmul.f32 %v4575_v46, %v15999_v21 }
 0xeee   : > { %v4698_v37 = vmul.f32 0.044715, %v4634_v12  ;;  %v4700_v27 = vmul.f32 0.044715, %v4636_v54  ;;  %v4638_v3 = vmul.f32 %v4574_v55, %v16006_v50  ;;  %v4640_v30 = vmul.f32 %v4576_v7, %v16009_v1  ;;  %v4387_v53 = vpop.f32.mrb[100].mxu0  ;;  %v4500_v9 = vpop.f32.mrb[116].mxu1 }
 0xeef   : > { %v4761_v2 = vadd.f32 %v4697_v63, %v15980_v33  ;;  %v4763_v44 = vadd.f32 %v4699_v24, %v15983_v4  ;;  %v4701_v31 = vmul.f32 0.044715, %v4637_v42  ;;  %v4703_v11 = vmul.f32 0.044715, %v4639_v34  ;;  %v4389_v32 = vpop.f32.mrb[101].mxu0  ;;  %v4502_v18 = vpop.f32.mrb[117].mxu1 }
 0xef0   : > { %v4762_v26 = vadd.f32 %v4698_v37, %v15986_v58  ;;  %v4764_v20 = vadd.f32 %v4700_v27, %v15989_v47  ;;  %v4702_v14 = vmul.f32 0.044715, %v4638_v3  ;;  %v4704_v15 = vmul.f32 0.044715, %v4640_v30  ;;  %v4391_v59 = vpop.f32.mrb[102].mxu0  ;;  %v4504_v40 = vpop.f32.mrb[118].mxu1 }
 0xef1   : > { %v4825_v52 = vmul.f32 0.7978846, %v4761_v2  ;;  %v4827_v46 = vmul.f32 0.7978846, %v4763_v44  ;;  %v4765_v12 = vadd.f32 %v4701_v31, %v15996_v0  ;;  %v4767_v54 = vadd.f32 %v4703_v11, %v15999_v21  ;;  %v4393_v55 = vpop.f32.mrb[103].mxu0  ;;  %v4506_v7 = vpop.f32.mrb[119].mxu1 }
 0xef2   : > { %v4826_v63 = vmul.f32 0.7978846, %v4762_v26  ;;  %v4828_v24 = vmul.f32 0.7978846, %v4764_v20  ;;  %v4766_v42 = vadd.f32 %v4702_v14, %v16006_v50  ;;  %v4768_v34 = vadd.f32 %v4704_v15, %v16009_v1 }
 0xef3   : > { %13131 = vtanh.f32 %v4825_v52  ;;  %v4829_v37 = vmul.f32 0.7978846, %v4765_v12  ;;  %v4831_v27 = vmul.f32 0.7978846, %v4767_v54  ;;  %v16036_v3 = vadd.f32 %v4387_v53, %v15968_v28 }
 0xef4   : > { %13133 = vtanh.f32 %v4827_v46  ;;  %v4830_v30 = vmul.f32 0.7978846, %v4766_v42  ;;  %v4832_v2 = vmul.f32 0.7978846, %v4768_v34  ;;  %v16039_v44 = vadd.f32 %v4500_v9, %v15971_v43 }
 0xef5   : > { %13135 = vtanh.f32 %v4826_v63  ;;  %v4577_v31 = vmul.f32 %v16036_v3, %v16036_v3  ;;  %v16044_v11 = vadd.f32 %v4389_v32, %v15974_v22  ;;  %v16047_v26 = vadd.f32 %v4502_v18, %v15977_v19 }
 0xef6   : > { %19880 = vst [vmem:[#allocation21_spill] sm:$0xff] %v16039_v44  ;;  %13137 = vtanh.f32 %v4828_v24  ;;  %v4579_v53 = vmul.f32 %v16039_v44, %v16039_v44  ;;  %v16052_v20 = vadd.f32 %v4391_v59, %v15968_v28  ;;  %v16055_v9 = vadd.f32 %v4504_v40, %v15971_v43  ;;  %v16057_v14 = vpop.f32.mrb[104].mxu0  ;;  %v16059_v15 = vpop.f32.mrb[120].mxu1 }
 0xef7   : > { %13139 = vtanh.f32 %v4829_v37  ;;  %v4641_v32 = vmul.f32 %v4577_v31, %v16036_v3  ;;  %v4578_v18 = vmul.f32 %v16044_v11, %v16044_v11  ;;  %v4580_v52 = vmul.f32 %v16047_v26, %v16047_v26  ;;  %v16066_v46 = vpop.f32.mrb[105].mxu0  ;;  %v16068_v59 = vpop.f32.mrb[121].mxu1 }
 0xef8   : > { %19881 = vst [vmem:[#allocation22_spill] sm:$0xff] %v16055_v9  ;;  %13141 = vtanh.f32 %v4831_v27  ;;  %v4643_v40 = vmul.f32 %v4579_v53, %v16039_v44  ;;  %v4581_v12 = vmul.f32 %v16052_v20, %v16052_v20  ;;  %v4583_v54 = vmul.f32 %v16055_v9, %v16055_v9  ;;  %v16075_v63 = vpop.f32.mrb[106].mxu0  ;;  %v16077_v24 = vpop.f32.mrb[122].mxu1 }
 0xef9   : > { %13143 = vtanh.f32 %v4830_v30  ;;  %v4705_v42 = vmul.f32 0.044715, %v4641_v32  ;;  %v4642_v34 = vmul.f32 %v4578_v18, %v16044_v11  ;;  %v4644_v37 = vmul.f32 %v4580_v52, %v16047_v26  ;;  %v16081_v31 = vpop.f32.mrb[107].mxu0  ;;  %v16083_v27 = vpop.f32.mrb[123].mxu1 }
 0xefa   : > { %13145 = vtanh.f32 %v4832_v2  ;;  %v4707_v53 = vmul.f32 0.044715, %v4643_v40  ;;  %v4645_v23 = vmul.f32 %v4581_v12, %v16052_v20  ;;  %v4647_v62 = vmul.f32 %v4583_v54, %v16055_v9 }
 0xefb   : > { %v4769_v57 = vadd.f32 %v4705_v42, %v16036_v3  ;;  %v4706_v16 = vmul.f32 0.044715, %v4642_v34  ;;  %v4708_v17 = vmul.f32 0.044715, %v4644_v37  ;;  %v16089_v30 = vadd.f32 %v4393_v55, %v15974_v22 }
 0xefc   : > { %v4771_v32 = vadd.f32 %v4707_v53, %v16039_v44  ;;  %v4709_v18 = vmul.f32 0.044715, %v4645_v23  ;;  %v4711_v52 = vmul.f32 0.044715, %v4647_v62  ;;  %v16093_v29 = vadd.f32 %v4506_v7, %v15977_v19 }
 0xefd   : > { %v13132_v2 = vpop.eup %13131  ;;  %v4833_v40 = vmul.f32 0.7978846, %v4769_v57  ;;  %v4770_v12 = vadd.f32 %v4706_v16, %v16044_v11  ;;  %v4772_v54 = vadd.f32 %v4708_v17, %v16047_v26  ;;  %v4582_v42 = vmul.f32 %v16089_v30, %v16089_v30 }
 0xefe   : > { %v13134_v34 = vpop.eup %13133  ;;  %v4953_v37 = vadd.f32 1.0, %v13132_v2  ;;  %v4835_v55 = vmul.f32 0.7978846, %v4771_v32  ;;  %v4773_v45 = vadd.f32 %v4709_v18, %v16052_v20  ;;  %v4775_v23 = vadd.f32 %v4711_v52, %v16055_v9  ;;  %v16101_v62 = vpop.f32.mrb[108].mxu0 }
 0xeff   : > { %v16103_v7 = vpop.f32.mrb[124].mxu1  ;;  %v16105_v53 = vpop.eup %13135  ;;  %v4955_v57 = vadd.f32 1.0, %v13134_v34  ;;  %13147 = vtanh.f32 %v4833_v40  ;;  %v4834_v16 = vmul.f32 0.7978846, %v4770_v12  ;;  %v4836_v17 = vmul.f32 0.7978846, %v4772_v54 }
 0xf00   : > { %v16107_v51 = vpop.f32.mrb[109].mxu0  ;;  %v16109_v35 = vpop.eup %13137  ;;  %v5017_v2 = vmul.f32 0.5, %v4953_v37  ;;  %13149 = vtanh.f32 %v4835_v55  ;;  %v4837_v32 = vmul.f32 0.7978846, %v4773_v45  ;;  %v4839_v18 = vmul.f32 0.7978846, %v4775_v23 }
 0xf01   : > { %v16111_v8 = vpop.f32.mrb[125].mxu1  ;;  %v13140_v52 = vpop.eup %13139  ;;  %v5019_v5 = vmul.f32 0.5, %v4955_v57  ;;  %13151 = vtanh.f32 %v4834_v16  ;;  %v4646_v49 = vmul.f32 %v4582_v42, %v16089_v30  ;;  %v4584_v40 = vmul.f32 %v16093_v29, %v16093_v29 }
 0xf02   : > { %v16116_v12 = vpop.f32.mrb[110].mxu0  ;;  %v16118_v54 = vpop.f32.mrb[126].mxu1  ;;  %v16121_v37 = vmul.f32 %v5017_v2, %v15980_v33  ;;  %v4957_v45 = vadd.f32 1.0, %v13140_v52  ;;  %13153 = vtanh.f32 %v4836_v17  ;;  %v16125_v55 = vadd.f32 %v16057_v14, %v15968_v28 }
 0xf03   : > { %v13142_v34 = vpop.eup %13141  ;;  %v16127_v23 = vpop.f32.mrb[111].mxu0  ;;  %v16134_v16 = vmul.f32 %v5019_v5, %v15983_v4  ;;  %13155 = vtanh.f32 %v4837_v32  ;;  %v4710_v36 = vmul.f32 0.044715, %v4646_v49  ;;  %v4648_v17 = vmul.f32 %v4584_v40, %v16093_v29 }
 0xf04   : > { %19882 = vst [vmem:[#allocation23_spill] sm:$0xff] %v16125_v55  ;;  %v16129_v42 = vpop.f32.mrb[127].mxu1  ;;  %v16131_v57 = vpop.eup %13143  ;;  %v4959_v39 = vadd.f32 1.0, %v13142_v34  ;;  %v5021_v2 = vmul.f32 0.5, %v4957_v45  ;;  %13157 = vtanh.f32 %v4839_v18  ;;  %v4585_v14 = vmul.f32 %v16125_v55, %v16125_v55 }
 0xf05   : > { %v16136_v33 = vpop.eup %13145  ;;  %v4774_v6 = vadd.f32 %v4710_v36, %v16089_v30  ;;  %v16144_v13 = vadd.f32 %v16059_v15, %v15971_v43  ;;  %v16148_v5 = vadd.f32 %v16066_v46, %v15974_v22  ;;  %v4712_v4 = vmul.f32 0.044715, %v4648_v17 }
 0xf06   : > { %v5023_v52 = vmul.f32 0.5, %v4959_v39  ;;  %v16151_v49 = vmul.f32 %v5021_v2, %v15996_v0  ;;  %v4649_v32 = vmul.f32 %v4585_v14, %v16125_v55  ;;  %v16156_v18 = vadd.f32 %v16068_v59, %v15977_v19 }
 0xf07   : > { %19883 = vst [vmem:[#allocation24_spill] sm:$0xff] %v16144_v13  ;;  %19884 = vst [vmem:[#allocation25_spill] sm:$0xff] %v16148_v5  ;;  %v4838_v39 = vmul.f32 0.7978846, %v4774_v6  ;;  %v4587_v15 = vmul.f32 %v16144_v13, %v16144_v13  ;;  %v4586_v46 = vmul.f32 %v16148_v5, %v16148_v5  ;;  %v4776_v40 = vadd.f32 %v4712_v4, %v16093_v29 }
 0xf08   : > { %19885 = vst [vmem:[#allocation26_spill] sm:$0xff] %v16156_v18  ;;  %v16159_v36 = vmul.f32 %v5023_v52, %v15999_v21  ;;  %v4713_v34 = vmul.f32 0.044715, %v4649_v32  ;;  %v4588_v59 = vmul.f32 %v16156_v18, %v16156_v18  ;;  %v16182_v32 = vadd.f32 %v16075_v63, %v15968_v28 }
 0xf09   : > { %v16170_v45 = vpop.eup %13147  ;;  %13159 = vtanh.f32 %v4838_v39  ;;  %v4651_v21 = vmul.f32 %v4587_v15, %v16144_v13  ;;  %v4650_v2 = vmul.f32 %v4586_v46, %v16148_v5  ;;  %v4840_v14 = vmul.f32 0.7978846, %v4776_v40 }
 0xf0a   : > { %v16176_v17 = vpop.eup %13149  ;;  %v4777_v52 = vadd.f32 %v4713_v34, %v16125_v55  ;;  %v4652_v4 = vmul.f32 %v4588_v59, %v16156_v18  ;;  %19886 = vst [vmem:[#allocation27_spill] sm:$0xff] %v16182_v32  ;;  %v16188_v39 = vadd.f32 %v16077_v24, %v15971_v43  ;;  %v16192_v15 = vadd.f32 %v16081_v31, %v15974_v22 }
 0xf0b   : > { %v16184_v0 = vpop.eup %13151  ;;  %v4715_v56 = vmul.f32 0.044715, %v4651_v21  ;;  %v4714_v6 = vmul.f32 0.044715, %v4650_v2  ;;  %13161 = vtanh.f32 %v4840_v14  ;;  %v4589_v63 = vmul.f32 %v16182_v32, %v16182_v32 }
 0xf0c   : > { %19887 = vst [vmem:[#allocation28_spill] sm:$0xff] %v16188_v39  ;;  %19888 = vst [vmem:[#allocation29_spill] sm:$0xff] %v16192_v15  ;;  %v16194_v46 = vpop.eup %13153  ;;  %v4841_v40 = vmul.f32 0.7978846, %v4777_v52  ;;  %v4716_v34 = vmul.f32 0.044715, %v4652_v4  ;;  %v4591_v24 = vmul.f32 %v16188_v39, %v16188_v39  ;;  %v4590_v31 = vmul.f32 %v16192_v15, %v16192_v15 }
 0xf0d   : > { %v16198_v59 = vpop.eup %13155  ;;  %v4779_v21 = vadd.f32 %v4715_v56, %v16144_v13  ;;  %v4778_v2 = vadd.f32 %v4714_v6, %v16148_v5  ;;  %v16206_v10 = vpop.f32.mrb[112].mxu0  ;;  %v4653_v60 = vmul.f32 %v4589_v63, %v16182_v32  ;;  %v16216_v56 = vadd.f32 %v16083_v27, %v15977_v19 }
 0xf0e   : > { %v16208_v14 = vpop.f32.mrb[128].mxu1  ;;  %v16210_v52 = vpop.eup %13157  ;;  %13163 = vtanh.f32 %v4841_v40  ;;  %v4780_v4 = vadd.f32 %v4716_v34, %v16156_v18  ;;  %v4655_v48 = vmul.f32 %v4591_v24, %v16188_v39  ;;  %v4654_v25 = vmul.f32 %v4590_v31, %v16192_v15 }
 0xf0f   : > { %19889 = vst [vmem:[#allocation30_spill] sm:$0xff] %v16216_v56  ;;  %v16218_v6 = vpop.f32.mrb[113].mxu0  ;;  %v16220_v38 = vpop.f32.mrb[129].mxu1  ;;  %v4843_v61 = vmul.f32 0.7978846, %v4779_v21  ;;  %v4592_v27 = vmul.f32 %v16216_v56, %v16216_v56  ;;  %v16232_v55 = vadd.f32 %v16101_v62, %v15968_v28  ;;  %v16240_v31 = vadd.f32 %v16103_v7, %v15971_v43 }
 0xf10   : > { %v4842_v41 = vmul.f32 0.7978846, %v4778_v2  ;;  %v16224_v13 = vpop.f32.mrb[114].mxu0  ;;  %v16226_v40 = vpop.f32.mrb[130].mxu1  ;;  %v4844_v34 = vmul.f32 0.7978846, %v4780_v4 }
 0xf11   : > { %v4717_v63 = vmul.f32 0.044715, %v4653_v60  ;;  %19890 = vst [vmem:[#allocation31_spill] sm:$0xff] %v16232_v55  ;;  %v16234_v18 = vpop.f32.mrb[115].mxu0  ;;  %v16236_v21 = vpop.f32.mrb[131].mxu1  ;;  %13165 = vtanh.f32 %v4843_v61  ;;  %19891 = vst [vmem:[#allocation32_spill] sm:$0xff] %v16240_v31  ;;  %v4656_v4 = vmul.f32 %v4592_v27, %v16216_v56  ;;  %v4593_v62 = vmul.f32 %v16232_v55, %v16232_v55 }
 0xf12   : > { %v4719_v2 = vmul.f32 0.044715, %v4655_v48  ;;  %v4718_v24 = vmul.f32 0.044715, %v4654_v25  ;;  %13167 = vtanh.f32 %v4842_v41  ;;  %v4595_v25 = vmul.f32 %v16240_v31, %v16240_v31 }
 0xf13   : > { %v4781_v60 = vadd.f32 %v4717_v63, %v16182_v32  ;;  %v16246_v5 = vpop.eup %13159  ;;  %13169 = vtanh.f32 %v4844_v34  ;;  %v4720_v7 = vmul.f32 0.044715, %v4656_v4  ;;  %v4657_v41 = vmul.f32 %v4593_v62, %v16232_v55 }
 0xf14   : > { %v4783_v9 = vadd.f32 %v4719_v2, %v16188_v39  ;;  %v4782_v48 = vadd.f32 %v4718_v24, %v16192_v15  ;;  %v16255_v63 = vadd.f32 %v16107_v51, %v15974_v22  ;;  %v4659_v44 = vmul.f32 %v4595_v25, %v16240_v31 }
 0xf15   : > { %v4845_v61 = vmul.f32 0.7978846, %v4781_v60  ;;  %v16260_v34 = vadd.f32 %v16111_v8, %v15977_v19  ;;  %v16262_v2 = vpop.f32.mrb[116].mxu0  ;;  %v16264_v24 = vpop.f32.mrb[132].mxu1  ;;  %v4784_v4 = vadd.f32 %v4720_v7, %v16216_v56  ;;  %v4721_v62 = vmul.f32 0.044715, %v4657_v41 }
 0xf16   : > { %19892 = vst [vmem:[#allocation33_spill] sm:$0xff] %v16255_v63  ;;  %v4847_v27 = vmul.f32 0.7978846, %v4783_v9  ;;  %v4846_v32 = vmul.f32 0.7978846, %v4782_v48  ;;  %v16266_v60 = vpop.eup %13161  ;;  %v4594_v51 = vmul.f32 %v16255_v63, %v16255_v63  ;;  %v16271_v9 = vpop.f32.mrb[117].mxu0  ;;  %v16279_v39 = vadd.f32 %v16116_v12, %v15968_v28 }
 0xf17   : > { %19893 = vst [vmem:[#allocation34_spill] sm:$0xff] %v16260_v34  ;;  %13171 = vtanh.f32 %v4845_v61  ;;  %19894 = vst [vmem:[#allocation35_spill] sm:$0xff] %v16271_v9  ;;  %v16273_v48 = vpop.f32.mrb[133].mxu1  ;;  %v4723_v8 = vmul.f32 0.044715, %v4659_v44  ;;  %v4596_v25 = vmul.f32 %v16260_v34, %v16260_v34  ;;  %v16281_v61 = vpop.f32.mrb[118].mxu0  ;;  %v4785_v15 = vadd.f32 %v4721_v62, %v16232_v55 }
 0xf18   : > { %19895 = vst [vmem:[#allocation36_spill] sm:$0xff] %v16273_v48  ;;  %13173 = vtanh.f32 %v4847_v27  ;;  %19896 = vst [vmem:[#allocation55_spill] sm:$0xff] %v16281_v61  ;;  %v16283_v7 = vpop.f32.mrb[134].mxu1  ;;  %v16285_v41 = vpop.eup %13163  ;;  %v4848_v56 = vmul.f32 0.7978846, %v4784_v4  ;;  %v4658_v27 = vmul.f32 %v4594_v51, %v16255_v63  ;;  %v4597_v61 = vmul.f32 %v16279_v39, %v16279_v39 }
 0xf19   : > { %19897 = vst [vmem:[#allocation56_spill] sm:$0xff] %v16285_v41  ;;  %13175 = vtanh.f32 %v4846_v32  ;;  %v16289_v44 = vpop.f32.mrb[119].mxu0  ;;  %v16291_v48 = vpop.f32.mrb[135].mxu1  ;;  %v4787_v9 = vadd.f32 %v4723_v8, %v16240_v31  ;;  %v4660_v12 = vmul.f32 %v4596_v25, %v16260_v34  ;;  %v16299_v41 = vadd.f32 %v16118_v54, %v15971_v43 }
 0xf1a   : > { %19898 = vst [vmem:[#allocation57_spill] sm:$0xff] %v16291_v48  ;;  %13177 = vtanh.f32 %v4848_v56  ;;  %v4849_v32 = vmul.f32 0.7978846, %v4785_v15  ;;  %v4722_v4 = vmul.f32 0.044715, %v4658_v27  ;;  %v16303_v62 = vadd.f32 %v16127_v23, %v15974_v22 }
 0xf1b   : > { %19899 = vst [vmem:[#allocation58_spill] sm:$0xff] %v16299_v41  ;;  %v16305_v51 = vpop.eup %13165  ;;  %v4851_v55 = vmul.f32 0.7978846, %v4787_v9  ;;  %v4724_v8 = vmul.f32 0.044715, %v4660_v12  ;;  %v4661_v25 = vmul.f32 %v4597_v61, %v16279_v39  ;;  %v4599_v31 = vmul.f32 %v16299_v41, %v16299_v41 }
 0xf1c   : > { %19900 = vst [vmem:[#allocation59_spill] sm:$0xff] %v16305_v51  ;;  %v16310_v48 = vpop.eup %13167  ;;  %13179 = vtanh.f32 %v4849_v32  ;;  %v4786_v54 = vadd.f32 %v4722_v4, %v16255_v63  ;;  %v4598_v15 = vmul.f32 %v16303_v62, %v16303_v62  ;;  %v16317_v23 = vadd.f32 %v16129_v42, %v15977_v19 }
 0xf1d   : > { %19901 = vst [vmem:[#allocation60_spill] sm:$0xff] %v16310_v48  ;;  %v16319_v56 = vpop.eup %13169  ;;  %13181 = vtanh.f32 %v4851_v55  ;;  %v4788_v9 = vadd.f32 %v4724_v8, %v16260_v34  ;;  %v4725_v61 = vmul.f32 0.044715, %v4661_v25  ;;  %v4663_v27 = vmul.f32 %v4599_v31, %v16299_v41 }
 0xf1e   : > { %19902 = vst [vmem:[#allocation61_spill] sm:$0xff] %v16319_v56  ;;  %v4850_v12 = vmul.f32 0.7978846, %v4786_v54  ;;  %v4662_v32 = vmul.f32 %v4598_v15, %v16303_v62  ;;  %v4600_v4 = vmul.f32 %v16317_v23, %v16317_v23  ;;  %v4954_v63 = vadd.f32 1.0, %v16105_v53 }
 0xf1f   : > { %v4852_v51 = vmul.f32 0.7978846, %v4788_v9  ;;  %v4789_v42 = vadd.f32 %v4725_v61, %v16279_v39  ;;  %v4727_v48 = vmul.f32 0.044715, %v4663_v27  ;;  %v4958_v56 = vadd.f32 1.0, %v16131_v57 }
 0xf20   : > { %13183 = vtanh.f32 %v4850_v12  ;;  %v4726_v8 = vmul.f32 0.044715, %v4662_v32  ;;  %v4664_v31 = vmul.f32 %v4600_v4, %v16317_v23  ;;  %v5018_v25 = vmul.f32 0.5, %v4954_v63 }
 0xf21   : > { %v16329_v55 = vpop.eup %13171  ;;  %13185 = vtanh.f32 %v4852_v51  ;;  %v4853_v15 = vmul.f32 0.7978846, %v4789_v42  ;;  %v4791_v34 = vadd.f32 %v4727_v48, %v16299_v41  ;;  %v5022_v53 = vmul.f32 0.5, %v4958_v56 }
 0xf22   : > { %v16332_v54 = vpop.eup %13173  ;;  %v4790_v61 = vadd.f32 %v4726_v8, %v16303_v62  ;;  %v4728_v27 = vmul.f32 0.044715, %v4664_v31  ;;  %v5082_v57 = vmul.f32 %v5018_v25, %v15986_v58  ;;  %v4956_v12 = vadd.f32 1.0, %v16109_v35 }
 0xf23   : > { %v16335_v9 = vpop.eup %13175  ;;  %13187 = vtanh.f32 %v4853_v15  ;;  %v4855_v32 = vmul.f32 0.7978846, %v4791_v34  ;;  %v5086_v63 = vmul.f32 %v5022_v53, %v16006_v50  ;;  %v4960_v4 = vadd.f32 1.0, %v16136_v33 }
 0xf24   : > { %v16342_v51 = vpop.eup %13177  ;;  %v4854_v42 = vmul.f32 0.7978846, %v4790_v61  ;;  %v4792_v48 = vadd.f32 %v4728_v27, %v16317_v23  ;;  %v5020_v56 = vmul.f32 0.5, %v4956_v12  ;;  %v16347_v8 = vadd.f32 %v16206_v10, %v15968_v28 }
 0xf25   : > { %13189 = vtanh.f32 %v4855_v32  ;;  %v5146_v58 = vpack.c.bf16 %v5086_v63, %v5082_v57  ;;  %v5024_v31 = vmul.f32 0.5, %v4960_v4  ;;  %v16351_v35 = vadd.f32 %v16208_v14, %v15971_v43 }
 0xf26   : > { %19903 = vst [vmem:[#allocation62_spill] sm:$0xff] %v16347_v8  ;;  %v16353_v50 = vpop.eup %13179  ;;  %13191 = vtanh.f32 %v4854_v42  ;;  %v4856_v33 = vmul.f32 0.7978846, %v4792_v48  ;;  %v5084_v34 = vmul.f32 %v5020_v56, %v15989_v47  ;;  %v4601_v25 = vmul.f32 %v16347_v8, %v16347_v8 }
 0xf27   : > { %19904 = vst [vmem:[#allocation63_spill] sm:$0xff] %v16351_v35  ;;  %v16358_v15 = vpop.eup %13181  ;;  %5405 = vmatprep.mubr.bf16.mxu0 %v5146_v58  ;;  %v5088_v10 = vmul.f32 %v5024_v31, %v16009_v1  ;;  %v4603_v53 = vmul.f32 %v16351_v35, %v16351_v35  ;;  %v16365_v14 = vadd.f32 %v16218_v6, %v15974_v22 }
 0xf28   : > { %v16369_v61 = vadd.f32 %v16220_v38, %v15977_v19  ;;  %13193 = vtanh.f32 %v4856_v33  ;;  %v19906_v47 = vpack.c.bf16 %v16151_v49, %v16121_v37  ;;  %v4665_v27 = vmul.f32 %v4601_v25, %v16347_v8  ;;  %v16383_v6 = vpop.f32.mrb[120].mxu0  ;;  %v16385_v12 = vpop.f32.mrb[136].mxu1 }
 0xf29   : > { %v16377_v1 = vadd.f32 %v16224_v13, %v15968_v28  ;;  %v16381_v57 = vadd.f32 %v16226_v40, %v15971_v43  ;;  %v5148_v38 = vpack.c.bf16 %v5088_v10, %v5084_v34  ;;  %v4667_v32 = vmul.f32 %v4603_v53, %v16351_v35  ;;  %v16392_v63 = vpop.f32.mrb[121].mxu0  ;;  %v16394_v13 = vpop.f32.mrb[137].mxu1 }
 0xf2a   : > { %19905 = vst [vmem:[#allocation64_spill] sm:$0xff] %v16369_v61  ;;  %5406 = vmatmul.mubr.bf16.vlgmr.msra.gmra.mrb[128].mxu0 %v19906_v47  ;;  %v4602_v37 = vmul.f32 %v16365_v14, %v16365_v14  ;;  %v4604_v49 = vmul.f32 %v16369_v61, %v16369_v61  ;;  %19909 = vst [vmem:[#allocation67_spill] sm:$0xff] %v16394_v13  ;;  %v16396_v4 = vpop.eup %13183  ;;  %v4729_v40 = vmul.f32 0.044715, %v4665_v27  ;;  %v16406_v58 = vpop.f32.mrb[122].mxu0 }
 0xf2b   : > { %19907 = vst [vmem:[#allocation65_spill] sm:$0xff] %v16377_v1  ;;  %19908 = vst [vmem:[#allocation66_spill] sm:$0xff] %v16381_v57  ;;  %v4605_v42 = vmul.f32 %v16377_v1, %v16377_v1  ;;  %v4607_v48 = vmul.f32 %v16381_v57, %v16381_v57  ;;  %v16404_v56 = vadd.f32 %v16234_v18, %v15974_v22  ;;  %v16408_v31 = vpop.f32.mrb[138].mxu1  ;;  %v16410_v33 = vpop.eup %13185  ;;  %5502 = vmatprep.mubr.bf16.mxu1 %v5148_v38 }
 0xf2c   : > { %19910 = vst [vmem:[#allocation68_spill] sm:$0xff] %v16406_v58  ;;  %19911 = vst [vmem:[#allocation69_spill] sm:$0xff] %v16408_v31  ;;  %v4731_v34 = vmul.f32 0.044715, %v4667_v32  ;;  %v4666_v25 = vmul.f32 %v4602_v37, %v16365_v14  ;;  %v4668_v10 = vmul.f32 %v4604_v49, %v16369_v61  ;;  %v16416_v53 = vadd.f32 %v16236_v21, %v15977_v19  ;;  %v16418_v47 = vpop.f32.mrb[123].mxu0  ;;  %v16420_v18 = vpop.f32.mrb[139].mxu1 }
 0xf2d   : > { %19912 = vst [vmem:[#allocation70_spill] sm:$0xff] %v16418_v47  ;;  %19913 = vst [vmem:[#allocation71_spill] sm:$0xff] %v16420_v18  ;;  %v19914_v27 = vpack.c.bf16 %v16159_v36, %v16134_v16  ;;  %v4793_v31 = vadd.f32 %v4729_v40, %v16347_v8  ;;  %v4669_v38 = vmul.f32 %v4605_v42, %v16377_v1  ;;  %v16430_v49 = vpop.eup %13187 }
 0xf2e   : > { %v4671_v32 = vmul.f32 %v4607_v48, %v16381_v57  ;;  %v4606_v37 = vmul.f32 %v16404_v56, %v16404_v56  ;;  %v4795_v21 = vadd.f32 %v4731_v34, %v16351_v35  ;;  %v4730_v47 = vmul.f32 0.044715, %v4666_v25 }
 0xf2f   : > { %5503 = vmatmul.mubr.bf16.vlgmr.msra.gmra.mrb[144].mxu1 %v19914_v27  ;;  %v4732_v58 = vmul.f32 0.044715, %v4668_v10  ;;  %v4608_v18 = vmul.f32 %v16416_v53, %v16416_v53  ;;  %v4857_v16 = vmul.f32 0.7978846, %v4793_v31  ;;  %v4733_v36 = vmul.f32 0.044715, %v4669_v38  ;;  %v16436_v42 = vpop.eup %13189 }
 0xf30   : > { %v4735_v27 = vmul.f32 0.044715, %v4671_v32  ;;  %v4670_v40 = vmul.f32 %v4606_v37, %v16404_v56  ;;  %v4859_v48 = vmul.f32 0.7978846, %v4795_v21  ;;  %v4794_v8 = vadd.f32 %v4730_v47, %v16365_v14  ;;  %v16441_v34 = vpop.eup %13191  ;;  %v16445_v38 = vpop.f32.mrb[124].mxu0 }
 0xf31   : > { %v4796_v13 = vadd.f32 %v4732_v58, %v16369_v61  ;;  %v4672_v41 = vmul.f32 %v4608_v18, %v16416_v53  ;;  %13195 = vtanh.f32 %v4857_v16  ;;  %v4797_v25 = vadd.f32 %v4733_v36, %v16377_v1  ;;  %v16447_v32 = vpop.f32.mrb[140].mxu1  ;;  %v16453_v36 = vpop.f32.mrb[125].mxu0 }
 0xf32   : > { %v4799_v31 = vadd.f32 %v4735_v27, %v16381_v57  ;;  %v4734_v10 = vmul.f32 0.044715, %v4670_v40  ;;  %13197 = vtanh.f32 %v4859_v48  ;;  %v4858_v37 = vmul.f32 0.7978846, %v4794_v8  ;;  %v16449_v35 = vpop.eup %13193  ;;  %v16458_v8 = vpop.f32.mrb[141].mxu1 }
 0xf33   : > { %v4860_v21 = vmul.f32 0.7978846, %v4796_v13  ;;  %v4736_v47 = vmul.f32 0.044715, %v4672_v41  ;;  %v4861_v58 = vmul.f32 0.7978846, %v4797_v25 }
 0xf34   : > { %v4863_v18 = vmul.f32 0.7978846, %v4799_v31  ;;  %v4798_v61 = vadd.f32 %v4734_v10, %v16404_v56  ;;  %v4962_v16 = vadd.f32 1.0, %v16184_v0  ;;  %13199 = vtanh.f32 %v4858_v37  ;;  %v16460_v41 = vpop.f32.mrb[126].mxu0  ;;  %v16463_v10 = vpop.f32.mrb[142].mxu1 }
 0xf35   : > { %v4800_v27 = vadd.f32 %v4736_v47, %v16416_v53  ;;  %v4966_v40 = vadd.f32 1.0, %v16246_v5  ;;  %v4964_v48 = vadd.f32 1.0, %v16194_v46  ;;  %13201 = vtanh.f32 %v4860_v21  ;;  %19915 = vst [vmem:[#allocation72_spill] sm:$0xff] %v16463_v10  ;;  %v16465_v0 = vpop.f32.mrb[127].mxu0  ;;  %v16467_v5 = vpop.f32.mrb[143].mxu1 }
 0xf36   : > { %v4862_v13 = vmul.f32 0.7978846, %v4798_v61  ;;  %v5026_v25 = vmul.f32 0.5, %v4962_v16  ;;  %v4968_v31 = vadd.f32 1.0, %v16266_v60  ;;  %19916 = vst [vmem:[#allocation73_spill] sm:$0xff] %v16465_v0  ;;  %13203 = vtanh.f32 %v4861_v58  ;;  %19917 = vst [vmem:[#allocation74_spill] sm:$0xff] %v16467_v5 }
 0xf37   : > { %v4864_v37 = vmul.f32 0.7978846, %v4800_v27  ;;  %v5030_v47 = vmul.f32 0.5, %v4966_v40  ;;  %v5028_v57 = vmul.f32 0.5, %v4964_v48  ;;  %13205 = vtanh.f32 %v4863_v18 }
 0xf38   : > { %v5090_v46 = vmul.f32 %v5026_v25, %v16044_v11  ;;  %v5032_v1 = vmul.f32 0.5, %v4968_v31  ;;  %v4961_v21 = vadd.f32 1.0, %v16170_v45  ;;  %13207 = vtanh.f32 %v4862_v13 }
 0xf39   : > { %v5094_v61 = vmul.f32 %v5030_v47, %v16089_v30  ;;  %v5092_v60 = vmul.f32 %v5028_v57, %v16047_v26  ;;  %v4965_v16 = vadd.f32 1.0, %v16198_v59  ;;  %13209 = vtanh.f32 %v4864_v37  ;;  %v19920_v57 = vld [vmem:[#allocation35_spill] sm:$0xff]  ;;  %v19923_v37 = vld [vmem:[#allocation36_spill] sm:$0xff] }
 0xf3a   : > { %v5096_v58 = vmul.f32 %v5032_v1, %v16093_v29  ;;  %v5025_v27 = vmul.f32 0.5, %v4961_v21  ;;  %v4963_v40 = vadd.f32 1.0, %v16176_v17  ;;  %v4967_v11 = vadd.f32 1.0, %v16210_v52 }
 0xf3b   : > { %v5150_v48 = vpack.c.bf16 %v5094_v61, %v5090_v46  ;;  %v5029_v18 = vmul.f32 0.5, %v4965_v16  ;;  %v16479_v45 = vadd.f32 %v16262_v2, %v15968_v28  ;;  %v16481_v13 = vpop.eup %13195  ;;  %v16486_v29 = vadd.f32 %v16264_v24, %v15971_v43 }
 0xf3c   : > { %v5152_v30 = vpack.c.bf16 %v5096_v58, %v5092_v60  ;;  %v5089_v26 = vmul.f32 %v5025_v27, %v16036_v3  ;;  %v5027_v59 = vmul.f32 0.5, %v4963_v40  ;;  %v16488_v1 = vpop.eup %13197  ;;  %v5031_v52 = vmul.f32 0.5, %v4967_v11  ;;  %v19922_v3 = vld [vmem:[#allocation21_spill] sm:$0xff]  ;;  %v19925_v60 = vld [vmem:[#allocation22_spill] sm:$0xff] }
 0xf3d   : > { %19918 = vst [vmem:[#allocation75_spill] sm:$0xff] %v16479_v45  ;;  %19919 = vst [vmem:[#allocation76_spill] sm:$0xff] %v16486_v29  ;;  %5413 = vmatprep.mubr.bf16.mxu0 %v5150_v48  ;;  %v5093_v17 = vmul.f32 %v5029_v18, %v16052_v20  ;;  %v4609_v2 = vmul.f32 %v16479_v45, %v16479_v45  ;;  %v16495_v25 = vadd.f32 %v19920_v57, %v15974_v22  ;;  %v19924_v20 = vld [vmem:[#allocation55_spill] sm:$0xff] }
 0xf3e   : > { %5510 = vmatprep.mubr.bf16.mxu1 %v5152_v30  ;;  %v5091_v31 = vmul.f32 %v5027_v59, %v19922_v3  ;;  %v4611_v24 = vmul.f32 %v16486_v29, %v16486_v29  ;;  %v16502_v47 = vadd.f32 %v19923_v37, %v15977_v19  ;;  %v16506_v46 = vadd.f32 %v19924_v20, %v15968_v28  ;;  %v16508_v21 = vpop.eup %13199 }
 0xf3f   : > { %19921 = vst [vmem:[#allocation35_spill] sm:$0xff] %v16495_v25  ;;  %v5149_v61 = vpack.c.bf16 %v5093_v17, %v5089_v26  ;;  %v5095_v16 = vmul.f32 %v5031_v52, %v19925_v60  ;;  %v4673_v58 = vmul.f32 %v4609_v2, %v16479_v45  ;;  %v4610_v27 = vmul.f32 %v16495_v25, %v16495_v25  ;;  %v16514_v40 = vpop.eup %13201  ;;  %v19926_v60 = vld [vmem:[#allocation57_spill] sm:$0xff] }
 0xf40   : > { %v4675_v48 = vmul.f32 %v4611_v24, %v16486_v29  ;;  %v4612_v18 = vmul.f32 %v16502_v47, %v16502_v47  ;;  %v4613_v11 = vmul.f32 %v16506_v46, %v16506_v46  ;;  %v16523_v30 = vadd.f32 %v16283_v7, %v15971_v43  ;;  %v16525_v26 = vpop.eup %13203 }
 0xf41   : > { %5414 = vmatmul.mubr.bf16.gmra.mrb[132].mxu0 %v5149_v61  ;;  %v5151_v59 = vpack.c.bf16 %v5095_v16, %v5091_v31  ;;  %v4737_v17 = vmul.f32 0.044715, %v4673_v58  ;;  %v4674_v52 = vmul.f32 %v4610_v27, %v16495_v25  ;;  %v16530_v2 = vadd.f32 %v16289_v44, %v15974_v22  ;;  %v16532_v57 = vpop.eup %13205 }
 0xf42   : > { %v4739_v3 = vmul.f32 0.044715, %v4675_v48  ;;  %v4676_v24 = vmul.f32 %v4612_v18, %v16502_v47  ;;  %v4677_v37 = vmul.f32 %v4613_v11, %v16506_v46  ;;  %v4615_v7 = vmul.f32 %v16523_v30, %v16523_v30  ;;  %v16538_v20 = vpop.eup %13207 }
 0xf43   : > { %5511 = vmatmul.mubr.bf16.gmra.mrb[148].mxu1 %v5151_v59  ;;  %v4801_v31 = vadd.f32 %v4737_v17, %v16479_v45  ;;  %v4738_v61 = vmul.f32 0.044715, %v4674_v52  ;;  %v4614_v44 = vmul.f32 %v16530_v2, %v16530_v2  ;;  %v16545_v16 = vadd.f32 %v19926_v60, %v15977_v19  ;;  %v16547_v58 = vpop.eup %13209 }
 0xf44   : > { %v4803_v27 = vadd.f32 %v4739_v3, %v16486_v29  ;;  %v4740_v48 = vmul.f32 0.044715, %v4676_v24  ;;  %v4741_v18 = vmul.f32 0.044715, %v4677_v37  ;;  %v4679_v11 = vmul.f32 %v4615_v7, %v16523_v30 }
 0xf45   : > { %v4865_v5 = vmul.f32 0.7978846, %v4801_v31  ;;  %v4802_v59 = vadd.f32 %v4738_v61, %v16495_v25  ;;  %v4678_v17 = vmul.f32 %v4614_v44, %v16530_v2  ;;  %v4616_v52 = vmul.f32 %v16545_v16, %v16545_v16 }
 0xf46   : > { %v4867_v45 = vmul.f32 0.7978846, %v4803_v27  ;;  %v4804_v60 = vadd.f32 %v4740_v48, %v16502_v47  ;;  %v4805_v0 = vadd.f32 %v4741_v18, %v16506_v46  ;;  %v4743_v10 = vmul.f32 0.044715, %v4679_v11  ;;  %v19927_v27 = vld [vmem:[#allocation60_spill] sm:$0xff] }
 0xf47   : > { %13211 = vtanh.f32 %v4865_v5  ;;  %v4866_v3 = vmul.f32 0.7978846, %v4802_v59  ;;  %v4742_v24 = vmul.f32 0.044715, %v4678_v17  ;;  %v4680_v37 = vmul.f32 %v4616_v52, %v16545_v16  ;;  %v19928_v5 = vld [vmem:[#allocation61_spill] sm:$0xff] }
 0xf48   : > { %13213 = vtanh.f32 %v4867_v45  ;;  %v4868_v7 = vmul.f32 0.7978846, %v4804_v60  ;;  %v4869_v31 = vmul.f32 0.7978846, %v4805_v0  ;;  %v4807_v61 = vadd.f32 %v4743_v10, %v16523_v30 }
 0xf49   : > { %13215 = vtanh.f32 %v4866_v3  ;;  %v4806_v44 = vadd.f32 %v4742_v24, %v16530_v2  ;;  %v4744_v29 = vmul.f32 0.044715, %v4680_v37  ;;  %v4970_v25 = vadd.f32 1.0, %v19927_v27  ;;  %v19929_v3 = vld [vmem:[#allocation25_spill] sm:$0xff]  ;;  %v19930_v37 = vld [vmem:[#allocation56_spill] sm:$0xff] }
 0xf4a   : > { %13217 = vtanh.f32 %v4868_v7  ;;  %v4871_v48 = vmul.f32 0.7978846, %v4807_v61  ;;  %v4974_v18 = vadd.f32 1.0, %v16335_v9  ;;  %v4972_v11 = vadd.f32 1.0, %v19928_v5  ;;  %v19931_v61 = vld [vmem:[#allocation29_spill] sm:$0xff]  ;;  %v19932_v5 = vld [vmem:[#allocation26_spill] sm:$0xff] }
 0xf4b   : > { %13219 = vtanh.f32 %v4869_v31  ;;  %v4870_v59 = vmul.f32 0.7978846, %v4806_v44  ;;  %v4808_v45 = vadd.f32 %v4744_v29, %v16545_v16  ;;  %v5034_v17 = vmul.f32 0.5, %v4970_v25  ;;  %v19933_v25 = vld [vmem:[#allocation59_spill] sm:$0xff] }
 0xf4c   : > { %13221 = vtanh.f32 %v4871_v48  ;;  %v5038_v0 = vmul.f32 0.5, %v4974_v18  ;;  %v4976_v10 = vadd.f32 1.0, %v16342_v51  ;;  %v5036_v52 = vmul.f32 0.5, %v4972_v11  ;;  %v19934_v11 = vld [vmem:[#allocation30_spill] sm:$0xff] }
 0xf4d   : > { %13223 = vtanh.f32 %v4870_v59  ;;  %v4872_v60 = vmul.f32 0.7978846, %v4808_v45  ;;  %v5098_v24 = vmul.f32 %v5034_v17, %v19929_v3  ;;  %v4969_v7 = vadd.f32 1.0, %v19930_v37 }
 0xf4e   : > { %v5102_v9 = vmul.f32 %v5038_v0, %v19931_v61  ;;  %v5040_v27 = vmul.f32 0.5, %v4976_v10  ;;  %v5100_v31 = vmul.f32 %v5036_v52, %v19932_v5  ;;  %v4973_v44 = vadd.f32 1.0, %v16329_v55  ;;  %v19935_v0 = vld [vmem:[#allocation23_spill] sm:$0xff] }
 0xf4f   : > { %13225 = vtanh.f32 %v4872_v60  ;;  %v5033_v29 = vmul.f32 0.5, %v4969_v7  ;;  %v4971_v48 = vadd.f32 1.0, %v19933_v25  ;;  %v4975_v51 = vadd.f32 1.0, %v16332_v54  ;;  %v19936_v61 = vld [vmem:[#allocation27_spill] sm:$0xff] }
 0xf50   : > { %v5154_v18 = vpack.c.bf16 %v5102_v9, %v5098_v24  ;;  %v5104_v59 = vmul.f32 %v5040_v27, %v19934_v11  ;;  %v5037_v45 = vmul.f32 0.5, %v4973_v44  ;;  %v4978_v17 = vadd.f32 1.0, %v16396_v4  ;;  %v19937_v4 = vld [vmem:[#allocation24_spill] sm:$0xff] }
 0xf51   : > { %v16574_v3 = vpop.eup %13211  ;;  %v5097_v10 = vmul.f32 %v5033_v29, %v19935_v0  ;;  %v5035_v37 = vmul.f32 0.5, %v4971_v48  ;;  %v5039_v52 = vmul.f32 0.5, %v4975_v51  ;;  %v4982_v55 = vadd.f32 1.0, %v16441_v34  ;;  %v19938_v44 = vld [vmem:[#allocation28_spill] sm:$0xff] }
 0xf52   : > { %v16578_v60 = vpop.eup %13213  ;;  %5421 = vmatprep.mubr.bf16.mxu0 %v5154_v18  ;;  %v5156_v7 = vpack.c.bf16 %v5104_v59, %v5100_v31  ;;  %v5101_v54 = vmul.f32 %v5037_v45, %v19936_v61  ;;  %v5042_v24 = vmul.f32 0.5, %v4978_v17  ;;  %v4980_v9 = vadd.f32 1.0, %v16410_v33  ;;  %v19939_v18 = vld [vmem:[#allocation33_spill] sm:$0xff] }
 0xf53   : > { %v16582_v27 = vpop.eup %13215  ;;  %v5099_v5 = vmul.f32 %v5035_v37, %v19937_v4  ;;  %v5103_v25 = vmul.f32 %v5039_v52, %v19938_v44  ;;  %v5046_v29 = vmul.f32 0.5, %v4982_v55  ;;  %v4984_v48 = vadd.f32 1.0, %v16449_v35  ;;  %v19940_v35 = vld [vmem:[#allocation34_spill] sm:$0xff] }
 0xf54   : > { %v16587_v51 = vpop.eup %13217  ;;  %5518 = vmatprep.mubr.bf16.mxu1 %v5156_v7  ;;  %v5153_v34 = vpack.c.bf16 %v5101_v54, %v5097_v10  ;;  %v5106_v31 = vmul.f32 %v5042_v24, %v19939_v18  ;;  %v5044_v11 = vmul.f32 0.5, %v4980_v9  ;;  %v4977_v59 = vadd.f32 1.0, %v16353_v50  ;;  %v19941_v9 = vld [vmem:[#allocation31_spill] sm:$0xff]  ;;  %v19943_v18 = vld [vmem:[#allocation58_spill] sm:$0xff] }
 0xf55   : > { %v16591_v45 = vpop.eup %13219  ;;  %v5155_v33 = vpack.c.bf16 %v5103_v25, %v5099_v5  ;;  %v5110_v17 = vmul.f32 %v5046_v29, %v16303_v62  ;;  %v5048_v0 = vmul.f32 0.5, %v4984_v48  ;;  %v4981_v37 = vadd.f32 1.0, %v16430_v49  ;;  %v19942_v48 = vld [vmem:[#allocation32_spill] sm:$0xff] }
 0xf56   : > { %v16595_v52 = vpop.eup %13221  ;;  %5422 = vmatmul.mubr.bf16.gmra.mrb[136].mxu0 %v5153_v34  ;;  %v5108_v55 = vmul.f32 %v5044_v11, %v19940_v35  ;;  %v5041_v7 = vmul.f32 0.5, %v4977_v59  ;;  %v4979_v10 = vadd.f32 1.0, %v16358_v15  ;;  %v4983_v61 = vadd.f32 1.0, %v16436_v42  ;;  %v19944_v11 = vld [vmem:[#allocation67_spill] sm:$0xff] }
 0xf57   : > { %v16600_v54 = vpop.eup %13223  ;;  %5519 = vmatmul.mubr.bf16.gmra.mrb[152].mxu1 %v5155_v33  ;;  %v5158_v50 = vpack.c.bf16 %v5110_v17, %v5106_v31  ;;  %v5112_v24 = vmul.f32 %v5048_v0, %v16317_v23  ;;  %v5045_v62 = vmul.f32 0.5, %v4981_v37  ;;  %v16605_v49 = vadd.f32 %v16383_v6, %v15968_v28 }
 0xf58   : > { %v5105_v4 = vmul.f32 %v5041_v7, %v19941_v9  ;;  %v5043_v5 = vmul.f32 0.5, %v4979_v10  ;;  %v5047_v44 = vmul.f32 0.5, %v4983_v61  ;;  %v16610_v15 = vadd.f32 %v16385_v12, %v15971_v43  ;;  %v19946_v7 = vld [vmem:[#allocation69_spill] sm:$0xff] }
 0xf59   : > { %v16612_v42 = vpop.eup %13225  ;;  %5429 = vmatprep.mubr.bf16.mxu0 %v5158_v50  ;;  %v5160_v25 = vpack.c.bf16 %v5112_v24, %v5108_v55  ;;  %v5109_v29 = vmul.f32 %v5045_v62, %v16279_v39  ;;  %v4617_v23 = vmul.f32 %v16605_v49, %v16605_v49  ;;  %v16619_v6 = vadd.f32 %v16392_v63, %v15974_v22  ;;  %v19945_v63 = vld [vmem:[#allocation68_spill] sm:$0xff]  ;;  %v19947_v62 = vld [vmem:[#allocation70_spill] sm:$0xff] }
 0xf5a   : > { %v5107_v34 = vmul.f32 %v5043_v5, %v19942_v48  ;;  %v5111_v31 = vmul.f32 %v5047_v44, %v19943_v18  ;;  %v4619_v12 = vmul.f32 %v16610_v15, %v16610_v15  ;;  %v16627_v59 = vadd.f32 %v19944_v11, %v15977_v19 }
 0xf5b   : > { %5526 = vmatprep.mubr.bf16.mxu1 %v5160_v25  ;;  %v5157_v39 = vpack.c.bf16 %v5109_v29, %v5105_v4  ;;  %v4681_v33 = vmul.f32 %v4617_v23, %v16605_v49  ;;  %v4618_v17 = vmul.f32 %v16619_v6, %v16619_v6  ;;  %v16634_v0 = vadd.f32 %v19945_v63, %v15968_v28  ;;  %v19948_v25 = vld [vmem:[#allocation71_spill] sm:$0xff] }
 0xf5c   : > { %v5159_v37 = vpack.c.bf16 %v5111_v31, %v5107_v34  ;;  %v4683_v35 = vmul.f32 %v4619_v12, %v16610_v15  ;;  %v4620_v55 = vmul.f32 %v16627_v59, %v16627_v59  ;;  %v16641_v10 = vadd.f32 %v19946_v7, %v15971_v43 }
 0xf5d   : > { %v4745_v61 = vmul.f32 0.044715, %v4681_v33  ;;  %v4682_v50 = vmul.f32 %v4618_v17, %v16619_v6  ;;  %v4621_v24 = vmul.f32 %v16634_v0, %v16634_v0  ;;  %v16648_v9 = vadd.f32 %v19947_v62, %v15974_v22 }
 0xf5e   : > { %5430 = vmatmul.mubr.bf16.gmra.mrb[140].mxu0 %v5157_v39  ;;  %v4747_v4 = vmul.f32 0.044715, %v4683_v35  ;;  %v4684_v5 = vmul.f32 %v4620_v55, %v16627_v59  ;;  %v4623_v44 = vmul.f32 %v16641_v10, %v16641_v10  ;;  %v16655_v29 = vadd.f32 %v19948_v25, %v15977_v19 }
 0xf5f   : > { %5527 = vmatmul.mubr.bf16.gmra.mrb[156].mxu1 %v5159_v37  ;;  %v4809_v23 = vadd.f32 %v4745_v61, %v16605_v49  ;;  %v4746_v48 = vmul.f32 0.044715, %v4682_v50  ;;  %v4685_v34 = vmul.f32 %v4621_v24, %v16634_v0  ;;  %v4622_v18 = vmul.f32 %v16648_v9, %v16648_v9 }
 0xf60   : > { %v4811_v31 = vadd.f32 %v4747_v4, %v16610_v15  ;;  %v4748_v12 = vmul.f32 0.044715, %v4684_v5  ;;  %v4687_v11 = vmul.f32 %v4623_v44, %v16641_v10  ;;  %v4624_v39 = vmul.f32 %v16655_v29, %v16655_v29 }
 0xf61   : > { %v4873_v33 = vmul.f32 0.7978846, %v4809_v23  ;;  %v4810_v17 = vadd.f32 %v4746_v48, %v16619_v6  ;;  %v4749_v63 = vmul.f32 0.044715, %v4685_v34  ;;  %v4686_v37 = vmul.f32 %v4622_v18, %v16648_v9 }
 0xf62   : > { %v4875_v35 = vmul.f32 0.7978846, %v4811_v31  ;;  %v4812_v55 = vadd.f32 %v4748_v12, %v16627_v59  ;;  %v4751_v7 = vmul.f32 0.044715, %v4687_v11  ;;  %v4688_v61 = vmul.f32 %v4624_v39, %v16655_v29 }
 0xf63   : > { %13227 = vtanh.f32 %v4873_v33  ;;  %v4874_v50 = vmul.f32 0.7978846, %v4810_v17  ;;  %v4813_v24 = vadd.f32 %v4749_v63, %v16634_v0  ;;  %v4750_v62 = vmul.f32 0.044715, %v4686_v37 }
 0xf64   : > { %13229 = vtanh.f32 %v4875_v35  ;;  %v4876_v4 = vmul.f32 0.7978846, %v4812_v55  ;;  %v4815_v5 = vadd.f32 %v4751_v7, %v16641_v10  ;;  %v4752_v44 = vmul.f32 0.044715, %v4688_v61 }
 0xf65   : > { %13231 = vtanh.f32 %v4874_v50  ;;  %v4877_v25 = vmul.f32 0.7978846, %v4813_v24  ;;  %v4814_v23 = vadd.f32 %v4750_v62, %v16648_v9  ;;  %v16674_v48 = vadd.f32 %v16445_v38, %v15968_v28 }
 0xf66   : > { %13233 = vtanh.f32 %v4876_v4  ;;  %v4879_v34 = vmul.f32 0.7978846, %v4815_v5  ;;  %v4816_v18 = vadd.f32 %v4752_v44, %v16655_v29  ;;  %v16679_v31 = vadd.f32 %v16447_v32, %v15971_v43  ;;  %v19949_v44 = vld [vmem:[#allocation64_spill] sm:$0xff] }
 0xf67   : > { %13235 = vtanh.f32 %v4877_v25  ;;  %v4878_v12 = vmul.f32 0.7978846, %v4814_v23  ;;  %v4625_v11 = vmul.f32 %v16674_v48, %v16674_v48  ;;  %v4986_v39 = vadd.f32 1.0, %v16508_v21 }
 0xf68   : > { %13237 = vtanh.f32 %v4879_v34  ;;  %v4880_v33 = vmul.f32 0.7978846, %v4816_v18  ;;  %v4627_v38 = vmul.f32 %v16679_v31, %v16679_v31  ;;  %v4990_v17 = vadd.f32 1.0, %v16538_v20 }
 0xf69   : > { %13239 = vtanh.f32 %v4878_v12  ;;  %v4689_v63 = vmul.f32 %v4625_v11, %v16674_v48  ;;  %v5050_v37 = vmul.f32 0.5, %v4986_v39  ;;  %v4988_v32 = vadd.f32 1.0, %v16514_v40 }
 0xf6a   : > { %13241 = vtanh.f32 %v4880_v33  ;;  %v4691_v35 = vmul.f32 %v4627_v38, %v16679_v31  ;;  %v5054_v55 = vmul.f32 0.5, %v4990_v17  ;;  %v4992_v7 = vadd.f32 1.0, %v16547_v58 }
 0xf6b   : > { %v4753_v21 = vmul.f32 0.044715, %v4689_v63  ;;  %v5114_v61 = vmul.f32 %v5050_v37, %v16365_v14  ;;  %v5052_v50 = vmul.f32 0.5, %v4988_v32  ;;  %v16694_v24 = vadd.f32 %v16453_v36, %v15974_v22 }
 0xf6c   : > { %v4755_v20 = vmul.f32 0.044715, %v4691_v35  ;;  %v5118_v62 = vmul.f32 %v5054_v55, %v16404_v56  ;;  %v5056_v4 = vmul.f32 0.5, %v4992_v7  ;;  %v16699_v40 = vadd.f32 %v16458_v8, %v15977_v19  ;;  %v19950_v7 = vld [vmem:[#allocation62_spill] sm:$0xff] }
 0xf6d   : > { %v16701_v5 = vpop.eup %13227  ;;  %v4817_v58 = vadd.f32 %v4753_v21, %v16674_v48  ;;  %v5116_v25 = vmul.f32 %v5052_v50, %v19949_v44  ;;  %v4626_v14 = vmul.f32 %v16694_v24, %v16694_v24  ;;  %v4985_v36 = vadd.f32 1.0, %v16481_v13 }
 0xf6e   : > { %v16708_v23 = vpop.eup %13229  ;;  %v4819_v56 = vadd.f32 %v4755_v20, %v16679_v31  ;;  %v5162_v34 = vpack.c.bf16 %v5118_v62, %v5114_v61  ;;  %v5120_v18 = vmul.f32 %v5056_v4, %v16416_v53  ;;  %v4628_v8 = vmul.f32 %v16699_v40, %v16699_v40 }
 0xf6f   : > { %v16714_v12 = vpop.eup %13231  ;;  %v4881_v11 = vmul.f32 0.7978846, %v4817_v58  ;;  %v4690_v39 = vmul.f32 %v4626_v14, %v16694_v24  ;;  %v4989_v33 = vadd.f32 1.0, %v16525_v26  ;;  %v5049_v38 = vmul.f32 0.5, %v4985_v36 }
 0xf70   : > { %v16718_v17 = vpop.eup %13233  ;;  %v4883_v13 = vmul.f32 0.7978846, %v4819_v56  ;;  %5437 = vmatprep.mubr.bf16.mxu0 %v5162_v34  ;;  %v5164_v63 = vpack.c.bf16 %v5120_v18, %v5116_v25  ;;  %v4692_v37 = vmul.f32 %v4628_v8, %v16699_v40  ;;  %v4987_v53 = vadd.f32 1.0, %v16488_v1  ;;  %v19951_v1 = vld [vmem:[#allocation65_spill] sm:$0xff]  ;;  %v19952_v25 = vld [vmem:[#allocation72_spill] sm:$0xff]  ;;  %v19953_v34 = vld [vmem:[#allocation63_spill] sm:$0xff] }
 0xf71   : > { %v16722_v32 = vpop.eup %13235  ;;  %13243 = vtanh.f32 %v4881_v11  ;;  %v4754_v35 = vmul.f32 0.044715, %v4690_v39  ;;  %v5053_v55 = vmul.f32 0.5, %v4989_v33  ;;  %v5113_v21 = vmul.f32 %v5049_v38, %v19950_v7  ;;  %v19954_v8 = vld [vmem:[#allocation73_spill] sm:$0xff]  ;;  %v19955_v38 = vld [vmem:[#allocation66_spill] sm:$0xff] }
 0xf72   : > { %v16725_v61 = vpop.eup %13237  ;;  %13245 = vtanh.f32 %v4883_v13  ;;  %5534 = vmatprep.mubr.bf16.mxu1 %v5164_v63  ;;  %v4756_v26 = vmul.f32 0.044715, %v4692_v37  ;;  %v4991_v50 = vadd.f32 1.0, %v16532_v57  ;;  %v5051_v20 = vmul.f32 0.5, %v4987_v53  ;;  %v19956_v37 = vld [vmem:[#allocation74_spill] sm:$0xff] }
 0xf73   : > { %v16728_v62 = vpop.eup %13239  ;;  %v4818_v4 = vadd.f32 %v4754_v35, %v16694_v24  ;;  %v5117_v58 = vmul.f32 %v5053_v55, %v19951_v1  ;;  %v16734_v44 = vadd.f32 %v16460_v41, %v15968_v28  ;;  %v16738_v14 = vadd.f32 %v19952_v25, %v15971_v43 }
 0xf74   : > { %v16740_v36 = vpop.eup %13241  ;;  %v4820_v56 = vadd.f32 %v4756_v26, %v16699_v40  ;;  %v5055_v57 = vmul.f32 0.5, %v4991_v50  ;;  %v5115_v18 = vmul.f32 %v5051_v20, %v19953_v34  ;;  %v16746_v11 = vadd.f32 %v19954_v8, %v15974_v22  ;;  %v19957_v8 = vld [vmem:[#allocation35_spill] sm:$0xff] }
 0xf75   : > { %v4882_v39 = vmul.f32 0.7978846, %v4818_v4  ;;  %v5161_v33 = vpack.c.bf16 %v5117_v58, %v5113_v21  ;;  %v4629_v28 = vmul.f32 %v16734_v44, %v16734_v44  ;;  %v4631_v43 = vmul.f32 %v16738_v14, %v16738_v14 }
 0xf76   : > { %v4884_v41 = vmul.f32 0.7978846, %v4820_v56  ;;  %v5119_v13 = vmul.f32 %v5055_v57, %v19955_v38  ;;  %v4630_v63 = vmul.f32 %v16746_v11, %v16746_v11  ;;  %v16757_v53 = vadd.f32 %v19956_v37, %v15977_v19 }
 0xf77   : > { %13247 = vtanh.f32 %v4882_v39  ;;  %5438 = vmatmul.mubr.bf16.gmra.mrb[144].mxu0 %v5161_v33  ;;  %v4693_v22 = vmul.f32 %v4629_v28, %v16734_v44  ;;  %v4695_v35 = vmul.f32 %v4631_v43, %v16738_v14  ;;  %v4994_v55 = vadd.f32 1.0, %v16582_v27 }
 0xf78   : > { %13249 = vtanh.f32 %v4884_v41  ;;  %v5163_v7 = vpack.c.bf16 %v5119_v13, %v5115_v18  ;;  %v4694_v21 = vmul.f32 %v4630_v63, %v16746_v11  ;;  %v4632_v26 = vmul.f32 %v16757_v53, %v16757_v53 }
 0xf79   : > { %v4757_v50 = vmul.f32 0.044715, %v4693_v22  ;;  %v4759_v20 = vmul.f32 0.044715, %v4695_v35  ;;  %v4998_v19 = vadd.f32 1.0, %v16600_v54  ;;  %v5058_v4 = vmul.f32 0.5, %v4994_v55 }
 0xf7a   : > { %5535 = vmatmul.mubr.bf16.gmra.mrb[160].mxu1 %v5163_v7  ;;  %v4758_v1 = vmul.f32 0.044715, %v4694_v21  ;;  %v4696_v58 = vmul.f32 %v4632_v26, %v16757_v53  ;;  %v4996_v25 = vadd.f32 1.0, %v16587_v51  ;;  %v5000_v27 = vadd.f32 1.0, %v16612_v42 }
 0xf7b   : > { %v16769_v56 = vpop.eup %13243  ;;  %v4821_v57 = vadd.f32 %v4757_v50, %v16734_v44  ;;  %v4823_v34 = vadd.f32 %v4759_v20, %v16738_v14  ;;  %v5062_v18 = vmul.f32 0.5, %v4998_v19  ;;  %v5122_v39 = vmul.f32 %v5058_v4, %v19957_v8  ;;  %v19958_v19 = vld [vmem:[#allocation75_spill] sm:$0xff] }
 0xf7c   : > { %v16774_v33 = vpop.eup %13245  ;;  %v4822_v54 = vadd.f32 %v4758_v1, %v16746_v11  ;;  %v4760_v28 = vmul.f32 0.044715, %v4696_v58  ;;  %v5060_v43 = vmul.f32 0.5, %v4996_v25  ;;  %v5064_v41 = vmul.f32 0.5, %v5000_v27 }
 0xf7d   : > { %v4885_v38 = vmul.f32 0.7978846, %v4821_v57  ;;  %v4887_v51 = vmul.f32 0.7978846, %v4823_v34  ;;  %v5126_v42 = vmul.f32 %v5062_v18, %v16530_v2  ;;  %v4993_v13 = vadd.f32 1.0, %v16574_v3  ;;  %v19959_v34 = vld [vmem:[#allocation76_spill] sm:$0xff] }
 0xf7e   : > { %v4886_v63 = vmul.f32 0.7978846, %v4822_v54  ;;  %v4824_v37 = vadd.f32 %v4760_v28, %v16757_v53  ;;  %v5124_v22 = vmul.f32 %v5060_v43, %v16502_v47  ;;  %v5128_v35 = vmul.f32 %v5064_v41, %v16545_v16 }
 0xf7f   : > { %13251 = vtanh.f32 %v4885_v38  ;;  %v5166_v55 = vpack.c.bf16 %v5126_v42, %v5122_v39  ;;  %v4997_v7 = vadd.f32 1.0, %v16591_v45  ;;  %v5057_v21 = vmul.f32 0.5, %v4993_v13 }
 0xf80   : > { %13253 = vtanh.f32 %v4887_v51  ;;  %v4888_v26 = vmul.f32 0.7978846, %v4824_v37  ;;  %v5168_v50 = vpack.c.bf16 %v5128_v35, %v5124_v22  ;;  %v4995_v20 = vadd.f32 1.0, %v16578_v60 }
 0xf81   : > { %v13248_v2 = vpop.eup %13247  ;;  %13255 = vtanh.f32 %v4886_v63  ;;  %5445 = vmatprep.mubr.bf16.mxu0 %v5166_v55  ;;  %v5061_v3 = vmul.f32 0.5, %v4997_v7  ;;  %v5121_v4 = vmul.f32 %v5057_v21, %v19958_v19  ;;  %v4999_v47 = vadd.f32 1.0, %v16595_v52 }
 0xf82   : > { %v13250_v1 = vpop.eup %13249  ;;  %13257 = vtanh.f32 %v4888_v26  ;;  %5542 = vmatprep.mubr.bf16.mxu1 %v5168_v50  ;;  %v5059_v16 = vmul.f32 0.5, %v4995_v20  ;;  %v5002_v45 = vadd.f32 1.0, %v16714_v12  ;;  %v5006_v58 = vadd.f32 1.0, %v16728_v62 }
 0xf83   : > { %v5125_v25 = vmul.f32 %v5061_v3, %v16506_v46  ;;  %v5063_v27 = vmul.f32 0.5, %v4999_v47  ;;  %v5004_v60 = vadd.f32 1.0, %v16718_v17  ;;  %v5008_v57 = vadd.f32 1.0, %v16740_v36 }
 0xf84   : > { %v5123_v18 = vmul.f32 %v5059_v16, %v19959_v34  ;;  %v5066_v8 = vmul.f32 0.5, %v5002_v45  ;;  %v5070_v39 = vmul.f32 0.5, %v5006_v58  ;;  %v5001_v52 = vadd.f32 1.0, %v16701_v5 }
 0xf85   : > { %v5165_v54 = vpack.c.bf16 %v5125_v25, %v5121_v4  ;;  %v5127_v28 = vmul.f32 %v5063_v27, %v16523_v30  ;;  %v5068_v43 = vmul.f32 0.5, %v5004_v60  ;;  %v5072_v12 = vmul.f32 0.5, %v5008_v57 }
 0xf86   : > { %v5130_v62 = vmul.f32 %v5066_v8, %v16619_v6  ;;  %v5134_v46 = vmul.f32 %v5070_v39, %v16648_v9  ;;  %v5005_v41 = vadd.f32 1.0, %v16722_v32  ;;  %v5065_v17 = vmul.f32 0.5, %v5001_v52 }
 0xf87   : > { %5446 = vmatmul.mubr.bf16.gmra.mrb[148].mxu0 %v5165_v54  ;;  %v5167_v36 = vpack.c.bf16 %v5127_v28, %v5123_v18  ;;  %v5132_v38 = vmul.f32 %v5068_v43, %v16627_v59  ;;  %v5136_v51 = vmul.f32 %v5072_v12, %v16655_v29  ;;  %v5003_v5 = vadd.f32 1.0, %v16708_v23 }
 0xf88   : > { %v5170_v42 = vpack.c.bf16 %v5134_v46, %v5130_v62  ;;  %v5069_v13 = vmul.f32 0.5, %v5005_v41  ;;  %v5129_v30 = vmul.f32 %v5065_v17, %v16605_v49  ;;  %v5007_v63 = vadd.f32 1.0, %v16725_v61 }
 0xf89   : > { %v13252_v6 = vpop.eup %13251  ;;  %5543 = vmatmul.mubr.bf16.gmra.mrb[164].mxu1 %v5167_v36  ;;  %v5172_v9 = vpack.c.bf16 %v5136_v51, %v5132_v38  ;;  %v5067_v37 = vmul.f32 0.5, %v5003_v5  ;;  %v5010_v32 = vadd.f32 1.0, %v13248_v2  ;;  %v5012_v22 = vadd.f32 1.0, %v13250_v1 }
 0xf8a   : > { %v13254_v35 = vpop.eup %13253  ;;  %5453 = vmatprep.mubr.bf16.mxu0 %v5170_v42  ;;  %v5133_v59 = vmul.f32 %v5069_v13, %v16634_v0  ;;  %v5071_v55 = vmul.f32 0.5, %v5007_v63  ;;  %v5009_v29 = vadd.f32 1.0, %v16769_v56  ;;  %v5013_v23 = vadd.f32 1.0, %v13252_v6  ;;  %v19962_v13 = vld [vmem:[#allocation42_spill] sm:$0xff]  ;;  %v19963_v63 = vld [vmem:[#allocation40_spill] sm:$0xff] }
 0xf8b   : > { %v13256_v7 = vpop.eup %13255  ;;  %5550 = vmatprep.mubr.bf16.mxu1 %v5172_v9  ;;  %v5131_v49 = vmul.f32 %v5067_v37, %v16610_v15  ;;  %v5074_v21 = vmul.f32 0.5, %v5010_v32  ;;  %v5011_v61 = vadd.f32 1.0, %v16774_v33  ;;  %v5076_v4 = vmul.f32 0.5, %v5012_v22 }
 0xf8c   : > { %v13258_v26 = vpop.eup %13257  ;;  %v5169_v50 = vpack.c.bf16 %v5133_v59, %v5129_v30  ;;  %v5135_v20 = vmul.f32 %v5071_v55, %v16641_v10  ;;  %v5014_v2 = vadd.f32 1.0, %v13256_v7  ;;  %v5073_v3 = vmul.f32 0.5, %v5009_v29 }
 0xf8d   : > { %v5016_v19 = vadd.f32 1.0, %v13258_v26  ;;  %v5077_v0 = vmul.f32 0.5, %v5013_v23  ;;  %v5015_v56 = vadd.f32 1.0, %v13254_v35  ;;  %v5075_v58 = vmul.f32 0.5, %v5011_v61 }
 0xf8e   : > { %v5171_v47 = vpack.c.bf16 %v5135_v20, %v5131_v49  ;;  %v5078_v1 = vmul.f32 0.5, %v5014_v2  ;;  %v5137_v45 = vmul.f32 %v5073_v3, %v16674_v48  ;;  %v5138_v33 = vmul.f32 %v5074_v21, %v16694_v24  ;;  %v19964_v2 = vld [vmem:[#allocation39_spill] sm:$0xff] }
 0xf8f   : > { %5454 = vmatmul.mubr.bf16.gmra.mrb[152].mxu0 %v5169_v50  ;;  %v5080_v16 = vmul.f32 0.5, %v5016_v19  ;;  %v5141_v15 = vmul.f32 %v5077_v0, %v16734_v44  ;;  %v5079_v10 = vmul.f32 0.5, %v5015_v56  ;;  %v5140_v27 = vmul.f32 %v5076_v4, %v16699_v40  ;;  %v16820_v40 = vld [vmem:[%s19589_s9] sm:$0xff] }
 0xf90   : > { %v5142_v25 = vmul.f32 %v5078_v1, %v16746_v11  ;;  %v5139_v18 = vmul.f32 %v5075_v58, %v16679_v31  ;;  %v19960_v24 = vmov 0   ;;  %v19961_v11 = vld [vmem:[#allocation18_spill] sm:$0xff]  ;;  %v19965_v19 = vld [vmem:[#allocation41_spill] sm:$0xff] }
 0xf91   : > { %5551 = vmatmul.mubr.bf16.gmra.mrb[168].mxu1 %v5171_v47  ;;  %v5144_v60 = vmul.f32 %v5080_v16, %v16757_v53  ;;  %v5173_v57 = vpack.c.bf16 %v5141_v15, %v5137_v45  ;;  %v5143_v8 = vmul.f32 %v5079_v10, %v16738_v14  ;;  %v19693_v39 = vsub.s32 6, %v19961_v11 }
 0xf92   : > { %v5174_v34 = vpack.c.bf16 %v5142_v25, %v5138_v33 }
 0xf93   : > { %v5176_v48 = vpack.c.bf16 %v5144_v60, %v5140_v27  ;;  %v5175_v44 = vpack.c.bf16 %v5143_v8, %v5139_v18  ;;  %v16825_v31 = vrot.slane %v16820_v40, %v19693_v39 }
 0xf94   : > { %5461 = vmatprep.mubr.bf16.mxu0 %v5174_v34 }
 0xf95   : > { %5558 = vmatprep.mubr.bf16.mxu1 %v5176_v48  ;;  %v19966_v48 = vld [vmem:[#allocation44_spill] sm:$0xff] }
 0xf97   : > { %5462 = vmatmul.mubr.bf16.gmra.mrb[156].mxu0 %v5173_v57 }
 0xf98   : > { %6120 = vmatprep.mubr.bf16.mxu0 %v19960_v24 }
 0xf99   : > { %5559 = vmatmul.mubr.bf16.gmra.mrb[172].mxu1 %v5175_v44 }
 0xffd   : > { %v11126_v52 = vpop.f32.mrb[128].mxu0 }
 0xffe   : > { %v11127_v14 = vpop.f32.mrb[129].mxu0 }
 0xfff   : > { %v11128_v53 = vadd.f32 %v11127_v14, %v11126_v52  ;;  %v11129_v54 = vpop.f32.mrb[130].mxu0 }
0x1000   : > { %v11130_v28 = vpop.f32.mrb[131].mxu0 }
0x1001   : > { %v5408_v12 = vadd.f32 %v11128_v53, %v16825_v31  ;;  %v11131_v62 = vadd.f32 %v11130_v28, %v11129_v54 }
0x1002   : > { %v11190_v43 = vpop.f32.mrb[144].mxu1 }
0x1003   : > { %v11191_v46 = vpop.f32.mrb[145].mxu1  ;;  %v5411_v36 = vadd.f32 %v11131_v62, %v16825_v31 }
0x1004   : > { %v11192_v41 = vadd.f32 %v11191_v46, %v11190_v43  ;;  %v11193_v17 = vpop.f32.mrb[146].mxu1  ;;  %v19967_v43 = vld [vmem:[#allocation46_spill] sm:$0xff] }
0x1005   : > { %v11194_v38 = vpop.f32.mrb[147].mxu1 }
0x1006   : > { %v5505_v51 = vadd.f32 %v11192_v41, %v5408_v12  ;;  %v11195_v5 = vadd.f32 %v11194_v38, %v11193_v17 }
0x1008   : > { %v5508_v42 = vadd.f32 %v11195_v5, %v5411_v36  ;;  %v16830_v30 = vadd.f32 %v5505_v51, %v19962_v13 }
0x100a   : > { %5583 = vadd.xlane.f32.xlu1 %v16830_v30  ;;  %v16834_v6 = vadd.f32 %v5508_v42, %v19963_v63  ;;  %v19968_v63 = vld [vmem:[#allocation43_spill] sm:$0xff] }
0x100c   : > { %5585 = vadd.xlane.f32.xlu0 %v16834_v6 }
0x1014   : > { %v11132_v9 = vpop.f32.mrb[132].mxu0 }
0x1015   : > { %v11133_v37 = vpop.f32.mrb[133].mxu0 }
0x1016   : > { %v11196_v32 = vpop.f32.mrb[148].mxu1  ;;  %v11134_v22 = vadd.f32 %v11133_v37, %v11132_v9  ;;  %v11135_v35 = vpop.f32.mrb[134].mxu0  ;;  %v19969_v37 = vld [vmem:[#allocation45_spill] sm:$0xff] }
0x1017   : > { %v11197_v59 = vpop.f32.mrb[149].mxu1  ;;  %v11136_v55 = vpop.f32.mrb[135].mxu0 }
0x1018   : > { %v5416_v29 = vadd.f32 %v11134_v22, %v16825_v31  ;;  %v11198_v23 = vadd.f32 %v11197_v59, %v11196_v32  ;;  %v11199_v7 = vpop.f32.mrb[150].mxu1  ;;  %v11137_v49 = vadd.f32 %v11136_v55, %v11135_v35 }
0x1019   : > { %v11200_v21 = vpop.f32.mrb[151].mxu1 }
0x101a   : > { %v5513_v61 = vadd.f32 %v11198_v23, %v5416_v29  ;;  %v5419_v26 = vadd.f32 %v11137_v49, %v16825_v31  ;;  %v11201_v50 = vadd.f32 %v11200_v21, %v11199_v7 }
0x101c   : > { %v5516_v20 = vadd.f32 %v11201_v50, %v5419_v26  ;;  %v16840_v3 = vadd.f32 %v5513_v61, %v19964_v2 }
0x101e   : > { %5587 = vadd.xlane.f32.xlu1 %v16840_v3  ;;  %v16844_v4 = vadd.f32 %v5516_v20, %v19965_v19 }
0x1020   : > { %5589 = vadd.xlane.f32.xlu0 %v16844_v4 }
0x1029   : > { %v11138_v0 = vpop.f32.mrb[136].mxu0 }
0x102a   : > { %v11202_v47 = vpop.f32.mrb[152].mxu1  ;;  %v11139_v1 = vpop.f32.mrb[137].mxu0 }
0x102b   : > { %v11140_v56 = vadd.f32 %v11139_v1, %v11138_v0  ;;  %v11203_v16 = vpop.f32.mrb[153].mxu1  ;;  %v11141_v45 = vpop.f32.mrb[138].mxu0 }
0x102c   : > { %v11204_v15 = vadd.f32 %v11203_v16, %v11202_v47  ;;  %v11205_v58 = vpop.f32.mrb[154].mxu1  ;;  %v11142_v33 = vpop.f32.mrb[139].mxu0  ;;  %v19970_v47 = vld [vmem:[#allocation50_spill] sm:$0xff] }
0x102d   : > { %v5424_v25 = vadd.f32 %v11140_v56, %v16825_v31  ;;  %v11143_v10 = vadd.f32 %v11142_v33, %v11141_v45  ;;  %v11206_v27 = vpop.f32.mrb[155].mxu1  ;;  %v19971_v56 = vld [vmem:[#allocation48_spill] sm:$0xff] }
0x102e   : > { %v11207_v60 = vadd.f32 %v11206_v27, %v11205_v58 }
0x102f   : > { %v5521_v57 = vadd.f32 %v11204_v15, %v5424_v25  ;;  %v5427_v34 = vadd.f32 %v11143_v10, %v16825_v31 }
0x1031   : > { %v5524_v18 = vadd.f32 %v11207_v60, %v5427_v34  ;;  %v11144_v8 = vpop.f32.mrb[140].mxu0  ;;  %v16850_v44 = vadd.f32 %v5521_v57, %v19966_v48 }
0x1032   : > { %v11208_v52 = vpop.f32.mrb[156].mxu1  ;;  %v11145_v14 = vpop.f32.mrb[141].mxu0 }
0x1033   : > { %v11146_v53 = vadd.f32 %v11145_v14, %v11144_v8  ;;  %v11209_v54 = vpop.f32.mrb[157].mxu1  ;;  %v11147_v28 = vpop.f32.mrb[142].mxu0  ;;  %5591 = vadd.xlane.f32.xlu1 %v16850_v44  ;;  %v16854_v12 = vadd.f32 %v5524_v18, %v19967_v43 }
0x1034   : > { %v11210_v62 = vadd.f32 %v11209_v54, %v11208_v52  ;;  %v11211_v46 = vpop.f32.mrb[158].mxu1  ;;  %v11148_v41 = vpop.f32.mrb[143].mxu0  ;;  %v19972_v54 = vld [vmem:[#allocation47_spill] sm:$0xff] }
0x1035   : > { %v5432_v17 = vadd.f32 %v11146_v53, %v16825_v31  ;;  %v11149_v36 = vadd.f32 %v11148_v41, %v11147_v28  ;;  %v11212_v38 = vpop.f32.mrb[159].mxu1  ;;  %5593 = vadd.xlane.f32.xlu0 %v16854_v12 }
0x1036   : > { %v11213_v51 = vadd.f32 %v11212_v38, %v11211_v46  ;;  %v19973_v46 = vld [vmem:[#allocation49_spill] sm:$0xff] }
0x1037   : > { %v5529_v5 = vadd.f32 %v11210_v62, %v5432_v17  ;;  %v5435_v42 = vadd.f32 %v11149_v36, %v16825_v31 }
0x1039   : > { %v5532_v13 = vadd.f32 %v11213_v51, %v5435_v42  ;;  %v16860_v9 = vadd.f32 %v5529_v5, %v19968_v63 }
0x103b   : > { %5595 = vadd.xlane.f32.xlu1 %v16860_v9  ;;  %v16864_v32 = vadd.f32 %v5532_v13, %v19969_v37 }
0x103d   : > { %5597 = vadd.xlane.f32.xlu0 %v16864_v32 }
0x104a   : > { %v11150_v22 = vpop.f32.mrb[144].mxu0 }
0x104b   : > { %v11151_v35 = vpop.f32.mrb[145].mxu0 }
0x104c   : > { %v11152_v59 = vadd.f32 %v11151_v35, %v11150_v22  ;;  %v11153_v55 = vpop.f32.mrb[146].mxu0 }
0x104d   : > { %v11214_v29 = vpop.f32.mrb[160].mxu1  ;;  %v11154_v23 = vpop.f32.mrb[147].mxu0 }
0x104e   : > { %v5440_v7 = vadd.f32 %v11152_v59, %v16825_v31  ;;  %v11215_v49 = vpop.f32.mrb[161].mxu1  ;;  %v11155_v21 = vadd.f32 %v11154_v23, %v11153_v55 }
0x104f   : > { %v11216_v61 = vadd.f32 %v11215_v49, %v11214_v29  ;;  %v11217_v26 = vpop.f32.mrb[162].mxu1 }
0x1050   : > { %v5443_v50 = vadd.f32 %v11155_v21, %v16825_v31  ;;  %v11218_v20 = vpop.f32.mrb[163].mxu1 }
0x1051   : > { %v5537_v2 = vadd.f32 %v11216_v61, %v5440_v7  ;;  %v11219_v19 = vadd.f32 %v11218_v20, %v11217_v26  ;;  %v19974_v7 = vld [vmem:[#allocation54_spill] sm:$0xff]  ;;  %v19975_v20 = vld [vmem:[#allocation52_spill] sm:$0xff] }
0x1053   : > { %v5540_v0 = vadd.f32 %v11219_v19, %v5443_v50  ;;  %v16870_v1 = vadd.f32 %v5537_v2, %v19970_v47 }
0x1055   : > { %5599 = vadd.xlane.f32.xlu1 %v16870_v1  ;;  %v16874_v16 = vadd.f32 %v5540_v0, %v19971_v56 }
0x1057   : > { %5601 = vadd.xlane.f32.xlu0 %v16874_v16 }
0x105a   : > { %v11156_v45 = vpop.f32.mrb[148].mxu0 }
0x105b   : > { %v11157_v15 = vpop.f32.mrb[149].mxu0 }
0x105c   : > { %v11220_v58 = vpop.f32.mrb[164].mxu1  ;;  %v11158_v33 = vadd.f32 %v11157_v15, %v11156_v45  ;;  %v11159_v25 = vpop.f32.mrb[150].mxu0 }
0x105d   : > { %v11221_v10 = vpop.f32.mrb[165].mxu1  ;;  %v11160_v27 = vpop.f32.mrb[151].mxu0 }
0x105e   : > { %v5448_v60 = vadd.f32 %v11158_v33, %v16825_v31  ;;  %v11222_v57 = vadd.f32 %v11221_v10, %v11220_v58  ;;  %v11223_v34 = vpop.f32.mrb[166].mxu1  ;;  %v11161_v18 = vadd.f32 %v11160_v27, %v11159_v25 }
0x105f   : > { %v11224_v8 = vpop.f32.mrb[167].mxu1 }
0x1060   : > { %v5545_v48 = vadd.f32 %v11222_v57, %v5448_v60  ;;  %v5451_v52 = vadd.f32 %v11161_v18, %v16825_v31  ;;  %v11225_v14 = vadd.f32 %v11224_v8, %v11223_v34  ;;  %v19976_v60 = vld [vmem:[#allocation51_spill] sm:$0xff]  ;;  %v19977_v34 = vld [vmem:[#allocation53_spill] sm:$0xff] }
0x1061   : > { %v12691_v8 = vld [vmem:[#allocation2 + $0xc0] ss:$12 sps:$4 sm:$0xff]  }
0x1062   : > { %v5548_v53 = vadd.f32 %v11225_v14, %v5451_v52  ;;  %v16880_v28 = vadd.f32 %v5545_v48, %v19972_v54  ;;  %v11162_v43 = vpop.f32.mrb[152].mxu0  ;;  %v12693_v48 = vld [vmem:[#allocation2 + $0xc4] ss:$12 sps:$4 sm:$0xff]   ;;  %v12696_v52 = vld [vmem:[#allocation2 + $0xdc] ss:$12 sps:$4 sm:$0xff]  }
0x1063   : > { %v11163_v62 = vpop.f32.mrb[153].mxu0  ;;  %6088 = vmatprep.subr.bf16.mxu0 %v12693_v48  ;;  %v12694_v14 = vld [vmem:[#allocation2 + $0xd8] ss:$12 sps:$4 sm:$0xff]   ;;  %v12720_v48 = vld [vmem:[#allocation2 + $0x140] ss:$12 sps:$4 sm:$0xff]  }
0x1064   : > { %5603 = vadd.xlane.f32.xlu1 %v16880_v28  ;;  %v16884_v41 = vadd.f32 %v5548_v53, %v19973_v46  ;;  %v11226_v17 = vpop.f32.mrb[168].mxu1  ;;  %v11164_v36 = vadd.f32 %v11163_v62, %v11162_v43  ;;  %v11165_v38 = vpop.f32.mrb[154].mxu0  ;;  %6089 = vmatpush1.bf16.msra.mxu0 %v12691_v8  ;;  %v12697_v53 = vld [vmem:[#allocation2 + $0xf0] ss:$12 sps:$4 sm:$0xff]   ;;  %v12716_v8 = vld [vmem:[#allocation2 + $0x128] ss:$12 sps:$4 sm:$0xff]  }
0x1065   : > { %v11227_v51 = vpop.f32.mrb[169].mxu1  ;;  %v11166_v5 = vpop.f32.mrb[155].mxu0  ;;  %6090 = vmatprep.subr.bf16.mxu0 %v12696_v52  ;;  %v12717_v52 = vld [vmem:[#allocation2 + $0x168] ss:$12 sps:$4 sm:$0xff]  }
0x1066   : > { %5605 = vadd.xlane.f32.xlu0 %v16884_v41  ;;  %v5456_v42 = vadd.f32 %v11164_v36, %v16825_v31  ;;  %v11228_v13 = vadd.f32 %v11227_v51, %v11226_v17  ;;  %v11229_v63 = vpop.f32.mrb[170].mxu1  ;;  %v11167_v37 = vadd.f32 %v11166_v5, %v11165_v38 }
0x1067   : > { %v11230_v22 = vpop.f32.mrb[171].mxu1 }
0x1068   : > { %v5553_v35 = vadd.f32 %v11228_v13, %v5456_v42  ;;  %v5459_v59 = vadd.f32 %v11167_v37, %v16825_v31  ;;  %v11231_v55 = vadd.f32 %v11230_v22, %v11229_v63  ;;  %6091 = vmatpush1.bf16.msra.mxu0 %v12694_v14 }
0x106a   : > { %v5556_v29 = vadd.f32 %v11231_v55, %v5459_v59  ;;  %v11168_v23 = vpop.f32.mrb[156].mxu0  ;;  %v16890_v49 = vadd.f32 %v5553_v35, %v19974_v7  ;;  %v12700_v35 = vld [vmem:[#allocation2 + $0xc8] ss:$12 sps:$4 sm:$0xff]   ;;  %v12703_v55 = vld [vmem:[#allocation2 + $0x10c] ss:$12 sps:$4 sm:$0xff]  }
0x106b   : > { %v11169_v21 = vpop.f32.mrb[157].mxu0  ;;  %11942 = vmatprep.subr.bf16.mxu1 %v12700_v35  ;;  %v12701_v59 = vld [vmem:[#allocation2 + $0x108] ss:$12 sps:$4 sm:$0xff]  }
0x106c   : > { %v11232_v61 = vpop.f32.mrb[172].mxu1  ;;  %v11170_v26 = vadd.f32 %v11169_v21, %v11168_v23  ;;  %5607 = vadd.xlane.f32.xlu1 %v16890_v49  ;;  %v11171_v50 = vpop.f32.mrb[158].mxu0  ;;  %v16894_v2 = vadd.f32 %v5556_v29, %v19975_v20  ;;  %v12704_v29 = vld [vmem:[#allocation2 + $0xe0] ss:$12 sps:$4 sm:$0xff]   ;;  %11943 = vmatpush3.bf16.msra.mxu1 %v12700_v35 }
0x106d   : > { %v11233_v19 = vpop.f32.mrb[173].mxu1  ;;  %v11172_v0 = vpop.f32.mrb[159].mxu0  ;;  %11944 = vmatprep.subr.bf16.mxu1 %v12704_v29 }
0x106e   : > { %v5464_v47 = vadd.f32 %v11170_v26, %v16825_v31  ;;  %v11234_v56 = vadd.f32 %v11233_v19, %v11232_v61  ;;  %v11235_v45 = vpop.f32.mrb[174].mxu1  ;;  %v11173_v15 = vadd.f32 %v11172_v0, %v11171_v50  ;;  %5609 = vadd.xlane.f32.xlu0 %v16894_v2  ;;  %v12705_v61 = vld [vmem:[#allocation2 + $0x120] ss:$12 sps:$4 sm:$0xff]   ;;  %v12707_v26 = vld [vmem:[#allocation2 + $0x124] ss:$12 sps:$4 sm:$0xff]  }
0x106f   : > { %v11236_v58 = vpop.f32.mrb[175].mxu1  ;;  %v12708_v50 = vld [vmem:[#allocation2 + $0xf8] ss:$12 sps:$4 sm:$0xff]   ;;  %v12711_v0 = vld [vmem:[#allocation2 + $0x13c] ss:$12 sps:$4 sm:$0xff]  }
0x1070   : > { %v5561_v33 = vadd.f32 %v11234_v56, %v5464_v47  ;;  %v5467_v25 = vadd.f32 %v11173_v15, %v16825_v31  ;;  %v11237_v10 = vadd.f32 %v11236_v58, %v11235_v45  ;;  %v12699_v31 = vld [vmem:[#allocation2 + $0xf4] ss:$12 sps:$4 sm:$0xff]   ;;  %11945 = vmatpush3.bf16.msra.mxu1 %v12704_v29  ;;  %v12712_v47 = vld [vmem:[#allocation2 + $0x110] ss:$12 sps:$4 sm:$0xff]   ;;  %v12709_v56 = vld [vmem:[#allocation2 + $0x138] ss:$12 sps:$4 sm:$0xff]  }
0x1071   : > { %6092 = vmatprep.subr.bf16.mxu0 %v12699_v31  ;;  %11946 = vmatprep.subr.bf16.mxu1 %v12708_v50 }
0x1072   : > { %v5564_v27 = vadd.f32 %v11237_v10, %v5467_v25  ;;  %v16900_v57 = vadd.f32 %v5561_v33, %v19976_v60  ;;  %6093 = vmatpush1.bf16.msra.mxu0 %v12697_v53  ;;  %v12713_v60 = vld [vmem:[#allocation2 + $0x150] ss:$12 sps:$4 sm:$0xff]  }
0x1073   : > { %6094 = vmatprep.subr.bf16.mxu0 %v12703_v55  ;;  %v12722_v53 = vld [vmem:[#allocation2 + $0x170] ss:$12 sps:$4 sm:$0xff]  }
0x1074   : > { %5611 = vadd.xlane.f32.xlu1 %v16900_v57  ;;  %v16904_v18 = vadd.f32 %v5564_v27, %v19977_v34  ;;  %11947 = vmatpush3.bf16.msra.mxu1 %v12708_v50  ;;  %v12715_v34 = vld [vmem:[#allocation2 + $0x154] ss:$12 sps:$4 sm:$0xff]  }
0x1075   : > { %11948 = vmatprep.subr.bf16.mxu1 %v12712_v47 }
0x1076   : > { %5613 = vadd.xlane.f32.xlu0 %v16904_v18  ;;  %6095 = vmatpush1.bf16.msra.mxu0 %v12701_v59 }
0x1077   : > { %6096 = vmatprep.subr.bf16.mxu0 %v12707_v26 }
0x1078   : > { %11949 = vmatpush3.bf16.msra.mxu1 %v12712_v47 }
0x1079   : > { %11950 = vmatprep.subr.bf16.mxu1 %v12716_v8 }
0x107a   : > { %6097 = vmatpush1.bf16.msra.mxu0 %v12705_v61 }
0x107b   : > { %6098 = vmatprep.subr.bf16.mxu0 %v12711_v0 }
0x107c   : > { %11951 = vmatpush3.bf16.msra.mxu1 %v12716_v8 }
0x107d   : > { %11952 = vmatprep.subr.bf16.mxu1 %v12720_v48 }
0x107e   : > { %6099 = vmatpush1.bf16.msra.mxu0 %v12709_v56 }
0x107f   : > { %6100 = vmatprep.subr.bf16.mxu0 %v12715_v34  ;;  %v16999_v34 = vld [vmem:[%s19589_s9 + $0x8] ss:$0 sm:$0xff] }
0x1080   : > { %11953 = vmatpush3.bf16.msra.mxu1 %v12720_v48 }
0x1082   : > { %6101 = vmatpush1.bf16.msra.mxu0 %v12713_v60 }
0x1097   : > { %v5584_v54 = vpop.xlane.xlu1 %5583 }
0x1098   : > { %v5615_v43 = vmul.f32 0.0078125, %v5584_v54 }
0x1099   : > { %v5586_v62 = vpop.xlane.xlu0 %5585 }
0x109a   : > { %v16908_v46 = vsub.f32 %v16830_v30, %v5615_v43  ;;  %v5616_v17 = vmul.f32 0.0078125, %v5586_v62 }
0x109c   : > { %v16911_v36 = vsub.f32 %v16834_v6, %v5616_v17  ;;  %v5647_v38 = vmul.f32 %v16908_v46, %v16908_v46 }
0x109e   : > { %5663 = vadd.xlane.f32.xlu1 %v5647_v38  ;;  %v5648_v51 = vmul.f32 %v16911_v36, %v16911_v36 }
0x10a0   : > { %5665 = vadd.xlane.f32.xlu0 %v5648_v51 }
0x10ab   : > { %v5588_v5 = vpop.xlane.xlu1 %5587 }
0x10ac   : > { %v5617_v42 = vmul.f32 0.0078125, %v5588_v5 }
0x10ad   : > { %v5590_v13 = vpop.xlane.xlu0 %5589 }
0x10ae   : > { %v16918_v63 = vsub.f32 %v16840_v3, %v5617_v42  ;;  %v5618_v30 = vmul.f32 0.0078125, %v5590_v13 }
0x10b0   : > { %v16921_v37 = vsub.f32 %v16844_v4, %v5618_v30  ;;  %v5649_v6 = vmul.f32 %v16918_v63, %v16918_v63 }
0x10b2   : > { %5667 = vadd.xlane.f32.xlu1 %v5649_v6  ;;  %v5650_v22 = vmul.f32 %v16921_v37, %v16921_v37 }
0x10b4   : > { %5669 = vadd.xlane.f32.xlu0 %v5650_v22 }
0x10c0   : > { %v5592_v3 = vpop.xlane.xlu1 %5591 }
0x10c1   : > { %v5619_v23 = vmul.f32 0.0078125, %v5592_v3 }
0x10c2   : > { %v5594_v4 = vpop.xlane.xlu0 %5593 }
0x10c3   : > { %v16928_v7 = vsub.f32 %v16850_v44, %v5619_v23  ;;  %v5620_v21 = vmul.f32 0.0078125, %v5594_v4 }
0x10c5   : > { %v16931_v20 = vsub.f32 %v16854_v12, %v5620_v21  ;;  %v5651_v19 = vmul.f32 %v16928_v7, %v16928_v7 }
0x10c7   : > { %5671 = vadd.xlane.f32.xlu1 %v5651_v19  ;;  %v5652_v44 = vmul.f32 %v16931_v20, %v16931_v20 }
0x10c8   : > { %v5596_v45 = vpop.xlane.xlu1 %5595 }
0x10c9   : > { %v5621_v15 = vmul.f32 0.0078125, %v5596_v45  ;;  %5673 = vadd.xlane.f32.xlu0 %v5652_v44 }
0x10ca   : > { %v5598_v12 = vpop.xlane.xlu0 %5597 }
0x10cb   : > { %v16938_v58 = vsub.f32 %v16860_v9, %v5621_v15  ;;  %v5622_v33 = vmul.f32 0.0078125, %v5598_v12  ;;  %v12719_v9 = vld [vmem:[#allocation2 + $0x16c] ss:$12 sps:$4 sm:$0xff]   ;;  %v19692_v15 = vsub.s32 7, %v19961_v11 }
0x10cc   : > { %6102 = vmatprep.subr.bf16.mxu0 %v12719_v9 }
0x10cd   : > { %v16941_v25 = vsub.f32 %v16864_v32, %v5622_v33  ;;  %v5653_v10 = vmul.f32 %v16938_v58, %v16938_v58  ;;  %6103 = vmatpush1.bf16.msra.mxu0 %v12717_v52  ;;  %v12721_v32 = vld [vmem:[#allocation2 + $0x158] ss:$12 sps:$4 sm:$0xff]  }
0x10ce   : > { %11954 = vmatprep.subr.bf16.mxu1 %v12721_v32 }
0x10cf   : > { %5675 = vadd.xlane.f32.xlu1 %v5653_v10  ;;  %v5654_v27 = vmul.f32 %v16941_v25, %v16941_v25  ;;  %11955 = vmatpush3.bf16.msra.mxu1 %v12721_v32 }
0x10d0   : > { %11956 = vmatprep.subr.bf16.mxu1 %v12722_v53 }
0x10d1   : > { %5677 = vadd.xlane.f32.xlu0 %v5654_v27 }
0x10d3   : > { %11957 = vmatpush3.bf16.msra.mxu1 %v12722_v53 }
0x10e2   : > { %v5600_v14 = vpop.xlane.xlu1 %5599 }
0x10e3   : > { %v5623_v31 = vmul.f32 0.0078125, %v5600_v14 }
0x10e4   : > { %v5602_v54 = vpop.xlane.xlu0 %5601 }
0x10e5   : > { %v16948_v43 = vsub.f32 %v16870_v1, %v5623_v31  ;;  %v5624_v62 = vmul.f32 0.0078125, %v5602_v54 }
0x10e7   : > { %v16951_v17 = vsub.f32 %v16874_v16, %v5624_v62  ;;  %v5655_v38 = vmul.f32 %v16948_v43, %v16948_v43 }
0x10e9   : > { %5679 = vadd.xlane.f32.xlu1 %v5655_v38  ;;  %v5656_v51 = vmul.f32 %v16951_v17, %v16951_v17 }
0x10eb   : > { %5681 = vadd.xlane.f32.xlu0 %v5656_v51 }
0x10f1   : > { %v5604_v5 = vpop.xlane.xlu1 %5603 }
0x10f2   : > { %v5625_v42 = vmul.f32 0.0078125, %v5604_v5 }
0x10f3   : > { %v5606_v13 = vpop.xlane.xlu0 %5605 }
0x10f4   : > { %v16958_v1 = vsub.f32 %v16880_v28, %v5625_v42  ;;  %v5626_v30 = vmul.f32 0.0078125, %v5606_v13 }
0x10f6   : > { %v16961_v6 = vsub.f32 %v16884_v41, %v5626_v30  ;;  %v5657_v16 = vmul.f32 %v16958_v1, %v16958_v1 }
0x10f8   : > { %5683 = vadd.xlane.f32.xlu1 %v5657_v16  ;;  %v5658_v22 = vmul.f32 %v16961_v6, %v16961_v6 }
0x10f9   : > { %v5608_v35 = vpop.xlane.xlu1 %5607 }
0x10fa   : > { %5685 = vadd.xlane.f32.xlu0 %v5658_v22  ;;  %v5627_v59 = vmul.f32 0.0078125, %v5608_v35 }
0x10fb   : > { %v5610_v55 = vpop.xlane.xlu0 %5609 }
0x10fc   : > { %v16968_v29 = vsub.f32 %v16890_v49, %v5627_v59  ;;  %v5628_v28 = vmul.f32 0.0078125, %v5610_v55 }
0x10fe   : > { %v16971_v3 = vsub.f32 %v16894_v2, %v5628_v28  ;;  %v5659_v41 = vmul.f32 %v16968_v29, %v16968_v29 }
0x1100   : > { %5687 = vadd.xlane.f32.xlu1 %v5659_v41  ;;  %v5660_v23 = vmul.f32 %v16971_v3, %v16971_v3 }
0x1101   : > { %v5612_v4 = vpop.xlane.xlu1 %5611 }
0x1102   : > { %v5629_v21 = vmul.f32 0.0078125, %v5612_v4  ;;  %5689 = vadd.xlane.f32.xlu0 %v5660_v23 }
0x1103   : > { %v5614_v61 = vpop.xlane.xlu0 %5613 }
0x1104   : > { %v16978_v26 = vsub.f32 %v16900_v57, %v5629_v21  ;;  %v5630_v49 = vmul.f32 0.0078125, %v5614_v61 }
0x1106   : > { %v16981_v50 = vsub.f32 %v16904_v18, %v5630_v49  ;;  %v5661_v2 = vmul.f32 %v16978_v26, %v16978_v26  ;;  %v16991_v18 = vrot.slane %v16820_v40, %v19692_v15 }
0x1108   : > { %5691 = vadd.xlane.f32.xlu1 %v5661_v2  ;;  %v5662_v19 = vmul.f32 %v16981_v50, %v16981_v50 }
0x110a   : > { %5693 = vadd.xlane.f32.xlu0 %v5662_v19 }
0x112b   : > { %v5664_v0 = vpop.xlane.xlu1 %5663 }
0x112c   : > { %v5695_v47 = vmul.f32 0.0078125, %v5664_v0 }
0x112d   : > { %v5666_v44 = vpop.xlane.xlu0 %5665 }
0x112e   : > { %v5711_v56 = vadd.f32 1e-12, %v5695_v47  ;;  %v5696_v45 = vmul.f32 0.0078125, %v5666_v44 }
0x1130   : > { %13259 = vrsqrt.f32 %v5711_v56  ;;  %v5712_v57 = vadd.f32 1e-12, %v5696_v45 }
0x1132   : > { %13261 = vrsqrt.f32 %v5712_v57 }
0x113a   : > { %v13260_v12 = vpop.eup %13259 }
0x113b   : > { %v5743_v33 = vmul.f32 %v13260_v12, %v16908_v46 }
0x113c   : > { %v13262_v10 = vpop.eup %13261 }
0x113d   : > { %v5763_v27 = vmul.f32 %v16991_v18, %v5743_v33  ;;  %v5744_v60 = vmul.f32 %v13262_v10, %v16911_v36 }
0x113f   : > { %v5764_v8 = vmul.f32 %v16991_v18, %v5744_v60  ;;  %v5668_v9 = vpop.xlane.xlu1 %5667  ;;  %v17003_v40 = vadd.f32 %v16999_v34, %v5763_v27 }
0x1140   : > { %v5697_v48 = vmul.f32 0.0078125, %v5668_v9 }
0x1141   : > { %19978 = vst [vmem:[#allocation21_spill] sm:$0xff] %v17003_v40  ;;  %v17006_v52 = vadd.f32 %v16999_v34, %v5764_v8  ;;  %v5670_v46 = vpop.xlane.xlu0 %5669 }
0x1142   : > { %v5713_v32 = vadd.f32 1e-12, %v5697_v48  ;;  %v5698_v14 = vmul.f32 0.0078125, %v5670_v46 }
0x1143   : > { %19979 = vst [vmem:[#allocation36_spill] sm:$0xff] %v17006_v52  ;;  %v5952_v36 = vpack.c.bf16 %v17006_v52, %v17003_v40 }
0x1144   : > { %13263 = vrsqrt.f32 %v5713_v32  ;;  %v5714_v31 = vadd.f32 1e-12, %v5698_v14 }
0x1145   : > { %6121 = vmatmul.mubr.bf16.vlgmr.msra.gmra.mrb[160].mxu0 %v5952_v36  ;;  %11958 = vmatprep.mubr.bf16.mxu1 %v5952_v36 }
0x1146   : > { %6130 = vmatprep.mubr.bf16.mxu0 %v19960_v24  ;;  %13265 = vrsqrt.f32 %v5714_v31 }
0x114e   : > { %v13264_v53 = vpop.eup %13263 }
0x114f   : > { %v5745_v54 = vmul.f32 %v13264_v53, %v16918_v63 }
0x1150   : > { %v13266_v62 = vpop.eup %13265 }
0x1151   : > { %v5746_v38 = vmul.f32 %v13266_v62, %v16921_v37  ;;  %v5765_v51 = vmul.f32 %v16991_v18, %v5745_v54 }
0x1153   : > { %v5766_v5 = vmul.f32 %v16991_v18, %v5746_v38  ;;  %v17016_v30 = vadd.f32 %v16999_v34, %v5765_v51 }
0x1154   : > { %v5672_v42 = vpop.xlane.xlu1 %5671 }
0x1155   : > { %v5699_v13 = vmul.f32 0.0078125, %v5672_v42  ;;  %19980 = vst [vmem:[#allocation55_spill] sm:$0xff] %v17016_v30  ;;  %v17019_v16 = vadd.f32 %v16999_v34, %v5766_v5 }
0x1156   : > { %v5674_v22 = vpop.xlane.xlu0 %5673 }
0x1157   : > { %19981 = vst [vmem:[#allocation22_spill] sm:$0xff] %v17019_v16  ;;  %v5715_v35 = vadd.f32 1e-12, %v5699_v13  ;;  %v5700_v59 = vmul.f32 0.0078125, %v5674_v22  ;;  %v5953_v63 = vpack.c.bf16 %v17019_v16, %v17016_v30 }
0x1159   : > { %13267 = vrsqrt.f32 %v5715_v35  ;;  %v5716_v37 = vadd.f32 1e-12, %v5700_v59  ;;  %6131 = vmatmul.mubr.bf16.gmra.mrb[164].mxu0 %v5953_v63  ;;  %11959 = vmatmul.mubr.bf16.vlgmr.msra.gmra.mrb[176].mxu1 %v5953_v63 }
0x115a   : > { %6140 = vmatprep.mubr.bf16.mxu0 %v19960_v24 }
0x115b   : > { %13269 = vrsqrt.f32 %v5716_v37 }
0x115c   : > { %v5676_v55 = vpop.xlane.xlu1 %5675 }
0x115d   : > { %v5701_v28 = vmul.f32 0.0078125, %v5676_v55 }
0x115e   : > { %v5678_v41 = vpop.xlane.xlu0 %5677 }
0x115f   : > { %v5717_v23 = vadd.f32 1e-12, %v5701_v28  ;;  %v5702_v4 = vmul.f32 0.0078125, %v5678_v41 }
0x1161   : > { %13271 = vrsqrt.f32 %v5717_v23  ;;  %v5718_v21 = vadd.f32 1e-12, %v5702_v4 }
0x1163   : > { %v13268_v61 = vpop.eup %13267  ;;  %13273 = vrsqrt.f32 %v5718_v21 }
0x1164   : > { %v5747_v49 = vmul.f32 %v13268_v61, %v16928_v7 }
0x1165   : > { %v13270_v2 = vpop.eup %13269 }
0x1166   : > { %v5748_v19 = vmul.f32 %v13270_v2, %v16931_v20  ;;  %v5767_v0 = vmul.f32 %v16991_v18, %v5747_v49 }
0x1168   : > { %v5768_v47 = vmul.f32 %v16991_v18, %v5748_v19  ;;  %v17029_v44 = vadd.f32 %v16999_v34, %v5767_v0 }
0x116a   : > { %19982 = vst [vmem:[#allocation57_spill] sm:$0xff] %v17029_v44  ;;  %v17032_v56 = vadd.f32 %v16999_v34, %v5768_v47 }
0x116b   : > { %v13272_v45 = vpop.eup %13271 }
0x116c   : > { %19983 = vst [vmem:[#allocation60_spill] sm:$0xff] %v17032_v56  ;;  %v5954_v57 = vpack.c.bf16 %v17032_v56, %v17029_v44  ;;  %v5749_v12 = vmul.f32 %v13272_v45, %v16938_v58 }
0x116d   : > { %v13274_v7 = vpop.eup %13273 }
0x116e   : > { %6141 = vmatmul.mubr.bf16.gmra.mrb[168].mxu0 %v5954_v57  ;;  %11962 = vmatprep.mubr.bf16.mxu1 %v5954_v57  ;;  %v5750_v20 = vmul.f32 %v13274_v7, %v16941_v25  ;;  %v5769_v33 = vmul.f32 %v16991_v18, %v5749_v12 }
0x116f   : > { %6150 = vmatprep.mubr.bf16.mxu0 %v19960_v24 }
0x1170   : > { %v5770_v10 = vmul.f32 %v16991_v18, %v5750_v20  ;;  %v17042_v27 = vadd.f32 %v16999_v34, %v5769_v33 }
0x1172   : > { %19984 = vst [vmem:[#allocation61_spill] sm:$0xff] %v17042_v27  ;;  %v17045_v60 = vadd.f32 %v16999_v34, %v5770_v10 }
0x1174   : > { %19985 = vst [vmem:[#allocation25_spill] sm:$0xff] %v17045_v60  ;;  %v5955_v58 = vpack.c.bf16 %v17045_v60, %v17042_v27 }
0x1176   : > { %v5680_v8 = vpop.xlane.xlu1 %5679  ;;  %6151 = vmatmul.mubr.bf16.gmra.mrb[172].mxu0 %v5955_v58  ;;  %11963 = vmatmul.mubr.bf16.gmra.mrb[180].mxu1 %v5955_v58 }
0x1177   : > { %v5703_v9 = vmul.f32 0.0078125, %v5680_v8  ;;  %6160 = vmatprep.mubr.bf16.mxu0 %v19960_v24 }
0x1178   : > { %v5682_v25 = vpop.xlane.xlu0 %5681 }
0x1179   : > { %v5719_v48 = vadd.f32 1e-12, %v5703_v9  ;;  %v5704_v46 = vmul.f32 0.0078125, %v5682_v25 }
0x117b   : > { %13275 = vrsqrt.f32 %v5719_v48  ;;  %v5720_v32 = vadd.f32 1e-12, %v5704_v46 }
0x117d   : > { %13277 = vrsqrt.f32 %v5720_v32 }
0x1185   : > { %v13276_v14 = vpop.eup %13275  ;;  %v5684_v36 = vpop.xlane.xlu1 %5683 }
0x1186   : > { %v5705_v31 = vmul.f32 0.0078125, %v5684_v36  ;;  %v5751_v53 = vmul.f32 %v13276_v14, %v16948_v43 }
0x1187   : > { %v13278_v54 = vpop.eup %13277  ;;  %v5686_v62 = vpop.xlane.xlu0 %5685 }
0x1188   : > { %v5721_v38 = vadd.f32 1e-12, %v5705_v31  ;;  %v5706_v51 = vmul.f32 0.0078125, %v5686_v62  ;;  %v5752_v5 = vmul.f32 %v13278_v54, %v16951_v17  ;;  %v5771_v42 = vmul.f32 %v16991_v18, %v5751_v53  ;;  %v19994_v62 = vld [vmem:[#allocation19_spill] sm:$0xff] }
0x118a   : > { %13279 = vrsqrt.f32 %v5721_v38  ;;  %v5722_v13 = vadd.f32 1e-12, %v5706_v51  ;;  %v5772_v22 = vmul.f32 %v16991_v18, %v5752_v5  ;;  %v17055_v35 = vadd.f32 %v16999_v34, %v5771_v42 }
0x118c   : > { %13281 = vrsqrt.f32 %v5722_v13  ;;  %19986 = vst [vmem:[#allocation56_spill] sm:$0xff] %v17055_v35  ;;  %v17058_v59 = vadd.f32 %v16999_v34, %v5772_v22 }
0x118d   : > { %v5688_v43 = vpop.xlane.xlu1 %5687 }
0x118e   : > { %19987 = vst [vmem:[#allocation29_spill] sm:$0xff] %v17058_v59  ;;  %v5956_v63 = vpack.c.bf16 %v17058_v59, %v17055_v35  ;;  %v5707_v37 = vmul.f32 0.0078125, %v5688_v43 }
0x118f   : > { %v5690_v55 = vpop.xlane.xlu0 %5689 }
0x1190   : > { %6161 = vmatmul.mubr.bf16.gmra.mrb[176].mxu0 %v5956_v63  ;;  %11966 = vmatprep.mubr.bf16.mxu1 %v5956_v63  ;;  %v5723_v17 = vadd.f32 1e-12, %v5707_v37  ;;  %v5708_v28 = vmul.f32 0.0078125, %v5690_v55 }
0x1191   : > { %6170 = vmatprep.mubr.bf16.mxu0 %v19960_v24 }
0x1192   : > { %13283 = vrsqrt.f32 %v5723_v17  ;;  %v5724_v41 = vadd.f32 1e-12, %v5708_v28 }
0x1194   : > { %v13280_v23 = vpop.eup %13279  ;;  %13285 = vrsqrt.f32 %v5724_v41  ;;  %v19996_v41 = vld [vmem:[#allocation37_spill] sm:$0xff] }
0x1195   : > { %v5753_v4 = vmul.f32 %v13280_v23, %v16958_v1  ;;  %v5692_v21 = vpop.xlane.xlu1 %5691 }
0x1196   : > { %v13282_v61 = vpop.eup %13281  ;;  %v5709_v49 = vmul.f32 0.0078125, %v5692_v21 }
0x1197   : > { %v5754_v2 = vmul.f32 %v13282_v61, %v16961_v6  ;;  %v5773_v19 = vmul.f32 %v16991_v18, %v5753_v4  ;;  %v5694_v0 = vpop.xlane.xlu0 %5693 }
0x1198   : > { %v5725_v47 = vadd.f32 1e-12, %v5709_v49  ;;  %v5710_v45 = vmul.f32 0.0078125, %v5694_v0 }
0x1199   : > { %v5774_v57 = vmul.f32 %v16991_v18, %v5754_v2  ;;  %v17068_v7 = vadd.f32 %v16999_v34, %v5773_v19 }
0x119a   : > { %13287 = vrsqrt.f32 %v5725_v47  ;;  %v5726_v12 = vadd.f32 1e-12, %v5710_v45 }
0x119b   : > { %19988 = vst [vmem:[#allocation26_spill] sm:$0xff] %v17068_v7  ;;  %v17071_v20 = vadd.f32 %v16999_v34, %v5774_v57 }
0x119c   : > { %v13284_v1 = vpop.eup %13283  ;;  %13289 = vrsqrt.f32 %v5726_v12 }
0x119d   : > { %19989 = vst [vmem:[#allocation59_spill] sm:$0xff] %v17071_v20  ;;  %v5957_v6 = vpack.c.bf16 %v17071_v20, %v17068_v7  ;;  %v5755_v33 = vmul.f32 %v13284_v1, %v16968_v29 }
0x119e   : > { %v13286_v10 = vpop.eup %13285 }
0x119f   : > { %6171 = vmatmul.mubr.bf16.gmra.mrb[180].mxu0 %v5957_v6  ;;  %11967 = vmatmul.mubr.bf16.gmra.mrb[184].mxu1 %v5957_v6  ;;  %v5756_v58 = vmul.f32 %v13286_v10, %v16971_v3  ;;  %v5775_v8 = vmul.f32 %v16991_v18, %v5755_v33 }
0x11a0   : > { %6180 = vmatprep.mubr.bf16.mxu0 %v19960_v24 }
0x11a1   : > { %v5776_v9 = vmul.f32 %v16991_v18, %v5756_v58  ;;  %v17081_v25 = vadd.f32 %v16999_v34, %v5775_v8 }
0x11a3   : > { %19990 = vst [vmem:[#allocation30_spill] sm:$0xff] %v17081_v25  ;;  %v17084_v48 = vadd.f32 %v16999_v34, %v5776_v9 }
0x11a4   : > { %v13288_v46 = vpop.eup %13287 }
0x11a5   : > { %19991 = vst [vmem:[#allocation23_spill] sm:$0xff] %v17084_v48  ;;  %v5958_v29 = vpack.c.bf16 %v17084_v48, %v17081_v25  ;;  %v5757_v32 = vmul.f32 %v13288_v46, %v16978_v26 }
0x11a6   : > { %v13290_v14 = vpop.eup %13289 }
0x11a7   : > { %6181 = vmatmul.mubr.bf16.gmra.mrb[184].mxu0 %v5958_v29  ;;  %11970 = vmatprep.mubr.bf16.mxu1 %v5958_v29  ;;  %v5758_v3 = vmul.f32 %v13290_v14, %v16981_v50  ;;  %v5777_v36 = vmul.f32 %v16991_v18, %v5757_v32  ;;  %v10746_v50 = vld [vmem:[%s19589_s9 + $0x10] sm:$0xff] }
0x11a8   : > { %6190 = vmatprep.mubr.bf16.mxu0 %v19960_v24  ;;  %v17105_v38 = vrot.slane %v10746_v50, %v19994_v62  ;;  %v17127_v23 = vrot.slane %v10746_v50, %v19996_v41 }
0x11a9   : > { %v5778_v31 = vmul.f32 %v16991_v18, %v5758_v3  ;;  %v17094_v53 = vadd.f32 %v16999_v34, %v5777_v36  ;;  %v19995_v18 = vld [vmem:[#allocation20_spill] sm:$0xff] }
0x11aa   : > { %v17108_v5 = vrot.slane %v10746_v50, %v19995_v18 }
0x11ab   : > { %19992 = vst [vmem:[#allocation27_spill] sm:$0xff] %v17094_v53  ;;  %v17097_v54 = vadd.f32 %v16999_v34, %v5778_v31 }
0x11ad   : > { %19993 = vst [vmem:[#allocation24_spill] sm:$0xff] %v17097_v54  ;;  %v5959_v26 = vpack.c.bf16 %v17097_v54, %v17094_v53 }
0x11af   : > { %6191 = vmatmul.mubr.bf16.gmra.mrb[188].mxu0 %v5959_v26  ;;  %11971 = vmatmul.mubr.bf16.gmra.mrb[188].mxu1 %v5959_v26 }
0x1218   : > { %v6122_v51 = vpop.f32.mrb[160].mxu0 }
0x1219   : > { %v6124_v42 = vpop.f32.mrb[161].mxu0  ;;  %v6302_v34 = vadd.f32 %v17105_v38, %v6122_v51 }
0x121a   : > { %v6126_v13 = vpop.f32.mrb[162].mxu0  ;;  %v6330_v63 = vadd.f32 %v17108_v5, %v6124_v42 }
0x121b   : > { %v6303_v22 = vadd.f32 %v17105_v38, %v6126_v13  ;;  %v6128_v43 = vpop.f32.mrb[163].mxu0 }
0x121c   : > { %v6331_v37 = vadd.f32 %v17108_v5, %v6128_v43 }
0x121d   : > { %v17114_v55 = vpack.c.bf16 %v6303_v22, %v6302_v34 }
0x121e   : > { %v17116_v17 = vpack.c.bf16 %v6331_v37, %v6330_v63 }
0x121f   : > { %11990 = vmatprep.mubr.msk.bf16.mxu0 %vm1537_vm1, %v17114_v55 }
0x1220   : > { %6816 = vrot.lane.b32.xlu1 %v17116_v17, %s13884_s13  ;;  %12454 = vmatprep.subr.msk.bf16.mxu0 %vm1537_vm1, %v17116_v17  ;;  %v6407_v28 = vsel %vm1537_vm1, %v17116_v17, 0 }
0x1221   : > { %11975 = vmatpush3.bf16.xpose.msra.mxu0 %v6407_v28 }
0x122c   : > { %v6132_v4 = vpop.f32.mrb[164].mxu0  ;;  %v11960_v21 = vpop.f32.mrb[176].mxu1 }
0x122d   : > { %v6134_v61 = vpop.f32.mrb[165].mxu0  ;;  %v6235_v49 = vpop.f32.mrb[177].mxu1  ;;  %v6304_v0 = vadd.f32 %v17105_v38, %v6132_v4  ;;  %v6360_v47 = vadd.f32 %v11960_v21, %v17127_v23 }
0x122e   : > { %v6136_v2 = vpop.f32.mrb[166].mxu0  ;;  %v11961_v19 = vpop.f32.mrb[178].mxu1  ;;  %v6332_v6 = vadd.f32 %v17108_v5, %v6134_v61  ;;  %v6358_v33 = vadd.f32 %v17127_v23, %v6235_v49 }
0x122f   : > { %v6305_v45 = vadd.f32 %v17105_v38, %v6136_v2  ;;  %v6361_v57 = vadd.f32 %v11961_v19, %v17127_v23  ;;  %v6138_v12 = vpop.f32.mrb[167].mxu0  ;;  %v6238_v1 = vpop.f32.mrb[179].mxu1 }
0x1230   : > { %v6333_v10 = vadd.f32 %v17108_v5, %v6138_v12  ;;  %v6359_v58 = vadd.f32 %v17127_v23, %v6238_v1 }
0x1231   : > { %v17137_v8 = vpack.c.bf16 %v6305_v45, %v6304_v0  ;;  %v17139_v9 = vpack.c.bf16 %v6361_v57, %v6360_v47 }
0x1232   : > { %v17141_v46 = vpack.c.bf16 %v6333_v10, %v6332_v6  ;;  %v17143_v29 = vpack.c.bf16 %v6359_v58, %v6358_v33 }
0x1233   : > { %19997 = vst [vmem:[#allocation28_spill] sm:$0xff] %v17139_v9 }
0x1234   : > { %19998 = vst [vmem:[#allocation33_spill] sm:$0xff] %v17143_v29  ;;  %12006 = vmatprep.subr.bf16.mxu1 %v17143_v29  ;;  %6818 = vrot.lane.b32.xlu0 %v17141_v46, %s13884_s13  ;;  %v6410_v32 = vsel %vm1537_vm1, %v17141_v46, 0 }
0x1235   : > { %12455 = vmatprep.subr.msk.bf16.mxu0 %vm1537_vm1, %v17141_v46  ;;  %12007 = vmatpush3.bf16.msra.mxu1 %v17143_v29 }
0x1236   : > { %11977 = vmatpush3.bf16.xpose.msra.mxu0 %v6410_v32  ;;  %12008 = vmatprep.subr.bf16.mxu1 %v17139_v9 }
0x1239   : > { %12009 = vmatpush3.bf16.msra.mxu1 %v17139_v9 }
0x1241   : > { %v6142_v14 = vpop.f32.mrb[168].mxu0 }
0x1242   : > { %v6144_v3 = vpop.f32.mrb[169].mxu0  ;;  %v6306_v31 = vadd.f32 %v17105_v38, %v6142_v14 }
0x1243   : > { %v6146_v36 = vpop.f32.mrb[170].mxu0  ;;  %v6334_v51 = vadd.f32 %v17108_v5, %v6144_v3 }
0x1244   : > { %v6307_v26 = vadd.f32 %v17105_v38, %v6146_v36  ;;  %v6148_v50 = vpop.f32.mrb[171].mxu0 }
0x1245   : > { %v6335_v42 = vadd.f32 %v17108_v5, %v6148_v50 }
0x1246   : > { %v17159_v13 = vpack.c.bf16 %v6307_v26, %v6306_v31 }
0x1247   : > { %v17161_v34 = vpack.c.bf16 %v6335_v42, %v6334_v51 }
0x1248   : > { %19999 = vst [vmem:[#allocation34_spill] sm:$0xff] %v17159_v13 }
0x1249   : > { %6820 = vrot.lane.b32.xlu1 %v17161_v34, %s13884_s13  ;;  %v6152_v22 = vpop.f32.mrb[172].mxu0  ;;  %v11964_v43 = vpop.f32.mrb[180].mxu1  ;;  %12456 = vmatprep.subr.msk.bf16.mxu0 %vm1537_vm1, %v17161_v34  ;;  %v6413_v63 = vsel %vm1537_vm1, %v17161_v34, 0 }
0x124a   : > { %v6154_v37 = vpop.f32.mrb[173].mxu0  ;;  %v6251_v28 = vpop.f32.mrb[181].mxu1  ;;  %11979 = vmatpush3.bf16.xpose.msra.mxu0 %v6413_v63  ;;  %v6308_v61 = vadd.f32 %v17105_v38, %v6152_v22  ;;  %v6364_v49 = vadd.f32 %v11964_v43, %v17127_v23 }
0x124b   : > { %v6156_v4 = vpop.f32.mrb[174].mxu0  ;;  %v11965_v21 = vpop.f32.mrb[182].mxu1  ;;  %v6336_v45 = vadd.f32 %v17108_v5, %v6154_v37  ;;  %v6362_v57 = vadd.f32 %v17127_v23, %v6251_v28 }
0x124c   : > { %v6309_v2 = vadd.f32 %v17105_v38, %v6156_v4  ;;  %v6365_v19 = vadd.f32 %v11965_v21, %v17127_v23  ;;  %v6158_v0 = vpop.f32.mrb[175].mxu0  ;;  %v6254_v47 = vpop.f32.mrb[183].mxu1 }
0x124d   : > { %v6337_v12 = vadd.f32 %v17108_v5, %v6158_v0  ;;  %v6363_v1 = vadd.f32 %v17127_v23, %v6254_v47 }
0x124e   : > { %v17177_v6 = vpack.c.bf16 %v6309_v2, %v6308_v61  ;;  %v17179_v33 = vpack.c.bf16 %v6365_v19, %v6364_v49 }
0x124f   : > { %v17181_v10 = vpack.c.bf16 %v6337_v12, %v6336_v45  ;;  %v17183_v58 = vpack.c.bf16 %v6363_v1, %v6362_v57 }
0x1250   : > { %20000 = vst [vmem:[#allocation31_spill] sm:$0xff] %v17177_v6  ;;  %20001 = vst [vmem:[#allocation32_spill] sm:$0xff] %v17179_v33 }
0x1251   : > { %20002 = vst [vmem:[#allocation58_spill] sm:$0xff] %v17183_v58  ;;  %12010 = vmatprep.subr.bf16.mxu1 %v17183_v58  ;;  %6822 = vrot.lane.b32.xlu1 %v17181_v10, %s13884_s13  ;;  %v6416_v32 = vsel %vm1537_vm1, %v17181_v10, 0 }
0x1252   : > { %12457 = vmatprep.subr.msk.bf16.mxu0 %vm1537_vm1, %v17181_v10  ;;  %12011 = vmatpush3.bf16.msra.mxu1 %v17183_v58 }
0x1253   : > { %11981 = vmatpush3.bf16.xpose.msra.mxu0 %v6416_v32  ;;  %12012 = vmatprep.subr.bf16.mxu1 %v17179_v33 }
0x1256   : > { %12013 = vmatpush3.bf16.msra.mxu1 %v17179_v33 }
0x1263   : > { %v6162_v14 = vpop.f32.mrb[176].mxu0 }
0x1264   : > { %v6164_v3 = vpop.f32.mrb[177].mxu0  ;;  %v6310_v31 = vadd.f32 %v17105_v38, %v6162_v14 }
0x1265   : > { %v6166_v36 = vpop.f32.mrb[178].mxu0  ;;  %v6338_v51 = vadd.f32 %v17108_v5, %v6164_v3 }
0x1266   : > { %v6311_v26 = vadd.f32 %v17105_v38, %v6166_v36  ;;  %v6168_v50 = vpop.f32.mrb[179].mxu0 }
0x1267   : > { %v6339_v42 = vadd.f32 %v17108_v5, %v6168_v50 }
0x1268   : > { %v17199_v22 = vpack.c.bf16 %v6311_v26, %v6310_v31 }
0x1269   : > { %v17201_v43 = vpack.c.bf16 %v6339_v42, %v6338_v51 }
0x126a   : > { %20003 = vst [vmem:[#allocation67_spill] sm:$0xff] %v17199_v22 }
0x126b   : > { %6824 = vrot.lane.b32.xlu0 %v17201_v43, %s13884_s13  ;;  %12458 = vmatprep.subr.msk.bf16.mxu0 %vm1537_vm1, %v17201_v43  ;;  %v6419_v63 = vsel %vm1537_vm1, %v17201_v43, 0 }
0x126c   : > { %11983 = vmatpush3.bf16.xpose.msra.mxu0 %v6419_v63 }
0x1272   : > { %v6172_v37 = vpop.f32.mrb[180].mxu0  ;;  %v11968_v28 = vpop.f32.mrb[184].mxu1 }
0x1273   : > { %v6174_v4 = vpop.f32.mrb[181].mxu0  ;;  %v6267_v21 = vpop.f32.mrb[185].mxu1  ;;  %v6312_v2 = vadd.f32 %v17105_v38, %v6172_v37  ;;  %v6368_v19 = vadd.f32 %v11968_v28, %v17127_v23 }
0x1274   : > { %v6176_v61 = vpop.f32.mrb[182].mxu0  ;;  %v11969_v49 = vpop.f32.mrb[186].mxu1  ;;  %v6340_v12 = vadd.f32 %v17108_v5, %v6174_v4  ;;  %v6366_v1 = vadd.f32 %v17127_v23, %v6267_v21 }
0x1275   : > { %v6313_v0 = vadd.f32 %v17105_v38, %v6176_v61  ;;  %v6369_v47 = vadd.f32 %v11969_v49, %v17127_v23  ;;  %v6178_v45 = vpop.f32.mrb[183].mxu0  ;;  %v6270_v57 = vpop.f32.mrb[187].mxu1 }
0x1276   : > { %v6341_v32 = vadd.f32 %v17108_v5, %v6178_v45  ;;  %v6367_v14 = vadd.f32 %v17127_v23, %v6270_v57 }
0x1277   : > { %v17217_v3 = vpack.c.bf16 %v6313_v0, %v6312_v2  ;;  %v17219_v36 = vpack.c.bf16 %v6369_v47, %v6368_v19 }
0x1278   : > { %v17221_v31 = vpack.c.bf16 %v6341_v32, %v6340_v12  ;;  %v17223_v26 = vpack.c.bf16 %v6367_v14, %v6366_v1 }
0x1279   : > { %20004 = vst [vmem:[#allocation68_spill] sm:$0xff] %v17217_v3  ;;  %20005 = vst [vmem:[#allocation69_spill] sm:$0xff] %v17219_v36 }
0x127a   : > { %20006 = vst [vmem:[#allocation70_spill] sm:$0xff] %v17223_v26  ;;  %12014 = vmatprep.subr.bf16.mxu1 %v17223_v26  ;;  %6826 = vrot.lane.b32.xlu1 %v17221_v31, %s13884_s13  ;;  %v6422_v50 = vsel %vm1537_vm1, %v17221_v31, 0  ;;  %v6182_v51 = vpop.f32.mrb[184].mxu0 }
0x127b   : > { %12459 = vmatprep.subr.msk.bf16.mxu0 %vm1537_vm1, %v17221_v31  ;;  %12015 = vmatpush3.bf16.msra.mxu1 %v17223_v26  ;;  %v6184_v42 = vpop.f32.mrb[185].mxu0  ;;  %v6314_v37 = vadd.f32 %v17105_v38, %v6182_v51 }
0x127c   : > { %11985 = vmatpush3.bf16.xpose.msra.mxu0 %v6422_v50  ;;  %12016 = vmatprep.subr.bf16.mxu1 %v17219_v36  ;;  %v6186_v63 = vpop.f32.mrb[186].mxu0  ;;  %v6342_v21 = vadd.f32 %v17108_v5, %v6184_v42 }
0x127d   : > { %v6315_v28 = vadd.f32 %v17105_v38, %v6186_v63  ;;  %v6188_v4 = vpop.f32.mrb[187].mxu0 }
0x127e   : > { %v6343_v61 = vadd.f32 %v17108_v5, %v6188_v4 }
0x127f   : > { %12017 = vmatpush3.bf16.msra.mxu1 %v17219_v36  ;;  %v17239_v49 = vpack.c.bf16 %v6315_v28, %v6314_v37 }
0x1280   : > { %v17241_v2 = vpack.c.bf16 %v6343_v61, %v6342_v21 }
0x1281   : > { %20007 = vst [vmem:[#allocation71_spill] sm:$0xff] %v17239_v49 }
0x1282   : > { %6828 = vrot.lane.b32.xlu0 %v17241_v2, %s13884_s13  ;;  %v6192_v19 = vpop.f32.mrb[188].mxu0  ;;  %v11972_v0 = vpop.f32.mrb[188].mxu1  ;;  %12460 = vmatprep.subr.msk.bf16.mxu0 %vm1537_vm1, %v17241_v2  ;;  %v6425_v47 = vsel %vm1537_vm1, %v17241_v2, 0 }
0x1283   : > { %v6194_v45 = vpop.f32.mrb[189].mxu0  ;;  %v6283_v57 = vpop.f32.mrb[189].mxu1  ;;  %v6316_v32 = vadd.f32 %v17105_v38, %v6192_v19  ;;  %v6372_v14 = vadd.f32 %v11972_v0, %v17127_v23 }
0x1284   : > { %11987 = vmatpush3.bf16.xpose.msra.mxu0 %v6425_v47  ;;  %v6196_v12 = vpop.f32.mrb[190].mxu0  ;;  %v11973_v1 = vpop.f32.mrb[190].mxu1  ;;  %v6344_v37 = vadd.f32 %v17108_v5, %v6194_v45  ;;  %v6370_v28 = vadd.f32 %v17127_v23, %v6283_v57 }
0x1285   : > { %v6317_v50 = vadd.f32 %v17105_v38, %v6196_v12  ;;  %v6373_v51 = vadd.f32 %v11973_v1, %v17127_v23  ;;  %v6198_v42 = vpop.f32.mrb[191].mxu0  ;;  %v6286_v63 = vpop.f32.mrb[191].mxu1 }
0x1286   : > { %v6345_v4 = vadd.f32 %v17108_v5, %v6198_v42  ;;  %v6371_v21 = vadd.f32 %v17127_v23, %v6286_v63  ;;  %6792 = vrot.lane.b32.xlu0 %v17114_v55, %s13884_s13 }
0x1287   : > { %v17259_v61 = vpack.c.bf16 %v6317_v50, %v6316_v32  ;;  %v17261_v19 = vpack.c.bf16 %v6373_v51, %v6372_v14 }
0x1288   : > { %v17263_v38 = vpack.c.bf16 %v6345_v4, %v6344_v37  ;;  %v17265_v0 = vpack.c.bf16 %v6371_v21, %v6370_v28 }
0x1289   : > { %20008 = vst [vmem:[#allocation64_spill] sm:$0xff] %v17259_v61  ;;  %20009 = vst [vmem:[#allocation62_spill] sm:$0xff] %v17261_v19 }
0x128a   : > { %20010 = vst [vmem:[#allocation65_spill] sm:$0xff] %v17265_v0  ;;  %6796 = vrot.lane.b32.xlu0 %v17159_v13, %s13884_s13  ;;  %12018 = vmatprep.subr.bf16.mxu1 %v17265_v0  ;;  %v6428_v5 = vsel %vm1537_vm1, %v17263_v38, 0 }
0x128b   : > { %6830 = vrot.lane.b32.xlu1 %v17263_v38, %s13884_s13  ;;  %12461 = vmatprep.subr.msk.bf16.mxu0 %vm1537_vm1, %v17263_v38 }
0x128c   : > { %11989 = vmatpush3.bf16.xpose.msra.mxu0 %v6428_v5  ;;  %12019 = vmatpush3.bf16.msra.mxu1 %v17265_v0 }
0x128d   : > { %12020 = vmatprep.subr.bf16.mxu1 %v17261_v19 }
0x128e   : > { %6800 = vrot.lane.b32.xlu0 %v17199_v22, %s13884_s13 }
0x128f   : > { %6794 = vrot.lane.b32.xlu1 %v17137_v8, %s13884_s13 }
0x1290   : > { %12021 = vmatpush3.bf16.msra.mxu1 %v17261_v19 }
0x1292   : > { %v6817_v23 = vpop.permute.xlu1 %6816  ;;  %6804 = vrot.lane.b32.xlu0 %v17239_v49, %s13884_s13 }
0x1293   : > { %12462 = vmatprep.subr.msk.bf16.mxu0 %vm1537_vm1, %v6817_v23  ;;  %v6857_v47 = vsel %vm1537_vm1, %v6817_v23, 0  ;;  %6798 = vrot.lane.b32.xlu1 %v17177_v6, %s13884_s13 }
0x1294   : > { %11991 = vmatmul.mubr.msk.bf16.vlgmr.msra.gmra.mrb[192].mxu0 %vm1537_vm1, %v17137_v8 }
0x1295   : > { %11994 = vmatprep.mubr.msk.bf16.mxu0 %vm1537_vm1, %v17159_v13  ;;  %12039 = vmatpush3.bf16.xpose.msra.mxu0 %v6857_v47 }
0x1296   : > { %7548 = vrot.lane.b32.xlu0 %v17116_v17, %s13885_s29 }
0x1297   : > { %6802 = vrot.lane.b32.xlu1 %v17217_v3, %s13884_s13 }
0x129a   : > { %7552 = vrot.lane.b32.xlu0 %v17161_v34, %s13885_s29 }
0x129b   : > { %6806 = vrot.lane.b32.xlu1 %v17259_v61, %s13884_s13 }
0x129c   : > { %11995 = vmatmul.mubr.msk.bf16.gmra.mrb[196].mxu0 %vm1537_vm1, %v17177_v6 }
0x129d   : > { %11998 = vmatprep.mubr.msk.bf16.mxu0 %vm1537_vm1, %v17199_v22 }
0x129e   : > { %7558 = vrot.lane.b32.xlu0 %v17221_v31, %s13885_s29 }
0x129f   : > { %7550 = vrot.lane.b32.xlu1 %v17141_v46, %s13885_s29 }
0x12a2   : > { %7534 = vrot.lane.b32.xlu0 %v17137_v8, %s13885_s29 }
0x12a3   : > { %7554 = vrot.lane.b32.xlu1 %v17181_v10, %s13885_s29 }
0x12a4   : > { %11999 = vmatmul.mubr.msk.bf16.gmra.mrb[200].mxu0 %vm1537_vm1, %v17217_v3 }
0x12a5   : > { %12002 = vmatprep.mubr.msk.bf16.mxu0 %vm1537_vm1, %v17239_v49 }
0x12a6   : > { %7538 = vrot.lane.b32.xlu0 %v17177_v6, %s13885_s29  ;;  %v6819_v45 = vpop.permute.xlu0 %6818 }
0x12a7   : > { %7556 = vrot.lane.b32.xlu1 %v17201_v43, %s13885_s29  ;;  %12463 = vmatprep.subr.msk.bf16.mxu0 %vm1537_vm1, %v6819_v45  ;;  %v6860_v57 = vsel %vm1537_vm1, %v6819_v45, 0 }
0x12a8   : > { %12041 = vmatpush3.bf16.xpose.msra.mxu0 %v6860_v57 }
0x12aa   : > { %7542 = vrot.lane.b32.xlu0 %v17217_v3, %s13885_s29 }
0x12ab   : > { %7560 = vrot.lane.b32.xlu1 %v17241_v2, %s13885_s29 }
0x12ac   : > { %12003 = vmatmul.mubr.msk.bf16.gmra.mrb[204].mxu0 %vm1537_vm1, %v17259_v61 }
0x12ae   : > { %7546 = vrot.lane.b32.xlu0 %v17259_v61, %s13885_s29 }
0x12af   : > { %7532 = vrot.lane.b32.xlu1 %v17114_v55, %s13885_s29 }
0x12b2   : > { %7139 = vrot.lane.b32.xlu0 %v17139_v9, %s13884_s13 }
0x12b3   : > { %7536 = vrot.lane.b32.xlu1 %v17159_v13, %s13885_s29 }
0x12b6   : > { %7145 = vrot.lane.b32.xlu0 %v17223_v26, %s13884_s13 }
0x12b7   : > { %7540 = vrot.lane.b32.xlu1 %v17199_v22, %s13885_s29 }
0x12ba   : > { %7147 = vrot.lane.b32.xlu0 %v17219_v36, %s13884_s13 }
0x12bb   : > { %7544 = vrot.lane.b32.xlu1 %v17239_v49, %s13885_s29  ;;  %v6821_v12 = vpop.permute.xlu1 %6820 }
0x12bc   : > { %12464 = vmatprep.subr.msk.bf16.mxu0 %vm1537_vm1, %v6821_v12  ;;  %v6863_v1 = vsel %vm1537_vm1, %v6821_v12, 0 }
0x12bd   : > { %12043 = vmatpush3.bf16.xpose.msra.mxu0 %v6863_v1 }
0x12be   : > { %7151 = vrot.lane.b32.xlu0 %v17261_v19, %s13884_s13 }
0x12bf   : > { %7137 = vrot.lane.b32.xlu1 %v17143_v29, %s13884_s13 }
0x12c2   : > { %7562 = vrot.lane.b32.xlu0 %v17263_v38, %s13885_s29 }
0x12c3   : > { %7141 = vrot.lane.b32.xlu1 %v17183_v58, %s13884_s13  ;;  %v6823_v32 = vpop.permute.xlu1 %6822 }
0x12c4   : > { %12465 = vmatprep.subr.msk.bf16.mxu0 %vm1537_vm1, %v6823_v32  ;;  %v6866_v14 = vsel %vm1537_vm1, %v6823_v32, 0 }
0x12c5   : > { %12045 = vmatpush3.bf16.xpose.msra.mxu0 %v6866_v14 }
0x12c7   : > { %7143 = vrot.lane.b32.xlu1 %v17179_v33, %s13884_s13 }
0x12cb   : > { %8155 = vrot.lane.b32.xlu1 %v17116_v17, %s13886_s23 }
0x12cf   : > { %7149 = vrot.lane.b32.xlu1 %v17265_v0, %s13884_s13 }
0x12dd   : > { %v6825_v50 = vpop.permute.xlu0 %6824 }
0x12de   : > { %12466 = vmatprep.subr.msk.bf16.mxu0 %vm1537_vm1, %v6825_v50  ;;  %v6869_v51 = vsel %vm1537_vm1, %v6825_v50, 0 }
0x12df   : > { %12047 = vmatpush3.bf16.xpose.msra.mxu0 %v6869_v51 }
0x12ec   : > { %v6827_v42 = vpop.permute.xlu1 %6826 }
0x12ed   : > { %12467 = vmatprep.subr.msk.bf16.mxu0 %vm1537_vm1, %v6827_v42  ;;  %v6872_v63 = vsel %vm1537_vm1, %v6827_v42, 0 }
0x12ee   : > { %12049 = vmatpush3.bf16.xpose.msra.mxu0 %v6872_v63 }
0x12f4   : > { %v6829_v37 = vpop.permute.xlu0 %6828 }
0x12f5   : > { %12468 = vmatprep.subr.msk.bf16.mxu0 %vm1537_vm1, %v6829_v37  ;;  %v6875_v17 = vsel %vm1537_vm1, %v6829_v37, 0 }
0x12f6   : > { %12051 = vmatpush3.bf16.xpose.msra.mxu0 %v6875_v17 }
0x12f8   : > { %v6793_v28 = vpop.permute.xlu0 %6792 }
0x12f9   : > { %12054 = vmatprep.mubr.msk.bf16.mxu0 %vm1537_vm1, %v6793_v28 }
0x12fc   : > { %v6797_v4 = vpop.permute.xlu0 %6796 }
0x12fd   : > { %v6831_v21 = vpop.permute.xlu1 %6830 }
0x12fe   : > { %12469 = vmatprep.subr.msk.bf16.mxu0 %vm1537_vm1, %v6831_v21  ;;  %v6878_v5 = vsel %vm1537_vm1, %v6831_v21, 0 }
0x12ff   : > { %12053 = vmatpush3.bf16.xpose.msra.mxu0 %v6878_v5 }
0x1300   : > { %v6801_v23 = vpop.permute.xlu0 %6800 }
0x1301   : > { %v6795_v47 = vpop.permute.xlu1 %6794 }
0x1304   : > { %v6805_v45 = vpop.permute.xlu0 %6804 }
0x1305   : > { %v6799_v57 = vpop.permute.xlu1 %6798 }
0x1306   : > { %12055 = vmatmul.mubr.msk.bf16.vlgmr.msra.gmra.mrb[208].mxu0 %vm1537_vm1, %v6795_v47 }
0x1307   : > { %12058 = vmatprep.mubr.msk.bf16.mxu0 %vm1537_vm1, %v6797_v4 }
0x1308   : > { %v7549_v12 = vpop.permute.xlu0 %7548 }
0x1309   : > { %v6803_v1 = vpop.permute.xlu1 %6802  ;;  %12470 = vmatprep.subr.msk.bf16.mxu0 %vm1537_vm1, %v7549_v12  ;;  %v7589_v32 = vsel %vm1537_vm1, %v7549_v12, 0 }
0x130a   : > { %12143 = vmatpush3.bf16.xpose.msra.mxu0 %v7589_v32 }
0x130c   : > { %v7553_v14 = vpop.permute.xlu0 %7552 }
0x130d   : > { %v6807_v50 = vpop.permute.xlu1 %6806  ;;  %v7595_v21 = vsel %vm1537_vm1, %v7553_v14, 0 }
0x130e   : > { %12059 = vmatmul.mubr.msk.bf16.gmra.mrb[212].mxu0 %vm1537_vm1, %v6799_v57 }
0x130f   : > { %12062 = vmatprep.mubr.msk.bf16.mxu0 %vm1537_vm1, %v6801_v23 }
0x1310   : > { %v7559_v51 = vpop.permute.xlu0 %7558 }
0x1311   : > { %v7551_v42 = vpop.permute.xlu1 %7550 }
0x1312   : > { %12471 = vmatprep.subr.msk.bf16.mxu0 %vm1537_vm1, %v7551_v42  ;;  %v7592_v63 = vsel %vm1537_vm1, %v7551_v42, 0 }
0x1313   : > { %12145 = vmatpush3.bf16.xpose.msra.mxu0 %v7592_v63 }
0x1314   : > { %12472 = vmatprep.subr.msk.bf16.mxu0 %vm1537_vm1, %v7553_v14  ;;  %v7535_v37 = vpop.permute.xlu0 %7534 }
0x1315   : > { %v7555_v17 = vpop.permute.xlu1 %7554 }
0x1316   : > { %12063 = vmatmul.mubr.msk.bf16.gmra.mrb[216].mxu0 %vm1537_vm1, %v6803_v1  ;;  %v7598_v12 = vsel %vm1537_vm1, %v7555_v17, 0 }
0x1317   : > { %12066 = vmatprep.mubr.msk.bf16.mxu0 %vm1537_vm1, %v6805_v45 }
0x1318   : > { %v7539_v28 = vpop.permute.xlu0 %7538 }
0x1319   : > { %v7557_v4 = vpop.permute.xlu1 %7556 }
0x131a   : > { %v7601_v42 = vsel %vm1537_vm1, %v7557_v4, 0 }
0x131b   : > { %12147 = vmatpush3.bf16.xpose.msra.mxu0 %v7595_v21 }
0x131c   : > { %12473 = vmatprep.subr.msk.bf16.mxu0 %vm1537_vm1, %v7555_v17  ;;  %v7543_v5 = vpop.permute.xlu0 %7542  ;;  %v7604_v17 = vsel %vm1537_vm1, %v7559_v51, 0 }
0x131d   : > { %v7561_v23 = vpop.permute.xlu1 %7560 }
0x131e   : > { %12067 = vmatmul.mubr.msk.bf16.gmra.mrb[220].mxu0 %vm1537_vm1, %v6807_v50 }
0x1320   : > { %v7547_v47 = vpop.permute.xlu0 %7546 }
0x1321   : > { %v7533_v57 = vpop.permute.xlu1 %7532 }
0x1322   : > { %12158 = vmatprep.mubr.msk.bf16.mxu0 %vm1537_vm1, %v7533_v57 }
0x1323   : > { %12149 = vmatpush3.bf16.xpose.msra.mxu0 %v7598_v12 }
0x1324   : > { %12474 = vmatprep.subr.msk.bf16.mxu0 %vm1537_vm1, %v7557_v4  ;;  %v17389_v45 = vpop.permute.xlu0 %7139  ;;  %v7607_v4 = vsel %vm1537_vm1, %v7561_v23, 0 }
0x1325   : > { %v7537_v1 = vpop.permute.xlu1 %7536 }
0x1328   : > { %v17391_v32 = vpop.permute.xlu0 %7145 }
0x1329   : > { %v7541_v14 = vpop.permute.xlu1 %7540 }
0x132b   : > { %12151 = vmatpush3.bf16.xpose.msra.mxu0 %v7601_v42 }
0x132c   : > { %12475 = vmatprep.subr.msk.bf16.mxu0 %vm1537_vm1, %v7559_v51  ;;  %v17395_v63 = vpop.permute.xlu0 %7147 }
0x132d   : > { %v7545_v50 = vpop.permute.xlu1 %7544  ;;  %20011 = vst [vmem:[#allocation72_spill] sm:$0xff] %v17395_v63 }
0x1330   : > { %v17402_v57 = vpop.permute.xlu0 %7151 }
0x1331   : > { %v17397_v21 = vpop.permute.xlu1 %7137  ;;  %20012 = vst [vmem:[#allocation63_spill] sm:$0xff] %v17402_v57 }
0x1332   : > { %12070 = vmatprep.subr.bf16.mxu1 %v17397_v21 }
0x1333   : > { %12153 = vmatpush3.bf16.xpose.msra.mxu0 %v7604_v17 }
0x1334   : > { %12476 = vmatprep.subr.msk.bf16.mxu0 %vm1537_vm1, %v7561_v23  ;;  %v7563_v42 = vpop.permute.xlu0 %7562  ;;  %v17421_v23 = vld [vmem:[%s14642_s20] ss:$0 sm:$0xff] }
0x1335   : > { %v17404_v12 = vpop.permute.xlu1 %7141  ;;  %v7610_v39 = vsel %vm1537_vm1, %v7563_v42, 0 }
0x1339   : > { %v17408_v15 = vpop.permute.xlu1 %7143 }
0x133b   : > { %12155 = vmatpush3.bf16.xpose.msra.mxu0 %v7607_v4 }
0x133c   : > { %12477 = vmatprep.subr.msk.bf16.mxu0 %vm1537_vm1, %v7563_v42 }
0x133d   : > { %v8156_v18 = vpop.permute.xlu1 %8155 }
0x133e   : > { %v8196_v51 = vsel %vm1537_vm1, %v8156_v18, 0 }
0x1341   : > { %v17547_v58 = vpop.permute.xlu1 %7149 }
0x1342   : > { %20013 = vst [vmem:[#allocation73_spill] sm:$0xff] %v17547_v58 }
0x1343   : > { %12157 = vmatpush3.bf16.xpose.msra.mxu0 %v7610_v39 }
0x1344   : > { %12478 = vmatprep.subr.msk.bf16.mxu0 %vm1537_vm1, %v8156_v18 }
0x134a   : > { %12159 = vmatmul.mubr.msk.bf16.vlgmr.msra.gmra.mrb[224].mxu0 %vm1537_vm1, %v7535_v37 }
0x134b   : > { %12162 = vmatprep.mubr.msk.bf16.mxu0 %vm1537_vm1, %v7537_v1  ;;  %12227 = vmatpush3.bf16.xpose.msra.mxu0 %v8196_v51 }
0x1352   : > { %12163 = vmatmul.mubr.msk.bf16.gmra.mrb[228].mxu0 %vm1537_vm1, %v7539_v28 }
0x1353   : > { %12166 = vmatprep.mubr.msk.bf16.mxu0 %vm1537_vm1, %v7541_v14 }
0x135a   : > { %12167 = vmatmul.mubr.msk.bf16.gmra.mrb[232].mxu0 %vm1537_vm1, %v7543_v5 }
0x135b   : > { %12170 = vmatprep.mubr.msk.bf16.mxu0 %vm1537_vm1, %v7545_v50 }
0x1362   : > { %12171 = vmatmul.mubr.msk.bf16.gmra.mrb[236].mxu0 %vm1537_vm1, %v7547_v47 }
0x1367   : > { %v11992_v39 = vpop.f32.mrb[192].mxu0 }
0x1368   : > { %v17424_v37 = vadd.f32 %v17421_v23, %v11992_v39  ;;  %v6464_v18 = vpop.f32.mrb[193].mxu0 }
0x1369   : > { %v11993_v17 = vpop.f32.mrb[194].mxu0  ;;  %v17431_v5 = vadd.f32 %v17421_v23, %v6464_v18 }
0x136a   : > { %6531 = vmax.xlane.f32.xlu0 %v17424_v37  ;;  %v6467_v1 = vpop.f32.mrb[195].mxu0  ;;  %v17436_v14 = vadd.f32 %v17421_v23, %v11993_v17 }
0x136b   : > { %v17428_v28 = vadd.f32 %v17421_v23, %v6467_v1 }
0x136d   : > { %6529 = vmax.xlane.f32.xlu1 %v17428_v28 }
0x136e   : > { %6527 = vmax.xlane.f32.xlu0 %v17431_v5 }
0x136f   : > { %v11996_v47 = vpop.f32.mrb[196].mxu0 }
0x1370   : > { %v6480_v50 = vpop.f32.mrb[197].mxu0  ;;  %v17440_v51 = vadd.f32 %v17421_v23, %v11996_v47 }
0x1371   : > { %v11997_v4 = vpop.f32.mrb[198].mxu0  ;;  %v17444_v18 = vadd.f32 %v17421_v23, %v6480_v50 }
0x1372   : > { %v6483_v42 = vpop.f32.mrb[199].mxu0  ;;  %6533 = vmax.xlane.f32.xlu0 %v17436_v14  ;;  %v17452_v11 = vadd.f32 %v17421_v23, %v11997_v4 }
0x1376   : > { %6539 = vmax.xlane.f32.xlu0 %v17440_v51 }
0x1377   : > { %v12000_v39 = vpop.f32.mrb[200].mxu0 }
0x1378   : > { %v17447_v1 = vadd.f32 %v17421_v23, %v12000_v39  ;;  %v6496_v41 = vpop.f32.mrb[201].mxu0  ;;  %v17460_v39 = vadd.f32 %v17421_v23, %v6483_v42 }
0x1379   : > { %v12001_v17 = vpop.f32.mrb[202].mxu0  ;;  %v17455_v47 = vadd.f32 %v17421_v23, %v6496_v41 }
0x137a   : > { %v6499_v62 = vpop.f32.mrb[203].mxu0  ;;  %6547 = vmax.xlane.f32.xlu1 %v17447_v1  ;;  %6535 = vmax.xlane.f32.xlu0 %v17444_v18  ;;  %v17463_v54 = vadd.f32 %v17421_v23, %v12001_v17 }
0x137b   : > { %v17468_v41 = vadd.f32 %v17421_v23, %v6499_v62 }
0x137e   : > { %6543 = vmax.xlane.f32.xlu1 %v17455_v47  ;;  %6541 = vmax.xlane.f32.xlu0 %v17452_v11 }
0x137f   : > { %v12004_v50 = vpop.f32.mrb[204].mxu0 }
0x1380   : > { %v6512_v53 = vpop.f32.mrb[205].mxu0  ;;  %v17476_v42 = vadd.f32 %v17421_v23, %v12004_v50 }
0x1381   : > { %v12005_v48 = vpop.f32.mrb[206].mxu0  ;;  %v17480_v17 = vadd.f32 %v17421_v23, %v6512_v53 }
0x1382   : > { %v6515_v25 = vpop.f32.mrb[207].mxu0  ;;  %6549 = vmax.xlane.f32.xlu1 %v17463_v54  ;;  %6537 = vmax.xlane.f32.xlu0 %v17460_v39  ;;  %v17471_v4 = vadd.f32 %v17421_v23, %v12005_v48 }
0x1383   : > { %v17484_v62 = vadd.f32 %v17421_v23, %v6515_v25 }
0x1386   : > { %6557 = vmax.xlane.f32.xlu1 %v17471_v4  ;;  %6545 = vmax.xlane.f32.xlu0 %v17468_v41 }
0x138a   : > { %6555 = vmax.xlane.f32.xlu0 %v17476_v42 }
0x138e   : > { %6551 = vmax.xlane.f32.xlu0 %v17480_v17 }
0x1392   : > { %6553 = vmax.xlane.f32.xlu0 %v17484_v62 }
0x13d9   : > { %v12056_v48 = vpop.f32.mrb[208].mxu0 }
0x13da   : > { %v17488_v20 = vadd.f32 %v17421_v23, %v12056_v48  ;;  %v6914_v7 = vpop.f32.mrb[209].mxu0 }
0x13db   : > { %v17491_v50 = vadd.f32 %v17421_v23, %v6914_v7  ;;  %v12057_v59 = vpop.f32.mrb[210].mxu0 }
0x13dc   : > { %6981 = vmax.xlane.f32.xlu1 %v17488_v20  ;;  %v6917_v53 = vpop.f32.mrb[211].mxu0  ;;  %v17496_v35 = vadd.f32 %v17421_v23, %v12057_v59 }
0x13dd   : > { %6977 = vmax.xlane.f32.xlu0 %v17491_v50  ;;  %v17500_v60 = vadd.f32 %v17421_v23, %v6917_v53 }
0x13e0   : > { %6983 = vmax.xlane.f32.xlu1 %v17496_v35 }
0x13e1   : > { %v12060_v25 = vpop.f32.mrb[212].mxu0 }
0x13e2   : > { %v6930_v48 = vpop.f32.mrb[213].mxu0  ;;  %v17507_v44 = vadd.f32 %v17421_v23, %v12060_v25 }
0x13e3   : > { %v12061_v27 = vpop.f32.mrb[214].mxu0  ;;  %v17512_v16 = vadd.f32 %v17421_v23, %v6930_v48 }
0x13e4   : > { %6979 = vmax.xlane.f32.xlu1 %v17500_v60  ;;  %v6933_v7 = vpop.f32.mrb[215].mxu0  ;;  %v17519_v40 = vadd.f32 %v17421_v23, %v12061_v27 }
0x13e5   : > { %v17504_v56 = vadd.f32 %v17421_v23, %v6933_v7 }
0x13e7   : > { %6987 = vmax.xlane.f32.xlu0 %v17504_v56 }
0x13e8   : > { %6989 = vmax.xlane.f32.xlu1 %v17507_v44 }
0x13e9   : > { %v12064_v59 = vpop.f32.mrb[216].mxu0 }
0x13ea   : > { %v6946_v53 = vpop.f32.mrb[217].mxu0  ;;  %v17527_v19 = vadd.f32 %v17421_v23, %v12064_v59 }
0x13eb   : > { %v12065_v30 = vpop.f32.mrb[218].mxu0  ;;  %v17532_v27 = vadd.f32 %v17421_v23, %v6946_v53 }
0x13ec   : > { %v17515_v52 = vadd.f32 %v17421_v23, %v12065_v30  ;;  %6985 = vmax.xlane.f32.xlu1 %v17512_v16  ;;  %v6949_v7 = vpop.f32.mrb[219].mxu0 }
0x13ed   : > { %v17523_v25 = vadd.f32 %v17421_v23, %v6949_v7 }
0x13ee   : > { %6999 = vmax.xlane.f32.xlu0 %v17515_v52 }
0x13f0   : > { %6991 = vmax.xlane.f32.xlu1 %v17519_v40 }
0x13f1   : > { %v12068_v48 = vpop.f32.mrb[220].mxu0 }
0x13f2   : > { %6995 = vmax.xlane.f32.xlu0 %v17523_v25  ;;  %v6962_v30 = vpop.f32.mrb[221].mxu0  ;;  %v17536_v26 = vadd.f32 %v17421_v23, %v12068_v48 }
0x13f3   : > { %v12069_v24 = vpop.f32.mrb[222].mxu0  ;;  %v17540_v59 = vadd.f32 %v17421_v23, %v6962_v30 }
0x13f4   : > { %6997 = vmax.xlane.f32.xlu1 %v17527_v19  ;;  %v6965_v36 = vpop.f32.mrb[223].mxu0 }
0x13f7   : > { %v6532_v7 = vpop.xlane.xlu0 %6531 }
0x13f8   : > { %6993 = vmax.xlane.f32.xlu1 %v17532_v27 }
0x13fa   : > { %v6530_v29 = vpop.xlane.xlu1 %6529 }
0x13fb   : > { %v6528_v9 = vpop.xlane.xlu0 %6527 }
0x13fc   : > { %7005 = vmax.xlane.f32.xlu1 %v17536_v26 }
0x13ff   : > { %v6534_v0 = vpop.xlane.xlu0 %6533 }
0x1400   : > { %7001 = vmax.xlane.f32.xlu1 %v17540_v59  ;;  %v6562_v61 = vsub.f32 %v17436_v14, %v6534_v0 }
0x1402   : > { %v6581_v13 = vmul.f32 1.442695, %v6562_v61 }
0x1403   : > { %v6540_v53 = vpop.xlane.xlu0 %6539 }
0x1404   : > { %13291 = vpow2.f32 %v6581_v13 }
0x1407   : > { %v6536_v33 = vpop.xlane.xlu0 %6535  ;;  %v17550_v30 = vpop.xlane.xlu1 %6547 }
0x1408   : > { %8159 = vrot.lane.b32.xlu0 %v17161_v34, %s13886_s23  ;;  %v6560_v34 = vsub.f32 %v17428_v28, %v6530_v29  ;;  %v6559_v29 = vsub.f32 %v17431_v5, %v6528_v9  ;;  %v6565_v9 = vsub.f32 %v17440_v51, %v6540_v53 }
0x140a   : > { %v6577_v0 = vmul.f32 1.442695, %v6560_v34  ;;  %v6575_v34 = vmul.f32 1.442695, %v6559_v29 }
0x140b   : > { %v6542_v48 = vpop.xlane.xlu0 %6541  ;;  %v17562_v58 = vpop.xlane.xlu1 %6543 }
0x140c   : > { %v6566_v14 = vsub.f32 %v17452_v11, %v6542_v48  ;;  %13293 = vpow2.f32 %v6577_v0 }
0x140e   : > { %v6589_v28 = vmul.f32 1.442695, %v6566_v14 }
0x140f   : > { %v6538_v49 = vpop.xlane.xlu0 %6537  ;;  %v6550_v11 = vpop.xlane.xlu1 %6549 }
0x1410   : > { %v6564_v13 = vsub.f32 %v17460_v39, %v6538_v49  ;;  %v17587_v49 = vpop.eup %13291  ;;  %v6587_v39 = vmul.f32 1.442695, %v6565_v9 }
0x1411   : > { %8157 = vrot.lane.b32.xlu1 %v17141_v46, %s13886_s23  ;;  %v6561_v46 = vsub.f32 %v17424_v37, %v6532_v7 }
0x1412   : > { %v6585_v5 = vmul.f32 1.442695, %v6564_v13 }
0x1413   : > { %v6546_v6 = vpop.xlane.xlu0 %6545 }
0x1414   : > { %v6568_v29 = vsub.f32 %v17468_v41, %v6546_v6 }
0x1416   : > { %v17598_v13 = vpop.eup %13293 }
0x1417   : > { %v6556_v48 = vpop.xlane.xlu0 %6555 }
0x141d   : > { %v17552_v3 = vpop.f32.mrb[224].mxu0 }
0x141e   : > { %20014 = vst [vmem:[#allocation66_spill] sm:$0xff] %v17552_v3  ;;  %v17554_v22 = vpop.f32.mrb[225].mxu0  ;;  %v17566_v3 = vadd.f32 %v17421_v23, %v12069_v24  ;;  %v17580_v24 = vadd.f32 %v17421_v23, %v6965_v36  ;;  %v6563_v36 = vsub.f32 %v17444_v18, %v6536_v33  ;;  %v6569_v33 = vsub.f32 %v17447_v1, %v17550_v30 }
0x141f   : > { %20015 = vst [vmem:[#allocation74_spill] sm:$0xff] %v17554_v22  ;;  %v17556_v57 = vpop.f32.mrb[226].mxu0  ;;  %v6567_v1 = vsub.f32 %v17455_v47, %v17562_v58  ;;  %v6573_v47 = vsub.f32 %v17476_v42, %v6556_v48 }
0x1420   : > { %20016 = vst [vmem:[#allocation35_spill] sm:$0xff] %v17556_v57  ;;  %v17559_v63 = vpop.f32.mrb[227].mxu0  ;;  %v6579_v57 = vmul.f32 1.442695, %v6561_v46  ;;  %v6570_v46 = vsub.f32 %v17463_v54, %v6550_v11  ;;  %v6583_v11 = vmul.f32 1.442695, %v6563_v36 }
0x1421   : > { %v6591_v58 = vmul.f32 1.442695, %v6567_v1 }
0x1422   : > { %13295 = vpow2.f32 %v6579_v57  ;;  %v6552_v57 = vpop.xlane.xlu0 %6551  ;;  %v6597_v53 = vmul.f32 1.442695, %v6570_v46  ;;  %v6595_v46 = vmul.f32 1.442695, %v6569_v33 }
0x1423   : > { %13297 = vpow2.f32 %v6589_v28  ;;  %v6558_v28 = vpop.xlane.xlu1 %6557 }
0x1424   : > { %13299 = vpow2.f32 %v6575_v34  ;;  %v6593_v34 = vmul.f32 1.442695, %v6568_v29  ;;  %v6574_v9 = vsub.f32 %v17471_v4, %v6558_v28 }
0x1425   : > { %v17568_v22 = vpop.f32.mrb[228].mxu0  ;;  %13301 = vpow2.f32 %v6585_v5 }
0x1426   : > { %v17571_v61 = vpop.f32.mrb[229].mxu0  ;;  %13303 = vpow2.f32 %v6587_v39  ;;  %v6554_v5 = vpop.xlane.xlu0 %6553  ;;  %v6605_v4 = vmul.f32 1.442695, %v6574_v9  ;;  %v6571_v9 = vsub.f32 %v17480_v17, %v6552_v57 }
0x1427   : > { %7007 = vmax.xlane.f32.xlu0 %v17566_v3  ;;  %v17574_v37 = vpop.f32.mrb[230].mxu0  ;;  %13305 = vpow2.f32 %v6597_v53  ;;  %v6572_v53 = vsub.f32 %v17484_v62, %v6554_v5  ;;  %v6603_v62 = vmul.f32 1.442695, %v6573_v47 }
0x1428   : > { %20017 = vst [vmem:[#allocation75_spill] sm:$0xff] %v17574_v37  ;;  %v17577_v7 = vpop.f32.mrb[231].mxu0  ;;  %13307 = vpow2.f32 %v6583_v11  ;;  %v6599_v48 = vmul.f32 1.442695, %v6571_v9 }
0x1429   : > { %20018 = vst [vmem:[#allocation76_spill] sm:$0xff] %v17577_v7  ;;  %13309 = vpow2.f32 %v6593_v34  ;;  %v6601_v33 = vmul.f32 1.442695, %v6572_v53 }
0x142a   : > { %13311 = vpow2.f32 %v6595_v46 }
0x142b   : > { %7003 = vmax.xlane.f32.xlu0 %v17580_v24  ;;  %13313 = vpow2.f32 %v6605_v4 }
0x142c   : > { %v17603_v18 = vpop.eup %13295  ;;  %13315 = vpow2.f32 %v6591_v58 }
0x142d   : > { %v17585_v0 = vpop.f32.mrb[232].mxu0  ;;  %v17609_v41 = vpop.eup %13297  ;;  %13317 = vpow2.f32 %v6601_v33 }
0x142e   : > { %20019 = vst [vmem:[#allocation42_spill] sm:$0xff] %v17585_v0  ;;  %v17590_v14 = vpop.f32.mrb[233].mxu0  ;;  %v17618_v36 = vpop.eup %13299  ;;  %13319 = vpow2.f32 %v6603_v62 }
0x142f   : > { %6613 = vadd.xlane.f32.xlu0 %v17587_v49  ;;  %v17593_v51 = vpop.f32.mrb[234].mxu0  ;;  %v17624_v28 = vpop.eup %13301  ;;  %13321 = vpow2.f32 %v6599_v48 }
0x1430   : > { %20020 = vst [vmem:[#allocation40_spill] sm:$0xff] %v17593_v51  ;;  %v17596_v54 = vpop.f32.mrb[235].mxu0  ;;  %v17628_v11 = vpop.eup %13303 }
0x1431   : > { %20021 = vst [vmem:[#allocation39_spill] sm:$0xff] %v17596_v54  ;;  %v17631_v34 = vpop.eup %13305 }
0x1432   : > { %v17635_v5 = vpop.eup %13307 }
0x1433   : > { %6609 = vadd.xlane.f32.xlu0 %v17598_v13  ;;  %v17638_v42 = vpop.eup %13309 }
0x1434   : > { %v17641_v46 = vpop.eup %13311 }
0x1435   : > { %6611 = vadd.xlane.f32.xlu1 %v17603_v18  ;;  %v17607_v6 = vpop.f32.mrb[236].mxu0  ;;  %v17644_v1 = vpop.eup %13313 }
0x1436   : > { %20022 = vst [vmem:[#allocation41_spill] sm:$0xff] %v17607_v6  ;;  %v17613_v30 = vpop.f32.mrb[237].mxu0  ;;  %v17647_v17 = vpop.eup %13315 }
0x1437   : > { %20023 = vst [vmem:[#allocation44_spill] sm:$0xff] %v17613_v30  ;;  %v17615_v39 = vpop.f32.mrb[238].mxu0  ;;  %6621 = vadd.xlane.f32.xlu0 %v17609_v41  ;;  %v17650_v57 = vpop.eup %13317 }
0x1438   : > { %20024 = vst [vmem:[#allocation46_spill] sm:$0xff] %v17615_v39  ;;  %v17621_v29 = vpop.f32.mrb[239].mxu0  ;;  %v17653_v4 = vpop.eup %13319 }
0x1439   : > { %20025 = vst [vmem:[#allocation43_spill] sm:$0xff] %v17621_v29  ;;  %6607 = vadd.xlane.f32.xlu1 %v17618_v36  ;;  %v17656_v53 = vpop.eup %13321 }
0x143b   : > { %6617 = vadd.xlane.f32.xlu0 %v17624_v28 }
0x143d   : > { %6619 = vadd.xlane.f32.xlu1 %v17628_v11 }
0x143f   : > { %6629 = vadd.xlane.f32.xlu0 %v17631_v34 }
0x1441   : > { %6615 = vadd.xlane.f32.xlu1 %v17635_v5 }
0x1443   : > { %6625 = vadd.xlane.f32.xlu0 %v17638_v42 }
0x1445   : > { %6627 = vadd.xlane.f32.xlu1 %v17641_v46 }
0x1447   : > { %6637 = vadd.xlane.f32.xlu0 %v17644_v1 }
0x1449   : > { %6623 = vadd.xlane.f32.xlu1 %v17647_v17 }
0x144b   : > { %6633 = vadd.xlane.f32.xlu0 %v17650_v57 }
0x144d   : > { %6635 = vadd.xlane.f32.xlu1 %v17653_v4 }
0x1451   : > { %6631 = vadd.xlane.f32.xlu1 %v17656_v53 }
0x1469   : > { %v6982_v58 = vpop.xlane.xlu1 %6981 }
0x146a   : > { %v7011_v47 = vsub.f32 %v17488_v20, %v6982_v58  ;;  %v6978_v33 = vpop.xlane.xlu0 %6977 }
0x146b   : > { %v7009_v62 = vsub.f32 %v17491_v50, %v6978_v33 }
0x146c   : > { %v7029_v9 = vmul.f32 1.442695, %v7011_v47 }
0x146d   : > { %v6984_v48 = vpop.xlane.xlu1 %6983  ;;  %v7025_v39 = vmul.f32 1.442695, %v7009_v62 }
0x146e   : > { %13323 = vpow2.f32 %v7029_v9  ;;  %v7012_v29 = vsub.f32 %v17496_v35, %v6984_v48 }
0x146f   : > { %13325 = vpow2.f32 %v7025_v39 }
0x1470   : > { %v7031_v30 = vmul.f32 1.442695, %v7012_v29 }
0x1471   : > { %v6980_v6 = vpop.xlane.xlu1 %6979 }
0x1472   : > { %v7010_v51 = vsub.f32 %v17500_v60, %v6980_v6  ;;  %13327 = vpow2.f32 %v7031_v30 }
0x1474   : > { %v6988_v54 = vpop.xlane.xlu0 %6987  ;;  %v7027_v37 = vmul.f32 1.442695, %v7010_v51 }
0x1475   : > { %v7014_v0 = vsub.f32 %v17504_v56, %v6988_v54  ;;  %v6990_v7 = vpop.xlane.xlu1 %6989 }
0x1476   : > { %v7015_v20 = vsub.f32 %v17507_v44, %v6990_v7  ;;  %13329 = vpow2.f32 %v7027_v37 }
0x1477   : > { %v7035_v47 = vmul.f32 1.442695, %v7014_v0 }
0x1478   : > { %v17665_v50 = vpop.eup %13323  ;;  %v7037_v58 = vmul.f32 1.442695, %v7015_v20 }
0x1479   : > { %7061 = vadd.xlane.f32.xlu0 %v17665_v50  ;;  %v6986_v35 = vpop.xlane.xlu1 %6985  ;;  %v17669_v6 = vpop.eup %13325 }
0x147a   : > { %13331 = vpow2.f32 %v7037_v58  ;;  %v7013_v39 = vsub.f32 %v17512_v16, %v6986_v35 }
0x147b   : > { %v7000_v60 = vpop.xlane.xlu0 %6999  ;;  %13333 = vpow2.f32 %v7035_v47 }
0x147c   : > { %v7033_v51 = vmul.f32 1.442695, %v7013_v39  ;;  %v17673_v37 = vpop.eup %13327 }
0x147d   : > { %7057 = vadd.xlane.f32.xlu0 %v17669_v6  ;;  %v6992_v56 = vpop.xlane.xlu1 %6991 }
0x147e   : > { %13335 = vpow2.f32 %v7033_v51  ;;  %v7016_v44 = vsub.f32 %v17519_v40, %v6992_v56  ;;  %v7020_v40 = vsub.f32 %v17515_v52, %v7000_v60 }
0x147f   : > { %v6996_v7 = vpop.xlane.xlu0 %6995 }
0x1480   : > { %v7039_v0 = vmul.f32 1.442695, %v7016_v44  ;;  %v7018_v54 = vsub.f32 %v17523_v25, %v6996_v7  ;;  %v17678_v33 = vpop.eup %13329  ;;  %v7047_v47 = vmul.f32 1.442695, %v7020_v40 }
0x1481   : > { %7063 = vadd.xlane.f32.xlu0 %v17673_v37  ;;  %v6998_v16 = vpop.xlane.xlu1 %6997 }
0x1482   : > { %13337 = vpow2.f32 %v7039_v0  ;;  %v7043_v30 = vmul.f32 1.442695, %v7018_v54  ;;  %v7019_v29 = vsub.f32 %v17527_v19, %v6998_v16 }
0x1483   : > { %v8160_v54 = vpop.permute.xlu0 %8159 }
0x1484   : > { %v17680_v62 = vpop.eup %13331  ;;  %13339 = vpow2.f32 %v7043_v30  ;;  %v7045_v9 = vmul.f32 1.442695, %v7019_v29  ;;  %v8202_v29 = vsel %vm1537_vm1, %v8160_v54, 0 }
0x1485   : > { %7059 = vadd.xlane.f32.xlu0 %v17678_v33  ;;  %7069 = vadd.xlane.f32.xlu1 %v17680_v62  ;;  %v6994_v25 = vpop.xlane.xlu1 %6993  ;;  %v17686_v20 = vpop.eup %13333 }
0x1486   : > { %13341 = vpow2.f32 %v7045_v9  ;;  %v7017_v48 = vsub.f32 %v17532_v27, %v6994_v25 }
0x1488   : > { %v17688_v58 = vpop.eup %13335  ;;  %v7041_v19 = vmul.f32 1.442695, %v7017_v48 }
0x1489   : > { %7067 = vadd.xlane.f32.xlu0 %v17686_v20  ;;  %7065 = vadd.xlane.f32.xlu1 %v17688_v58  ;;  %v7006_v35 = vpop.xlane.xlu1 %7005 }
0x148a   : > { %13343 = vpow2.f32 %v7041_v19  ;;  %v7023_v52 = vsub.f32 %v17536_v26, %v7006_v35 }
0x148b   : > { %13345 = vpow2.f32 %v7047_v47 }
0x148c   : > { %v17693_v39 = vpop.eup %13337  ;;  %v7053_v60 = vmul.f32 1.442695, %v7023_v52 }
0x148d   : > { %7071 = vadd.xlane.f32.xlu1 %v17693_v39  ;;  %v7002_v27 = vpop.xlane.xlu1 %7001 }
0x148e   : > { %v17696_v51 = vpop.eup %13339  ;;  %13347 = vpow2.f32 %v7053_v60  ;;  %v7021_v56 = vsub.f32 %v17540_v59, %v7002_v27 }
0x148f   : > { %7075 = vadd.xlane.f32.xlu0 %v17696_v51 }
0x1490   : > { %v17700_v44 = vpop.eup %13341  ;;  %v7049_v7 = vmul.f32 1.442695, %v7021_v56 }
0x1491   : > { %7077 = vadd.xlane.f32.xlu1 %v17700_v44  ;;  %v8158_v26 = vpop.permute.xlu1 %8157 }
0x1492   : > { %13349 = vpow2.f32 %v7049_v7  ;;  %12479 = vmatprep.subr.msk.bf16.mxu0 %vm1537_vm1, %v8158_v26  ;;  %v8199_v0 = vsel %vm1537_vm1, %v8158_v26, 0 }
0x1493   : > { %12229 = vmatpush3.bf16.xpose.msra.mxu0 %v8199_v0 }
0x1494   : > { %v17705_v16 = vpop.eup %13343  ;;  %12480 = vmatprep.subr.msk.bf16.mxu0 %vm1537_vm1, %v8160_v54 }
0x1495   : > { %7073 = vadd.xlane.f32.xlu1 %v17705_v16  ;;  %v17709_v59 = vpop.eup %13345 }
0x1498   : > { %v17711_v30 = vpop.eup %13347 }
0x1499   : > { %7079 = vadd.xlane.f32.xlu1 %v17709_v59  ;;  %7085 = vadd.xlane.f32.xlu0 %v17711_v30 }
0x149b   : > { %12231 = vmatpush3.bf16.xpose.msra.mxu0 %v8202_v29 }
0x149c   : > { %v17716_v9 = vpop.eup %13349 }
0x149d   : > { %7081 = vadd.xlane.f32.xlu1 %v17716_v9 }
0x14af   : > { %8163 = vrot.lane.b32.xlu0 %v17201_v43, %s13886_s23 }
0x14b3   : > { %8167 = vrot.lane.b32.xlu0 %v17241_v2, %s13886_s23 }
0x14b4   : > { %v7008_v40 = vpop.xlane.xlu0 %7007 }
0x14b5   : > { %v7024_v25 = vsub.f32 %v17566_v3, %v7008_v40 }
0x14b7   : > { %v7055_v48 = vmul.f32 1.442695, %v7024_v25  ;;  %8139 = vrot.lane.b32.xlu0 %v17114_v55, %s13886_s23 }
0x14b8   : > { %v7004_v19 = vpop.xlane.xlu0 %7003 }
0x14b9   : > { %13351 = vpow2.f32 %v7055_v48  ;;  %v7022_v27 = vsub.f32 %v17580_v24, %v7004_v19 }
0x14bb   : > { %v7051_v2 = vmul.f32 1.442695, %v7022_v27 }
0x14bc   : > { %v6614_v47 = vpop.xlane.xlu0 %6613 }
0x14c0   : > { %v6610_v35 = vpop.xlane.xlu0 %6609 }
0x14c2   : > { %v6612_v52 = vpop.xlane.xlu1 %6611 }
0x14c3   : > { %v17726_v60 = vpop.eup %13351  ;;  %13353 = vrcp.f32 %v6612_v52 }
0x14c4   : > { %v6622_v43 = vpop.xlane.xlu0 %6621  ;;  %7087 = vadd.xlane.f32.xlu1 %v17726_v60  ;;  %13355 = vrcp.f32 %v6610_v35 }
0x14c5   : > { %13357 = vrcp.f32 %v6614_v47 }
0x14c6   : > { %v6608_v3 = vpop.xlane.xlu1 %6607 }
0x14c7   : > { %13359 = vrcp.f32 %v6608_v3 }
0x14c8   : > { %v6618_v56 = vpop.xlane.xlu0 %6617  ;;  %13361 = vpow2.f32 %v7051_v2 }
0x14ca   : > { %v6620_v55 = vpop.xlane.xlu1 %6619 }
0x14cb   : > { %13363 = vrcp.f32 %v6620_v55 }
0x14cc   : > { %v6630_v7 = vpop.xlane.xlu0 %6629  ;;  %13365 = vrcp.f32 %v6618_v56 }
0x14cd   : > { %v13354_v26 = vpop.eup %13353  ;;  %13367 = vrcp.f32 %v6622_v43 }
0x14ce   : > { %v6616_v0 = vpop.xlane.xlu1 %6615  ;;  %v13356_v54 = vpop.eup %13355  ;;  %v6657_v25 = vmul.f32 %v13354_v26, %v17603_v18 }
0x14cf   : > { %13369 = vrcp.f32 %v6616_v0  ;;  %v13358_v24 = vpop.eup %13357  ;;  %v6656_v47 = vmul.f32 %v13356_v54, %v17598_v13 }
0x14d0   : > { %v6626_v29 = vpop.xlane.xlu0 %6625  ;;  %v6658_v35 = vmul.f32 %v13358_v24, %v17587_v49 }
0x14d1   : > { %v13360_v40 = vpop.eup %13359 }
0x14d2   : > { %v6628_v48 = vpop.xlane.xlu1 %6627  ;;  %v6655_v19 = vmul.f32 %v13360_v40, %v17618_v36  ;;  %v17734_v3 = vpop.eup %13361  ;;  %v6672_v43 = vpack.c.bf16 %v6658_v35, %v6657_v25  ;;  %v20028_v35 = vld [vmem:[#allocation34_spill] sm:$0xff] }
0x14d3   : > { %13371 = vrcp.f32 %v6628_v48 }
0x14d4   : > { %v6638_v52 = vpop.xlane.xlu0 %6637  ;;  %v6671_v27 = vpack.c.bf16 %v6656_v47, %v6655_v19  ;;  %13373 = vrcp.f32 %v6626_v29 }
0x14d5   : > { %8161 = vrot.lane.b32.xlu1 %v17181_v10, %s13886_s23  ;;  %v13364_v2 = vpop.eup %13363  ;;  %13375 = vrcp.f32 %v6630_v7 }
0x14d6   : > { %7083 = vadd.xlane.f32.xlu0 %v17734_v3  ;;  %12022 = vmatprep.mubr.bf16.mxu1 %v6671_v27  ;;  %v6624_v18 = vpop.xlane.xlu1 %6623  ;;  %v13366_v36 = vpop.eup %13365  ;;  %v6661_v10 = vmul.f32 %v13364_v2, %v17628_v11  ;;  %v20029_v27 = vld [vmem:[#allocation73_spill] sm:$0xff] }
0x14d7   : > { %13377 = vrcp.f32 %v6624_v18  ;;  %12023 = vmatmul.mubr.bf16.vlgmr.msra.gmra.mrb[192].mxu1 %v6672_v43  ;;  %v13368_v49 = vpop.eup %13367  ;;  %v6660_v26 = vmul.f32 %v13366_v36, %v17624_v28  ;;  %v20032_v18 = vld [vmem:[#allocation66_spill] sm:$0xff] }
0x14d8   : > { %12071 = vmatpush3.bf16.msra.mxu1 %v17397_v21  ;;  %v6634_v56 = vpop.xlane.xlu0 %6633  ;;  %v6662_v0 = vmul.f32 %v13368_v49, %v17609_v41  ;;  %v17788_v36 = vadd.f32 %v17421_v23, %v20032_v18  ;;  %v17815_v18 = vadd.f32 %v17421_v23, %v17571_v61  ;;  %v20037_v61 = vld [vmem:[#allocation42_spill] sm:$0xff] }
0x14d9   : > { %v13370_v13 = vpop.eup %13369  ;;  %12072 = vmatprep.subr.bf16.mxu1 %v17389_v45  ;;  %8165 = vrot.lane.b32.xlu1 %v17221_v31, %s13886_s23 }
0x14da   : > { %v6636_v55 = vpop.xlane.xlu1 %6635  ;;  %v6659_v7 = vmul.f32 %v13370_v13, %v17635_v5  ;;  %v6674_v31 = vpack.c.bf16 %v6662_v0, %v6661_v10  ;;  %v20033_v13 = vld [vmem:[#allocation35_spill] sm:$0xff] }
0x14db   : > { %13379 = vrcp.f32 %v6636_v55  ;;  %v20034_v0 = vld [vmem:[#allocation67_spill] sm:$0xff] }
0x14dc   : > { %12073 = vmatpush3.bf16.msra.mxu1 %v17389_v45  ;;  %v6673_v21 = vpack.c.bf16 %v6660_v26, %v6659_v7  ;;  %13381 = vrcp.f32 %v6634_v56 }
0x14dd   : > { %12074 = vmatprep.subr.bf16.mxu1 %v17404_v12  ;;  %8169 = vrot.lane.b32.xlu1 %v17263_v38, %s13886_s23  ;;  %v13372_v11 = vpop.eup %13371  ;;  %13383 = vrcp.f32 %v6638_v52 }
0x14de   : > { %12026 = vmatprep.mubr.bf16.mxu1 %v6673_v21  ;;  %v6632_v54 = vpop.xlane.xlu1 %6631  ;;  %v13374_v5 = vpop.eup %13373  ;;  %v6665_v45 = vmul.f32 %v13372_v11, %v17641_v46 }
0x14df   : > { %13385 = vrcp.f32 %v6632_v54  ;;  %12027 = vmatmul.mubr.bf16.gmra.mrb[196].mxu1 %v6674_v31  ;;  %v13376_v28 = vpop.eup %13375  ;;  %v6664_v24 = vmul.f32 %v13374_v5, %v17638_v42  ;;  %v20027_v42 = vld [vmem:[#allocation72_spill] sm:$0xff] }
0x14e0   : > { %12075 = vmatpush3.bf16.msra.mxu1 %v17404_v12  ;;  %v6666_v29 = vmul.f32 %v13376_v28, %v17631_v34  ;;  %v20026_v12 = vld [vmem:[#allocation31_spill] sm:$0xff] }
0x14e1   : > { %v13378_v41 = vpop.eup %13377  ;;  %12076 = vmatprep.subr.bf16.mxu1 %v17408_v15  ;;  %8141 = vrot.lane.b32.xlu1 %v17137_v8, %s13886_s23 }
0x14e2   : > { %v6663_v38 = vmul.f32 %v13378_v41, %v17647_v17  ;;  %v6676_v25 = vpack.c.bf16 %v6666_v29, %v6665_v45 }
0x14e4   : > { %12077 = vmatpush3.bf16.msra.mxu1 %v17408_v15  ;;  %v6675_v40 = vpack.c.bf16 %v6664_v24, %v6663_v38 }
0x14e5   : > { %12078 = vmatprep.subr.bf16.mxu1 %v17391_v32  ;;  %8145 = vrot.lane.b32.xlu1 %v20026_v12, %s13886_s23  ;;  %v13380_v48 = vpop.eup %13379 }
0x14e6   : > { %12030 = vmatprep.mubr.bf16.mxu1 %v6675_v40  ;;  %v13382_v8 = vpop.eup %13381  ;;  %v6669_v34 = vmul.f32 %v13380_v48, %v17653_v4  ;;  %v20030_v4 = vld [vmem:[#allocation63_spill] sm:$0xff] }
0x14e7   : > { %12031 = vmatmul.mubr.bf16.gmra.mrb[200].mxu1 %v6676_v25  ;;  %v13384_v46 = vpop.eup %13383  ;;  %v6668_v19 = vmul.f32 %v13382_v8, %v17650_v57 }
0x14e8   : > { %12079 = vmatpush3.bf16.msra.mxu1 %v17391_v32  ;;  %v6670_v47 = vmul.f32 %v13384_v46, %v17644_v1  ;;  %v17778_v1 = vadd.f32 %v17421_v23, %v17559_v63  ;;  %v17793_v63 = vadd.f32 %v17421_v23, %v20033_v13 }
0x14e9   : > { %v13386_v17 = vpop.eup %13385  ;;  %12080 = vmatprep.subr.bf16.mxu1 %v20027_v42 }
0x14ea   : > { %v6667_v15 = vmul.f32 %v13386_v17, %v17656_v53  ;;  %v6678_v32 = vpack.c.bf16 %v6670_v47, %v6669_v34  ;;  %v20031_v53 = vld [vmem:[#allocation74_spill] sm:$0xff] }
0x14eb   : > { %v17782_v43 = vadd.f32 %v17421_v23, %v20031_v53 }
0x14ec   : > { %12081 = vmatpush3.bf16.msra.mxu1 %v20027_v42  ;;  %8143 = vrot.lane.b32.xlu0 %v20028_v35, %s13886_s23  ;;  %v6677_v52 = vpack.c.bf16 %v6668_v19, %v6667_v15  ;;  %v20035_v19 = vld [vmem:[#allocation68_spill] sm:$0xff] }
0x14ed   : > { %12082 = vmatprep.subr.bf16.mxu1 %v20029_v27 }
0x14ee   : > { %12034 = vmatprep.mubr.bf16.mxu1 %v6677_v52 }
0x14ef   : > { %12035 = vmatmul.mubr.bf16.gmra.mrb[204].mxu1 %v6678_v32 }
0x14f0   : > { %12083 = vmatpush3.bf16.msra.mxu1 %v20029_v27 }
0x14f1   : > { %12084 = vmatprep.subr.bf16.mxu1 %v20030_v4 }
0x14f4   : > { %12085 = vmatpush3.bf16.msra.mxu1 %v20030_v4 }
0x1506   : > { %v7062_v57 = vpop.xlane.xlu0 %7061 }
0x1509   : > { %7711 = vmax.xlane.f32.xlu1 %v17778_v1 }
0x150a   : > { %v7058_v2 = vpop.xlane.xlu0 %7057 }
0x150b   : > { %7709 = vmax.xlane.f32.xlu0 %v17782_v43 }
0x150e   : > { %v7064_v49 = vpop.xlane.xlu0 %7063 }
0x150f   : > { %7713 = vmax.xlane.f32.xlu0 %v17788_v36  ;;  %13387 = vrcp.f32 %v7064_v49  ;;  %v17834_v49 = vadd.f32 %v17421_v23, %v20037_v61 }
0x1510   : > { %13389 = vrcp.f32 %v7058_v2 }
0x1511   : > { %13391 = vrcp.f32 %v7062_v57 }
0x1512   : > { %v7060_v10 = vpop.xlane.xlu0 %7059  ;;  %v7070_v56 = vpop.xlane.xlu1 %7069 }
0x1513   : > { %13393 = vrcp.f32 %v7060_v10  ;;  %7715 = vmax.xlane.f32.xlu0 %v17793_v63  ;;  %v20039_v10 = vld [vmem:[#allocation39_spill] sm:$0xff] }
0x1516   : > { %v7068_v55 = vpop.xlane.xlu0 %7067  ;;  %v7066_v7 = vpop.xlane.xlu1 %7065 }
0x1517   : > { %13395 = vrcp.f32 %v7068_v55 }
0x1518   : > { %13397 = vrcp.f32 %v7066_v7  ;;  %v20040_v7 = vld [vmem:[#allocation40_spill] sm:$0xff] }
0x1519   : > { %13399 = vrcp.f32 %v7070_v56  ;;  %v13388_v26 = vpop.eup %13387  ;;  %v17845_v56 = vadd.f32 %v17421_v23, %v20039_v10  ;;  %v20053_v10 = vld [vmem:[#allocation69_spill] sm:$0xff] }
0x151a   : > { %8147 = vrot.lane.b32.xlu1 %v20034_v0, %s13886_s23  ;;  %v7072_v21 = vpop.xlane.xlu1 %7071  ;;  %v13390_v31 = vpop.eup %13389  ;;  %v7108_v5 = vmul.f32 %v13388_v26, %v17673_v37  ;;  %v17850_v26 = vadd.f32 %v17421_v23, %v20040_v7 }
0x151b   : > { %13401 = vrcp.f32 %v7072_v21  ;;  %v13392_v11 = vpop.eup %13391  ;;  %v7105_v45 = vmul.f32 %v13390_v31, %v17669_v6  ;;  %v20041_v31 = vld [vmem:[#allocation71_spill] sm:$0xff] }
0x151c   : > { %v7076_v28 = vpop.xlane.xlu0 %7075  ;;  %v7107_v24 = vmul.f32 %v13392_v11, %v17665_v50 }
0x151d   : > { %v13394_v54 = vpop.eup %13393  ;;  %13403 = vrcp.f32 %v7076_v28  ;;  %v20042_v28 = vld [vmem:[#allocation64_spill] sm:$0xff] }
0x151e   : > { %v7078_v41 = vpop.xlane.xlu1 %7077  ;;  %v7106_v38 = vmul.f32 %v13394_v54, %v17678_v33  ;;  %v7122_v12 = vpack.c.bf16 %v7108_v5, %v7107_v24 }
0x1520   : > { %v7121_v29 = vpack.c.bf16 %v7106_v38, %v7105_v45 }
0x1521   : > { %v13396_v40 = vpop.eup %13395 }
0x1522   : > { %v13398_v25 = vpop.eup %13397  ;;  %12086 = vmatprep.mubr.bf16.mxu1 %v7121_v29  ;;  %v7074_v48 = vpop.xlane.xlu1 %7073  ;;  %v7110_v8 = vmul.f32 %v13396_v40, %v17686_v20 }
0x1523   : > { %v13400_v46 = vpop.eup %13399  ;;  %13405 = vrcp.f32 %v7074_v48  ;;  %12087 = vmatmul.mubr.bf16.vlgmr.msra.gmra.mrb[208].mxu1 %v7122_v12  ;;  %v7109_v37 = vmul.f32 %v13398_v25, %v17688_v58 }
0x1524   : > { %13407 = vrcp.f32 %v7078_v41  ;;  %v7111_v50 = vmul.f32 %v13400_v46, %v17680_v62 }
0x1525   : > { %v13402_v17 = vpop.eup %13401  ;;  %v7123_v6 = vpack.c.bf16 %v7110_v8, %v7109_v37  ;;  %v12723_v37 = vld [vmem:[#allocation5 + $0x50] sm:$0xff]  }
0x1526   : > { %v7086_v33 = vpop.xlane.xlu0 %7085  ;;  %v7080_v42 = vpop.xlane.xlu1 %7079  ;;  %v7112_v34 = vmul.f32 %v13402_v17, %v17693_v39  ;;  %12102 = vmatprep.subr.bf16.mxu1 %v12723_v37 }
0x1527   : > { %12090 = vmatprep.mubr.bf16.mxu1 %v7123_v6  ;;  %13409 = vrcp.f32 %v7080_v42  ;;  %v13404_v47 = vpop.eup %13403  ;;  %12103 = vmatpush3.bf16.msra.mxu1 %v12723_v37  ;;  %v12724_v6 = vld [vmem:[#allocation5 + $0x58] sm:$0xff]  }
0x1528   : > { %v7124_v15 = vpack.c.bf16 %v7112_v34, %v7111_v50  ;;  %v7114_v27 = vmul.f32 %v13404_v47, %v17696_v51  ;;  %v17820_v51 = vadd.f32 %v17421_v23, %v17568_v22  ;;  %v20038_v22 = vld [vmem:[#allocation75_spill] sm:$0xff]  ;;  %12104 = vmatprep.subr.bf16.mxu1 %v12724_v6  ;;  %v20044_v50 = vld [vmem:[#allocation41_spill] sm:$0xff]  ;;  %v20046_v47 = vld [vmem:[#allocation46_spill] sm:$0xff] }
0x1529   : > { %8149 = vrot.lane.b32.xlu0 %v20035_v19, %s13886_s23  ;;  %v17839_v13 = vadd.f32 %v17421_v23, %v20038_v22  ;;  %v20045_v19 = vld [vmem:[#allocation43_spill] sm:$0xff]  ;;  %v20052_v22 = vld [vmem:[#allocation70_spill] sm:$0xff] }
0x152a   : > { %v8164_v20 = vpop.permute.xlu0 %8163 }
0x152b   : > { %12091 = vmatmul.mubr.bf16.gmra.mrb[212].mxu1 %v7124_v15  ;;  %v8208_v11 = vsel %vm1537_vm1, %v8164_v20, 0 }
0x152c   : > { %12105 = vmatpush3.bf16.msra.mxu1 %v12724_v6 }
0x152d   : > { %v13406_v35 = vpop.eup %13405 }
0x152e   : > { %v8168_v58 = vpop.permute.xlu0 %8167  ;;  %v7113_v52 = vmul.f32 %v13406_v35, %v17705_v16  ;;  %v13408_v32 = vpop.eup %13407  ;;  %v17825_v16 = vadd.f32 %v17421_v23, %v17590_v14 }
0x152f   : > { %v7115_v39 = vmul.f32 %v13408_v32, %v17700_v44  ;;  %v20036_v44 = vld [vmem:[#allocation76_spill] sm:$0xff]  ;;  %v7082_v14 = vpop.xlane.xlu1 %7081  ;;  %v8214_v29 = vsel %vm1537_vm1, %v8168_v58, 0 }
0x1530   : > { %v7125_v4 = vpack.c.bf16 %v7114_v27, %v7113_v52  ;;  %v20047_v52 = vld [vmem:[#allocation33_spill] sm:$0xff] }
0x1531   : > { %v13410_v62 = vpop.eup %13409 }
0x1532   : > { %v8140_v57 = vpop.permute.xlu0 %8139  ;;  %12094 = vmatprep.mubr.bf16.mxu1 %v7125_v4  ;;  %v7116_v53 = vmul.f32 %v13410_v62, %v17709_v59  ;;  %v17829_v59 = vadd.f32 %v17421_v23, %v20036_v44  ;;  %v20048_v4 = vld [vmem:[#allocation58_spill] sm:$0xff]  ;;  %v20051_v44 = vld [vmem:[#allocation28_spill] sm:$0xff] }
0x1533   : > { %12242 = vmatprep.mubr.msk.bf16.mxu0 %vm1537_vm1, %v8140_v57 }
0x1534   : > { %v7126_v2 = vpack.c.bf16 %v7116_v53, %v7115_v39  ;;  %v20049_v39 = vld [vmem:[#allocation32_spill] sm:$0xff] }
0x1536   : > { %12095 = vmatmul.mubr.bf16.gmra.mrb[216].mxu1 %v7126_v2  ;;  %v20050_v2 = vld [vmem:[#allocation65_spill] sm:$0xff] }
0x153e   : > { %7717 = vmax.xlane.f32.xlu1 %v17815_v18 }
0x1542   : > { %7721 = vmax.xlane.f32.xlu1 %v17820_v51 }
0x1546   : > { %7725 = vmax.xlane.f32.xlu1 %v17825_v16 }
0x1548   : > { %7719 = vmax.xlane.f32.xlu0 %v17829_v59 }
0x154a   : > { %7729 = vmax.xlane.f32.xlu1 %v17834_v49 }
0x154c   : > { %7723 = vmax.xlane.f32.xlu0 %v17839_v13 }
0x1550   : > { %7727 = vmax.xlane.f32.xlu0 %v17845_v56 }
0x1551   : > { %v7088_v55 = vpop.xlane.xlu1 %7087 }
0x1552   : > { %13411 = vrcp.f32 %v7088_v55 }
0x1553   : > { %13413 = vrcp.f32 %v7082_v14 }
0x1554   : > { %7731 = vmax.xlane.f32.xlu0 %v17850_v26  ;;  %13415 = vrcp.f32 %v7086_v33  ;;  %v17872_v33 = vld [vmem:[%s14642_s20] ss:$0 sm:$0xff] }
0x1555   : > { %v8162_v0 = vpop.permute.xlu1 %8161  ;;  %v17883_v34 = vadd.f32 %v17872_v33, %v20044_v50  ;;  %v17894_v35 = vadd.f32 %v17872_v33, %v20046_v47 }
0x1556   : > { %12481 = vmatprep.subr.msk.bf16.mxu0 %vm1537_vm1, %v8162_v0  ;;  %v8205_v21 = vsel %vm1537_vm1, %v8162_v0, 0 }
0x1557   : > { %12233 = vmatpush3.bf16.xpose.msra.mxu0 %v8205_v21 }
0x1558   : > { %12482 = vmatprep.subr.msk.bf16.mxu0 %vm1537_vm1, %v8164_v20  ;;  %v17889_v20 = vadd.f32 %v17872_v33, %v20045_v19 }
0x1559   : > { %v8166_v54 = vpop.permute.xlu1 %8165 }
0x155a   : > { %v8211_v5 = vsel %vm1537_vm1, %v8166_v54, 0 }
0x155b   : > { %8151 = vrot.lane.b32.xlu1 %v20041_v31, %s13886_s23 }
0x155c   : > { %v13412_v41 = vpop.eup %13411 }
0x155d   : > { %v13414_v45 = vpop.eup %13413  ;;  %v7120_v40 = vmul.f32 %v13412_v41, %v17726_v60  ;;  %v8170_v12 = vpop.permute.xlu1 %8169 }
0x155e   : > { %v13416_v38 = vpop.eup %13415  ;;  %v7117_v25 = vmul.f32 %v13414_v45, %v17716_v9  ;;  %v8217_v60 = vsel %vm1537_vm1, %v8170_v12, 0  ;;  %v20043_v9 = vld [vmem:[#allocation44_spill] sm:$0xff] }
0x155f   : > { %12235 = vmatpush3.bf16.xpose.msra.mxu0 %v8208_v11  ;;  %v7119_v8 = vmul.f32 %v13416_v38, %v17711_v30 }
0x1560   : > { %12483 = vmatprep.subr.msk.bf16.mxu0 %vm1537_vm1, %v8166_v54 }
0x1561   : > { %v7128_v17 = vpack.c.bf16 %v7120_v40, %v7119_v8  ;;  %v8142_v42 = vpop.permute.xlu1 %8141 }
0x1563   : > { %v7084_v23 = vpop.xlane.xlu0 %7083 }
0x1564   : > { %13417 = vrcp.f32 %v7084_v23 }
0x1565   : > { %v8146_v15 = vpop.permute.xlu1 %8145 }
0x1567   : > { %12237 = vmatpush3.bf16.xpose.msra.mxu0 %v8211_v5  ;;  %v8144_v30 = vpop.permute.xlu0 %8143 }
0x1568   : > { %12484 = vmatprep.subr.msk.bf16.mxu0 %vm1537_vm1, %v8168_v58  ;;  %v17897_v58 = vld [vmem:[#allocation5 + $0x40] sm:$0xff]  }
0x1569   : > { %12122 = vmatprep.subr.bf16.mxu1 %v17897_v58 }
0x156a   : > { %8153 = vrot.lane.b32.xlu0 %v20042_v28, %s13886_s23 }
0x156e   : > { %v13418_v24 = vpop.eup %13417 }
0x156f   : > { %12239 = vmatpush3.bf16.xpose.msra.mxu0 %v8214_v29  ;;  %v7118_v48 = vmul.f32 %v13418_v24, %v17734_v3  ;;  %v17876_v3 = vadd.f32 %v17872_v33, %v20043_v9 }
0x1570   : > { %12485 = vmatprep.subr.msk.bf16.mxu0 %vm1537_vm1, %v8170_v12 }
0x1571   : > { %v7127_v46 = vpack.c.bf16 %v7118_v48, %v7117_v25 }
0x1573   : > { %12098 = vmatprep.mubr.bf16.mxu1 %v7127_v46 }
0x1574   : > { %12099 = vmatmul.mubr.bf16.gmra.mrb[220].mxu1 %v7128_v17 }
0x1577   : > { %12241 = vmatpush3.bf16.xpose.msra.mxu0 %v8217_v60 }
0x157e   : > { %12243 = vmatmul.mubr.msk.bf16.vlgmr.msra.gmra.mrb[240].mxu0 %vm1537_vm1, %v8142_v42 }
0x157f   : > { %7733 = vmax.xlane.f32.xlu1 %v17876_v3  ;;  %12246 = vmatprep.mubr.msk.bf16.mxu0 %vm1537_vm1, %v8144_v30 }
0x1583   : > { %7737 = vmax.xlane.f32.xlu1 %v17883_v34 }
0x1586   : > { %12247 = vmatmul.mubr.msk.bf16.gmra.mrb[244].mxu0 %vm1537_vm1, %v8146_v15 }
0x1589   : > { %7735 = vmax.xlane.f32.xlu0 %v17889_v20 }
0x158d   : > { %7739 = vmax.xlane.f32.xlu0 %v17894_v35 }
0x1594   : > { %7861 = vrot.lane.b32.xlu1 %v20047_v52, %s13885_s29 }
0x1596   : > { %v7712_v27 = vpop.xlane.xlu1 %7711 }
0x1598   : > { %v7710_v32 = vpop.xlane.xlu0 %7709  ;;  %7865 = vrot.lane.b32.xlu1 %v20048_v4, %s13885_s29 }
0x1599   : > { %v7741_v24 = vsub.f32 %v17782_v43, %v7710_v32  ;;  %v7742_v43 = vsub.f32 %v17778_v1, %v7712_v27 }
0x159a   : > { %v8148_v62 = vpop.permute.xlu1 %8147 }
0x159b   : > { %12250 = vmatprep.mubr.msk.bf16.mxu0 %vm1537_vm1, %v8148_v62  ;;  %v7757_v46 = vmul.f32 1.442695, %v7741_v24  ;;  %v7759_v50 = vmul.f32 1.442695, %v7742_v43 }
0x159c   : > { %v7714_v57 = vpop.xlane.xlu0 %7713  ;;  %7867 = vrot.lane.b32.xlu1 %v20049_v39, %s13885_s29 }
0x159d   : > { %v7743_v45 = vsub.f32 %v17788_v36, %v7714_v57 }
0x159f   : > { %v7761_v29 = vmul.f32 1.442695, %v7743_v45 }
0x15a0   : > { %v7716_v53 = vpop.xlane.xlu0 %7715  ;;  %7873 = vrot.lane.b32.xlu1 %v20050_v2, %s13885_s29 }
0x15a1   : > { %13419 = vpow2.f32 %v7761_v29  ;;  %v7744_v36 = vsub.f32 %v17793_v63, %v7716_v53 }
0x15a2   : > { %13421 = vpow2.f32 %v7757_v46 }
0x15a3   : > { %7863 = vrot.lane.b32.xlu0 %v20051_v44, %s13885_s29  ;;  %v7763_v17 = vmul.f32 1.442695, %v7744_v36 }
0x15a4   : > { %v8150_v61 = vpop.permute.xlu0 %8149 }
0x15a5   : > { %12251 = vmatmul.mubr.msk.bf16.gmra.mrb[248].mxu0 %vm1537_vm1, %v8150_v61  ;;  %13423 = vpow2.f32 %v7763_v17 }
0x15a6   : > { %13425 = vpow2.f32 %v7759_v50 }
0x15a7   : > { %7869 = vrot.lane.b32.xlu0 %v20052_v22, %s13885_s29 }
0x15aa   : > { %v17914_v14 = vpop.f32.mrb[192].mxu1 }
0x15ab   : > { %7871 = vrot.lane.b32.xlu0 %v20053_v10, %s13885_s29  ;;  %v17918_v55 = vpop.f32.mrb[193].mxu1  ;;  %v17968_v63 = vpop.eup %13419 }
0x15ac   : > { %v17920_v7 = vpop.f32.mrb[194].mxu1  ;;  %v17971_v15 = vpop.eup %13421 }
0x15ad   : > { %v6777_v0 = vpack.c.bf16 %v17920_v7, %v17914_v14  ;;  %v17924_v21 = vpop.f32.mrb[195].mxu1 }
0x15ae   : > { %v6776_v31 = vpack.c.bf16 %v17924_v21, %v17918_v55 }
0x15af   : > { %v17976_v32 = vpop.eup %13423 }
0x15b0   : > { %v17979_v61 = vpop.eup %13425 }
0x15b2   : > { %v17928_v11 = vpop.f32.mrb[196].mxu1 }
0x15b3   : > { %v17930_v54 = vpop.f32.mrb[197].mxu1 }
0x15b4   : > { %v17932_v23 = vpop.f32.mrb[198].mxu1 }
0x15b5   : > { %v6779_v5 = vpack.c.bf16 %v17932_v23, %v17928_v11  ;;  %v17936_v28 = vpop.f32.mrb[199].mxu1 }
0x15b6   : > { %v6778_v41 = vpack.c.bf16 %v17936_v28, %v17930_v54 }
0x15ba   : > { %v17941_v38 = vpop.f32.mrb[200].mxu1 }
0x15bb   : > { %v17944_v40 = vpop.f32.mrb[201].mxu1 }
0x15bc   : > { %v17946_v12 = vpop.f32.mrb[202].mxu1 }
0x15bd   : > { %v6781_v25 = vpack.c.bf16 %v17946_v12, %v17941_v38  ;;  %v17950_v48 = vpop.f32.mrb[203].mxu1 }
0x15be   : > { %v6780_v8 = vpack.c.bf16 %v17950_v48, %v17944_v40 }
0x15c2   : > { %v17955_v37 = vpop.f32.mrb[204].mxu1 }
0x15c3   : > { %v17958_v60 = vpop.f32.mrb[205].mxu1 }
0x15c4   : > { %v17960_v6 = vpop.f32.mrb[206].mxu1 }
0x15c5   : > { %v17964_v42 = vpop.f32.mrb[207].mxu1 }
0x15c6   : > { %v6782_v30 = vpack.c.bf16 %v17964_v42, %v17958_v60 }
0x15ca   : > { %7793 = vadd.xlane.f32.xlu0 %v17968_v63 }
0x15cb   : > { %v7718_v1 = vpop.xlane.xlu1 %7717 }
0x15cc   : > { %v7745_v47 = vsub.f32 %v17815_v18, %v7718_v1 }
0x15ce   : > { %7789 = vadd.xlane.f32.xlu0 %v17971_v15  ;;  %v7765_v53 = vmul.f32 1.442695, %v7745_v47 }
0x15cf   : > { %v7722_v19 = vpop.xlane.xlu1 %7721 }
0x15d0   : > { %v7747_v27 = vsub.f32 %v17820_v51, %v7722_v19 }
0x15d2   : > { %v7769_v62 = vmul.f32 1.442695, %v7747_v27  ;;  %7795 = vadd.xlane.f32.xlu0 %v17976_v32 }
0x15d3   : > { %v7726_v57 = vpop.xlane.xlu1 %7725 }
0x15d4   : > { %13427 = vpow2.f32 %v7769_v62 }
0x15d5   : > { %v7720_v45 = vpop.xlane.xlu0 %7719  ;;  %13429 = vpow2.f32 %v7765_v53 }
0x15d6   : > { %v7746_v24 = vsub.f32 %v17829_v59, %v7720_v45  ;;  %7791 = vadd.xlane.f32.xlu0 %v17979_v61  ;;  %v7749_v59 = vsub.f32 %v17825_v16, %v7726_v57 }
0x15d7   : > { %v7730_v29 = vpop.xlane.xlu1 %7729 }
0x15d8   : > { %v7767_v18 = vmul.f32 1.442695, %v7746_v24  ;;  %v7751_v51 = vsub.f32 %v17834_v49, %v7730_v29 }
0x15d9   : > { %v7724_v46 = vpop.xlane.xlu0 %7723 }
0x15da   : > { %13431 = vpow2.f32 %v7767_v18  ;;  %v7748_v36 = vsub.f32 %v17839_v13, %v7724_v46  ;;  %v7777_v50 = vmul.f32 1.442695, %v7751_v51  ;;  %v7773_v13 = vmul.f32 1.442695, %v7749_v59  ;;  %v12726_v59 = vld [vmem:[#allocation5 + $0x48] sm:$0xff]  }
0x15db   : > { %v8152_v43 = vpop.permute.xlu1 %8151 }
0x15dc   : > { %v7771_v17 = vmul.f32 1.442695, %v7748_v36  ;;  %12254 = vmatprep.mubr.msk.bf16.mxu0 %vm1537_vm1, %v8152_v43 }
0x15dd   : > { %v7728_v1 = vpop.xlane.xlu0 %7727 }
0x15de   : > { %v17986_v19 = vpop.eup %13427  ;;  %13433 = vpow2.f32 %v7771_v17  ;;  %v7750_v47 = vsub.f32 %v17845_v56, %v7728_v1  ;;  %v20054_v56 = vmov 0  }
0x15df   : > { %7801 = vadd.xlane.f32.xlu1 %v17986_v19  ;;  %13435 = vpow2.f32 %v7777_v50  ;;  %v17991_v62 = vpop.eup %13429 }
0x15e0   : > { %v7775_v49 = vmul.f32 1.442695, %v7750_v47 }
0x15e1   : > { %v7732_v27 = vpop.xlane.xlu0 %7731 }
0x15e2   : > { %13437 = vpow2.f32 %v7775_v49  ;;  %v7752_v53 = vsub.f32 %v17850_v26, %v7732_v27 }
0x15e3   : > { %7797 = vadd.xlane.f32.xlu1 %v17991_v62  ;;  %13439 = vpow2.f32 %v7773_v13 }
0x15e4   : > { %v17995_v45 = vpop.eup %13431  ;;  %v7779_v16 = vmul.f32 1.442695, %v7752_v53 }
0x15e5   : > { %v8154_v24 = vpop.permute.xlu0 %8153  ;;  %7799 = vadd.xlane.f32.xlu0 %v17995_v45 }
0x15e6   : > { %12255 = vmatmul.mubr.msk.bf16.gmra.mrb[252].mxu0 %vm1537_vm1, %v8154_v24  ;;  %13441 = vpow2.f32 %v7779_v16 }
0x15e7   : > { %9219 = vmatprep.mubr.bf16.mxu0 %v20054_v56 }
0x15e8   : > { %v18000_v57 = vpop.eup %13433 }
0x15e9   : > { %7803 = vadd.xlane.f32.xlu1 %v18000_v57  ;;  %v18003_v29 = vpop.eup %13435 }
0x15ec   : > { %v18005_v26 = vpop.eup %13437 }
0x15ed   : > { %7807 = vadd.xlane.f32.xlu0 %v18005_v26  ;;  %7809 = vadd.xlane.f32.xlu1 %v18003_v29  ;;  %v18009_v18 = vpop.eup %13439 }
0x15f0   : > { %v18012_v51 = vpop.eup %13441 }
0x15f1   : > { %7805 = vadd.xlane.f32.xlu1 %v18009_v18 }
0x15f5   : > { %7811 = vadd.xlane.f32.xlu1 %v18012_v51 }
0x15f6   : > { %v12088_v46 = vpop.f32.mrb[208].mxu1 }
0x15f7   : > { %v7195_v36 = vpop.f32.mrb[209].mxu1 }
0x15f8   : > { %v12089_v43 = vpop.f32.mrb[210].mxu1 }
0x15f9   : > { %v7259_v17 = vpack.c.bf16 %v12089_v43, %v12088_v46  ;;  %v7198_v50 = vpop.f32.mrb[211].mxu1 }
0x15fa   : > { %v7258_v1 = vpack.c.bf16 %v7198_v50, %v7195_v36 }
0x15fc   : > { %12106 = vmatprep.mubr.msk.bf16.mxu1 %vm1537_vm1, %v7258_v1 }
0x15fd   : > { %12107 = vmatmul.mubr.msk.bf16.vlgmr.msra.gmra.mrb[224].mxu1 %vm1537_vm1, %v7259_v17 }
0x15fe   : > { %v12092_v47 = vpop.f32.mrb[212].mxu1  ;;  %12123 = vmatpush3.bf16.msra.mxu1 %v17897_v58 }
0x15ff   : > { %v7211_v49 = vpop.f32.mrb[213].mxu1  ;;  %12124 = vmatprep.subr.bf16.mxu1 %v12726_v59 }
0x1600   : > { %v12093_v27 = vpop.f32.mrb[214].mxu1 }
0x1601   : > { %v7261_v13 = vpack.c.bf16 %v12093_v27, %v12092_v47  ;;  %v7214_v53 = vpop.f32.mrb[215].mxu1 }
0x1602   : > { %v7260_v24 = vpack.c.bf16 %v7214_v53, %v7211_v49  ;;  %12125 = vmatpush3.bf16.msra.mxu1 %v12726_v59 }
0x1604   : > { %12110 = vmatprep.mubr.msk.bf16.mxu1 %vm1537_vm1, %v7260_v24 }
0x1605   : > { %12111 = vmatmul.mubr.msk.bf16.gmra.mrb[228].mxu1 %vm1537_vm1, %v7261_v13 }
0x1609   : > { %v12096_v16 = vpop.f32.mrb[216].mxu1 }
0x160a   : > { %v7227_v46 = vpop.f32.mrb[217].mxu1 }
0x160b   : > { %v12097_v36 = vpop.f32.mrb[218].mxu1 }
0x160c   : > { %v7734_v43 = vpop.xlane.xlu1 %7733  ;;  %v7263_v50 = vpack.c.bf16 %v12097_v36, %v12096_v16  ;;  %v7230_v17 = vpop.f32.mrb[219].mxu1 }
0x160d   : > { %v7753_v1 = vsub.f32 %v17876_v3, %v7734_v43  ;;  %v7262_v58 = vpack.c.bf16 %v7230_v17, %v7227_v46  ;;  %v20055_v43 = vld [vmem:[#allocation62_spill] sm:$0xff] }
0x160f   : > { %v7781_v9 = vmul.f32 1.442695, %v7753_v1  ;;  %12114 = vmatprep.mubr.msk.bf16.mxu1 %vm1537_vm1, %v7262_v58 }
0x1610   : > { %v7738_v47 = vpop.xlane.xlu1 %7737  ;;  %12115 = vmatmul.mubr.msk.bf16.gmra.mrb[232].mxu1 %vm1537_vm1, %v7263_v50 }
0x1611   : > { %13443 = vpow2.f32 %v7781_v9  ;;  %v7755_v59 = vsub.f32 %v17883_v34, %v7738_v47 }
0x1613   : > { %v7785_v49 = vmul.f32 1.442695, %v7755_v59 }
0x1614   : > { %v7862_v27 = vpop.permute.xlu1 %7861 }
0x1615   : > { %13445 = vpow2.f32 %v7785_v49  ;;  %12174 = vmatprep.subr.bf16.mxu1 %v7862_v27 }
0x1616   : > { %v7736_v13 = vpop.xlane.xlu0 %7735 }
0x1617   : > { %v7754_v53 = vsub.f32 %v17889_v20, %v7736_v13 }
0x1618   : > { %v7866_v21 = vpop.permute.xlu1 %7865 }
0x1619   : > { %v7783_v24 = vmul.f32 1.442695, %v7754_v53 }
0x161a   : > { %v7740_v16 = vpop.xlane.xlu0 %7739 }
0x161b   : > { %v18025_v3 = vpop.eup %13443  ;;  %13447 = vpow2.f32 %v7783_v24  ;;  %v7756_v46 = vsub.f32 %v17894_v35, %v7740_v16 }
0x161c   : > { %7813 = vadd.xlane.f32.xlu1 %v18025_v3  ;;  %v7868_v54 = vpop.permute.xlu1 %7867 }
0x161d   : > { %v7787_v9 = vmul.f32 1.442695, %v7756_v46 }
0x161e   : > { %v7864_v35 = vpop.permute.xlu0 %7863 }
0x161f   : > { %v18029_v36 = vpop.eup %13445  ;;  %13449 = vpow2.f32 %v7787_v9 }
0x1620   : > { %7817 = vadd.xlane.f32.xlu0 %v18029_v36 }
0x1622   : > { %v7870_v49 = vpop.permute.xlu0 %7869 }
0x1625   : > { %v18032_v34 = vpop.eup %13447 }
0x1626   : > { %7815 = vadd.xlane.f32.xlu0 %v18032_v34  ;;  %v7872_v24 = vpop.permute.xlu0 %7871 }
0x1629   : > { %v18035_v20 = vpop.eup %13449 }
0x162a   : > { %7819 = vadd.xlane.f32.xlu1 %v18035_v20 }
0x163c   : > { %7875 = vrot.lane.b32.xlu0 %v20055_v43, %s13885_s29  ;;  %s432_s29 = sand.u32 1, %s13865_s18  }
0x163d   : > { %s433_s30 = scalar_lea.vmem [#allocation8], %s432_s29  ;;  %s10405_s14 = scalar_lea.sflag [#allocation4], %s432_s29 }
0x163e   : > { %s10417_s17 = sshll.u32 %s433_s30, 4  ;;  %s19540_s17 = int_to_ptr.vmem [resolvable:$true] %s10417_s17 }
0x163f   : > { %s13803_s16 = scalar_lea.vmem %s19540_s17, 16  ;;  %p13810_p4 = scmp.lt.s32.totalorder %s19540_s17, %s13808_s12 }
0x1640   : > { %p13804_p12 = scmp.ne.s32.totalorder %s19540_s17, %s13803_s16  ;;  %p13811_p7 = scmp.lt.s32.totalorder %s13809_s15, %s13803_s16 }
0x1642   : > { %p13805_p2 = pnand %p13804_p12, %p20167_p1  ;;  %p13812_p8 = por %p13811_p7, %p13810_p4 }
0x1644   : > { %p13806_p3 = pneg %p13805_p2 }
0x1646   : > { %p13813_p11 = pnand %p13812_p8, %p13806_p3 }
0x1647   : > { %v12100_v50 = vpop.f32.mrb[220].mxu1 }
0x1648   : > { %v7243_v17 = vpop.f32.mrb[221].mxu1 }
0x1649   : > { %v12101_v1 = vpop.f32.mrb[222].mxu1 }
0x164a   : > { %v7265_v58 = vpack.c.bf16 %v12101_v1, %v12100_v50  ;;  %v7246_v47 = vpop.f32.mrb[223].mxu1 }
0x164b   : > { %v7264_v59 = vpack.c.bf16 %v7246_v47, %v7243_v17 }
0x164d   : > { %12118 = vmatprep.mubr.msk.bf16.mxu1 %vm1537_vm1, %v7264_v59 }
0x164e   : > { %12119 = vmatmul.mubr.msk.bf16.gmra.mrb[236].mxu1 %vm1537_vm1, %v7265_v58 }
0x164f   : > { %12126 = vmatprep.mubr.msk.bf16.mxu1 %vm1537_vm1, %v6776_v31 }
0x1651   : > { %v12244_v13 = vpop.f32.mrb[240].mxu0 }
0x1652   : > { %v8253_v53 = vpop.f32.mrb[241].mxu0  ;;  %v18063_v14 = vadd.f32 %v17872_v33, %v12244_v13 }
0x1653   : > { %v18047_v16 = vadd.f32 %v17872_v33, %v8253_v53  ;;  %v12245_v46 = vpop.f32.mrb[242].mxu0 }
0x1654   : > { %v8256_v9 = vpop.f32.mrb[243].mxu0  ;;  %v18074_v28 = vadd.f32 %v17872_v33, %v12245_v46 }
0x1655   : > { %8316 = vmax.xlane.f32.xlu1 %v18047_v16  ;;  %v18055_v50 = vadd.f32 %v17872_v33, %v8256_v9 }
0x1656   : > { %12127 = vmatmul.mubr.msk.bf16.vlgmr.msra.gmra.mrb[224].mxu1 %vm1537_vm1, %v6777_v0 }
0x1657   : > { %12175 = vmatpush3.bf16.msra.mxu1 %v7862_v27  ;;  %v7794_v55 = vpop.xlane.xlu0 %7793  ;;  %12130 = vmatprep.mubr.msk.bf16.mxu1 %vm1537_vm1, %v6778_v41 }
0x1658   : > { %12176 = vmatprep.subr.bf16.mxu1 %v7864_v35  ;;  %13451 = vrcp.f32 %v7794_v55 }
0x1659   : > { %v12248_v31 = vpop.f32.mrb[244].mxu0  ;;  %8318 = vmax.xlane.f32.xlu1 %v18055_v50 }
0x165a   : > { %v8269_v17 = vpop.f32.mrb[245].mxu0 }
0x165b   : > { %12177 = vmatpush3.bf16.msra.mxu1 %v7864_v35  ;;  %v7790_v7 = vpop.xlane.xlu0 %7789  ;;  %v12249_v0 = vpop.f32.mrb[246].mxu0  ;;  %v18083_v11 = vadd.f32 %v17872_v33, %v8269_v17 }
0x165c   : > { %12178 = vmatprep.subr.bf16.mxu1 %v7866_v21  ;;  %v8272_v27 = vpop.f32.mrb[247].mxu0  ;;  %v18102_v38 = vadd.f32 %v17872_v33, %v12249_v0 }
0x165d   : > { %v18066_v1 = vadd.f32 %v17872_v33, %v8272_v27  ;;  %8320 = vmax.xlane.f32.xlu1 %v18063_v14 }
0x165e   : > { %12131 = vmatmul.mubr.msk.bf16.gmra.mrb[228].mxu1 %vm1537_vm1, %v6779_v5  ;;  %v18091_v5 = vadd.f32 %v17872_v33, %v12248_v31 }
0x165f   : > { %12179 = vmatpush3.bf16.msra.mxu1 %v7866_v21  ;;  %v7796_v41 = vpop.xlane.xlu0 %7795  ;;  %12134 = vmatprep.mubr.msk.bf16.mxu1 %vm1537_vm1, %v6780_v8  ;;  %v7874_v8 = vpop.permute.xlu1 %7873 }
0x1660   : > { %13453 = vrcp.f32 %v7796_v41  ;;  %8326 = vmax.xlane.f32.xlu0 %v18066_v1  ;;  %12180 = vmatprep.subr.bf16.mxu1 %v7868_v54 }
0x1661   : > { %8322 = vmax.xlane.f32.xlu1 %v18074_v28  ;;  %13455 = vrcp.f32 %v7790_v7 }
0x1662   : > { %v13452_v40 = vpop.eup %13451 }
0x1663   : > { %12181 = vmatpush3.bf16.msra.mxu1 %v7868_v54  ;;  %v7792_v23 = vpop.xlane.xlu0 %7791  ;;  %v18099_v35 = vmul.f32 %v13452_v40, %v17968_v63 }
0x1664   : > { %13457 = vrcp.f32 %v7792_v23  ;;  %12182 = vmatprep.subr.bf16.mxu1 %v7870_v49 }
0x1665   : > { %8324 = vmax.xlane.f32.xlu1 %v18083_v11 }
0x1666   : > { %12135 = vmatmul.mubr.msk.bf16.gmra.mrb[232].mxu1 %vm1537_vm1, %v6781_v25 }
0x1667   : > { %12183 = vmatpush3.bf16.msra.mxu1 %v7870_v49  ;;  %12138 = vmatprep.mubr.msk.bf16.mxu1 %vm1537_vm1, %v6782_v30  ;;  %v20056_v30 = vpack.c.bf16 %v17960_v6, %v17955_v37 }
0x1668   : > { %12184 = vmatprep.subr.bf16.mxu1 %v7872_v24 }
0x1669   : > { %8328 = vmax.xlane.f32.xlu1 %v18091_v5 }
0x166a   : > { %v13454_v48 = vpop.eup %13453 }
0x166b   : > { %v18105_v12 = vmul.f32 %v13454_v48, %v17976_v32  ;;  %12185 = vmatpush3.bf16.msra.mxu1 %v7872_v24  ;;  %v13456_v25 = vpop.eup %13455 }
0x166c   : > { %12186 = vmatprep.subr.bf16.mxu1 %v7874_v8  ;;  %v7837_v63 = vmul.f32 %v13456_v25, %v17971_v15 }
0x166d   : > { %8330 = vmax.xlane.f32.xlu1 %v18102_v38  ;;  %v7854_v60 = vpack.c.bf16 %v18105_v12, %v18099_v35 }
0x166e   : > { %v13458_v42 = vpop.eup %13457  ;;  %12139 = vmatmul.mubr.msk.bf16.gmra.mrb[236].mxu1 %vm1537_vm1, %v20056_v30 }
0x166f   : > { %12187 = vmatpush3.bf16.msra.mxu1 %v7874_v8  ;;  %v7838_v32 = vmul.f32 %v13458_v42, %v17979_v61  ;;  %v7802_v61 = vpop.xlane.xlu1 %7801 }
0x1671   : > { %v7853_v58 = vpack.c.bf16 %v7838_v32, %v7837_v63 }
0x1672   : > { %v7800_v9 = vpop.xlane.xlu0 %7799 }
0x1673   : > { %12190 = vmatprep.mubr.bf16.mxu1 %v7853_v58  ;;  %v7798_v24 = vpop.xlane.xlu1 %7797  ;;  %13459 = vrcp.f32 %v7800_v9 }
0x1674   : > { %13461 = vrcp.f32 %v7798_v24 }
0x1677   : > { %v7804_v46 = vpop.xlane.xlu1 %7803 }
0x1678   : > { %v12252_v47 = vpop.f32.mrb[248].mxu0  ;;  %13463 = vrcp.f32 %v7804_v46 }
0x1679   : > { %v8285_v59 = vpop.f32.mrb[249].mxu0  ;;  %v18125_v6 = vadd.f32 %v17872_v33, %v12252_v47 }
0x167a   : > { %v18117_v49 = vadd.f32 %v17872_v33, %v8285_v59  ;;  %v12253_v13 = vpop.f32.mrb[250].mxu0  ;;  %v7808_v21 = vpop.xlane.xlu0 %7807 }
0x167b   : > { %v8288_v53 = vpop.f32.mrb[251].mxu0  ;;  %v18129_v15 = vadd.f32 %v17872_v33, %v12253_v13  ;;  %v7810_v55 = vpop.xlane.xlu1 %7809 }
0x167c   : > { %8332 = vmax.xlane.f32.xlu1 %v18117_v49  ;;  %v18121_v37 = vadd.f32 %v17872_v33, %v8288_v53 }
0x167d   : > { %v13460_v0 = vpop.eup %13459 }
0x167e   : > { %v13462_v54 = vpop.eup %13461  ;;  %v7842_v23 = vmul.f32 %v13460_v0, %v17995_v45 }
0x167f   : > { %v7806_v31 = vpop.xlane.xlu1 %7805  ;;  %v7841_v8 = vmul.f32 %v13462_v54, %v17991_v62 }
0x1680   : > { %8334 = vmax.xlane.f32.xlu1 %v18121_v37  ;;  %13465 = vrcp.f32 %v7806_v31 }
0x1681   : > { %13467 = vrcp.f32 %v7802_v61  ;;  %v7855_v63 = vpack.c.bf16 %v7842_v23, %v7841_v8  ;;  %v12728_v23 = vld [vmem:[#allocation5 + $0x68] sm:$0xff]  }
0x1682   : > { %13469 = vrcp.f32 %v7808_v21  ;;  %v13464_v25 = vpop.eup %13463 }
0x1683   : > { %v7812_v27 = vpop.xlane.xlu1 %7811  ;;  %v7844_v59 = vmul.f32 %v13464_v25, %v18000_v57 }
0x1684   : > { %8336 = vmax.xlane.f32.xlu1 %v18125_v6  ;;  %13471 = vrcp.f32 %v7812_v27 }
0x1688   : > { %8338 = vmax.xlane.f32.xlu1 %v18129_v15 }
0x168a   : > { %v13466_v45 = vpop.eup %13465 }
0x168b   : > { %v13468_v58 = vpop.eup %13467  ;;  %v7845_v53 = vmul.f32 %v13466_v45, %v18009_v18 }
0x168c   : > { %v13470_v62 = vpop.eup %13469  ;;  %v7843_v61 = vmul.f32 %v13468_v58, %v17986_v19 }
0x168e   : > { %v7856_v24 = vpack.c.bf16 %v7844_v59, %v7843_v61  ;;  %v13472_v46 = vpop.eup %13471 }
0x168f   : > { %v7848_v19 = vmul.f32 %v13472_v46, %v18012_v51 }
0x16a9   : > { %v7814_v40 = vpop.xlane.xlu1 %7813 }
0x16ad   : > { %v7818_v17 = vpop.xlane.xlu0 %7817 }
0x16b3   : > { %v7816_v7 = vpop.xlane.xlu0 %7815 }
0x16b4   : > { %13473 = vrcp.f32 %v7816_v7  ;;  %v12727_v7 = vld [vmem:[#allocation5 + $0x60] sm:$0xff]  }
0x16b5   : > { %13475 = vrcp.f32 %v7810_v55 }
0x16b6   : > { %13477 = vrcp.f32 %v7814_v40 }
0x16b7   : > { %v7876_v41 = vpop.permute.xlu0 %7875  ;;  %v7820_v47 = vpop.xlane.xlu1 %7819 }
0x16b8   : > { %12188 = vmatprep.subr.bf16.mxu1 %v7876_v41  ;;  %13479 = vrcp.f32 %v7820_v47 }
0x16b9   : > { %12189 = vmatpush3.bf16.msra.mxu1 %v7876_v41  ;;  %v12256_v48 = vpop.f32.mrb[252].mxu0  ;;  %13481 = vrcp.f32 %v7818_v17 }
0x16ba   : > { %v18135_v35 = vadd.f32 %v17872_v33, %v12256_v48  ;;  %v8301_v12 = vpop.f32.mrb[253].mxu0  ;;  %12206 = vmatprep.subr.bf16.mxu1 %v12727_v7 }
0x16bb   : > { %v18138_v42 = vadd.f32 %v17872_v33, %v8301_v12  ;;  %v12257_v30 = vpop.f32.mrb[254].mxu0 }
0x16bc   : > { %v8304_v32 = vpop.f32.mrb[255].mxu0  ;;  %8344 = vmax.xlane.f32.xlu0 %v18135_v35  ;;  %12191 = vmatmul.mubr.bf16.vlgmr.msra.gmra.mrb[240].mxu1 %v7854_v60  ;;  %v7846_v60 = vmul.f32 %v13470_v62, %v18005_v26  ;;  %v18151_v9 = vadd.f32 %v17872_v33, %v12257_v30 }
0x16bd   : > { %8340 = vmax.xlane.f32.xlu1 %v18138_v42  ;;  %12194 = vmatprep.mubr.bf16.mxu1 %v7855_v63  ;;  %v18144_v13 = vadd.f32 %v17872_v33, %v8304_v32 }
0x16be   : > { %v7857_v55 = vpack.c.bf16 %v7846_v60, %v7845_v53  ;;  %v13474_v57 = vpop.eup %13473  ;;  %12207 = vmatpush3.bf16.msra.mxu1 %v12727_v7 }
0x16bf   : > { %v13476_v21 = vpop.eup %13475  ;;  %v7850_v31 = vmul.f32 %v13474_v57, %v18032_v34  ;;  %12208 = vmatprep.subr.bf16.mxu1 %v12728_v23 }
0x16c0   : > { %v13478_v18 = vpop.eup %13477  ;;  %v7847_v26 = vmul.f32 %v13476_v21, %v18003_v29 }
0x16c1   : > { %8342 = vmax.xlane.f32.xlu1 %v18144_v13  ;;  %v7849_v17 = vmul.f32 %v13478_v18, %v18025_v3 }
0x16c2   : > { %v7858_v33 = vpack.c.bf16 %v7848_v19, %v7847_v26  ;;  %v13480_v0 = vpop.eup %13479  ;;  %12209 = vmatpush3.bf16.msra.mxu1 %v12728_v23 }
0x16c3   : > { %v7859_v27 = vpack.c.bf16 %v7850_v31, %v7849_v17  ;;  %v13482_v54 = vpop.eup %13481  ;;  %v7852_v41 = vmul.f32 %v13480_v0, %v18035_v20 }
0x16c4   : > { %12195 = vmatmul.mubr.bf16.gmra.mrb[244].mxu1 %v7856_v24  ;;  %v7851_v51 = vmul.f32 %v13482_v54, %v18029_v36 }
0x16c5   : > { %8346 = vmax.xlane.f32.xlu1 %v18151_v9  ;;  %12198 = vmatprep.mubr.bf16.mxu1 %v7857_v55 }
0x16c6   : > { %v7860_v29 = vpack.c.bf16 %v7852_v41, %v7851_v51 }
0x16cc   : > { %12199 = vmatmul.mubr.bf16.gmra.mrb[248].mxu1 %v7858_v33 }
0x16cd   : > { %12202 = vmatprep.mubr.bf16.mxu1 %v7859_v27 }
0x16d2   : > { %8468 = vrot.lane.b32.xlu0 %v20047_v52, %s13886_s23 }
0x16d4   : > { %12203 = vmatmul.mubr.bf16.gmra.mrb[252].mxu1 %v7860_v29 }
0x16d6   : > { %8470 = vrot.lane.b32.xlu1 %v20051_v44, %s13886_s23  ;;  %8472 = vrot.lane.b32.xlu0 %v20048_v4, %s13886_s23 }
0x16da   : > { %8478 = vrot.lane.b32.xlu1 %v20053_v10, %s13886_s23  ;;  %8474 = vrot.lane.b32.xlu0 %v20049_v39, %s13886_s23 }
0x16de   : > { %8476 = vrot.lane.b32.xlu0 %v20052_v22, %s13886_s23 }
0x16e2   : > { %v8317_v3 = vpop.xlane.xlu1 %8316 }
0x16e3   : > { %v8348_v44 = vsub.f32 %v18047_v16, %v8317_v3 }
0x16e5   : > { %v8364_v8 = vmul.f32 1.442695, %v8348_v44 }
0x16e6   : > { %v8319_v52 = vpop.xlane.xlu1 %8318 }
0x16e7   : > { %v8349_v10 = vsub.f32 %v18055_v50, %v8319_v52 }
0x16e9   : > { %v8366_v63 = vmul.f32 1.442695, %v8349_v10 }
0x16ea   : > { %v8321_v36 = vpop.xlane.xlu1 %8320 }
0x16eb   : > { %v8350_v34 = vsub.f32 %v18063_v14, %v8321_v36 }
0x16ed   : > { %v8368_v40 = vmul.f32 1.442695, %v8350_v34  ;;  %v8327_v22 = vpop.xlane.xlu0 %8326 }
0x16ee   : > { %v8323_v20 = vpop.xlane.xlu1 %8322  ;;  %v8353_v16 = vsub.f32 %v18066_v1, %v8327_v22 }
0x16ef   : > { %v8351_v4 = vsub.f32 %v18074_v28, %v8323_v20  ;;  %13483 = vpow2.f32 %v8368_v40 }
0x16f0   : > { %13485 = vpow2.f32 %v8364_v8  ;;  %v8374_v50 = vmul.f32 1.442695, %v8353_v16 }
0x16f1   : > { %v8370_v39 = vmul.f32 1.442695, %v8351_v4 }
0x16f2   : > { %v8325_v48 = vpop.xlane.xlu1 %8324 }
0x16f3   : > { %v8352_v25 = vsub.f32 %v18083_v11, %v8325_v48  ;;  %13487 = vpow2.f32 %v8370_v39 }
0x16f5   : > { %v8372_v28 = vmul.f32 1.442695, %v8352_v25 }
0x16f6   : > { %v8329_v12 = vpop.xlane.xlu1 %8328 }
0x16f7   : > { %v8354_v30 = vsub.f32 %v18091_v5, %v8329_v12 }
0x16f9   : > { %v8376_v14 = vmul.f32 1.442695, %v8354_v30  ;;  %v18180_v58 = vpop.eup %13483 }
0x16fa   : > { %v8331_v45 = vpop.xlane.xlu1 %8330  ;;  %v18183_v62 = vpop.eup %13485 }
0x16fb   : > { %13489 = vpow2.f32 %v8376_v14  ;;  %v8355_v32 = vsub.f32 %v18102_v38, %v8331_v45 }
0x16fc   : > { %13491 = vpow2.f32 %v8366_v63 }
0x16fd   : > { %13493 = vpow2.f32 %v8372_v28  ;;  %v8378_v11 = vmul.f32 1.442695, %v8355_v32  ;;  %v18186_v1 = vpop.eup %13487 }
0x16fe   : > { %8400 = vadd.xlane.f32.xlu1 %v18180_v58  ;;  %13495 = vpow2.f32 %v8374_v50 }
0x16ff   : > { %13497 = vpow2.f32 %v8378_v11 }
0x1702   : > { %8396 = vadd.xlane.f32.xlu1 %v18183_v62 }
0x1705   : > { %v18188_v5 = vpop.eup %13489 }
0x1706   : > { %8402 = vadd.xlane.f32.xlu1 %v18186_v1  ;;  %8408 = vadd.xlane.f32.xlu0 %v18188_v5  ;;  %v18192_v38 = vpop.eup %13491 }
0x1707   : > { %v18194_v47 = vpop.eup %13493 }
0x1708   : > { %v18198_v59 = vpop.eup %13495 }
0x1709   : > { %v18200_v53 = vpop.eup %13497  ;;  %v8333_v61 = vpop.xlane.xlu1 %8332 }
0x170a   : > { %8398 = vadd.xlane.f32.xlu1 %v18192_v38  ;;  %8404 = vadd.xlane.f32.xlu0 %v18194_v47  ;;  %v8356_v46 = vsub.f32 %v18117_v49, %v8333_v61 }
0x170c   : > { %v8380_v21 = vmul.f32 1.442695, %v8356_v46 }
0x170d   : > { %v8335_v60 = vpop.xlane.xlu1 %8334 }
0x170e   : > { %8406 = vadd.xlane.f32.xlu1 %v18198_v59  ;;  %8410 = vadd.xlane.f32.xlu0 %v18200_v53  ;;  %v8357_v55 = vsub.f32 %v18121_v37, %v8335_v60  ;;  %13499 = vpow2.f32 %v8380_v21 }
0x1710   : > { %v8382_v19 = vmul.f32 1.442695, %v8357_v55 }
0x1711   : > { %v8337_v24 = vpop.xlane.xlu1 %8336 }
0x1712   : > { %v8358_v18 = vsub.f32 %v18125_v6, %v8337_v24  ;;  %13501 = vpow2.f32 %v8382_v19 }
0x1714   : > { %v8384_v7 = vmul.f32 1.442695, %v8358_v18 }
0x1715   : > { %v8339_v57 = vpop.xlane.xlu1 %8338 }
0x1716   : > { %v8359_v31 = vsub.f32 %v18129_v15, %v8339_v57  ;;  %13503 = vpow2.f32 %v8384_v7 }
0x171f   : > { %8482 = vrot.lane.b32.xlu1 %v20055_v43, %s13886_s23  ;;  %v8386_v43 = vmul.f32 1.442695, %v8359_v31 }
0x1721   : > { %13505 = vpow2.f32 %v8386_v43 }
0x1724   : > { %8480 = vrot.lane.b32.xlu0 %v20050_v2, %s13886_s23  ;;  %v18212_v2 = vpop.eup %13499 }
0x1725   : > { %v18214_v26 = vpop.eup %13501 }
0x1726   : > { %v18218_v49 = vpop.eup %13503 }
0x172b   : > { %v18220_v37 = vpop.eup %13505 }
0x1743   : > { %8412 = vadd.xlane.f32.xlu1 %v18212_v2  ;;  %8414 = vadd.xlane.f32.xlu0 %v18214_v26 }
0x1747   : > { %8416 = vadd.xlane.f32.xlu0 %v18218_v49  ;;  %8418 = vadd.xlane.f32.xlu1 %v18220_v37 }
0x1749   : > { %v8345_v6 = vpop.xlane.xlu0 %8344 }
0x174a   : > { %v8362_v15 = vsub.f32 %v18135_v35, %v8345_v6  ;;  %v8341_v17 = vpop.xlane.xlu1 %8340 }
0x174b   : > { %v8360_v33 = vsub.f32 %v18138_v42, %v8341_v17 }
0x174c   : > { %v8392_v54 = vmul.f32 1.442695, %v8362_v15 }
0x174d   : > { %v8388_v0 = vmul.f32 1.442695, %v8360_v33  ;;  %v8469_v27 = vpop.permute.xlu0 %8468 }
0x174e   : > { %12258 = vmatprep.subr.bf16.mxu1 %v8469_v27  ;;  %v8343_v41 = vpop.xlane.xlu1 %8342 }
0x174f   : > { %13507 = vpow2.f32 %v8388_v0  ;;  %v8361_v23 = vsub.f32 %v18144_v13, %v8343_v41 }
0x1750   : > { %13509 = vpow2.f32 %v8392_v54 }
0x1751   : > { %v8390_v51 = vmul.f32 1.442695, %v8361_v23  ;;  %v8473_v20 = vpop.permute.xlu0 %8472 }
0x1752   : > { %v8347_v29 = vpop.xlane.xlu1 %8346 }
0x1753   : > { %13511 = vpow2.f32 %v8390_v51  ;;  %v8363_v3 = vsub.f32 %v18151_v9, %v8347_v29 }
0x1755   : > { %v8394_v52 = vmul.f32 1.442695, %v8363_v3  ;;  %v8475_v40 = vpop.permute.xlu0 %8474 }
0x1756   : > { %v8471_v34 = vpop.permute.xlu1 %8470 }
0x1757   : > { %13513 = vpow2.f32 %v8394_v52 }
0x1759   : > { %v18228_v35 = vpop.eup %13507  ;;  %v8477_v30 = vpop.permute.xlu0 %8476 }
0x175a   : > { %8420 = vadd.xlane.f32.xlu0 %v18228_v35  ;;  %v18231_v42 = vpop.eup %13509  ;;  %v18240_v9 = vpop.permute.xlu1 %8478 }
0x175d   : > { %v18233_v36 = vpop.eup %13511 }
0x175e   : > { %8424 = vadd.xlane.f32.xlu0 %v18231_v42  ;;  %8422 = vadd.xlane.f32.xlu1 %v18233_v36 }
0x1761   : > { %v18237_v13 = vpop.eup %13513 }
0x1762   : > { %8426 = vadd.xlane.f32.xlu1 %v18237_v13 }
0x178b   : > { %v8401_v44 = vpop.xlane.xlu1 %8400 }
0x178f   : > { %v12192_v4 = vpop.f32.mrb[240].mxu1  ;;  %v8397_v48 = vpop.xlane.xlu1 %8396 }
0x1790   : > { %v7919_v8 = vpop.f32.mrb[241].mxu1 }
0x1791   : > { %v12193_v10 = vpop.f32.mrb[242].mxu1 }
0x1792   : > { %v7983_v39 = vpack.c.bf16 %v12193_v10, %v12192_v4  ;;  %v7922_v12 = vpop.f32.mrb[243].mxu1 }
0x1793   : > { %v7982_v22 = vpack.c.bf16 %v7922_v12, %v7919_v8  ;;  %v8403_v25 = vpop.xlane.xlu1 %8402  ;;  %v8409_v63 = vpop.xlane.xlu0 %8408 }
0x1795   : > { %12210 = vmatprep.mubr.msk.bf16.mxu1 %vm1537_vm1, %v7982_v22 }
0x1796   : > { %12211 = vmatmul.mubr.msk.bf16.vlgmr.msra.gmra.mrb[224].mxu1 %vm1537_vm1, %v7983_v39 }
0x1797   : > { %12259 = vmatpush3.bf16.msra.mxu1 %v8469_v27  ;;  %v12196_v14 = vpop.f32.mrb[244].mxu1  ;;  %v8399_v45 = vpop.xlane.xlu1 %8398 }
0x1798   : > { %12260 = vmatprep.subr.bf16.mxu1 %v8471_v34  ;;  %v7935_v16 = vpop.f32.mrb[245].mxu1  ;;  %13515 = vrcp.f32 %v8399_v45  ;;  %v8405_v61 = vpop.xlane.xlu0 %8404 }
0x1799   : > { %v12197_v28 = vpop.f32.mrb[246].mxu1  ;;  %13517 = vrcp.f32 %v8397_v48 }
0x179a   : > { %v7985_v32 = vpack.c.bf16 %v12197_v28, %v12196_v14  ;;  %v7938_v50 = vpop.f32.mrb[247].mxu1  ;;  %13519 = vrcp.f32 %v8403_v25 }
0x179b   : > { %v7984_v11 = vpack.c.bf16 %v7938_v50, %v7935_v16  ;;  %12261 = vmatpush3.bf16.msra.mxu1 %v8471_v34  ;;  %v8407_v46 = vpop.xlane.xlu1 %8406 }
0x179c   : > { %12262 = vmatprep.subr.bf16.mxu1 %v8473_v20  ;;  %13521 = vrcp.f32 %v8407_v46  ;;  %v8411_v19 = vpop.xlane.xlu0 %8410 }
0x179d   : > { %12214 = vmatprep.mubr.msk.bf16.mxu1 %vm1537_vm1, %v7984_v11  ;;  %13523 = vrcp.f32 %v8401_v44 }
0x179e   : > { %12215 = vmatmul.mubr.msk.bf16.gmra.mrb[228].mxu1 %vm1537_vm1, %v7985_v32  ;;  %13525 = vrcp.f32 %v8405_v61 }
0x179f   : > { %12263 = vmatpush3.bf16.msra.mxu1 %v8473_v20  ;;  %v12200_v60 = vpop.f32.mrb[248].mxu1  ;;  %13527 = vrcp.f32 %v8411_v19 }
0x17a0   : > { %12264 = vmatprep.subr.bf16.mxu1 %v8475_v40  ;;  %v7951_v24 = vpop.f32.mrb[249].mxu1  ;;  %v8481_v27 = vpop.permute.xlu0 %8480  ;;  %13529 = vrcp.f32 %v8409_v63 }
0x17a1   : > { %v12201_v55 = vpop.f32.mrb[250].mxu1 }
0x17a2   : > { %v7987_v57 = vpack.c.bf16 %v12201_v55, %v12200_v60  ;;  %v7954_v21 = vpop.f32.mrb[251].mxu1  ;;  %v13516_v31 = vpop.eup %13515 }
0x17a3   : > { %v7986_v18 = vpack.c.bf16 %v7954_v21, %v7951_v24  ;;  %12265 = vmatpush3.bf16.msra.mxu1 %v8475_v40  ;;  %v13518_v43 = vpop.eup %13517  ;;  %v8445_v17 = vmul.f32 %v13516_v31, %v18192_v38  ;;  %v8483_v38 = vpop.permute.xlu1 %8482 }
0x17a4   : > { %12266 = vmatprep.subr.bf16.mxu1 %v8477_v30  ;;  %v8444_v41 = vmul.f32 %v13518_v43, %v18183_v62  ;;  %v13520_v23 = vpop.eup %13519 }
0x17a5   : > { %12218 = vmatprep.mubr.msk.bf16.mxu1 %vm1537_vm1, %v7986_v18  ;;  %v8447_v34 = vmul.f32 %v13520_v23, %v18186_v1  ;;  %v12730_v18 = vld [vmem:[#allocation5 + $0x78] sm:$0xff]  }
0x17a6   : > { %12219 = vmatmul.mubr.msk.bf16.gmra.mrb[232].mxu1 %vm1537_vm1, %v7987_v57  ;;  %v8460_v51 = vpack.c.bf16 %v8445_v17, %v8444_v41  ;;  %v13522_v29 = vpop.eup %13521 }
0x17a7   : > { %12267 = vmatpush3.bf16.msra.mxu1 %v8477_v30  ;;  %v12204_v7 = vpop.f32.mrb[252].mxu1  ;;  %v13524_v3 = vpop.eup %13523  ;;  %v8449_v62 = vmul.f32 %v13522_v29, %v18198_v59 }
0x17a8   : > { %12268 = vmatprep.subr.bf16.mxu1 %v18240_v9  ;;  %v7967_v6 = vpop.f32.mrb[253].mxu1  ;;  %v13526_v52 = vpop.eup %13525  ;;  %v8446_v20 = vmul.f32 %v13524_v3, %v18180_v58 }
0x17a9   : > { %v12205_v15 = vpop.f32.mrb[254].mxu1  ;;  %v8448_v44 = vmul.f32 %v13526_v52, %v18194_v47  ;;  %v13528_v4 = vpop.eup %13527 }
0x17aa   : > { %v7989_v33 = vpack.c.bf16 %v12205_v15, %v12204_v7  ;;  %v7970_v0 = vpop.f32.mrb[255].mxu1  ;;  %v8461_v40 = vpack.c.bf16 %v8447_v34, %v8446_v20  ;;  %v13530_v8 = vpop.eup %13529  ;;  %v8451_v10 = vmul.f32 %v13528_v4, %v18200_v53  ;;  %v20057_v20 = vld [vmem:[#allocation38_spill] sm:$0xff] }
0x17ab   : > { %v7988_v54 = vpack.c.bf16 %v7970_v0, %v7967_v6  ;;  %12269 = vmatpush3.bf16.msra.mxu1 %v18240_v9  ;;  %v12729_v9 = vld [vmem:[#allocation5 + $0x70] sm:$0xff]   ;;  %v8462_v48 = vpack.c.bf16 %v8449_v62, %v8448_v44  ;;  %v8450_v1 = vmul.f32 %v13530_v8, %v18188_v5 }
0x17ac   : > { %12270 = vmatprep.subr.bf16.mxu1 %v8481_v27  ;;  %v18280_v62 = vld [vmem:[%s19589_s9 + $0x10] sm:$0xff] }
0x17ad   : > { %12222 = vmatprep.mubr.msk.bf16.mxu1 %vm1537_vm1, %v7988_v54  ;;  %v8463_v39 = vpack.c.bf16 %v8451_v10, %v8450_v1  ;;  %v8749_v44 = vrot.slane %v18280_v62, %v20057_v20 }
0x17ae   : > { %12223 = vmatmul.mubr.msk.bf16.gmra.mrb[236].mxu1 %vm1537_vm1, %v7989_v33 }
0x17af   : > { %12271 = vmatpush3.bf16.msra.mxu1 %v8481_v27  ;;  %12274 = vmatprep.mubr.bf16.mxu1 %v8460_v51 }
0x17b0   : > { %12272 = vmatprep.subr.bf16.mxu1 %v8483_v38 }
0x17b3   : > { %12273 = vmatpush3.bf16.msra.mxu1 %v8483_v38 }
0x17b4   : > { %12290 = vmatprep.subr.bf16.mxu1 %v12729_v9 }
0x17b6   : > { %12275 = vmatmul.mubr.bf16.vlgmr.msra.gmra.mrb[0].mxu1 %v8461_v40 }
0x17b7   : > { %12278 = vmatprep.mubr.bf16.mxu1 %v8462_v48  ;;  %12291 = vmatpush3.bf16.msra.mxu1 %v12729_v9 }
0x17b8   : > { %12292 = vmatprep.subr.bf16.mxu1 %v12730_v18 }
0x17bb   : > { %12293 = vmatpush3.bf16.msra.mxu1 %v12730_v18 }
0x17be   : > { %12279 = vmatmul.mubr.bf16.gmra.mrb[4].mxu1 %v8463_v39  ;;  %v20058_v39 = vld [vmem:[#allocation21_spill] sm:$0xff] }
0x17d0   : > { %v8415_v59 = vpop.xlane.xlu0 %8414  ;;  %v8413_v12 = vpop.xlane.xlu1 %8412 }
0x17d1   : > { %13531 = vrcp.f32 %v8415_v59 }
0x17d2   : > { %13533 = vrcp.f32 %v8413_v12 }
0x17d4   : > { %v8417_v58 = vpop.xlane.xlu0 %8416  ;;  %v8419_v47 = vpop.xlane.xlu1 %8418 }
0x17d5   : > { %13535 = vrcp.f32 %v8417_v58 }
0x17d6   : > { %13537 = vrcp.f32 %v8419_v47  ;;  %v20059_v47 = vld [vmem:[#allocation36_spill] sm:$0xff] }
0x17db   : > { %v13532_v22 = vpop.eup %13531 }
0x17dc   : > { %v13534_v25 = vpop.eup %13533  ;;  %v8453_v30 = vmul.f32 %v13532_v22, %v18214_v26 }
0x17dd   : > { %v8452_v14 = vmul.f32 %v13534_v25, %v18212_v2  ;;  %v20060_v25 = vld [vmem:[#allocation55_spill] sm:$0xff] }
0x17df   : > { %v13536_v63 = vpop.eup %13535  ;;  %v8464_v53 = vpack.c.bf16 %v8453_v30, %v8452_v14 }
0x17e0   : > { %v13538_v16 = vpop.eup %13537  ;;  %v8454_v5 = vmul.f32 %v13536_v63, %v18218_v49 }
0x17e1   : > { %v8455_v45 = vmul.f32 %v13538_v16, %v18220_v37  ;;  %12282 = vmatprep.mubr.bf16.mxu1 %v8464_v53  ;;  %v20061_v53 = vld [vmem:[#allocation22_spill] sm:$0xff] }
0x17e3   : > { %v8465_v28 = vpack.c.bf16 %v8455_v45, %v8454_v5 }
0x17e5   : > { %12283 = vmatmul.mubr.bf16.gmra.mrb[8].mxu1 %v8465_v28 }
0x17e7   : > { %v8421_v32 = vpop.xlane.xlu0 %8420 }
0x17e8   : > { %13539 = vrcp.f32 %v8421_v32 }
0x17eb   : > { %v8425_v50 = vpop.xlane.xlu0 %8424  ;;  %v8423_v11 = vpop.xlane.xlu1 %8422 }
0x17ec   : > { %13541 = vrcp.f32 %v8423_v11 }
0x17ed   : > { %13543 = vrcp.f32 %v8425_v50  ;;  %v20062_v50 = vld [vmem:[#allocation57_spill] sm:$0xff] }
0x17ef   : > { %v8427_v61 = vpop.xlane.xlu1 %8426 }
0x17f0   : > { %13545 = vrcp.f32 %v8427_v61 }
0x17f2   : > { %v13540_v26 = vpop.eup %13539 }
0x17f3   : > { %v8456_v24 = vmul.f32 %v13540_v26, %v18228_v35 }
0x17f6   : > { %v13542_v2 = vpop.eup %13541 }
0x17f7   : > { %v13544_v60 = vpop.eup %13543  ;;  %v8457_v49 = vmul.f32 %v13542_v2, %v18233_v36  ;;  %v20063_v2 = vld [vmem:[#allocation60_spill] sm:$0xff] }
0x17f8   : > { %v8458_v55 = vmul.f32 %v13544_v60, %v18231_v42 }
0x17f9   : > { %v8466_v37 = vpack.c.bf16 %v8457_v49, %v8456_v24  ;;  %v20064_v24 = vld [vmem:[#allocation61_spill] sm:$0xff] }
0x17fa   : > { %v13546_v46 = vpop.eup %13545 }
0x17fb   : > { %v8459_v57 = vmul.f32 %v13546_v46, %v18237_v13  ;;  %12286 = vmatprep.mubr.bf16.mxu1 %v8466_v37  ;;  %v20065_v46 = vld [vmem:[#allocation25_spill] sm:$0xff] }
0x17fd   : > { %v8467_v21 = vpack.c.bf16 %v8459_v57, %v8458_v55 }
0x17ff   : > { %12287 = vmatmul.mubr.bf16.gmra.mrb[12].mxu1 %v8467_v21 }
0x1889   : > { %v12276_v19 = vpop.f32.mrb[0].mxu1 }
0x188a   : > { %v8526_v31 = vpop.f32.mrb[1].mxu1 }
0x188b   : > { %v12277_v7 = vpop.f32.mrb[2].mxu1 }
0x188c   : > { %v8590_v43 = vpack.c.bf16 %v12277_v7, %v12276_v19  ;;  %v8529_v6 = vpop.f32.mrb[3].mxu1  ;;  %v20066_v7 = vld [vmem:[#allocation56_spill] sm:$0xff] }
0x188d   : > { %v8589_v35 = vpack.c.bf16 %v8529_v6, %v8526_v31 }
0x188f   : > { %12294 = vmatprep.mubr.msk.bf16.mxu1 %vm1537_vm1, %v8589_v35 }
0x1890   : > { %12295 = vmatmul.mubr.msk.bf16.vlgmr.msra.gmra.mrb[224].mxu1 %vm1537_vm1, %v8590_v43 }
0x1891   : > { %v12280_v36 = vpop.f32.mrb[4].mxu1 }
0x1892   : > { %v8542_v42 = vpop.f32.mrb[5].mxu1 }
0x1893   : > { %v12281_v15 = vpop.f32.mrb[6].mxu1 }
0x1894   : > { %v8592_v13 = vpack.c.bf16 %v12281_v15, %v12280_v36  ;;  %v8545_v17 = vpop.f32.mrb[7].mxu1  ;;  %v20067_v36 = vld [vmem:[#allocation29_spill] sm:$0xff]  ;;  %v20068_v15 = vld [vmem:[#allocation26_spill] sm:$0xff] }
0x1895   : > { %v8591_v33 = vpack.c.bf16 %v8545_v17, %v8542_v42  ;;  %v20069_v17 = vld [vmem:[#allocation59_spill] sm:$0xff] }
0x1897   : > { %12298 = vmatprep.mubr.msk.bf16.mxu1 %vm1537_vm1, %v8591_v33 }
0x1898   : > { %12299 = vmatmul.mubr.msk.bf16.gmra.mrb[228].mxu1 %vm1537_vm1, %v8592_v13 }
0x18b8   : > { %v12284_v0 = vpop.f32.mrb[8].mxu1 }
0x18b9   : > { %v8558_v27 = vpop.f32.mrb[9].mxu1 }
0x18ba   : > { %v12285_v54 = vpop.f32.mrb[10].mxu1 }
0x18bb   : > { %v8594_v41 = vpack.c.bf16 %v12285_v54, %v12284_v0  ;;  %v8561_v23 = vpop.f32.mrb[11].mxu1 }
0x18bc   : > { %v8593_v51 = vpack.c.bf16 %v8561_v23, %v8558_v27 }
0x18be   : > { %12302 = vmatprep.mubr.msk.bf16.mxu1 %vm1537_vm1, %v8593_v51 }
0x18bf   : > { %12303 = vmatmul.mubr.msk.bf16.gmra.mrb[232].mxu1 %vm1537_vm1, %v8594_v41 }
0x18d2   : > { %v12288_v29 = vpop.f32.mrb[12].mxu1 }
0x18d3   : > { %v8574_v3 = vpop.f32.mrb[13].mxu1 }
0x18d4   : > { %v12289_v38 = vpop.f32.mrb[14].mxu1 }
0x18d5   : > { %v8596_v52 = vpack.c.bf16 %v12289_v38, %v12288_v29  ;;  %v8577_v34 = vpop.f32.mrb[15].mxu1  ;;  %v20070_v29 = vld [vmem:[#allocation30_spill] sm:$0xff] }
0x18d6   : > { %v8595_v9 = vpack.c.bf16 %v8577_v34, %v8574_v3  ;;  %v20071_v34 = vld [vmem:[#allocation23_spill] sm:$0xff] }
0x18d8   : > { %12306 = vmatprep.mubr.msk.bf16.mxu1 %vm1537_vm1, %v8595_v9 }
0x18d9   : > { %12307 = vmatmul.mubr.msk.bf16.gmra.mrb[236].mxu1 %vm1537_vm1, %v8596_v52 }
0x18da   : > { %9332 = vmatprep.mubr.bf16.mxu1 %v20054_v56 }
0x1963   : > { %v12296_v40 = vpop.f32.mrb[224].mxu1 }
0x1964   : > { %v8667_v4 = vpop.f32.mrb[225].mxu1  ;;  %v8752_v1 = vadd.f32 %v12296_v40, %v8749_v44  ;;  %v20072_v40 = vld [vmem:[#allocation27_spill] sm:$0xff] }
0x1965   : > { %v8750_v48 = vadd.f32 %v8749_v44, %v8667_v4  ;;  %v12297_v8 = vpop.f32.mrb[226].mxu1 }
0x1966   : > { %v8670_v10 = vpop.f32.mrb[227].mxu1  ;;  %v8753_v58 = vadd.f32 %v12297_v8, %v8749_v44  ;;  %v18292_v30 = vadd.f32 %v8752_v1, %v20060_v25  ;;  %v12734_v1 = vld [vmem:[%s19587_s7 + $0x108] ss:$16 sps:$4 sm:$0xff]  }
0x1967   : > { %v18285_v59 = vadd.f32 %v8750_v48, %v20058_v39  ;;  %v8751_v12 = vadd.f32 %v8749_v44, %v8670_v10  ;;  %v20073_v48 = vld [vmem:[#allocation24_spill] sm:$0xff]  ;;  %v12736_v39 = vld [vmem:[%s19587_s7 + $0x10c] ss:$16 sps:$4 sm:$0xff]  }
0x1968   : > { %v18296_v16 = vadd.f32 %v8753_v58, %v20061_v53  ;;  %v12733_v10 = vld [vmem:[%s19587_s7 + $0x104] ss:$16 sps:$4 sm:$0xff]   ;;  %v12742_v58 = vld [vmem:[%s19587_s7 + $0x12c] ss:$16 sps:$4 sm:$0xff]   ;;  %9300 = vmatprep.subr.bf16.mxu1 %v12736_v39  ;;  %v12740_v25 = vld [vmem:[%s19587_s7 + $0x128] ss:$16 sps:$4 sm:$0xff]  }
0x1969   : > { %v18288_v22 = vadd.f32 %v8751_v12, %v20059_v47  ;;  %8782 = vadd.xlane.f32.xlu0 %v18285_v59  ;;  %v12739_v12 = vld [vmem:[%s19587_s7 + $0x124] ss:$16 sps:$4 sm:$0xff]   ;;  %9187 = vmatprep.subr.bf16.mxu0 %v12733_v10  ;;  %v12737_v47 = vld [vmem:[%s19587_s7 + $0x120] ss:$16 sps:$4 sm:$0xff]   ;;  %v12766_v10 = vld [vmem:[%s19587_s7 + $0x1ac] ss:$16 sps:$4 sm:$0xff]  }
0x196a   : > { %9301 = vmatpush1.bf16.msra.mxu1 %v12734_v1  ;;  %v12761_v39 = vld [vmem:[%s19587_s7 + $0x1a0] ss:$16 sps:$4 sm:$0xff]  }
0x196b   : > { %8784 = vadd.xlane.f32.xlu1 %v18288_v22  ;;  %v12300_v14 = vpop.f32.mrb[228].mxu1  ;;  %9302 = vmatprep.subr.bf16.mxu1 %v12742_v58 }
0x196c   : > { %v8683_v63 = vpop.f32.mrb[229].mxu1  ;;  %v8756_v32 = vadd.f32 %v12300_v14, %v8749_v44 }
0x196d   : > { %v8754_v5 = vadd.f32 %v8749_v44, %v8683_v63  ;;  %8786 = vadd.xlane.f32.xlu0 %v18292_v30  ;;  %v12301_v45 = vpop.f32.mrb[230].mxu1 }
0x196e   : > { %v8686_v28 = vpop.f32.mrb[231].mxu1  ;;  %v8757_v26 = vadd.f32 %v12301_v45, %v8749_v44  ;;  %v18308_v49 = vadd.f32 %v8756_v32, %v20064_v24  ;;  %9303 = vmatpush1.bf16.msra.mxu1 %v12740_v25 }
0x196f   : > { %v18300_v11 = vadd.f32 %v8754_v5, %v20062_v50  ;;  %v8755_v61 = vadd.f32 %v8749_v44, %v8686_v28  ;;  %8788 = vadd.xlane.f32.xlu1 %v18296_v16 }
0x1970   : > { %v18312_v37 = vadd.f32 %v8757_v26, %v20065_v46 }
0x1971   : > { %v18304_v60 = vadd.f32 %v8755_v61, %v20063_v2  ;;  %8790 = vadd.xlane.f32.xlu0 %v18300_v11 }
0x1973   : > { %8792 = vadd.xlane.f32.xlu1 %v18304_v60 }
0x1975   : > { %8794 = vadd.xlane.f32.xlu0 %v18308_v49 }
0x1977   : > { %8796 = vadd.xlane.f32.xlu1 %v18312_v37 }
0x1992   : > { %v12304_v55 = vpop.f32.mrb[232].mxu1 }
0x1993   : > { %v8699_v57 = vpop.f32.mrb[233].mxu1  ;;  %v8760_v31 = vadd.f32 %v12304_v55, %v8749_v44 }
0x1994   : > { %v8758_v21 = vadd.f32 %v8749_v44, %v8699_v57  ;;  %v12305_v18 = vpop.f32.mrb[234].mxu1 }
0x1995   : > { %v8702_v19 = vpop.f32.mrb[235].mxu1  ;;  %v8761_v35 = vadd.f32 %v12305_v18, %v8749_v44  ;;  %v18324_v13 = vadd.f32 %v8760_v31, %v20068_v15 }
0x1996   : > { %v18317_v43 = vadd.f32 %v8758_v21, %v20066_v7  ;;  %v8759_v6 = vadd.f32 %v8749_v44, %v8702_v19 }
0x1997   : > { %v18328_v33 = vadd.f32 %v8761_v35, %v20069_v17 }
0x1998   : > { %v18320_v42 = vadd.f32 %v8759_v6, %v20067_v36  ;;  %8798 = vadd.xlane.f32.xlu0 %v18317_v43 }
0x199a   : > { %8800 = vadd.xlane.f32.xlu1 %v18320_v42 }
0x199c   : > { %8802 = vadd.xlane.f32.xlu0 %v18324_v13 }
0x199e   : > { %8804 = vadd.xlane.f32.xlu1 %v18328_v33 }
0x19ac   : > { %v12308_v0 = vpop.f32.mrb[236].mxu1 }
0x19ad   : > { %v8715_v27 = vpop.f32.mrb[237].mxu1  ;;  %v8764_v51 = vadd.f32 %v12308_v0, %v8749_v44 }
0x19ae   : > { %v8762_v54 = vadd.f32 %v8749_v44, %v8715_v27  ;;  %v12309_v41 = vpop.f32.mrb[238].mxu1  ;;  %v12748_v27 = vld [vmem:[%s19587_s7 + $0x14c] ss:$16 sps:$4 sm:$0xff]  }
0x19af   : > { %v8718_v23 = vpop.f32.mrb[239].mxu1  ;;  %v8765_v52 = vadd.f32 %v12309_v41, %v8749_v44  ;;  %v18340_v4 = vadd.f32 %v8764_v51, %v20072_v40  ;;  %9304 = vmatprep.subr.bf16.mxu1 %v12748_v27  ;;  %v12751_v41 = vld [vmem:[%s19587_s7 + $0x164] ss:$16 sps:$4 sm:$0xff]   ;;  %v12749_v51 = vld [vmem:[%s19587_s7 + $0x160] ss:$16 sps:$4 sm:$0xff]  }
0x19b0   : > { %v18333_v3 = vadd.f32 %v8762_v54, %v20070_v29  ;;  %v8763_v38 = vadd.f32 %v8749_v44, %v8718_v23  ;;  %v12731_v44 = vld [vmem:[%s19587_s7 + $0x100] ss:$16 sps:$4 sm:$0xff]   ;;  %v12746_v54 = vld [vmem:[%s19587_s7 + $0x148] ss:$16 sps:$4 sm:$0xff]   ;;  %v12754_v23 = vld [vmem:[%s19587_s7 + $0x16c] ss:$16 sps:$4 sm:$0xff]  }
0x19b1   : > { %v18344_v8 = vadd.f32 %v8765_v52, %v20073_v48  ;;  %9188 = vmatpush1.bf16.msra.mxu0 %v12731_v44  ;;  %9305 = vmatpush1.bf16.msra.mxu1 %v12746_v54  ;;  %v12752_v29 = vld [vmem:[%s19587_s7 + $0x168] ss:$16 sps:$4 sm:$0xff]   ;;  %v12760_v52 = vld [vmem:[%s19587_s7 + $0x18c] ss:$16 sps:$4 sm:$0xff]   ;;  %v12763_v44 = vld [vmem:[%s19587_s7 + $0x1a4] ss:$16 sps:$4 sm:$0xff]  }
0x19b2   : > { %v18336_v9 = vadd.f32 %v8763_v38, %v20071_v34  ;;  %8806 = vadd.xlane.f32.xlu0 %v18333_v3  ;;  %9189 = vmatprep.subr.bf16.mxu0 %v12739_v12  ;;  %v12757_v38 = vld [vmem:[%s19587_s7 + $0x184] ss:$16 sps:$4 sm:$0xff]   ;;  %v12755_v34 = vld [vmem:[%s19587_s7 + $0x180] ss:$16 sps:$4 sm:$0xff]   ;;  %v12758_v40 = vld [vmem:[%s19587_s7 + $0x188] ss:$16 sps:$4 sm:$0xff]  }
0x19b3   : > { %9306 = vmatprep.subr.bf16.mxu1 %v12754_v23  ;;  %v12764_v12 = vld [vmem:[%s19587_s7 + $0x1a8] ss:$16 sps:$4 sm:$0xff]   ;;  %v12779_v23 = vld [vmem:[#allocation7 + $0x140] sm:$0xff]  }
0x19b4   : > { %8808 = vadd.xlane.f32.xlu1 %v18336_v9 }
0x19b5   : > { %9190 = vmatpush1.bf16.msra.mxu0 %v12737_v47  ;;  %9307 = vmatpush1.bf16.msra.mxu1 %v12752_v29 }
0x19b6   : > { %8810 = vadd.xlane.f32.xlu0 %v18340_v4  ;;  %9308 = vmatprep.subr.bf16.mxu1 %v12760_v52 }
0x19b8   : > { %8812 = vadd.xlane.f32.xlu1 %v18344_v8 }
0x19b9   : > { %9309 = vmatpush1.bf16.msra.mxu1 %v12758_v40 }
0x19ba   : > { %9310 = vmatprep.subr.bf16.mxu1 %v12766_v10 }
0x19bd   : > { %9311 = vmatpush1.bf16.msra.mxu1 %v12764_v12 }
0x19f6   : > { %v8783_v14 = vpop.xlane.xlu0 %8782 }
0x19f7   : > { %v8814_v63 = vmul.f32 0.0078125, %v8783_v14 }
0x19f8   : > { %v8785_v53 = vpop.xlane.xlu1 %8784 }
0x19f9   : > { %v18373_v5 = vsub.f32 %v18285_v59, %v8814_v63  ;;  %v8815_v45 = vmul.f32 0.0078125, %v8785_v53  ;;  %v12769_v63 = vld [vmem:[%s19587_s7 + $0x1c4] ss:$16 sps:$4 sm:$0xff]   ;;  %v12772_v53 = vld [vmem:[%s19587_s7 + $0x1cc] ss:$16 sps:$4 sm:$0xff]  }
0x19fa   : > { %v8787_v28 = vpop.xlane.xlu0 %8786  ;;  %9312 = vmatprep.subr.bf16.mxu1 %v12772_v53  ;;  %v20074_v53 = vld [vmem:[#allocation18_spill] sm:$0xff] }
0x19fb   : > { %v18376_v32 = vsub.f32 %v18288_v22, %v8815_v45  ;;  %v8816_v50 = vmul.f32 0.0078125, %v8787_v28  ;;  %v8846_v61 = vmul.f32 %v18373_v5, %v18373_v5 }
0x19fc   : > { %v8789_v26 = vpop.xlane.xlu1 %8788 }
0x19fd   : > { %v18381_v2 = vsub.f32 %v18292_v30, %v8816_v50  ;;  %v8817_v24 = vmul.f32 0.0078125, %v8789_v26  ;;  %8862 = vadd.xlane.f32.xlu0 %v8846_v61  ;;  %v8847_v46 = vmul.f32 %v18376_v32, %v18376_v32  ;;  %v12767_v50 = vld [vmem:[%s19587_s7 + $0x1c0] ss:$16 sps:$4 sm:$0xff]   ;;  %v12770_v61 = vld [vmem:[%s19587_s7 + $0x1c8] ss:$16 sps:$4 sm:$0xff]  }
0x19fe   : > { %v8791_v59 = vpop.xlane.xlu0 %8790  ;;  %9313 = vmatpush1.bf16.msra.mxu1 %v12770_v61 }
0x19ff   : > { %v18386_v55 = vsub.f32 %v18296_v16, %v8817_v24  ;;  %v8818_v57 = vmul.f32 0.0078125, %v8791_v59  ;;  %8864 = vadd.xlane.f32.xlu1 %v8847_v46  ;;  %v8848_v22 = vmul.f32 %v18381_v2, %v18381_v2  ;;  %v12775_v59 = vld [vmem:[%s19587_s7 + $0x1e4] ss:$16 sps:$4 sm:$0xff]  }
0x1a00   : > { %v8793_v21 = vpop.xlane.xlu1 %8792 }
0x1a01   : > { %v18391_v18 = vsub.f32 %v18300_v11, %v8818_v57  ;;  %v8819_v30 = vmul.f32 0.0078125, %v8793_v21  ;;  %8866 = vadd.xlane.f32.xlu0 %v8848_v22  ;;  %v8849_v19 = vmul.f32 %v18386_v55, %v18386_v55  ;;  %v12778_v57 = vld [vmem:[%s19587_s7 + $0x1ec] ss:$16 sps:$4 sm:$0xff]   ;;  %v12773_v21 = vld [vmem:[%s19587_s7 + $0x1e0] ss:$16 sps:$4 sm:$0xff]  }
0x1a02   : > { %v8795_v31 = vpop.xlane.xlu0 %8794  ;;  %9314 = vmatprep.subr.bf16.mxu1 %v12778_v57 }
0x1a03   : > { %v18396_v7 = vsub.f32 %v18304_v60, %v8819_v30  ;;  %v8820_v16 = vmul.f32 0.0078125, %v8795_v31  ;;  %8868 = vadd.xlane.f32.xlu1 %v8849_v19  ;;  %v8850_v6 = vmul.f32 %v18391_v18, %v18391_v18  ;;  %v12776_v30 = vld [vmem:[%s19587_s7 + $0x1e8] ss:$16 sps:$4 sm:$0xff]  }
0x1a04   : > { %v8797_v35 = vpop.xlane.xlu1 %8796  ;;  %9315 = vmatpush1.bf16.msra.mxu1 %v12776_v30 }
0x1a05   : > { %v18401_v36 = vsub.f32 %v18308_v49, %v8820_v16  ;;  %v8821_v11 = vmul.f32 0.0078125, %v8797_v35  ;;  %8870 = vadd.xlane.f32.xlu0 %v8850_v6  ;;  %v8851_v15 = vmul.f32 %v18396_v7, %v18396_v7  ;;  %v12745_v49 = vld [vmem:[%s19587_s7 + $0x144] ss:$16 sps:$4 sm:$0xff]  }
0x1a06   : > { %9191 = vmatprep.subr.bf16.mxu0 %v12745_v49 }
0x1a07   : > { %v18406_v17 = vsub.f32 %v18312_v37, %v8821_v11  ;;  %8872 = vadd.xlane.f32.xlu1 %v8851_v15  ;;  %v8852_v60 = vmul.f32 %v18401_v36, %v18401_v36  ;;  %v12743_v37 = vld [vmem:[%s19587_s7 + $0x140] ss:$16 sps:$4 sm:$0xff]  }
0x1a08   : > { %9192 = vmatpush1.bf16.msra.mxu0 %v12743_v37 }
0x1a09   : > { %8874 = vadd.xlane.f32.xlu0 %v8852_v60  ;;  %v8853_v0 = vmul.f32 %v18406_v17, %v18406_v17  ;;  %9193 = vmatprep.subr.bf16.mxu0 %v12751_v41 }
0x1a0b   : > { %8876 = vadd.xlane.f32.xlu1 %v8853_v0 }
0x1a0c   : > { %9194 = vmatpush1.bf16.msra.mxu0 %v12749_v51 }
0x1a0d   : > { %9195 = vmatprep.subr.bf16.mxu0 %v12757_v38 }
0x1a10   : > { %9196 = vmatpush1.bf16.msra.mxu0 %v12755_v34 }
0x1a11   : > { %9197 = vmatprep.subr.bf16.mxu0 %v12763_v44 }
0x1a14   : > { %9198 = vmatpush1.bf16.msra.mxu0 %v12761_v39 }
0x1a15   : > { %9199 = vmatprep.subr.bf16.mxu0 %v12769_v63 }
0x1a18   : > { %9200 = vmatpush1.bf16.msra.mxu0 %v12767_v50 }
0x1a19   : > { %9201 = vmatprep.subr.bf16.mxu0 %v12775_v59 }
0x1a1c   : > { %9202 = vmatpush1.bf16.msra.mxu0 %v12773_v21 }
0x1a1d   : > { %11422 = vmatprep.subr.bf16.mxu0 %v12779_v23 }
0x1a25   : > { %v8799_v48 = vpop.xlane.xlu0 %8798 }
0x1a26   : > { %v8822_v1 = vmul.f32 0.0078125, %v8799_v48 }
0x1a27   : > { %v8801_v58 = vpop.xlane.xlu1 %8800 }
0x1a28   : > { %v18461_v47 = vsub.f32 %v18317_v43, %v8822_v1  ;;  %v8823_v25 = vmul.f32 0.0078125, %v8801_v58 }
0x1a29   : > { %v8803_v14 = vpop.xlane.xlu0 %8802 }
0x1a2a   : > { %v18470_v45 = vsub.f32 %v18320_v42, %v8823_v25  ;;  %v8824_v28 = vmul.f32 0.0078125, %v8803_v14  ;;  %v8854_v43 = vmul.f32 %v18461_v47, %v18461_v47 }
0x1a2b   : > { %v8805_v26 = vpop.xlane.xlu1 %8804 }
0x1a2c   : > { %v18481_v24 = vsub.f32 %v18324_v13, %v8824_v28  ;;  %v8825_v42 = vmul.f32 0.0078125, %v8805_v26  ;;  %8878 = vadd.xlane.f32.xlu0 %v8854_v43  ;;  %v8855_v46 = vmul.f32 %v18470_v45, %v18470_v45  ;;  %v20075_v28 = vsub.s32 4, %v20074_v53 }
0x1a2e   : > { %v18492_v22 = vsub.f32 %v18328_v33, %v8825_v42  ;;  %8880 = vadd.xlane.f32.xlu1 %v8855_v46  ;;  %v8856_v13 = vmul.f32 %v18481_v24, %v18481_v24  ;;  %v18527_v43 = vrot.slane %v18280_v62, %v20075_v28 }
0x1a30   : > { %8882 = vadd.xlane.f32.xlu0 %v8856_v13  ;;  %v8857_v19 = vmul.f32 %v18492_v22, %v18492_v22  ;;  %v20076_v13 = vsub.s32 5, %v20074_v53 }
0x1a32   : > { %8884 = vadd.xlane.f32.xlu1 %v8857_v19  ;;  %v18533_v21 = vrot.slane %v18280_v62, %v20076_v13 }
0x1a3f   : > { %v8807_v33 = vpop.xlane.xlu0 %8806 }
0x1a40   : > { %v8826_v31 = vmul.f32 0.0078125, %v8807_v33 }
0x1a41   : > { %v8809_v16 = vpop.xlane.xlu1 %8808 }
0x1a42   : > { %v18505_v6 = vsub.f32 %v18333_v3, %v8826_v31  ;;  %v8827_v35 = vmul.f32 0.0078125, %v8809_v16 }
0x1a43   : > { %v8811_v11 = vpop.xlane.xlu0 %8810 }
0x1a44   : > { %v18508_v15 = vsub.f32 %v18336_v9, %v8827_v35  ;;  %v8828_v60 = vmul.f32 0.0078125, %v8811_v11  ;;  %v8858_v0 = vmul.f32 %v18505_v6, %v18505_v6 }
0x1a45   : > { %v8813_v49 = vpop.xlane.xlu1 %8812 }
0x1a46   : > { %v18513_v27 = vsub.f32 %v18340_v4, %v8828_v60  ;;  %v8829_v37 = vmul.f32 0.0078125, %v8813_v49  ;;  %8886 = vadd.xlane.f32.xlu0 %v8858_v0  ;;  %v8859_v54 = vmul.f32 %v18508_v15, %v18508_v15 }
0x1a48   : > { %v18518_v3 = vsub.f32 %v18344_v8, %v8829_v37  ;;  %8888 = vadd.xlane.f32.xlu1 %v8859_v54  ;;  %v8860_v9 = vmul.f32 %v18513_v27, %v18513_v27  ;;  %v12780_v37 = vld [vmem:[#allocation7 + $0x100] sm:$0xff]  }
0x1a4a   : > { %8890 = vadd.xlane.f32.xlu0 %v8860_v9  ;;  %v8861_v41 = vmul.f32 %v18518_v3, %v18518_v3 }
0x1a4c   : > { %8892 = vadd.xlane.f32.xlu1 %v8861_v41 }
0x1a8a   : > { %v8863_v4 = vpop.xlane.xlu0 %8862 }
0x1a8b   : > { %v8894_v51 = vmul.f32 0.0078125, %v8863_v4 }
0x1a8c   : > { %v8865_v29 = vpop.xlane.xlu1 %8864 }
0x1a8d   : > { %v8910_v38 = vadd.f32 1e-12, %v8894_v51  ;;  %v8895_v52 = vmul.f32 0.0078125, %v8865_v29 }
0x1a8e   : > { %v8867_v34 = vpop.xlane.xlu0 %8866 }
0x1a8f   : > { %13547 = vrsqrt.f32 %v8910_v38  ;;  %v8911_v8 = vadd.f32 1e-12, %v8895_v52  ;;  %v8896_v40 = vmul.f32 0.0078125, %v8867_v34 }
0x1a90   : > { %v8869_v48 = vpop.xlane.xlu1 %8868 }
0x1a91   : > { %13549 = vrsqrt.f32 %v8911_v8  ;;  %v8912_v44 = vadd.f32 1e-12, %v8896_v40  ;;  %v8897_v10 = vmul.f32 0.0078125, %v8869_v48 }
0x1a92   : > { %v8871_v1 = vpop.xlane.xlu0 %8870 }
0x1a93   : > { %13551 = vrsqrt.f32 %v8912_v44  ;;  %v8913_v39 = vadd.f32 1e-12, %v8897_v10  ;;  %v8898_v12 = vmul.f32 0.0078125, %v8871_v1 }
0x1a94   : > { %v8873_v58 = vpop.xlane.xlu1 %8872 }
0x1a95   : > { %13553 = vrsqrt.f32 %v8913_v39  ;;  %v8899_v25 = vmul.f32 0.0078125, %v8873_v58  ;;  %v8914_v14 = vadd.f32 1e-12, %v8898_v12 }
0x1a96   : > { %v8875_v50 = vpop.xlane.xlu0 %8874 }
0x1a97   : > { %v8915_v63 = vadd.f32 1e-12, %v8899_v25  ;;  %v8900_v57 = vmul.f32 0.0078125, %v8875_v50 }
0x1a98   : > { %v8877_v61 = vpop.xlane.xlu1 %8876 }
0x1a99   : > { %v13548_v26 = vpop.eup %13547  ;;  %13555 = vrsqrt.f32 %v8915_v63  ;;  %v8901_v42 = vmul.f32 0.0078125, %v8877_v61  ;;  %v8916_v11 = vadd.f32 1e-12, %v8900_v57 }
0x1a9a   : > { %v8942_v46 = vmul.f32 %v13548_v26, %v18373_v5  ;;  %13557 = vrsqrt.f32 %v8914_v14 }
0x1a9b   : > { %v13550_v59 = vpop.eup %13549  ;;  %v8917_v31 = vadd.f32 1e-12, %v8901_v42 }
0x1a9c   : > { %v8962_v30 = vmul.f32 %v18527_v43, %v8942_v46  ;;  %v8943_v19 = vmul.f32 %v13550_v59, %v18376_v32 }
0x1a9d   : > { %v13552_v33 = vpop.eup %13551  ;;  %13559 = vrsqrt.f32 %v8917_v31 }
0x1a9e   : > { %v8963_v16 = vmul.f32 %v18527_v43, %v8943_v19  ;;  %v18539_v5 = vadd.f32 %v18533_v21, %v8962_v30  ;;  %v8944_v0 = vmul.f32 %v13552_v33, %v18381_v2  ;;  %13561 = vrsqrt.f32 %v8916_v11 }
0x1a9f   : > { %v13554_v35 = vpop.eup %13553 }
0x1aa0   : > { %20077 = vst [vmem:[#allocation45_spill] sm:$0xff] %v18539_v5  ;;  %v8983_v60 = vadd.f32 %v18533_v21, %v8963_v16  ;;  %v8945_v62 = vmul.f32 %v13554_v35, %v18386_v55  ;;  %v8964_v9 = vmul.f32 %v18527_v43, %v8944_v0 }
0x1aa2   : > { %v8998_v49 = vpack.c.bf16 %v8983_v60, %v18539_v5  ;;  %v8965_v32 = vmul.f32 %v18527_v43, %v8945_v62  ;;  %v8984_v23 = vadd.f32 %v18533_v21, %v8964_v9 }
0x1aa3   : > { %v13556_v54 = vpop.eup %13555 }
0x1aa4   : > { %9220 = vmatmul.mubr.bf16.vlgmr.msra.gmra.mrb[0].mxu0 %v8998_v49  ;;  %9333 = vmatmul.mubr.bf16.vlgmr.msra.gmra.mrb[16].mxu1 %v8998_v49  ;;  %v13558_v41 = vpop.eup %13557  ;;  %v8985_v2 = vadd.f32 %v18533_v21, %v8965_v32  ;;  %v8947_v55 = vmul.f32 %v13556_v54, %v18396_v7 }
0x1aa5   : > { %9229 = vmatprep.mubr.bf16.mxu0 %v20054_v56  ;;  %9342 = vmatprep.mubr.bf16.mxu1 %v20054_v56  ;;  %v8946_v4 = vmul.f32 %v13558_v41, %v18391_v18 }
0x1aa6   : > { %11423 = vmatpush3.bf16.msra.mxu0 %v12780_v37  ;;  %v8999_v51 = vpack.c.bf16 %v8985_v2, %v8984_v23  ;;  %v8967_v29 = vmul.f32 %v18527_v43, %v8947_v55 }
0x1aa7   : > { %v13560_v38 = vpop.eup %13559  ;;  %v8966_v52 = vmul.f32 %v18527_v43, %v8946_v4 }
0x1aa8   : > { %v13562_v34 = vpop.eup %13561  ;;  %v8987_v7 = vadd.f32 %v18533_v21, %v8967_v29  ;;  %v8949_v8 = vmul.f32 %v13560_v38, %v18406_v17 }
0x1aa9   : > { %v8986_v40 = vadd.f32 %v18533_v21, %v8966_v52  ;;  %v8948_v18 = vmul.f32 %v13562_v34, %v18401_v36 }
0x1aaa   : > { %v8969_v44 = vmul.f32 %v18527_v43, %v8949_v8 }
0x1aab   : > { %v9000_v48 = vpack.c.bf16 %v8987_v7, %v8986_v40  ;;  %v8968_v10 = vmul.f32 %v18527_v43, %v8948_v18 }
0x1aac   : > { %9230 = vmatmul.mubr.bf16.gmra.mrb[4].mxu0 %v8999_v51  ;;  %9343 = vmatmul.mubr.bf16.gmra.mrb[20].mxu1 %v8999_v51  ;;  %v8989_v1 = vadd.f32 %v18533_v21, %v8969_v44 }
0x1aad   : > { %9239 = vmatprep.mubr.bf16.mxu0 %v20054_v56  ;;  %9352 = vmatprep.mubr.bf16.mxu1 %v20054_v56  ;;  %v8988_v39 = vadd.f32 %v18533_v21, %v8968_v10 }
0x1aaf   : > { %v9001_v12 = vpack.c.bf16 %v8989_v1, %v8988_v39 }
0x1ab4   : > { %9240 = vmatmul.mubr.bf16.gmra.mrb[8].mxu0 %v9000_v48  ;;  %9353 = vmatmul.mubr.bf16.gmra.mrb[24].mxu1 %v9000_v48 }
0x1ab5   : > { %9249 = vmatprep.mubr.bf16.mxu0 %v20054_v56  ;;  %9362 = vmatprep.mubr.bf16.mxu1 %v20054_v56 }
0x1ab9   : > { %v8879_v17 = vpop.xlane.xlu0 %8878 }
0x1aba   : > { %v8902_v58 = vmul.f32 0.0078125, %v8879_v17 }
0x1abb   : > { %v8881_v25 = vpop.xlane.xlu1 %8880 }
0x1abc   : > { %v8918_v36 = vadd.f32 1e-12, %v8902_v58  ;;  %v8903_v14 = vmul.f32 0.0078125, %v8881_v25  ;;  %9250 = vmatmul.mubr.bf16.gmra.mrb[12].mxu0 %v9001_v12  ;;  %9363 = vmatmul.mubr.bf16.gmra.mrb[28].mxu1 %v9001_v12 }
0x1abd   : > { %v8883_v63 = vpop.xlane.xlu0 %8882  ;;  %9259 = vmatprep.mubr.bf16.mxu0 %v20054_v56  ;;  %9372 = vmatprep.mubr.bf16.mxu1 %v20054_v56 }
0x1abe   : > { %13563 = vrsqrt.f32 %v8918_v36  ;;  %v8919_v28 = vadd.f32 1e-12, %v8903_v14  ;;  %v8904_v50 = vmul.f32 0.0078125, %v8883_v63  ;;  %v12783_v14 = vld [vmem:[#allocation7 + $0x150] sm:$0xff]  }
0x1abf   : > { %v8885_v61 = vpop.xlane.xlu1 %8884  ;;  %v12784_v63 = vld [vmem:[#allocation7 + $0x110] sm:$0xff]  }
0x1ac0   : > { %13565 = vrsqrt.f32 %v8919_v28  ;;  %v8920_v26 = vadd.f32 1e-12, %v8904_v50  ;;  %v8905_v42 = vmul.f32 0.0078125, %v8885_v61  ;;  %v12786_v28 = vld [vmem:[#allocation7 + $0x118] sm:$0xff]   ;;  %v12788_v50 = vld [vmem:[#allocation7 + $0x120] sm:$0xff]   ;;  %v12790_v61 = vld [vmem:[#allocation7 + $0x128] sm:$0xff]  }
0x1ac2   : > { %13567 = vrsqrt.f32 %v8920_v26  ;;  %v8921_v46 = vadd.f32 1e-12, %v8905_v42  ;;  %v12791_v26 = vld [vmem:[#allocation7 + $0x170] sm:$0xff]   ;;  %v12792_v42 = vld [vmem:[#allocation7 + $0x1c0] sm:$0xff]  }
0x1ac3   : > { %12310 = vmatprep.subr.bf16.mxu1 %v12792_v42 }
0x1ac4   : > { %13569 = vrsqrt.f32 %v8921_v46  ;;  %v12793_v46 = vld [vmem:[#allocation7 + $0x130] sm:$0xff]  }
0x1ac8   : > { %v13564_v59 = vpop.eup %13563 }
0x1ac9   : > { %v8950_v57 = vmul.f32 %v13564_v59, %v18461_v47  ;;  %v18599_v59 = vld [vmem:[#allocation7 + $0x180] sm:$0xff]  }
0x1aca   : > { %v13566_v13 = vpop.eup %13565  ;;  %12318 = vmatpush3.bf16.msra.mxu1 %v18599_v59 }
0x1acb   : > { %v8970_v30 = vmul.f32 %v18527_v43, %v8950_v57  ;;  %v8951_v19 = vmul.f32 %v13566_v13, %v18470_v45  ;;  %v12795_v57 = vld [vmem:[#allocation7 + $0x178] sm:$0xff]   ;;  %v18602_v13 = vld [vmem:[#allocation7 + $0x1c8] sm:$0xff]  }
0x1acc   : > { %v13568_v33 = vpop.eup %13567  ;;  %12311 = vmatprep.subr.bf16.mxu1 %v18602_v13 }
0x1acd   : > { %v8971_v31 = vmul.f32 %v18527_v43, %v8951_v19  ;;  %v8990_v35 = vadd.f32 %v18533_v21, %v8970_v30  ;;  %v8952_v60 = vmul.f32 %v13568_v33, %v18481_v24  ;;  %v12797_v30 = vld [vmem:[#allocation7 + $0x138] sm:$0xff]   ;;  %v18604_v19 = vld [vmem:[#allocation7 + $0x188] sm:$0xff]   ;;  %v18608_v33 = vld [vmem:[#allocation7 + $0x1d0] sm:$0xff]  }
0x1ace   : > { %v13570_v16 = vpop.eup %13569  ;;  %12319 = vmatpush3.bf16.msra.mxu1 %v18604_v19 }
0x1acf   : > { %v8991_v11 = vadd.f32 %v18533_v21, %v8971_v31  ;;  %v8953_v0 = vmul.f32 %v13570_v16, %v18492_v22  ;;  %v8972_v49 = vmul.f32 %v18527_v43, %v8952_v60  ;;  %v18610_v31 = vld [vmem:[#allocation7 + $0x190] sm:$0xff]   ;;  %12312 = vmatprep.subr.bf16.mxu1 %v18608_v33  ;;  %v18614_v16 = vld [vmem:[#allocation7 + $0x1d8] sm:$0xff]   ;;  %v18622_v60 = vld [vmem:[#allocation7 + $0x1a0] sm:$0xff]  }
0x1ad0   : > { %20079 = vst [vmem:[#allocation48_spill] sm:$0xff] %v18622_v60 }
0x1ad1   : > { %v9002_v62 = vpack.c.bf16 %v8991_v11, %v8990_v35  ;;  %v8973_v47 = vmul.f32 %v18527_v43, %v8953_v0  ;;  %v8992_v22 = vadd.f32 %v18533_v21, %v8972_v49  ;;  %v18616_v35 = vld [vmem:[#allocation7 + $0x198] sm:$0xff]   ;;  %v18620_v11 = vld [vmem:[#allocation7 + $0x1e0] sm:$0xff]   ;;  %v18626_v0 = vld [vmem:[#allocation7 + $0x1e8] sm:$0xff]  }
0x1ad2   : > { %12320 = vmatpush3.bf16.msra.mxu1 %v18610_v31  ;;  %20078 = vst [vmem:[#allocation50_spill] sm:$0xff] %v18620_v11  ;;  %20080 = vst [vmem:[#allocation47_spill] sm:$0xff] %v18626_v0  ;;  %v12808_v49 = vld [vmem:[#allocation7 + $0x1b0] sm:$0xff]  }
0x1ad3   : > { %9260 = vmatmul.mubr.bf16.gmra.mrb[16].mxu0 %v9002_v62  ;;  %9373 = vmatmul.mubr.bf16.gmra.mrb[32].mxu1 %v9002_v62  ;;  %v8887_v45 = vpop.xlane.xlu0 %8886  ;;  %v8993_v37 = vadd.f32 %v18533_v21, %v8973_v47  ;;  %v18628_v62 = vld [vmem:[#allocation7 + $0x1a8] sm:$0xff]   ;;  %v18632_v47 = vld [vmem:[#allocation7 + $0x1f0] sm:$0xff]  }
0x1ad4   : > { %v8906_v32 = vmul.f32 0.0078125, %v8887_v45  ;;  %9269 = vmatprep.mubr.bf16.mxu0 %v20054_v56  ;;  %9382 = vmatprep.mubr.bf16.mxu1 %v20054_v56  ;;  %20081 = vst [vmem:[#allocation49_spill] sm:$0xff] %v18628_v62  ;;  %20082 = vst [vmem:[#allocation54_spill] sm:$0xff] %v18632_v47  ;;  %v12809_v45 = vld [vmem:[#allocation7 + $0x1f8] sm:$0xff]  }
0x1ad5   : > { %v8889_v54 = vpop.xlane.xlu1 %8888  ;;  %v9003_v23 = vpack.c.bf16 %v8993_v37, %v8992_v22  ;;  %12313 = vmatprep.subr.bf16.mxu1 %v18614_v16  ;;  %v10748_v37 = vld [vmem:[%s19590_s10 + $0x4] sm:$0xf] }
0x1ad6   : > { %v8922_v9 = vadd.f32 1e-12, %v8906_v32  ;;  %v8907_v24 = vmul.f32 0.0078125, %v8889_v54  ;;  %12321 = vmatpush3.bf16.msra.mxu1 %v18616_v35  ;;  %v12810_v32 = vld [vmem:[#allocation7 + $0x1b8] sm:$0xff]   ;;  %v20083_v54 = vld [vmem:[#allocation19_spill] sm:$0xff] }
0x1ad7   : > { %v8891_v41 = vpop.xlane.xlu0 %8890  ;;  %12314 = vmatprep.subr.bf16.mxu1 %v18620_v11 }
0x1ad8   : > { %13571 = vrsqrt.f32 %v8922_v9  ;;  %v8923_v2 = vadd.f32 1e-12, %v8907_v24  ;;  %v8908_v55 = vmul.f32 0.0078125, %v8891_v41  ;;  %v18639_v9 = vrot.slane %v10748_v37, %v20083_v54  ;;  %v20084_v24 = vld [vmem:[#allocation37_spill] sm:$0xff]  ;;  %v20085_v41 = vld [vmem:[#allocation20_spill] sm:$0xff] }
0x1ad9   : > { %v8893_v4 = vpop.xlane.xlu1 %8892  ;;  %v18642_v22 = vrot.slane %v10748_v37, %v20084_v24 }
0x1ada   : > { %13573 = vrsqrt.f32 %v8923_v2  ;;  %v8924_v51 = vadd.f32 1e-12, %v8908_v55  ;;  %v8909_v29 = vmul.f32 0.0078125, %v8893_v4  ;;  %12322 = vmatpush3.bf16.msra.mxu1 %v18622_v60  ;;  %v18645_v2 = vrot.slane %v10748_v37, %v20085_v41 }
0x1adb   : > { %9270 = vmatmul.mubr.bf16.gmra.mrb[20].mxu0 %v9003_v23  ;;  %9383 = vmatmul.mubr.bf16.gmra.mrb[36].mxu1 %v9003_v23  ;;  %v18648_v55 = vrot.slane %v10748_v37, %v20057_v20 }
0x1adc   : > { %13575 = vrsqrt.f32 %v8924_v51  ;;  %v8925_v38 = vadd.f32 1e-12, %v8909_v29  ;;  %9279 = vmatprep.mubr.bf16.mxu0 %v20054_v56  ;;  %9392 = vmatprep.mubr.bf16.mxu1 %v20054_v56 }
0x1add   : > { %12315 = vmatprep.subr.bf16.mxu1 %v18626_v0 }
0x1ade   : > { %13577 = vrsqrt.f32 %v8925_v38  ;;  %12323 = vmatpush3.bf16.msra.mxu1 %v18628_v62 }
0x1adf   : > { %12316 = vmatprep.subr.bf16.mxu1 %v18632_v47 }
0x1ae2   : > { %v13572_v52 = vpop.eup %13571  ;;  %12324 = vmatpush3.bf16.msra.mxu1 %v12808_v49 }
0x1ae3   : > { %v8954_v34 = vmul.f32 %v13572_v52, %v18505_v6  ;;  %12317 = vmatprep.subr.bf16.mxu1 %v12809_v45 }
0x1ae4   : > { %v13574_v7 = vpop.eup %13573 }
0x1ae5   : > { %v8974_v8 = vmul.f32 %v18527_v43, %v8954_v34  ;;  %v8955_v40 = vmul.f32 %v13574_v7, %v18508_v15 }
0x1ae6   : > { %v13576_v18 = vpop.eup %13575  ;;  %12325 = vmatpush3.bf16.msra.mxu1 %v12810_v32 }
0x1ae7   : > { %v8975_v48 = vmul.f32 %v18527_v43, %v8955_v40  ;;  %v8994_v10 = vadd.f32 %v18533_v21, %v8974_v8  ;;  %v8956_v39 = vmul.f32 %v13576_v18, %v18513_v27  ;;  %v12781_v27 = vld [vmem:[#allocation7 + $0x148] sm:$0xff]  }
0x1ae8   : > { %v13578_v44 = vpop.eup %13577  ;;  %11424 = vmatprep.subr.bf16.mxu0 %v12781_v27 }
0x1ae9   : > { %v8995_v1 = vadd.f32 %v18533_v21, %v8975_v48  ;;  %v8957_v17 = vmul.f32 %v13578_v44, %v18518_v3  ;;  %v8976_v58 = vmul.f32 %v18527_v43, %v8956_v39  ;;  %v12782_v3 = vld [vmem:[#allocation7 + $0x108] sm:$0xff]  }
0x1aea   : > { %11425 = vmatpush3.bf16.msra.mxu0 %v12782_v3 }
0x1aeb   : > { %v9004_v12 = vpack.c.bf16 %v8995_v1, %v8994_v10  ;;  %v8977_v6 = vmul.f32 %v18527_v43, %v8957_v17  ;;  %v8996_v25 = vadd.f32 %v18533_v21, %v8976_v58  ;;  %11426 = vmatprep.subr.bf16.mxu0 %v12783_v14  ;;  %v12785_v43 = vld [vmem:[#allocation7 + $0x158] sm:$0xff]  }
0x1aed   : > { %9280 = vmatmul.mubr.bf16.gmra.mrb[24].mxu0 %v9004_v12  ;;  %9393 = vmatmul.mubr.bf16.gmra.mrb[40].mxu1 %v9004_v12  ;;  %v8997_v15 = vadd.f32 %v18533_v21, %v8977_v6  ;;  %v12789_v21 = vld [vmem:[#allocation7 + $0x168] sm:$0xff]  }
0x1aee   : > { %9289 = vmatprep.mubr.bf16.mxu0 %v20054_v56  ;;  %9402 = vmatprep.mubr.bf16.mxu1 %v20054_v56  ;;  %v12787_v56 = vld [vmem:[#allocation7 + $0x160] sm:$0xff]  }
0x1aef   : > { %v9005_v36 = vpack.c.bf16 %v8997_v15, %v8996_v25  ;;  %11427 = vmatpush3.bf16.msra.mxu0 %v12784_v63 }
0x1af0   : > { %11428 = vmatprep.subr.bf16.mxu0 %v12785_v43 }
0x1af3   : > { %11429 = vmatpush3.bf16.msra.mxu0 %v12786_v28 }
0x1af4   : > { %11430 = vmatprep.subr.bf16.mxu0 %v12787_v56 }
0x1af5   : > { %9290 = vmatmul.mubr.bf16.gmra.mrb[28].mxu0 %v9005_v36  ;;  %9403 = vmatmul.mubr.bf16.gmra.mrb[44].mxu1 %v9005_v36 }
0x1af7   : > { %11431 = vmatpush3.bf16.msra.mxu0 %v12788_v50 }
0x1af8   : > { %11432 = vmatprep.subr.bf16.mxu0 %v12789_v21 }
0x1afb   : > { %11433 = vmatpush3.bf16.msra.mxu0 %v12790_v61 }
0x1afc   : > { %11434 = vmatprep.subr.bf16.mxu0 %v12791_v26 }
0x1aff   : > { %11435 = vmatpush3.bf16.msra.mxu0 %v12793_v46 }
0x1b00   : > { %11436 = vmatprep.subr.bf16.mxu0 %v12795_v57 }
0x1b03   : > { %11437 = vmatpush3.bf16.msra.mxu0 %v12797_v30 }
0x1b04   : > { %11486 = vmatprep.subr.bf16.mxu0 %v12792_v42 }
0x1b77   : > { %v9221_v23 = vpop.f32.mrb[0].mxu0  ;;  %v9334_v4 = vpop.f32.mrb[16].mxu1 }
0x1b78   : > { %v18651_v51 = vadd.f32 %v9221_v23, %v18639_v9  ;;  %v18654_v29 = vadd.f32 %v9334_v4, %v18642_v22  ;;  %v9223_v38 = vpop.f32.mrb[1].mxu0  ;;  %v9336_v52 = vpop.f32.mrb[17].mxu1 }
0x1b79   : > { %v18657_v34 = vadd.f32 %v9223_v38, %v18645_v2  ;;  %v18660_v7 = vadd.f32 %v9336_v52, %v18648_v55  ;;  %v9225_v8 = vpop.f32.mrb[2].mxu0  ;;  %v9338_v40 = vpop.f32.mrb[18].mxu1 }
0x1b7a   : > { %v9413_v20 = vmul.f32 %v18651_v51, %v18651_v51  ;;  %v9415_v18 = vmul.f32 %v18654_v29, %v18654_v29  ;;  %v18667_v48 = vadd.f32 %v9225_v8, %v18639_v9  ;;  %v18670_v44 = vadd.f32 %v9338_v40, %v18642_v22  ;;  %v9227_v10 = vpop.f32.mrb[3].mxu0  ;;  %v9340_v1 = vpop.f32.mrb[19].mxu1 }
0x1b7b   : > { %20086 = vst [vmem:[#allocation52_spill] sm:$0xff] %v18660_v7  ;;  %v9414_v39 = vmul.f32 %v18657_v34, %v18657_v34  ;;  %v9416_v17 = vmul.f32 %v18660_v7, %v18660_v7  ;;  %v18677_v12 = vadd.f32 %v9227_v10, %v18645_v2  ;;  %v18680_v6 = vadd.f32 %v9340_v1, %v18648_v55 }
0x1b7c   : > { %v9477_v58 = vmul.f32 %v9413_v20, %v18651_v51  ;;  %v9479_v15 = vmul.f32 %v9415_v18, %v18654_v29  ;;  %v9417_v25 = vmul.f32 %v18667_v48, %v18667_v48  ;;  %v9419_v36 = vmul.f32 %v18670_v44, %v18670_v44 }
0x1b7d   : > { %20087 = vst [vmem:[#allocation51_spill] sm:$0xff] %v18680_v6  ;;  %v9478_v27 = vmul.f32 %v9414_v39, %v18657_v34  ;;  %v9480_v3 = vmul.f32 %v9416_v17, %v18660_v7  ;;  %v9418_v14 = vmul.f32 %v18677_v12, %v18677_v12  ;;  %v9420_v63 = vmul.f32 %v18680_v6, %v18680_v6 }
0x1b7e   : > { %v9541_v43 = vmul.f32 0.044715, %v9477_v58  ;;  %v9543_v28 = vmul.f32 0.044715, %v9479_v15  ;;  %v9481_v56 = vmul.f32 %v9417_v25, %v18667_v48  ;;  %v9483_v50 = vmul.f32 %v9419_v36, %v18670_v44 }
0x1b7f   : > { %v9542_v21 = vmul.f32 0.044715, %v9478_v27  ;;  %v9544_v61 = vmul.f32 0.044715, %v9480_v3  ;;  %v9482_v26 = vmul.f32 %v9418_v14, %v18677_v12  ;;  %v9484_v42 = vmul.f32 %v9420_v63, %v18680_v6  ;;  %v9231_v46 = vpop.f32.mrb[4].mxu0  ;;  %v9344_v57 = vpop.f32.mrb[20].mxu1 }
0x1b80   : > { %v9605_v30 = vadd.f32 %v9541_v43, %v18651_v51  ;;  %v9607_v49 = vadd.f32 %v9543_v28, %v18654_v29  ;;  %v9545_v45 = vmul.f32 0.044715, %v9481_v56  ;;  %v9547_v32 = vmul.f32 0.044715, %v9483_v50  ;;  %v9233_v37 = vpop.f32.mrb[5].mxu0  ;;  %v9346_v54 = vpop.f32.mrb[21].mxu1 }
0x1b81   : > { %v9606_v24 = vadd.f32 %v9542_v21, %v18657_v34  ;;  %v9608_v41 = vadd.f32 %v9544_v61, %v18660_v7  ;;  %v9546_v23 = vmul.f32 0.044715, %v9482_v26  ;;  %v9548_v4 = vmul.f32 0.044715, %v9484_v42  ;;  %v9235_v38 = vpop.f32.mrb[6].mxu0  ;;  %v9348_v52 = vpop.f32.mrb[22].mxu1 }
0x1b82   : > { %v9669_v8 = vmul.f32 0.7978846, %v9605_v30  ;;  %v9671_v40 = vmul.f32 0.7978846, %v9607_v49  ;;  %v9609_v20 = vadd.f32 %v9545_v45, %v18667_v48  ;;  %v9611_v18 = vadd.f32 %v9547_v32, %v18670_v44  ;;  %v9237_v10 = vpop.f32.mrb[7].mxu0  ;;  %v9350_v1 = vpop.f32.mrb[23].mxu1 }
0x1b83   : > { %v9670_v39 = vmul.f32 0.7978846, %v9606_v24  ;;  %v9672_v17 = vmul.f32 0.7978846, %v9608_v41  ;;  %v9610_v58 = vadd.f32 %v9546_v23, %v18677_v12  ;;  %v9612_v15 = vadd.f32 %v9548_v4, %v18680_v6 }
0x1b84   : > { %13579 = vtanh.f32 %v9669_v8  ;;  %v9673_v25 = vmul.f32 0.7978846, %v9609_v20  ;;  %v9675_v36 = vmul.f32 0.7978846, %v9611_v18  ;;  %v18707_v27 = vadd.f32 %v9231_v46, %v18639_v9 }
0x1b85   : > { %13581 = vtanh.f32 %v9671_v40  ;;  %v9674_v3 = vmul.f32 0.7978846, %v9610_v58  ;;  %v9676_v14 = vmul.f32 0.7978846, %v9612_v15  ;;  %v18710_v63 = vadd.f32 %v9344_v57, %v18642_v22 }
0x1b86   : > { %13583 = vtanh.f32 %v9670_v39  ;;  %v9421_v43 = vmul.f32 %v18707_v27, %v18707_v27  ;;  %v18715_v28 = vadd.f32 %v9233_v37, %v18645_v2  ;;  %v18718_v56 = vadd.f32 %v9346_v54, %v18648_v55 }
0x1b87   : > { %13585 = vtanh.f32 %v9672_v17  ;;  %v9423_v50 = vmul.f32 %v18710_v63, %v18710_v63  ;;  %v18723_v21 = vadd.f32 %v9235_v38, %v18639_v9  ;;  %v18726_v61 = vadd.f32 %v9348_v52, %v18642_v22  ;;  %v18728_v26 = vpop.f32.mrb[8].mxu0  ;;  %v18730_v42 = vpop.f32.mrb[24].mxu1 }
0x1b88   : > { %20088 = vst [vmem:[#allocation53_spill] sm:$0xff] %v18718_v56  ;;  %13587 = vtanh.f32 %v9673_v25  ;;  %v9485_v46 = vmul.f32 %v9421_v43, %v18707_v27  ;;  %v9422_v57 = vmul.f32 %v18715_v28, %v18715_v28  ;;  %v9424_v30 = vmul.f32 %v18718_v56, %v18718_v56  ;;  %v18737_v49 = vpop.f32.mrb[9].mxu0  ;;  %v18739_v45 = vpop.f32.mrb[25].mxu1 }
0x1b89   : > { %13589 = vtanh.f32 %v9675_v36  ;;  %v9487_v32 = vmul.f32 %v9423_v50, %v18710_v63  ;;  %v9425_v37 = vmul.f32 %v18723_v21, %v18723_v21  ;;  %v9427_v54 = vmul.f32 %v18726_v61, %v18726_v61  ;;  %v18746_v24 = vpop.f32.mrb[10].mxu0  ;;  %v18748_v41 = vpop.f32.mrb[26].mxu1 }
0x1b8a   : > { %13591 = vtanh.f32 %v9674_v3  ;;  %v9549_v23 = vmul.f32 0.044715, %v9485_v46  ;;  %v9486_v4 = vmul.f32 %v9422_v57, %v18715_v28  ;;  %v9488_v38 = vmul.f32 %v9424_v30, %v18718_v56  ;;  %v18752_v52 = vpop.f32.mrb[11].mxu0  ;;  %v18754_v8 = vpop.f32.mrb[27].mxu1 }
0x1b8b   : > { %13593 = vtanh.f32 %v9676_v14  ;;  %v9551_v40 = vmul.f32 0.044715, %v9487_v32  ;;  %v9489_v20 = vmul.f32 %v9425_v37, %v18723_v21  ;;  %v9491_v18 = vmul.f32 %v9427_v54, %v18726_v61 }
0x1b8c   : > { %v9613_v39 = vadd.f32 %v9549_v23, %v18707_v27  ;;  %v9550_v17 = vmul.f32 0.044715, %v9486_v4  ;;  %v9552_v58 = vmul.f32 0.044715, %v9488_v38  ;;  %v18760_v15 = vadd.f32 %v9237_v10, %v18645_v2 }
0x1b8d   : > { %v9615_v25 = vadd.f32 %v9551_v40, %v18710_v63  ;;  %v9553_v36 = vmul.f32 0.044715, %v9489_v20  ;;  %v9555_v3 = vmul.f32 0.044715, %v9491_v18  ;;  %v18764_v43 = vadd.f32 %v9350_v1, %v18648_v55 }
0x1b8e   : > { %v13580_v14 = vpop.eup %13579  ;;  %v9677_v50 = vmul.f32 0.7978846, %v9613_v39  ;;  %v9614_v46 = vadd.f32 %v9550_v17, %v18715_v28  ;;  %v9616_v57 = vadd.f32 %v9552_v58, %v18718_v56  ;;  %v9426_v30 = vmul.f32 %v18760_v15, %v18760_v15 }
0x1b8f   : > { %20089 = vst [vmem:[#allocation31_spill] sm:$0xff] %v18764_v43  ;;  %v13582_v32 = vpop.eup %13581  ;;  %v9797_v37 = vadd.f32 1.0, %v13580_v14  ;;  %v9679_v10 = vmul.f32 0.7978846, %v9615_v25  ;;  %v9617_v54 = vadd.f32 %v9553_v36, %v18723_v21  ;;  %v9619_v23 = vadd.f32 %v9555_v3, %v18726_v61  ;;  %v18772_v4 = vpop.f32.mrb[12].mxu0 }
0x1b90   : > { %v18774_v1 = vpop.f32.mrb[28].mxu1  ;;  %v18776_v38 = vpop.eup %13583  ;;  %v9799_v40 = vadd.f32 1.0, %v13582_v32  ;;  %13595 = vtanh.f32 %v9677_v50  ;;  %v9678_v20 = vmul.f32 0.7978846, %v9614_v46  ;;  %v9680_v18 = vmul.f32 0.7978846, %v9616_v57 }
0x1b91   : > { %v18778_v39 = vpop.f32.mrb[13].mxu0  ;;  %v18780_v17 = vpop.eup %13585  ;;  %v9861_v58 = vmul.f32 0.5, %v9797_v37  ;;  %13597 = vtanh.f32 %v9679_v10  ;;  %v9681_v25 = vmul.f32 0.7978846, %v9617_v54  ;;  %v9683_v36 = vmul.f32 0.7978846, %v9619_v23 }
0x1b92   : > { %20090 = vst [vmem:[#allocation72_spill] sm:$0xff] %v18780_v17  ;;  %v18782_v14 = vpop.f32.mrb[29].mxu1  ;;  %v13588_v3 = vpop.eup %13587  ;;  %v9863_v5 = vmul.f32 0.5, %v9799_v40  ;;  %13599 = vtanh.f32 %v9678_v20  ;;  %v9490_v53 = vmul.f32 %v9426_v30, %v18760_v15  ;;  %v9428_v50 = vmul.f32 %v18764_v43, %v18764_v43 }
0x1b93   : > { %v18787_v46 = vpop.f32.mrb[14].mxu0  ;;  %v18789_v57 = vpop.f32.mrb[30].mxu1  ;;  %v18792_v37 = vmul.f32 %v9861_v58, %v18651_v51  ;;  %v9801_v10 = vadd.f32 1.0, %v13588_v3  ;;  %13601 = vtanh.f32 %v9680_v18  ;;  %v18796_v54 = vadd.f32 %v18728_v26, %v18639_v9 }
0x1b94   : > { %v13590_v32 = vpop.eup %13589  ;;  %v18798_v23 = vpop.f32.mrb[15].mxu0  ;;  %v18805_v20 = vmul.f32 %v9863_v5, %v18654_v29  ;;  %13603 = vtanh.f32 %v9681_v25  ;;  %v9554_v6 = vmul.f32 0.044715, %v9490_v53  ;;  %v9492_v18 = vmul.f32 %v9428_v50, %v18764_v43 }
0x1b95   : > { %v18800_v30 = vpop.f32.mrb[31].mxu1  ;;  %v18802_v40 = vpop.eup %13591  ;;  %v9803_v56 = vadd.f32 1.0, %v13590_v32  ;;  %v9865_v58 = vmul.f32 0.5, %v9801_v10  ;;  %13605 = vtanh.f32 %v9683_v36  ;;  %v9429_v26 = vmul.f32 %v18796_v54, %v18796_v54 }
0x1b96   : > { %20091 = vst [vmem:[#allocation34_spill] sm:$0xff] %v18805_v20  ;;  %v18807_v51 = vpop.eup %13593  ;;  %v9618_v7 = vadd.f32 %v9554_v6, %v18760_v15  ;;  %v18815_v17 = vadd.f32 %v18730_v42, %v18642_v22  ;;  %v18819_v5 = vadd.f32 %v18737_v49, %v18645_v2  ;;  %v9556_v29 = vmul.f32 0.044715, %v9492_v18 }
0x1b97   : > { %20092 = vst [vmem:[#allocation73_spill] sm:$0xff] %v18807_v51  ;;  %v9867_v3 = vmul.f32 0.5, %v9803_v56  ;;  %v18822_v53 = vmul.f32 %v9865_v58, %v18667_v48  ;;  %v9493_v25 = vmul.f32 %v9429_v26, %v18796_v54  ;;  %v18827_v36 = vadd.f32 %v18739_v45, %v18648_v55 }
0x1b98   : > { %20093 = vst [vmem:[#allocation63_spill] sm:$0xff] %v18819_v5  ;;  %v9682_v56 = vmul.f32 0.7978846, %v9618_v7  ;;  %v9431_v42 = vmul.f32 %v18815_v17, %v18815_v17  ;;  %v9430_v49 = vmul.f32 %v18819_v5, %v18819_v5  ;;  %v9620_v50 = vadd.f32 %v9556_v29, %v18764_v43 }
0x1b99   : > { %20094 = vst [vmem:[#allocation74_spill] sm:$0xff] %v18827_v36  ;;  %v18830_v6 = vmul.f32 %v9867_v3, %v18670_v44  ;;  %v9557_v32 = vmul.f32 0.044715, %v9493_v25  ;;  %v9432_v45 = vmul.f32 %v18827_v36, %v18827_v36  ;;  %v18851_v44 = vadd.f32 %v18746_v24, %v18639_v9 }
0x1b9a   : > { %v13596_v10 = vpop.eup %13595  ;;  %13607 = vtanh.f32 %v9682_v56  ;;  %v9495_v7 = vmul.f32 %v9431_v42, %v18815_v17  ;;  %v9494_v58 = vmul.f32 %v9430_v49, %v18819_v5  ;;  %v9684_v3 = vmul.f32 0.7978846, %v9620_v50 }
0x1b9b   : > { %20095 = vst [vmem:[#allocation66_spill] sm:$0xff] %v18830_v6  ;;  %v13598_v18 = vpop.eup %13597  ;;  %v9805_v26 = vadd.f32 1.0, %v13596_v10  ;;  %v9621_v48 = vadd.f32 %v9557_v32, %v18796_v54  ;;  %v9496_v29 = vmul.f32 %v9432_v45, %v18827_v36 }
0x1b9c   : > { %v18847_v25 = vpop.eup %13599  ;;  %v9807_v43 = vadd.f32 1.0, %v13598_v18  ;;  %v9559_v51 = vmul.f32 0.044715, %v9495_v7  ;;  %v9558_v47 = vmul.f32 0.044715, %v9494_v58  ;;  %13609 = vtanh.f32 %v9684_v3 }
0x1b9d   : > { %v18853_v56 = vpop.eup %13601  ;;  %v9869_v42 = vmul.f32 0.5, %v9805_v26  ;;  %v9685_v49 = vmul.f32 0.7978846, %v9621_v48  ;;  %v9560_v10 = vmul.f32 0.044715, %v9496_v29  ;;  %v9433_v7 = vmul.f32 %v18851_v44, %v18851_v44 }
0x1b9e   : > { %20096 = vst [vmem:[#allocation35_spill] sm:$0xff] %v18853_v56  ;;  %v13604_v50 = vpop.eup %13603  ;;  %v9871_v20 = vmul.f32 0.5, %v9807_v43  ;;  %v9623_v32 = vadd.f32 %v9559_v51, %v18815_v17  ;;  %v9622_v45 = vadd.f32 %v9558_v47, %v18819_v5  ;;  %v18869_v29 = vadd.f32 %v18748_v41, %v18642_v22 }
0x1b9f   : > { %v13606_v58 = vpop.eup %13605  ;;  %v9809_v18 = vadd.f32 1.0, %v13604_v50  ;;  %13611 = vtanh.f32 %v9685_v49  ;;  %v9624_v24 = vadd.f32 %v9560_v10, %v18827_v36  ;;  %v18861_v6 = vmul.f32 %v9869_v42, %v18707_v27 }
0x1ba0   : > { %v9811_v26 = vadd.f32 1.0, %v13606_v58  ;;  %v9687_v48 = vmul.f32 0.7978846, %v9623_v32  ;;  %v9686_v3 = vmul.f32 0.7978846, %v9622_v45  ;;  %v18864_v43 = vmul.f32 %v9871_v20, %v18710_v63 }
0x1ba1   : > { %v9873_v51 = vmul.f32 0.5, %v9809_v18  ;;  %v9497_v47 = vmul.f32 %v9433_v7, %v18851_v44  ;;  %v18873_v49 = vadd.f32 %v18752_v52, %v18645_v2  ;;  %v18877_v27 = vadd.f32 %v18754_v8, %v18648_v55 }
0x1ba2   : > { %20097 = vst [vmem:[#allocation67_spill] sm:$0xff] %v18864_v43  ;;  %v9875_v50 = vmul.f32 0.5, %v9811_v26  ;;  %13613 = vtanh.f32 %v9687_v48  ;;  %v9688_v20 = vmul.f32 0.7978846, %v9624_v24  ;;  %v9435_v10 = vmul.f32 %v18869_v29, %v18869_v29 }
0x1ba3   : > { %20098 = vst [vmem:[#allocation68_spill] sm:$0xff] %v18873_v49  ;;  %20099 = vst [vmem:[#allocation76_spill] sm:$0xff] %v18877_v27  ;;  %v18880_v63 = vmul.f32 %v9873_v51, %v18723_v21  ;;  %v9561_v42 = vmul.f32 0.044715, %v9497_v47  ;;  %13615 = vtanh.f32 %v9686_v3  ;;  %v9434_v52 = vmul.f32 %v18873_v49, %v18873_v49 }
0x1ba4   : > { %v18884_v41 = vpop.eup %13607  ;;  %v18887_v32 = vmul.f32 %v9875_v50, %v18726_v61  ;;  %v9436_v8 = vmul.f32 %v18877_v27, %v18877_v27  ;;  %v9499_v7 = vmul.f32 %v9435_v10, %v18869_v29  ;;  %v18899_v58 = vadd.f32 %v18772_v4, %v18639_v9 }
0x1ba5   : > { %v9625_v45 = vadd.f32 %v9561_v42, %v18851_v44  ;;  %v9498_v18 = vmul.f32 %v9434_v52, %v18873_v49  ;;  %v18907_v26 = vadd.f32 %v18774_v1, %v18642_v22  ;;  %v18919_v42 = vadd.f32 %v18778_v39, %v18645_v2 }
0x1ba6   : > { %20100 = vst [vmem:[#allocation42_spill] sm:$0xff] %v18887_v32  ;;  %v9500_v24 = vmul.f32 %v9436_v8, %v18877_v27  ;;  %v18909_v48 = vpop.f32.mrb[16].mxu0  ;;  %v18911_v3 = vpop.f32.mrb[32].mxu1  ;;  %v9563_v4 = vmul.f32 0.044715, %v9499_v7  ;;  %v9437_v50 = vmul.f32 %v18899_v58, %v18899_v58 }
0x1ba7   : > { %v18913_v51 = vpop.eup %13609  ;;  %v9689_v47 = vmul.f32 0.7978846, %v9625_v45  ;;  %20102 = vst [vmem:[#allocation39_spill] sm:$0xff] %v18919_v42  ;;  %v18921_v10 = vpop.f32.mrb[17].mxu0  ;;  %v9562_v1 = vmul.f32 0.044715, %v9498_v18  ;;  %v9439_v61 = vmul.f32 %v18907_v26, %v18907_v26  ;;  %v18929_v45 = vadd.f32 %v18782_v14, %v18648_v55 }
0x1ba8   : > { %20101 = vst [vmem:[#allocation75_spill] sm:$0xff] %v18913_v51  ;;  %v18923_v52 = vpop.f32.mrb[33].mxu1  ;;  %v9564_v8 = vmul.f32 0.044715, %v9500_v24  ;;  %v18931_v7 = vpop.f32.mrb[18].mxu0  ;;  %v9627_v39 = vadd.f32 %v9563_v4, %v18869_v29  ;;  %v9501_v32 = vmul.f32 %v9437_v50, %v18899_v58  ;;  %v9438_v18 = vmul.f32 %v18919_v42, %v18919_v42 }
0x1ba9   : > { %20103 = vst [vmem:[#allocation40_spill] sm:$0xff] %v18929_v45  ;;  %v18933_v21 = vpop.f32.mrb[34].mxu1  ;;  %v13612_v43 = vpop.eup %13611  ;;  %13617 = vtanh.f32 %v9689_v47  ;;  %v9626_v14 = vadd.f32 %v9562_v1, %v18873_v49  ;;  %v9503_v62 = vmul.f32 %v9439_v61, %v18907_v26  ;;  %v9440_v50 = vmul.f32 %v18929_v45, %v18929_v45 }
0x1baa   : > { %v18939_v24 = vpop.f32.mrb[19].mxu0  ;;  %v18941_v36 = vpop.f32.mrb[35].mxu1  ;;  %v9813_v51 = vadd.f32 1.0, %v13612_v43  ;;  %v9628_v56 = vadd.f32 %v9564_v8, %v18877_v27  ;;  %v9691_v5 = vmul.f32 0.7978846, %v9627_v39  ;;  %v9502_v4 = vmul.f32 %v9438_v18, %v18919_v42 }
0x1bab   : > { %v9565_v47 = vmul.f32 0.044715, %v9501_v32  ;;  %13619 = vtanh.f32 %v9688_v20  ;;  %v9690_v11 = vmul.f32 0.7978846, %v9626_v14  ;;  %v18951_v43 = vadd.f32 %v18787_v46, %v18639_v9 }
0x1bac   : > { %v13614_v0 = vpop.eup %13613  ;;  %v9877_v60 = vmul.f32 0.5, %v9813_v51  ;;  %13621 = vtanh.f32 %v9691_v5  ;;  %v9567_v61 = vmul.f32 0.044715, %v9503_v62  ;;  %v18959_v18 = vmul.f32 0.7978846, %v9628_v56 }
0x1bad   : > { %v9815_v1 = vadd.f32 1.0, %v13614_v0  ;;  %v9629_v8 = vadd.f32 %v9565_v47, %v18899_v58  ;;  %v18954_v39 = vpop.eup %13615  ;;  %v9566_v27 = vmul.f32 0.044715, %v9502_v4  ;;  %v9504_v20 = vmul.f32 %v9440_v50, %v18929_v45 }
0x1bae   : > { %v18957_v32 = vmul.f32 %v9877_v60, %v18796_v54  ;;  %20104 = vst [vmem:[#allocation71_spill] sm:$0xff] %v18959_v18  ;;  %v18962_v51 = vpop.f32.mrb[20].mxu0  ;;  %v18964_v14 = vpop.f32.mrb[36].mxu1  ;;  %13623 = vtanh.f32 %v9690_v11  ;;  %v9631_v5 = vadd.f32 %v9567_v61, %v18907_v26  ;;  %v9441_v56 = vmul.f32 %v18951_v43, %v18951_v43 }
0x1baf   : > { %v9879_v46 = vmul.f32 0.5, %v9815_v1  ;;  %v9693_v0 = vmul.f32 0.7978846, %v9629_v8  ;;  %v18967_v62 = vpop.f32.mrb[21].mxu0  ;;  %v18969_v47 = vpop.f32.mrb[37].mxu1  ;;  %v9630_v60 = vadd.f32 %v9566_v27, %v18919_v42  ;;  %v18976_v4 = vadd.f32 %v18789_v57, %v18642_v22 }
0x1bb0   : > { %20105 = vst [vmem:[#allocation64_spill] sm:$0xff] %v18967_v62  ;;  %20106 = vst [vmem:[#allocation44_spill] sm:$0xff] %v18969_v47  ;;  %v9568_v54 = vmul.f32 0.044715, %v9504_v20  ;;  %v18978_v50 = vpop.f32.mrb[22].mxu0  ;;  %v18980_v11 = vpop.f32.mrb[38].mxu1  ;;  %v18987_v27 = vadd.f32 %v18798_v23, %v18645_v2  ;;  %v9505_v42 = vmul.f32 %v9441_v56, %v18951_v43  ;;  %v19001_v23 = vadd.f32 %v18800_v30, %v18648_v55 }
0x1bb1   : > { %20107 = vst [vmem:[#allocation41_spill] sm:$0xff] %v18978_v50  ;;  %20108 = vst [vmem:[#allocation43_spill] sm:$0xff] %v18980_v11  ;;  %v18983_v1 = vmul.f32 %v9879_v46, %v18815_v17  ;;  %13625 = vtanh.f32 %v9693_v0  ;;  %v9695_v8 = vmul.f32 0.7978846, %v9631_v5  ;;  %v18989_v61 = vpop.f32.mrb[23].mxu0  ;;  %v18991_v20 = vpop.f32.mrb[39].mxu1  ;;  %v9443_v11 = vmul.f32 %v18976_v4, %v18976_v4 }
0x1bb2   : > { %20110 = vst [vmem:[#allocation33_spill] sm:$0xff] %v18989_v61  ;;  %20111 = vst [vmem:[#allocation58_spill] sm:$0xff] %v18991_v20  ;;  %v9694_v18 = vmul.f32 0.7978846, %v9630_v60  ;;  %v9632_v57 = vadd.f32 %v9568_v54, %v18929_v45  ;;  %v9442_v46 = vmul.f32 %v18987_v27, %v18987_v27  ;;  %v9798_v0 = vadd.f32 1.0, %v18776_v38 }
0x1bb3   : > { %20109 = vst [vmem:[#allocation46_spill] sm:$0xff] %v18983_v1  ;;  %v13618_v17 = vpop.eup %13617  ;;  %13627 = vtanh.f32 %v9695_v8  ;;  %v9569_v54 = vmul.f32 0.044715, %v9505_v42  ;;  %v9507_v56 = vmul.f32 %v9443_v11, %v18976_v4  ;;  %v9444_v8 = vmul.f32 %v19001_v23, %v19001_v23 }
0x1bb4   : > { %v9817_v5 = vadd.f32 1.0, %v13618_v17  ;;  %13629 = vtanh.f32 %v9694_v18  ;;  %v9696_v60 = vmul.f32 0.7978846, %v9632_v57  ;;  %v9506_v45 = vmul.f32 %v9442_v46, %v18987_v27 }
0x1bb5   : > { %v9802_v20 = vadd.f32 1.0, %v18802_v40  ;;  %v19009_v61 = vpop.eup %13619  ;;  %v9633_v30 = vadd.f32 %v9569_v54, %v18951_v43  ;;  %v9862_v38 = vmul.f32 0.5, %v9798_v0  ;;  %v9571_v18 = vmul.f32 0.044715, %v9507_v56 }
0x1bb6   : > { %20112 = vst [vmem:[#allocation32_spill] sm:$0xff] %v19009_v61  ;;  %v9881_v50 = vmul.f32 0.5, %v9817_v5  ;;  %13631 = vtanh.f32 %v9696_v60  ;;  %v13622_v17 = vpop.eup %13621  ;;  %v9570_v57 = vmul.f32 0.044715, %v9506_v45  ;;  %v9508_v42 = vmul.f32 %v9444_v8, %v19001_v23 }
0x1bb7   : > { %v9866_v11 = vmul.f32 0.5, %v9802_v20  ;;  %v9819_v49 = vadd.f32 1.0, %v13622_v17  ;;  %v9697_v47 = vmul.f32 0.7978846, %v9633_v30  ;;  %v9926_v40 = vmul.f32 %v9862_v38, %v18657_v34 }
0x1bb8   : > { %v19014_v46 = vmul.f32 %v9881_v50, %v18851_v44  ;;  %v19017_v62 = vpop.eup %13623  ;;  %v9635_v5 = vadd.f32 %v9571_v18, %v18976_v4  ;;  %v9634_v60 = vadd.f32 %v9570_v57, %v18987_v27  ;;  %v9572_v0 = vmul.f32 0.044715, %v9508_v42 }
0x1bb9   : > { %v9930_v54 = vmul.f32 %v9866_v11, %v18677_v12  ;;  %v9883_v20 = vmul.f32 0.5, %v9819_v49  ;;  %13633 = vtanh.f32 %v9697_v47  ;;  %v9806_v44 = vadd.f32 1.0, %v18847_v25 }
0x1bba   : > { %v9699_v56 = vmul.f32 0.7978846, %v9635_v5  ;;  %v9698_v8 = vmul.f32 0.7978846, %v9634_v60  ;;  %v9636_v34 = vadd.f32 %v9572_v0, %v19001_v23  ;;  %v9810_v18 = vadd.f32 1.0, %v18884_v41 }
0x1bbb   : > { %v13626_v50 = vpop.eup %13625  ;;  %v9990_v30 = vpack.c.bf16 %v9930_v54, %v9926_v40  ;;  %v19027_v38 = vmul.f32 %v9883_v20, %v18869_v29  ;;  %v9870_v12 = vmul.f32 0.5, %v9806_v44  ;;  %v19032_v25 = vadd.f32 %v18909_v48, %v18639_v9 }
0x1bbc   : > { %v9821_v17 = vadd.f32 1.0, %v13626_v50  ;;  %13635 = vtanh.f32 %v9699_v56  ;;  %v9700_v42 = vmul.f32 0.7978846, %v9636_v34  ;;  %v19036_v49 = vadd.f32 %v18911_v3, %v18642_v22 }
0x1bbd   : > { %20113 = vst [vmem:[#allocation65_spill] sm:$0xff] %v19027_v38  ;;  %v13628_v57 = vpop.eup %13627  ;;  %10249 = vmatprep.mubr.bf16.mxu0 %v9990_v30  ;;  %13637 = vtanh.f32 %v9698_v8  ;;  %v20114_v40 = vpack.c.bf16 %v18822_v53, %v18792_v37  ;;  %v9874_v5 = vmul.f32 0.5, %v9810_v18  ;;  %v9934_v48 = vmul.f32 %v9870_v12, %v18715_v28  ;;  %v20128_v38 = vld [vmem:[#allocation54_spill] sm:$0xff] }
0x1bbe   : > { %v19038_v47 = vpop.eup %13629  ;;  %v9885_v11 = vmul.f32 0.5, %v9821_v17  ;;  %v9823_v41 = vadd.f32 1.0, %v13628_v57  ;;  %13639 = vtanh.f32 %v9700_v42  ;;  %v9445_v3 = vmul.f32 %v19032_v25, %v19032_v25 }
0x1bbf   : > { %10250 = vmatmul.mubr.bf16.vlgmr.msra.gmra.mrb[32].mxu0 %v20114_v40  ;;  %v9447_v20 = vmul.f32 %v19036_v49, %v19036_v49  ;;  %v19058_v37 = vadd.f32 %v18921_v10, %v18645_v2  ;;  %v19073_v50 = vadd.f32 %v18931_v7, %v18639_v9  ;;  %v19107_v40 = vadd.f32 %v18939_v24, %v18645_v2 }
0x1bc0   : > { %11487 = vmatpush3.bf16.msra.mxu0 %v18599_v59  ;;  %v19049_v60 = vpop.eup %13631  ;;  %v19052_v0 = vmul.f32 %v9885_v11, %v18899_v58  ;;  %v9887_v54 = vmul.f32 0.5, %v9823_v41  ;;  %v19061_v28 = vpop.f32.mrb[24].mxu0  ;;  %v9938_v59 = vmul.f32 %v9874_v5, %v18760_v15  ;;  %v9509_v44 = vmul.f32 %v9445_v3, %v19032_v25 }
0x1bc1   : > { %11488 = vmatprep.subr.bf16.mxu0 %v18602_v13  ;;  %v19063_v53 = vpop.f32.mrb[40].mxu1  ;;  %v19069_v58 = vadd.f32 %v18923_v52, %v18648_v55  ;;  %v19075_v10 = vpop.f32.mrb[25].mxu0  ;;  %v9511_v8 = vmul.f32 %v9447_v20, %v19036_v49  ;;  %v9446_v15 = vmul.f32 %v19058_v37, %v19058_v37  ;;  %v19087_v52 = vadd.f32 %v18933_v21, %v18642_v22 }
0x1bc2   : > { %v19077_v56 = vpop.f32.mrb[41].mxu1  ;;  %v19080_v13 = vmul.f32 %v9887_v54, %v18907_v26  ;;  %v19089_v34 = vpop.f32.mrb[26].mxu0  ;;  %v9994_v30 = vpack.c.bf16 %v9938_v59, %v9934_v48  ;;  %v9573_v17 = vmul.f32 0.044715, %v9509_v44  ;;  %v9449_v26 = vmul.f32 %v19073_v50, %v19073_v50 }
0x1bc3   : > { %v19091_v7 = vpop.f32.mrb[42].mxu1  ;;  %v9448_v18 = vmul.f32 %v19069_v58, %v19069_v58  ;;  %v19098_v12 = vpop.f32.mrb[27].mxu0  ;;  %v9575_v42 = vmul.f32 0.044715, %v9511_v8  ;;  %v9510_v11 = vmul.f32 %v9446_v15, %v19058_v37  ;;  %v9451_v41 = vmul.f32 %v19087_v52, %v19087_v52 }
0x1bc4   : > { %11489 = vmatpush3.bf16.msra.mxu0 %v18604_v19  ;;  %v19100_v57 = vpop.f32.mrb[43].mxu1  ;;  %v13634_v21 = vpop.eup %13633  ;;  %10256 = vmatprep.mubr.bf16.mxu0 %v9994_v30  ;;  %v9637_v19 = vadd.f32 %v9573_v17, %v19032_v25  ;;  %v9513_v3 = vmul.f32 %v9449_v26, %v19073_v50  ;;  %v20115_v54 = vpack.c.bf16 %v18880_v63, %v18861_v6 }
0x1bc5   : > { %11490 = vmatprep.subr.bf16.mxu0 %v18608_v33  ;;  %v9825_v5 = vadd.f32 1.0, %v13634_v21  ;;  %v9512_v48 = vmul.f32 %v9448_v18, %v19069_v58  ;;  %v9639_v20 = vadd.f32 %v9575_v42, %v19036_v49  ;;  %v9574_v59 = vmul.f32 0.044715, %v9510_v11 }
0x1bc6   : > { %v9515_v24 = vmul.f32 %v9451_v41, %v19087_v52  ;;  %v9450_v33 = vmul.f32 %v19107_v40, %v19107_v40  ;;  %v13636_v44 = vpop.eup %13635  ;;  %v9701_v15 = vmul.f32 0.7978846, %v9637_v19  ;;  %v19122_v17 = vadd.f32 %v18941_v36, %v18648_v55 }
0x1bc7   : > { %10257 = vmatmul.mubr.bf16.gmra.mrb[36].mxu0 %v20115_v54  ;;  %v9889_v8 = vmul.f32 0.5, %v9825_v5  ;;  %v9576_v30 = vmul.f32 0.044715, %v9512_v48  ;;  %v19125_v6 = vpop.eup %13637  ;;  %v9827_v63 = vadd.f32 1.0, %v13636_v44  ;;  %v9703_v18 = vmul.f32 0.7978846, %v9639_v20 }
0x1bc8   : > { %11491 = vmatpush3.bf16.msra.mxu0 %v18610_v31  ;;  %v9638_v26 = vadd.f32 %v9574_v59, %v19058_v37  ;;  %v9577_v21 = vmul.f32 0.044715, %v9513_v3  ;;  %v19128_v42 = vpop.f32.mrb[28].mxu0  ;;  %v19131_v11 = vpop.eup %13639  ;;  %13641 = vtanh.f32 %v9701_v15  ;;  %v9579_v31 = vmul.f32 0.044715, %v9515_v24 }
0x1bc9   : > { %11492 = vmatprep.subr.bf16.mxu0 %v18614_v16  ;;  %v19134_v41 = vmul.f32 %v9889_v8, %v18951_v43  ;;  %v9640_v36 = vadd.f32 %v9576_v30, %v19069_v58  ;;  %v19137_v5 = vpop.f32.mrb[44].mxu1  ;;  %v19139_v19 = vpop.f32.mrb[29].mxu0  ;;  %v9891_v48 = vmul.f32 0.5, %v9827_v63  ;;  %13643 = vtanh.f32 %v9703_v18 }
0x1bca   : > { %v9702_v3 = vmul.f32 0.7978846, %v9638_v26  ;;  %v9641_v54 = vadd.f32 %v9577_v21, %v19073_v50  ;;  %v19142_v20 = vpop.f32.mrb[45].mxu1  ;;  %v19144_v16 = vpop.f32.mrb[30].mxu0  ;;  %v9643_v44 = vadd.f32 %v9579_v31, %v19087_v52  ;;  %v9514_v24 = vmul.f32 %v9450_v33, %v19107_v40  ;;  %v20119_v21 = vld [vmem:[#allocation50_spill] sm:$0xff] }
0x1bcb   : > { %v9704_v59 = vmul.f32 0.7978846, %v9640_v36  ;;  %v19150_v8 = vpop.f32.mrb[46].mxu1  ;;  %v19152_v15 = vpop.f32.mrb[31].mxu0  ;;  %v19156_v30 = vmul.f32 %v9891_v48, %v18976_v4  ;;  %v9452_v18 = vmul.f32 %v19122_v17, %v19122_v17  ;;  %v9814_v31 = vadd.f32 1.0, %v18954_v39 }
0x1bcc   : > { %20116 = vst [vmem:[#allocation28_spill] sm:$0xff] %v19150_v8  ;;  %20117 = vst [vmem:[#allocation70_spill] sm:$0xff] %v19152_v15  ;;  %11493 = vmatpush3.bf16.msra.mxu0 %v18616_v35  ;;  %13645 = vtanh.f32 %v9702_v3  ;;  %v9705_v63 = vmul.f32 0.7978846, %v9641_v54  ;;  %v19160_v26 = vpop.f32.mrb[47].mxu1  ;;  %v9818_v48 = vadd.f32 1.0, %v19017_v62 }
0x1bcd   : > { %20118 = vst [vmem:[#allocation69_spill] sm:$0xff] %v19160_v26  ;;  %11494 = vmatprep.subr.bf16.mxu0 %v20119_v21  ;;  %13647 = vtanh.f32 %v9704_v59  ;;  %v9707_v33 = vmul.f32 0.7978846, %v9643_v44  ;;  %v9578_v36 = vmul.f32 0.044715, %v9514_v24  ;;  %v9516_v4 = vmul.f32 %v9452_v18, %v19122_v17  ;;  %v20120_v59 = vld [vmem:[#allocation48_spill] sm:$0xff] }
0x1bce   : > { %13649 = vtanh.f32 %v9705_v63  ;;  %v9878_v54 = vmul.f32 0.5, %v9814_v31  ;;  %v19171_v21 = vadd.f32 %v18962_v51, %v18639_v9  ;;  %v9882_v39 = vmul.f32 0.5, %v9818_v48  ;;  %v20121_v63 = vld [vmem:[#allocation64_spill] sm:$0xff]  ;;  %v20122_v62 = vld [vmem:[#allocation47_spill] sm:$0xff] }
0x1bcf   : > { %13651 = vtanh.f32 %v9707_v33  ;;  %v9642_v3 = vadd.f32 %v9578_v36, %v19107_v40  ;;  %v9580_v44 = vmul.f32 0.044715, %v9516_v4  ;;  %v19176_v24 = vadd.f32 %v18964_v14, %v18642_v22  ;;  %v20123_v36 = vld [vmem:[#allocation63_spill] sm:$0xff]  ;;  %v20125_v14 = vld [vmem:[#allocation68_spill] sm:$0xff] }
0x1bd0   : > { %11495 = vmatpush3.bf16.msra.mxu0 %v20120_v59  ;;  %v19180_v18 = vadd.f32 %v20121_v63, %v18645_v2  ;;  %v9942_v31 = vmul.f32 %v9878_v54, %v20123_v36  ;;  %v9453_v51 = vmul.f32 %v19171_v21, %v19171_v21  ;;  %v20124_v59 = vld [vmem:[#allocation44_spill] sm:$0xff]  ;;  %v9946_v29 = vmul.f32 %v9882_v39, %v20125_v14 }
0x1bd1   : > { %11496 = vmatprep.subr.bf16.mxu0 %v20122_v62  ;;  %v9706_v33 = vmul.f32 0.7978846, %v9642_v3  ;;  %v19188_v4 = vadd.f32 %v20124_v59, %v18648_v55  ;;  %v9644_v48 = vadd.f32 %v9580_v44, %v19122_v17  ;;  %v9455_v63 = vmul.f32 %v19176_v24, %v19176_v24  ;;  %v20126_v59 = vld [vmem:[#allocation41_spill] sm:$0xff] }
0x1bd2   : > { %v9454_v62 = vmul.f32 %v19180_v18, %v19180_v18  ;;  %v13642_v3 = vpop.eup %13641  ;;  %v9517_v54 = vmul.f32 %v9453_v51, %v19171_v21  ;;  %v19201_v35 = vadd.f32 %v20126_v59, %v18639_v9  ;;  %v20127_v44 = vld [vmem:[#allocation49_spill] sm:$0xff]  ;;  %v9998_v45 = vpack.c.bf16 %v9946_v29, %v9942_v31 }
0x1bd3   : > { %13653 = vtanh.f32 %v9706_v33  ;;  %v9456_v36 = vmul.f32 %v19188_v4, %v19188_v4  ;;  %v13644_v39 = vpop.eup %13643  ;;  %v9829_v14 = vadd.f32 1.0, %v13642_v3  ;;  %v9708_v43 = vmul.f32 0.7978846, %v9644_v48 }
0x1bd4   : > { %11497 = vmatpush3.bf16.msra.mxu0 %v20127_v44  ;;  %v9519_v1 = vmul.f32 %v9455_v63, %v19176_v24  ;;  %v9831_v33 = vadd.f32 1.0, %v13644_v39  ;;  %v9581_v61 = vmul.f32 0.044715, %v9517_v54  ;;  %v9518_v51 = vmul.f32 %v9454_v62, %v19180_v18  ;;  %10262 = vmatprep.mubr.bf16.mxu0 %v9998_v45 }
0x1bd5   : > { %11498 = vmatprep.subr.bf16.mxu0 %v20128_v38  ;;  %v9520_v26 = vmul.f32 %v9456_v36, %v19188_v4  ;;  %v9893_v59 = vmul.f32 0.5, %v9829_v14  ;;  %13655 = vtanh.f32 %v9708_v43  ;;  %v9457_v48 = vmul.f32 %v19201_v35, %v19201_v35  ;;  %v20130_v43 = vld [vmem:[#allocation43_spill] sm:$0xff] }
0x1bd6   : > { %v19208_v15 = vpop.eup %13645  ;;  %v9583_v44 = vmul.f32 0.044715, %v9519_v1  ;;  %v9895_v31 = vmul.f32 0.5, %v9831_v33  ;;  %v20129_v38 = vpack.c.bf16 %v19014_v46, %v18957_v32  ;;  %v9645_v63 = vadd.f32 %v9581_v61, %v19171_v21  ;;  %v13715_v14 = vld [vmem:[#allocation7 + $0x1b0] sm:$0xff]  }
0x1bd7   : > { %v19212_v29 = vpop.eup %13647  ;;  %v9582_v62 = vmul.f32 0.044715, %v9518_v51  ;;  %v9584_v3 = vmul.f32 0.044715, %v9520_v26  ;;  %v19219_v36 = vmul.f32 %v9893_v59, %v19032_v25  ;;  %v9521_v45 = vmul.f32 %v9457_v48, %v19201_v35  ;;  %v13716_v25 = vld [vmem:[#allocation7 + $0x1f8] sm:$0xff]  }
0x1bd8   : > { %10263 = vmatmul.mubr.bf16.gmra.mrb[40].mxu0 %v20129_v38  ;;  %v13650_v54 = vpop.eup %13649  ;;  %v9647_v1 = vadd.f32 %v9583_v44, %v19176_v24  ;;  %v19225_v39 = vadd.f32 %v20130_v43, %v18642_v22  ;;  %v19228_v46 = vmul.f32 %v9895_v31, %v19036_v49  ;;  %v9709_v26 = vmul.f32 0.7978846, %v9645_v63  ;;  %v13717_v63 = vld [vmem:[#allocation7 + $0x1b8] sm:$0xff]  }
0x1bd9   : > { %11499 = vmatpush3.bf16.msra.mxu0 %v13715_v14  ;;  %v13652_v32 = vpop.eup %13651  ;;  %v9833_v61 = vadd.f32 1.0, %v13650_v54  ;;  %v9646_v33 = vadd.f32 %v9582_v62, %v19180_v18  ;;  %v9648_v44 = vadd.f32 %v9584_v3, %v19188_v4  ;;  %v9585_v48 = vmul.f32 0.044715, %v9521_v45 }
0x1bda   : > { %11500 = vmatprep.subr.bf16.mxu0 %v13716_v25  ;;  %v9835_v51 = vadd.f32 1.0, %v13652_v32  ;;  %v9711_v59 = vmul.f32 0.7978846, %v9647_v1  ;;  %13657 = vtanh.f32 %v9709_v26  ;;  %v9459_v14 = vmul.f32 %v19225_v39, %v19225_v39  ;;  %v20131_v1 = vld [vmem:[#allocation33_spill] sm:$0xff]  ;;  %v20132_v26 = vld [vmem:[#allocation58_spill] sm:$0xff] }
0x1bdb   : > { %v9897_v38 = vmul.f32 0.5, %v9833_v61  ;;  %v9710_v43 = vmul.f32 0.7978846, %v9646_v33  ;;  %v9712_v49 = vmul.f32 0.7978846, %v9648_v44  ;;  %v9649_v31 = vadd.f32 %v9585_v48, %v19201_v35 }
0x1bdc   : > { %v9899_v8 = vmul.f32 0.5, %v9835_v51  ;;  %13659 = vtanh.f32 %v9711_v59  ;;  %v9523_v3 = vmul.f32 %v9459_v14, %v19225_v39  ;;  %v19243_v45 = vadd.f32 %v20131_v1, %v18645_v2 }
0x1bdd   : > { %11501 = vmatpush3.bf16.msra.mxu0 %v13717_v63  ;;  %v19235_v62 = vpop.eup %13653  ;;  %v19238_v54 = vmul.f32 %v9897_v38, %v19073_v50  ;;  %13661 = vtanh.f32 %v9710_v43  ;;  %v9713_v61 = vmul.f32 0.7978846, %v9649_v31  ;;  %v19250_v33 = vadd.f32 %v20132_v26, %v18648_v55  ;;  %v20133_v26 = vld [vmem:[#allocation39_spill] sm:$0xff] }
0x1bde   : > { %v19246_v32 = vmul.f32 %v9899_v8, %v19087_v52  ;;  %13663 = vtanh.f32 %v9712_v49  ;;  %v9587_v25 = vmul.f32 0.044715, %v9523_v3  ;;  %v9458_v51 = vmul.f32 %v19243_v45, %v19243_v45 }
0x1bdf   : > { %v9822_v59 = vadd.f32 1.0, %v19038_v47  ;;  %v19257_v44 = vpop.eup %13655  ;;  %13665 = vtanh.f32 %v9713_v61  ;;  %v9460_v8 = vmul.f32 %v19250_v33, %v19250_v33  ;;  %v9826_v48 = vadd.f32 1.0, %v19125_v6 }
0x1be0   : > { %v9651_v38 = vadd.f32 %v9587_v25, %v19225_v39  ;;  %v9522_v43 = vmul.f32 %v9458_v51, %v19243_v45  ;;  %v9824_v49 = vadd.f32 1.0, %v19049_v60  ;;  %v9828_v63 = vadd.f32 1.0, %v19131_v11 }
0x1be1   : > { %v9886_v14 = vmul.f32 0.5, %v9822_v59  ;;  %v9524_v47 = vmul.f32 %v9460_v8, %v19250_v33  ;;  %v9890_v31 = vmul.f32 0.5, %v9826_v48  ;;  %v19271_v3 = vadd.f32 %v19061_v28, %v18639_v9  ;;  %v20134_v48 = vld [vmem:[#allocation40_spill] sm:$0xff] }
0x1be2   : > { %v9715_v1 = vmul.f32 0.7978846, %v9651_v38  ;;  %v9586_v61 = vmul.f32 0.044715, %v9522_v43  ;;  %v9888_v52 = vmul.f32 0.5, %v9824_v49  ;;  %v9892_v59 = vmul.f32 0.5, %v9828_v63 }
0x1be3   : > { %v9950_v6 = vmul.f32 %v9886_v14, %v20133_v26  ;;  %v9588_v25 = vmul.f32 0.044715, %v9524_v47  ;;  %v9954_v51 = vmul.f32 %v9890_v31, %v18987_v27  ;;  %v9461_v60 = vmul.f32 %v19271_v3, %v19271_v3 }
0x1be4   : > { %v13658_v8 = vpop.eup %13657  ;;  %13667 = vtanh.f32 %v9715_v1  ;;  %v9650_v11 = vadd.f32 %v9586_v61, %v19243_v45  ;;  %v9952_v50 = vmul.f32 %v9888_v52, %v20134_v48  ;;  %v19281_v28 = vadd.f32 %v19063_v53, %v18642_v22 }
0x1be5   : > { %v9837_v43 = vadd.f32 1.0, %v13658_v8  ;;  %v9652_v14 = vadd.f32 %v9588_v25, %v19250_v33  ;;  %v10002_v49 = vpack.c.bf16 %v9954_v51, %v9950_v6  ;;  %v9956_v27 = vmul.f32 %v9892_v59, %v19001_v23 }
0x1be6   : > { %v13660_v38 = vpop.eup %13659  ;;  %v9714_v63 = vmul.f32 0.7978846, %v9650_v11  ;;  %v9525_v1 = vmul.f32 %v9461_v60, %v19271_v3  ;;  %v9463_v52 = vmul.f32 %v19281_v28, %v19281_v28  ;;  %v19294_v6 = vadd.f32 %v19075_v10, %v18645_v2 }
0x1be7   : > { %v19285_v47 = vpop.eup %13661  ;;  %v9839_v31 = vadd.f32 1.0, %v13660_v38  ;;  %v9901_v53 = vmul.f32 0.5, %v9837_v43  ;;  %v9716_v26 = vmul.f32 0.7978846, %v9652_v14  ;;  %10268 = vmatprep.mubr.bf16.mxu0 %v10002_v49  ;;  %v10004_v8 = vpack.c.bf16 %v9956_v27, %v9952_v50 }
0x1be8   : > { %v19290_v61 = vpop.eup %13663  ;;  %13669 = vtanh.f32 %v9714_v63  ;;  %v20135_v25 = vpack.c.bf16 %v19134_v41, %v19052_v0  ;;  %v9589_v51 = vmul.f32 0.044715, %v9525_v1  ;;  %v9527_v59 = vmul.f32 %v9463_v52, %v19281_v28 }
0x1be9   : > { %v9903_v23 = vmul.f32 0.5, %v9839_v31  ;;  %v13666_v60 = vpop.eup %13665  ;;  %v19301_v11 = vmul.f32 %v9901_v53, %v19171_v21  ;;  %13671 = vtanh.f32 %v9716_v26  ;;  %10350 = vmatprep.mubr.bf16.mxu1 %v10004_v8  ;;  %v9462_v50 = vmul.f32 %v19294_v6, %v19294_v6 }
0x1bea   : > { %10269 = vmatmul.mubr.bf16.gmra.mrb[44].mxu0 %v20135_v25  ;;  %v19307_v10 = vadd.f32 %v19077_v56, %v18648_v55  ;;  %v9841_v0 = vadd.f32 1.0, %v13666_v60  ;;  %v20136_v41 = vpack.c.bf16 %v19156_v30, %v19080_v13  ;;  %v9653_v21 = vadd.f32 %v9589_v51, %v19271_v3 }
0x1beb   : > { %v19310_v48 = vmul.f32 %v9903_v23, %v19176_v24  ;;  %v9591_v38 = vmul.f32 0.044715, %v9527_v59  ;;  %v9526_v43 = vmul.f32 %v9462_v50, %v19294_v6  ;;  %v19321_v56 = vadd.f32 %v19089_v34, %v18639_v9 }
0x1bec   : > { %10351 = vmatmul.mubr.bf16.vlgmr.msra.gmra.mrb[48].mxu1 %v20136_v41  ;;  %v9464_v14 = vmul.f32 %v19307_v10, %v19307_v10  ;;  %v19325_v24 = vadd.f32 %v19091_v7, %v18642_v22  ;;  %v9905_v49 = vmul.f32 0.5, %v9841_v0  ;;  %v9717_v27 = vmul.f32 0.7978846, %v9653_v21 }
0x1bed   : > { %v9655_v13 = vadd.f32 %v9591_v38, %v19281_v28  ;;  %v19330_v30 = vadd.f32 %v19098_v12, %v18645_v2  ;;  %v9590_v31 = vmul.f32 0.044715, %v9526_v43  ;;  %v9465_v1 = vmul.f32 %v19321_v56, %v19321_v56 }
0x1bee   : > { %v9528_v63 = vmul.f32 %v9464_v14, %v19307_v10  ;;  %v9467_v34 = vmul.f32 %v19325_v24, %v19325_v24  ;;  %v13668_v52 = vpop.eup %13667  ;;  %v19338_v7 = vmul.f32 %v9905_v49, %v19201_v35  ;;  %13673 = vtanh.f32 %v9717_v27 }
0x1bef   : > { %v9719_v53 = vmul.f32 0.7978846, %v9655_v13  ;;  %v9466_v26 = vmul.f32 %v19330_v30, %v19330_v30  ;;  %v9843_v12 = vadd.f32 1.0, %v13668_v52  ;;  %v9654_v8 = vadd.f32 %v9590_v31, %v19294_v6 }
0x1bf0   : > { %v9592_v23 = vmul.f32 0.044715, %v9528_v63  ;;  %v9529_v25 = vmul.f32 %v9465_v1, %v19321_v56  ;;  %v10009_v51 = vpack.c.bf16 %v19338_v7, %v19301_v11  ;;  %v9531_v59 = vmul.f32 %v9467_v34, %v19325_v24 }
0x1bf1   : > { %13675 = vtanh.f32 %v9719_v53  ;;  %v9530_v35 = vmul.f32 %v9466_v26, %v19330_v30  ;;  %v9907_v60 = vmul.f32 0.5, %v9843_v12  ;;  %v9718_v50 = vmul.f32 0.7978846, %v9654_v8 }
0x1bf2   : > { %v9656_v0 = vadd.f32 %v9592_v23, %v19307_v10  ;;  %v9593_v41 = vmul.f32 0.044715, %v9529_v25  ;;  %v19349_v21 = vpop.eup %13669  ;;  %v9595_v38 = vmul.f32 0.044715, %v9531_v59  ;;  %v19353_v14 = vadd.f32 %v19100_v57, %v18648_v55 }
0x1bf3   : > { %v9594_v43 = vmul.f32 0.044715, %v9530_v35  ;;  %v19357_v49 = vadd.f32 %v19128_v42, %v18639_v9  ;;  %v19359_v27 = vpop.eup %13671  ;;  %v19362_v13 = vmul.f32 %v9907_v60, %v19225_v39  ;;  %13677 = vtanh.f32 %v9718_v50 }
0x1bf4   : > { %v9720_v31 = vmul.f32 0.7978846, %v9656_v0  ;;  %v9657_v63 = vadd.f32 %v9593_v41, %v19321_v56  ;;  %v9659_v1 = vadd.f32 %v9595_v38, %v19325_v24  ;;  %v9468_v57 = vmul.f32 %v19353_v14, %v19353_v14 }
0x1bf5   : > { %v9658_v34 = vadd.f32 %v9594_v43, %v19330_v30  ;;  %v9469_v42 = vmul.f32 %v19357_v49, %v19357_v49  ;;  %v10011_v52 = vpack.c.bf16 %v19362_v13, %v19310_v48  ;;  %v19375_v53 = vadd.f32 %v19137_v5, %v18642_v22 }
0x1bf6   : > { %13679 = vtanh.f32 %v9720_v31  ;;  %v9721_v39 = vmul.f32 0.7978846, %v9657_v63  ;;  %v9723_v26 = vmul.f32 0.7978846, %v9659_v1  ;;  %v9532_v8 = vmul.f32 %v9468_v57, %v19353_v14 }
0x1bf7   : > { %v9722_v12 = vmul.f32 0.7978846, %v9658_v34  ;;  %v9533_v23 = vmul.f32 %v9469_v42, %v19357_v49  ;;  %v9471_v25 = vmul.f32 %v19375_v53, %v19375_v53  ;;  %v9830_v59 = vadd.f32 1.0, %v19208_v15 }
0x1bf8   : > { %13681 = vtanh.f32 %v9721_v39  ;;  %v9834_v35 = vadd.f32 1.0, %v19235_v62  ;;  %v13674_v60 = vpop.eup %13673  ;;  %v9596_v50 = vmul.f32 0.044715, %v9532_v8  ;;  %v9832_v5 = vadd.f32 1.0, %v19212_v29 }
0x1bf9   : > { %13683 = vtanh.f32 %v9723_v26  ;;  %v9597_v0 = vmul.f32 0.044715, %v9533_v23  ;;  %v9845_v41 = vadd.f32 1.0, %v13674_v60  ;;  %v9535_v38 = vmul.f32 %v9471_v25, %v19375_v53 }
0x1bfa   : > { %13685 = vtanh.f32 %v9722_v12  ;;  %v9894_v43 = vmul.f32 0.5, %v9830_v59  ;;  %v9660_v63 = vadd.f32 %v9596_v50, %v19353_v14  ;;  %v9898_v34 = vmul.f32 0.5, %v9834_v35 }
0x1bfb   : > { %v13676_v31 = vpop.eup %13675  ;;  %v9661_v1 = vadd.f32 %v9597_v0, %v19357_v49  ;;  %v9836_v15 = vadd.f32 1.0, %v19257_v44  ;;  %v9909_v62 = vmul.f32 0.5, %v9845_v41  ;;  %v9599_v42 = vmul.f32 0.044715, %v9535_v38  ;;  %v20137_v38 = vld [vmem:[#allocation28_spill] sm:$0xff] }
0x1bfc   : > { %v9847_v57 = vadd.f32 1.0, %v13676_v31  ;;  %v9958_v39 = vmul.f32 %v9894_v43, %v19058_v37  ;;  %v9724_v26 = vmul.f32 0.7978846, %v9660_v63  ;;  %v9962_v12 = vmul.f32 %v9898_v34, %v19107_v40  ;;  %v20139_v63 = vld [vmem:[#allocation70_spill] sm:$0xff] }
0x1bfd   : > { %v9725_v29 = vmul.f32 0.7978846, %v9661_v1  ;;  %v9896_v8 = vmul.f32 0.5, %v9832_v5  ;;  %v19390_v23 = vpop.eup %13677  ;;  %v19393_v25 = vmul.f32 %v9909_v62, %v19271_v3  ;;  %v9663_v35 = vadd.f32 %v9599_v42, %v19375_v53 }
0x1bfe   : > { %v9911_v59 = vmul.f32 0.5, %v9847_v57  ;;  %v9900_v60 = vmul.f32 0.5, %v9836_v15  ;;  %13687 = vtanh.f32 %v9724_v26  ;;  %v10006_v44 = vpack.c.bf16 %v9962_v12, %v9958_v39 }
0x1bff   : > { %v9960_v50 = vmul.f32 %v9896_v8, %v19069_v58  ;;  %v19399_v37 = vadd.f32 %v19139_v19, %v18645_v2  ;;  %13689 = vtanh.f32 %v9725_v29  ;;  %v9727_v3 = vmul.f32 0.7978846, %v9663_v35 }
0x1c00   : > { %v19401_v0 = vpop.eup %13679  ;;  %v19404_v40 = vmul.f32 %v9911_v59, %v19281_v28  ;;  %v9964_v5 = vmul.f32 %v9900_v60, %v19122_v17  ;;  %10274 = vmatprep.mubr.bf16.mxu0 %v10006_v44  ;;  %v19411_v58 = vadd.f32 %v19142_v20, %v18648_v55  ;;  %v19415_v19 = vadd.f32 %v19144_v16, %v18639_v9  ;;  %v20140_v20 = vld [vmem:[#allocation69_spill] sm:$0xff] }
0x1c01   : > { %v9470_v41 = vmul.f32 %v19399_v37, %v19399_v37  ;;  %v19419_v28 = vadd.f32 %v20137_v38, %v18642_v22  ;;  %13691 = vtanh.f32 %v9727_v3  ;;  %v20138_v17 = vpack.c.bf16 %v19238_v54, %v19219_v36 }
0x1c02   : > { %v13682_v43 = vpop.eup %13681  ;;  %v10008_v31 = vpack.c.bf16 %v9964_v5, %v9960_v50  ;;  %v19426_v1 = vadd.f32 %v20139_v63, %v18645_v2  ;;  %v19430_v34 = vadd.f32 %v20140_v20, %v18648_v55  ;;  %v9472_v15 = vmul.f32 %v19411_v58, %v19411_v58 }
0x1c03   : > { %10275 = vmatmul.mubr.bf16.gmra.mrb[48].mxu0 %v20138_v17  ;;  %v13684_v9 = vpop.eup %13683  ;;  %v9849_v16 = vadd.f32 1.0, %v13682_v43  ;;  %v9534_v22 = vmul.f32 %v9470_v41, %v19399_v37  ;;  %v9473_v62 = vmul.f32 %v19415_v19, %v19415_v19  ;;  %v9475_v2 = vmul.f32 %v19419_v28, %v19419_v28 }
0x1c04   : > { %v13686_v36 = vpop.eup %13685  ;;  %v9851_v54 = vadd.f32 1.0, %v13684_v9  ;;  %10356 = vmatprep.mubr.bf16.mxu1 %v10008_v31  ;;  %v9474_v55 = vmul.f32 %v19426_v1, %v19426_v1  ;;  %v9476_v57 = vmul.f32 %v19430_v34, %v19430_v34  ;;  %v9536_v26 = vmul.f32 %v9472_v15, %v19411_v58 }
0x1c05   : > { %v9913_v42 = vmul.f32 0.5, %v9849_v16  ;;  %v9598_v39 = vmul.f32 0.044715, %v9534_v22  ;;  %v20141_v29 = vpack.c.bf16 %v19246_v32, %v19228_v46  ;;  %v9537_v12 = vmul.f32 %v9473_v62, %v19415_v19 }
0x1c06   : > { %v9915_v8 = vmul.f32 0.5, %v9851_v54  ;;  %v9539_v59 = vmul.f32 %v9475_v2, %v19419_v28  ;;  %v9538_v35 = vmul.f32 %v9474_v55, %v19426_v1  ;;  %v9540_v60 = vmul.f32 %v9476_v57, %v19430_v34  ;;  %v20142_v55 = vld [vmem:[#allocation71_spill] sm:$0xff] }
0x1c07   : > { %10357 = vmatmul.mubr.bf16.gmra.mrb[52].mxu1 %v20141_v29  ;;  %v19452_v44 = vmul.f32 %v9913_v42, %v19321_v56  ;;  %v9662_v50 = vadd.f32 %v9598_v39, %v19399_v37  ;;  %v9600_v3 = vmul.f32 0.044715, %v9536_v26  ;;  %v9601_v5 = vmul.f32 0.044715, %v9537_v12 }
0x1c08   : > { %v19456_v41 = vmul.f32 %v9915_v8, %v19325_v24  ;;  %v9603_v46 = vmul.f32 0.044715, %v9539_v59  ;;  %v9602_v32 = vmul.f32 0.044715, %v9538_v35  ;;  %v9604_v38 = vmul.f32 0.044715, %v9540_v60  ;;  %v13688_v43 = vpop.eup %13687 }
0x1c09   : > { %v10013_v31 = vpack.c.bf16 %v19452_v44, %v19393_v25  ;;  %v9726_v17 = vmul.f32 0.7978846, %v9662_v50  ;;  %v9664_v63 = vadd.f32 %v9600_v3, %v19411_v58  ;;  %v9665_v56 = vadd.f32 %v9601_v5, %v19415_v19  ;;  %v13690_v20 = vpop.eup %13689 }
0x1c0a   : > { %v10015_v9 = vpack.c.bf16 %v19456_v41, %v19404_v40  ;;  %v9667_v16 = vadd.f32 %v9603_v46, %v19419_v28  ;;  %v9666_v24 = vadd.f32 %v9602_v32, %v19426_v1  ;;  %v9668_v22 = vadd.f32 %v9604_v38, %v19430_v34  ;;  %v20155_v40 = vld [vmem:[#allocation34_spill] sm:$0xff]  ;;  %v20158_v41 = vld [vmem:[#allocation67_spill] sm:$0xff] }
0x1c0b   : > { %v9853_v15 = vadd.f32 1.0, %v13690_v20  ;;  %13693 = vtanh.f32 %v9726_v17  ;;  %v9728_v62 = vmul.f32 0.7978846, %v9664_v63  ;;  %v9729_v54 = vmul.f32 0.7978846, %v9665_v56  ;;  %v13692_v2 = vpop.eup %13691  ;;  %v20143_v56 = vld [vmem:[#allocation72_spill] sm:$0xff] }
0x1c0c   : > { %13695 = vtanh.f32 %v20142_v55  ;;  %v9731_v57 = vmul.f32 0.7978846, %v9667_v16  ;;  %v9730_v42 = vmul.f32 0.7978846, %v9666_v24  ;;  %v9732_v39 = vmul.f32 0.7978846, %v9668_v22 }
0x1c0d   : > { %13697 = vtanh.f32 %v9728_v62  ;;  %v9838_v26 = vadd.f32 1.0, %v19285_v47  ;;  %v9842_v29 = vadd.f32 1.0, %v19349_v21  ;;  %v9840_v12 = vadd.f32 1.0, %v19290_v61 }
0x1c0e   : > { %13699 = vtanh.f32 %v9729_v54  ;;  %v9844_v8 = vadd.f32 1.0, %v19359_v27  ;;  %v9917_v59 = vmul.f32 0.5, %v9853_v15  ;;  %v9855_v5 = vadd.f32 1.0, %v13692_v2  ;;  %v20144_v15 = vld [vmem:[#allocation73_spill] sm:$0xff] }
0x1c0f   : > { %13701 = vtanh.f32 %v9731_v57  ;;  %v9902_v35 = vmul.f32 0.5, %v9838_v26  ;;  %v9906_v60 = vmul.f32 0.5, %v9842_v29  ;;  %v9904_v50 = vmul.f32 0.5, %v9840_v12 }
0x1c10   : > { %13703 = vtanh.f32 %v9730_v42  ;;  %v9908_v3 = vmul.f32 0.5, %v9844_v8  ;;  %v9846_v47 = vadd.f32 1.0, %v19390_v23  ;;  %v9850_v27 = vadd.f32 1.0, %v13686_v36 }
0x1c11   : > { %13705 = vtanh.f32 %v9732_v39  ;;  %v9966_v46 = vmul.f32 %v9902_v35, %v19180_v18  ;;  %v9970_v32 = vmul.f32 %v9906_v60, %v19243_v45  ;;  %v9968_v21 = vmul.f32 %v9904_v50, %v19188_v4  ;;  %v20147_v35 = vld [vmem:[#allocation52_spill] sm:$0xff] }
0x1c12   : > { %v9972_v61 = vmul.f32 %v9908_v3, %v19250_v33  ;;  %v9910_v38 = vmul.f32 0.5, %v9846_v47  ;;  %v9848_v17 = vadd.f32 1.0, %v19401_v0  ;;  %v9852_v63 = vadd.f32 1.0, %v13688_v43  ;;  %v20145_v43 = vld [vmem:[#allocation35_spill] sm:$0xff] }
0x1c13   : > { %v9800_v20 = vadd.f32 1.0, %v20143_v56  ;;  %v10010_v16 = vpack.c.bf16 %v9970_v32, %v9966_v46  ;;  %v9914_v22 = vmul.f32 0.5, %v9850_v27  ;;  %v9804_v18 = vadd.f32 1.0, %v20144_v15  ;;  %v20150_v27 = vld [vmem:[#allocation31_spill] sm:$0xff] }
0x1c14   : > { %v10012_v24 = vpack.c.bf16 %v9972_v61, %v9968_v21  ;;  %v9974_v23 = vmul.f32 %v9910_v38, %v19294_v6  ;;  %v9912_v45 = vmul.f32 0.5, %v9848_v17  ;;  %v9916_v54 = vmul.f32 0.5, %v9852_v63  ;;  %v20149_v21 = vld [vmem:[#allocation53_spill] sm:$0xff] }
0x1c15   : > { %v13694_v62 = vpop.eup %13693  ;;  %v9864_v4 = vmul.f32 0.5, %v9800_v20  ;;  %10280 = vmatprep.mubr.bf16.mxu0 %v10010_v16  ;;  %v9978_v33 = vmul.f32 %v9914_v22, %v19330_v30  ;;  %v9868_v36 = vmul.f32 0.5, %v9804_v18  ;;  %v9808_v55 = vadd.f32 1.0, %v20145_v43  ;;  %v20146_v30 = vld [vmem:[#allocation75_spill] sm:$0xff]  ;;  %v20151_v20 = vld [vmem:[#allocation32_spill] sm:$0xff] }
0x1c16   : > { %v13696_v2 = vpop.eup %13695  ;;  %10362 = vmatprep.mubr.bf16.mxu1 %v10012_v24  ;;  %v9854_v0 = vadd.f32 1.0, %v13694_v62  ;;  %v9981_v42 = vmul.f32 %v9917_v59, %v19357_v49  ;;  %10281 = vmatmul.mubr.bf16.gmra.mrb[52].mxu0 %v10009_v51  ;;  %v9976_v6 = vmul.f32 %v9912_v45, %v19307_v10  ;;  %v9980_v39 = vmul.f32 %v9916_v54, %v19353_v14  ;;  %v20148_v49 = vld [vmem:[#allocation51_spill] sm:$0xff] }
0x1c17   : > { %v13698_v57 = vpop.eup %13697  ;;  %10363 = vmatmul.mubr.bf16.gmra.mrb[56].mxu1 %v10011_v52  ;;  %v9812_v26 = vadd.f32 1.0, %v20146_v30  ;;  %v10014_v12 = vpack.c.bf16 %v9978_v33, %v9974_v23  ;;  %v9928_v60 = vmul.f32 %v9864_v4, %v20147_v35  ;;  %v9932_v59 = vmul.f32 %v9868_v36, %v20148_v49  ;;  %v20152_v36 = vld [vmem:[#allocation74_spill] sm:$0xff] }
0x1c18   : > { %v13700_v29 = vpop.eup %13699  ;;  %v9856_v8 = vadd.f32 1.0, %v13698_v57  ;;  %v10016_v7 = vpack.c.bf16 %v9980_v39, %v9976_v6  ;;  %v9872_v51 = vmul.f32 0.5, %v9808_v55  ;;  %v9919_v13 = vmul.f32 0.5, %v9855_v5  ;;  %v20153_v55 = vld [vmem:[#allocation76_spill] sm:$0xff]  ;;  %v20161_v57 = vld [vmem:[#allocation46_spill] sm:$0xff] }
0x1c19   : > { %v13702_v50 = vpop.eup %13701  ;;  %v9857_v11 = vadd.f32 1.0, %v13700_v29  ;;  %v9876_v3 = vmul.f32 0.5, %v9812_v26  ;;  %10286 = vmatprep.mubr.bf16.mxu0 %v10014_v12  ;;  %v9918_v10 = vmul.f32 0.5, %v9854_v0  ;;  %v9992_v14 = vpack.c.bf16 %v9932_v59, %v9928_v60 }
0x1c1a   : > { %v13704_v48 = vpop.eup %13703  ;;  %v9859_v52 = vadd.f32 1.0, %v13702_v50  ;;  %10368 = vmatprep.mubr.bf16.mxu1 %v10016_v7  ;;  %v9936_v61 = vmul.f32 %v9872_v51, %v20149_v21  ;;  %v9920_v56 = vmul.f32 0.5, %v9856_v8  ;;  %v9816_v16 = vadd.f32 1.0, %v20151_v20 }
0x1c1b   : > { %v13706_v46 = vpop.eup %13705  ;;  %v9921_v47 = vmul.f32 0.5, %v9857_v11  ;;  %v9858_v32 = vadd.f32 1.0, %v13704_v48  ;;  %v9940_v38 = vmul.f32 %v9876_v3, %v20150_v27  ;;  %v9820_v15 = vadd.f32 1.0, %v13696_v2 }
0x1c1c   : > { %v9923_v17 = vmul.f32 0.5, %v9859_v52  ;;  %v9860_v63 = vadd.f32 1.0, %v13706_v46  ;;  %v9983_v18 = vmul.f32 %v9919_v13, %v19375_v53  ;;  %v9880_v45 = vmul.f32 0.5, %v9816_v16 }
0x1c1d   : > { %v9985_v24 = vmul.f32 %v9921_v47, %v19415_v19  ;;  %v9922_v5 = vmul.f32 0.5, %v9858_v32  ;;  %v9996_v22 = vpack.c.bf16 %v9940_v38, %v9936_v61  ;;  %v9982_v19 = vmul.f32 %v9918_v10, %v19399_v37  ;;  %v20154_v37 = vld [vmem:[#allocation66_spill] sm:$0xff] }
0x1c1e   : > { %v9987_v62 = vmul.f32 %v9923_v17, %v19419_v28  ;;  %v9924_v23 = vmul.f32 0.5, %v9860_v63  ;;  %10287 = vmatmul.mubr.bf16.gmra.mrb[56].mxu0 %v10013_v31  ;;  %v9884_v2 = vmul.f32 0.5, %v9820_v15  ;;  %v9984_v53 = vmul.f32 %v9920_v56, %v19411_v58  ;;  %v20157_v58 = vld [vmem:[#allocation42_spill] sm:$0xff] }
0x1c1f   : > { %v10017_v54 = vpack.c.bf16 %v9985_v24, %v9981_v42  ;;  %10369 = vmatmul.mubr.bf16.gmra.mrb[60].mxu1 %v10015_v9  ;;  %v9986_v4 = vmul.f32 %v9922_v5, %v19426_v1  ;;  %v9944_v43 = vmul.f32 %v9880_v45, %v20152_v36  ;;  %v20156_v1 = vpack.c.bf16 %v20154_v37, %v20155_v40  ;;  %v20160_v9 = vld [vmem:[#allocation65_spill] sm:$0xff] }
0x1c20   : > { %v10019_v33 = vpack.c.bf16 %v9987_v62, %v9983_v18  ;;  %v9988_v28 = vmul.f32 %v9924_v23, %v19430_v34  ;;  %v9948_v25 = vmul.f32 %v9884_v2, %v20153_v55  ;;  %v20159_v34 = vpack.c.bf16 %v20157_v58, %v20158_v41 }
0x1c21   : > { %v10018_v0 = vpack.c.bf16 %v9986_v4, %v9982_v19  ;;  %v20162_v42 = vpack.c.bf16 %v20160_v9, %v20161_v57 }
0x1c22   : > { %v10020_v44 = vpack.c.bf16 %v9988_v28, %v9984_v53  ;;  %v10000_v31 = vpack.c.bf16 %v9948_v25, %v9944_v43 }
0x1c23   : > { %10292 = vmatprep.mubr.bf16.mxu0 %v10018_v0 }
0x1c24   : > { %10374 = vmatprep.mubr.bf16.mxu1 %v10020_v44  ;;  %v13718_v44 = vld [vmem:[%s19589_s9 + $0x10] sm:$0xff] }
0x1c26   : > { %10293 = vmatmul.mubr.bf16.gmra.mrb[60].mxu0 %v10017_v54 }
0x1c27   : > { %10375 = vmatmul.mubr.bf16.gmra.mrb[80].mxu1 %v10019_v33  ;;  %10331 = vmatprep.mubr.bf16.mxu0 %v9992_v14 }
0x1c2e   : > { %10332 = vmatmul.mubr.bf16.vlgmr.msra.gmra.mrb[64].mxu0 %v20156_v1 }
0x1c2f   : > { %10338 = vmatprep.mubr.bf16.mxu0 %v9996_v22 }
0x1c36   : > { %10339 = vmatmul.mubr.bf16.gmra.mrb[68].mxu0 %v20159_v34 }
0x1c37   : > { %10344 = vmatprep.mubr.bf16.mxu0 %v10000_v31  ;;  %v20163_v31 = vld [vmem:[#allocation18_spill] sm:$0xff] }
0x1c38   : > { %v20164_v37 = vsub.s32 6, %v20163_v31 }
0x1c3a   : > { %v10024_v40 = vrot.slane %v13718_v44, %v20164_v37 }
0x1c3e   : > { %10345 = vmatmul.mubr.bf16.gmra.mrb[72].mxu0 %v20162_v42 }
0x1c92   : > { %v11438_v6 = vpop.f32.mrb[32].mxu0 }
0x1c93   : > { %v11439_v39 = vpop.f32.mrb[33].mxu0 }
0x1c94   : > { %v11440_v30 = vadd.f32 %v11439_v39, %v11438_v6  ;;  %v11441_v26 = vpop.f32.mrb[34].mxu0  ;;  %v20165_v6 = vld [vmem:[#allocation45_spill] sm:$0xff] }
0x1c95   : > { %v11442_v29 = vpop.f32.mrb[35].mxu0 }
0x1c96   : > { %v10252_v41 = vadd.f32 %v11440_v30, %v10024_v40 }
0x1c9a   : > { %v11444_v12 = vpop.f32.mrb[36].mxu0 }
0x1c9b   : > { %v11445_v8 = vpop.f32.mrb[37].mxu0 }
0x1c9c   : > { %v11447_v35 = vpop.f32.mrb[38].mxu0 }
0x1c9d   : > { %v11448_v60 = vpop.f32.mrb[39].mxu0 }
0x1cab   : > { %v11450_v49 = vpop.f32.mrb[40].mxu0 }
0x1cac   : > { %v11451_v59 = vpop.f32.mrb[41].mxu0 }
0x1cad   : > { %v11453_v50 = vpop.f32.mrb[42].mxu0 }
0x1cae   : > { %v11454_v11 = vpop.f32.mrb[43].mxu0 }
0x1cbd   : > { %v11456_v7 = vpop.f32.mrb[44].mxu0 }
0x1cbe   : > { %v11457_v51 = vpop.f32.mrb[45].mxu0 }
0x1cbf   : > { %v11520_v3 = vpop.f32.mrb[48].mxu1  ;;  %v11459_v48 = vpop.f32.mrb[46].mxu0 }
0x1cc0   : > { %v11521_v13 = vpop.f32.mrb[49].mxu1  ;;  %v11460_v52 = vpop.f32.mrb[47].mxu0 }
0x1cc1   : > { %v11523_v10 = vpop.f32.mrb[50].mxu1  ;;  %v20166_v13 = vsub.s32 7, %v20163_v31 }
0x1cc2   : > { %v11524_v14 = vpop.f32.mrb[51].mxu1 }
0x1cc3   : > { %v10396_v52 = vrot.slane %v13718_v44, %v20166_v13 }
0x1cd6   : > { %v11462_v46 = vpop.f32.mrb[48].mxu0 }
0x1cd7   : > { %v11463_v47 = vpop.f32.mrb[49].mxu0  ;;  %v10909_v46 = vld [vmem:[%s19589_s9 + $0x18] ss:$0 sm:$0xff] }
0x1cd8   : > { %v11465_v32 = vpop.f32.mrb[50].mxu0 }
0x1cd9   : > { %v11466_v61 = vpop.f32.mrb[51].mxu0 }
0x1cda   : > { %v11526_v21 = vpop.f32.mrb[52].mxu1 }
0x1cdb   : > { %v11527_v27 = vpop.f32.mrb[53].mxu1 }
0x1cdc   : > { %v11529_v38 = vpop.f32.mrb[54].mxu1 }
0x1cdd   : > { %v11530_v17 = vpop.f32.mrb[55].mxu1 }
0x1ce9   : > { %v11468_v63 = vpop.f32.mrb[52].mxu0 }
0x1cea   : > { %v11532_v56 = vpop.f32.mrb[56].mxu1  ;;  %v11469_v20 = vpop.f32.mrb[53].mxu0 }
0x1ceb   : > { %v11533_v16 = vpop.f32.mrb[57].mxu1  ;;  %v11471_v24 = vpop.f32.mrb[54].mxu0 }
0x1cec   : > { %v11535_v5 = vpop.f32.mrb[58].mxu1  ;;  %v11472_v22 = vpop.f32.mrb[55].mxu0 }
0x1ced   : > { %v11536_v15 = vpop.f32.mrb[59].mxu1 }
0x1cf1   : > { %v11474_v18 = vpop.f32.mrb[56].mxu0 }
0x1cf2   : > { %v11538_v62 = vpop.f32.mrb[60].mxu1  ;;  %v11475_v23 = vpop.f32.mrb[57].mxu0 }
0x1cf3   : > { %v11539_v45 = vpop.f32.mrb[61].mxu1  ;;  %v11477_v54 = vpop.f32.mrb[58].mxu0 }
0x1cf4   : > { %v11541_v19 = vpop.f32.mrb[62].mxu1  ;;  %v11478_v4 = vpop.f32.mrb[59].mxu0 }
0x1cf5   : > { %v11542_v2 = vpop.f32.mrb[63].mxu1 }
0x1cf9   : > { %v11480_v33 = vpop.f32.mrb[60].mxu0 }
0x1cfa   : > { %v11544_v53 = vpop.f32.mrb[80].mxu1  ;;  %v11481_v28 = vpop.f32.mrb[61].mxu0 }
0x1cfb   : > { %v11545_v0 = vpop.f32.mrb[81].mxu1  ;;  %v11483_v36 = vpop.f32.mrb[62].mxu0 }
0x1cfc   : > { %v11547_v43 = vpop.f32.mrb[82].mxu1  ;;  %v11484_v55 = vpop.f32.mrb[63].mxu0 }
0x1cfd   : > { %v11548_v25 = vpop.f32.mrb[83].mxu1 }
0x1d01   : > { %v11502_v1 = vpop.f32.mrb[64].mxu0 }
0x1d02   : > { %v11503_v58 = vpop.f32.mrb[65].mxu0 }
0x1d03   : > { %v11504_v34 = vadd.f32 %v11503_v58, %v11502_v1  ;;  %v11505_v9 = vpop.f32.mrb[66].mxu0 }
0x1d04   : > { %v11506_v57 = vpop.f32.mrb[67].mxu0 }
0x1d05   : > { %v10334_v42 = vadd.f32 %v11504_v34, %v10252_v41 }
0x1d07   : > { %v10381_v39 = vadd.f32 %v10334_v42, %v20165_v6 }
0x1d09   : > { %v11508_v26 = vpop.f32.mrb[68].mxu0  ;;  %10382 = vadd.xlane.f32.xlu0 %v10381_v39 }
0x1d0a   : > { %v11509_v29 = vpop.f32.mrb[69].mxu0 }
0x1d0b   : > { %v11511_v12 = vpop.f32.mrb[70].mxu0 }
0x1d0c   : > { %v11512_v8 = vpop.f32.mrb[71].mxu0 }
0x1d11   : > { %v11514_v35 = vpop.f32.mrb[72].mxu0 }
0x1d12   : > { %v11515_v60 = vpop.f32.mrb[73].mxu0 }
0x1d13   : > { %v11517_v49 = vpop.f32.mrb[74].mxu0 }
0x1d14   : > { %v11518_v59 = vpop.f32.mrb[75].mxu0 }
0x1d96   : > { %v10383_v50 = vpop.xlane.xlu0 %10382 }
0x1d97   : > { %v10384_v11 = vmul.f32 0.0078125, %v10383_v50 }
0x1d99   : > { %v10385_v30 = vsub.f32 %v10381_v39, %v10384_v11 }
0x1d9b   : > { %v10386_v7 = vmul.f32 %v10385_v30, %v10385_v30 }
0x1d9d   : > { %10387 = vadd.xlane.f32.xlu1 %v10386_v7 }
0x1e2a   : > { %v10388_v51 = vpop.xlane.xlu1 %10387 }
0x1e2b   : > { %v10389_v3 = vmul.f32 0.0078125, %v10388_v51 }
0x1e2d   : > { %v10390_v48 = vadd.f32 1e-12, %v10389_v3 }
0x1e2f   : > { %13707 = vrsqrt.f32 %v10390_v48 }
0x1e39   : > { %v13708_v10 = vpop.eup %13707 }
0x1e3a   : > { %v10392_v14 = vmul.f32 %v13708_v10, %v10385_v30 }
0x1e3c   : > { %v10397_v47 = vmul.f32 %v10396_v52, %v10392_v14 }
0x1e3e   : > { %v10402_v32 = vadd.f32 %v10909_v46, %v10397_v47 }
0x1e40   : > { %10403 = vst [vmem:[%s433_s30] sm:$0x1] %v10402_v32 }
0x1e41   : > { %13816 = shalt.err (!%p13813_p11)
}
0x1e42   : > { %s13817_s26 = scalar_lea.hbm %s19538_s25, 16  ;;  %s13821_s20 = scalar_lea.hbm %s19591_s11, 32 }
0x1e43   : > { %p13818_p5 = scmp.ne.s32.totalorder %s19538_s25, %s13817_s26  ;;  %p13822_p9 = scmp.lt.u32.totalorder %s19538_s25, %s19591_s11 }
0x1e44   : > { %p13823_p10 = scmp.lt.u32.totalorder %s13821_s20, %s13817_s26  ;;  %p13825_p12 = scmp.lt.u32.totalorder %s13817_s26, %s19538_s25 }
0x1e45   : > { %p13819_p0 = pnand %p13818_p5, %p20167_p1 }
0x1e46   : > { %p13824_p13 = por %p13823_p10, %p13822_p9 }
0x1e47   : > { %p13820_p6 = pneg %p13819_p0 }
0x1e48   : > { %p13826_p2 = por %p13825_p12, %p13824_p13 }
0x1e4a   : > { %p13827_p3 = pnand %p13826_p2, %p13820_p6 }
0x1e4c   : > { %13830 = shalt.err (!%p13827_p3)
}
0x1e4d   : > { %12498 = dma.vmem_to_hbm [thread:$0]  (%p20167_p1), %s19540_s17, 16, %s19538_s25, %s10405_s14  }
0x1e4e PF: > { %s20168_s6 = sld [smem:[#allocation14_spill]]  ;;  %s20169_s22 = sld [smem:[#allocation12_spill]] }
0x1e4f   : > { %s20170_s30 = sld [smem:[#allocation17_spill]] }
0x1e54   : > { %p12520_p4 = scmp.ge.s32.totalorder %s20168_s6, 2  ;;  %s10429_s19 = sand.u32 1, %s20169_s22  }
0x1e55   : > { %p20171_p7 = scmp.ne.s32.totalorder %s20170_s30, 0  ;;  %s10430_s24 = scalar_lea.sflag [#allocation4], %s10429_s19 }
0x1e57   : > { %p12511_p8 = pnand %p12520_p4, %p20171_p7 }
0x1e59   : > { %13856 = dma.done.wait (!%p12511_p8), %s10430_s24, 16  }
0x1e5a   : > { %13858 = vsyncadd (!%p12511_p8), %s10430_s24, 4294967280  ;;  %s20172_s20 = sld [smem:[#allocation15_spill]]  ;;  %s20173_s16 = sld [smem:[#allocation13_spill]] }
0x1e5b   : > { %s20174_s19 = sld [smem:[#allocation16_spill]]  ;;  %s20175_s17 = smov %s13865_s18 }
0x1e60   : > { %p23_p11 = scmp.ge.s32.totalorder %s20172_s20, 4   ;;  %s20176_s18 = smov %s20173_s16 }
0x1e62   :  { %25 = sbr.rel (!%p23_p11) target bundleno = 7 (0x7), region = 121 }
0x1e69   :  { %10434 = vsyncpa [#allocation3], 1 }
0x1e6a   :  { %10436 = vsyncpa [#allocation3 + $0x1], 1 }
0x1e6b   :  { %10437 = vsyncpa [#allocation6], 1 }
0x1e6c   :  { %10438 = vsyncpa [#allocation4], 1 }
0x1e6d   :  { %10440 = vsyncpa [#allocation4 + $0x1], 1 }

</bundles_post_ra>
